<compile_context>
chip_gen: v7x
topology: tpu7x:2x2x1
jax: 0.10.0
libtpu: 0.0.40
codegen_flags: <defaults>
</compile_context>

<pallas_src>
import jax
import jax.numpy as jnp
from jax.experimental import pallas as pl
from jax.experimental.pallas import tpu as pltpu

# Model hyper-parameters (CryptoSpeculationModel defaults).
H = 32                 # lstm_hidden_dim
E = 72                 # embed_dims[0]
LAYERS = 2             # lstm_layers (bidirectional)
EPS = 1e-5             # nn.LayerNorm default eps
EMBED_DIMS = [72, 32, 8, 4]
LSTM_OUT = 1024
OUT_DIM = 4
D_TRUE = LSTM_OUT + EMBED_DIMS[1] + EMBED_DIMS[2] + 1    # 1065 (head concat width)
D_PAD = 1152                                             # 9 * 128, lane-aligned
OUT_PAD = 128                                            # lane-dense output store


# ----------------------------------------------------------------------------
# Fused kernel (built per static (B, L))
# ----------------------------------------------------------------------------
def _make_kernel(B, L):
    def kernel(xcat0_ref, xuser_ref, xsrc_ref, xint_ref,
               w0_ref, u0_ref, b0_ref,
               w1_ref, u1_ref, b1_ref,
               wr_ref, br_ref, wu_ref, bu_ref, ws_ref, bs_ref,
               g0_ref, t0_ref, wf0_ref, bf0_ref,
               g1_ref, t1_ref, wf1_ref, bf1_ref,
               g2_ref, t2_ref, wf2_ref, bf2_ref,
               wo_ref, bo_ref,
               out_ref,
               xcat1_ref, yflat_ref):

        def bilstm(xp, u, write_h):
            # xp: (L*B, 8H) time-major input projections (+bias), gate columns
            #     interleaved as [i_f i_b | f_f f_b | o_f o_b | g_f g_b].
            # u : (2H, 8H) block-diagonal recurrent weights (same column order).
            h = jnp.zeros((B, 2 * H), jnp.float32)
            c = jnp.zeros((B, 2 * H), jnp.float32)
            for s in range(L):                       # static unroll, L is small
                gates = xp[s * B:(s + 1) * B, :] + jnp.dot(
                    h, u, preferred_element_type=jnp.float32)
                sig = jax.nn.sigmoid(gates[:, :6 * H])   # i, f, o (both dirs)
                g = jnp.tanh(gates[:, 6 * H:])           # g (both dirs)
                c = sig[:, 2 * H:4 * H] * c + sig[:, 0:2 * H] * g
                h = sig[:, 4 * H:6 * H] * jnp.tanh(c)    # [h_fwd(s) | h_bwd(L-1-s)]
                write_h(s, h)

        # ---------------- LSTM layer 0 (fused bidirectional) ----------------
        xp0 = jnp.dot(xcat0_ref[...], w0_ref[...],
                      preferred_element_type=jnp.float32) + b0_ref[...]

        def write0(s, h):
            r = L - 1 - s
            hf = h[:, 0:H]            # forward output at time s
            hb = h[:, H:2 * H]        # backward output at time L-1-s
            # layer-1 stacked input, time-major rows:
            #   cols [0:2H]  = y0(t)        (current time)
            #   cols [2H:4H] = y0(L-1-t)    (time-reversed copy)
            xcat1_ref[pl.ds(s * B, B), pl.ds(0, H)] = hf
            xcat1_ref[pl.ds(r * B, B), pl.ds(2 * H, H)] = hf
            xcat1_ref[pl.ds(r * B, B), pl.ds(H, H)] = hb
            xcat1_ref[pl.ds(s * B, B), pl.ds(3 * H, H)] = hb

        bilstm(xp0, u0_ref[...], write0)

        # ---------------- LSTM layer 1 (fused bidirectional) ----------------
        xp1 = jnp.dot(xcat1_ref[...], w1_ref[...],
                      preferred_element_type=jnp.float32) + b1_ref[...]

        def write1(s, h):
            r = L - 1 - s
            # write directly in torch.flatten(x_lstm, start_dim=1) order:
            # column = t * 2H + dir * H
            yflat_ref[:, pl.ds(s * 2 * H, H)] = h[:, 0:H]
            yflat_ref[:, pl.ds(r * 2 * H + H, H)] = h[:, H:2 * H]

        bilstm(xp1, u1_ref[...], write1)

        # ------------------------------ head --------------------------------
        def linear(x, w_ref, b_ref):
            return jnp.dot(x, w_ref[...], preferred_element_type=jnp.float32) + b_ref[...]

        x_sem = jax.nn.relu(linear(yflat_ref[...], wr_ref, br_ref))     # (B, 1024)
        x_u = jax.nn.relu(linear(xuser_ref[...], wu_ref, bu_ref))       # (B, 32)
        x_s = jax.nn.relu(linear(xsrc_ref[...], ws_ref, bs_ref))        # (B, 8)
        pad = jnp.zeros((B, D_PAD - D_TRUE), jnp.float32)
        x = jnp.concatenate([x_sem, x_u, x_s, xint_ref[...], pad], axis=1)  # (B, 1152)

        # LayerNorm over the true 1065 features: padded lanes are zero, padded
        # gamma/beta and padded fc0 K-rows are zero -> numerics unchanged.
        inv_n = 1.0 / float(D_TRUE)
        mu = jnp.sum(x, axis=-1, keepdims=True) * inv_n
        var = jnp.sum(x * x, axis=-1, keepdims=True) * inv_n - mu * mu
        x = (x - mu) * jax.lax.rsqrt(var + EPS) * g0_ref[...] + t0_ref[...]
        x = jax.nn.relu(linear(x, wf0_ref, bf0_ref))                    # (B, 512)

        for g_ref, t_ref, wf_ref, bf_ref in ((g1_ref, t1_ref, wf1_ref, bf1_ref),
                                             (g2_ref, t2_ref, wf2_ref, bf2_ref)):
            mu = jnp.mean(x, axis=-1, keepdims=True)
            var = jnp.mean((x - mu) ** 2, axis=-1, keepdims=True)
            x = (x - mu) * jax.lax.rsqrt(var + EPS) * g_ref[...] + t_ref[...]
            x = jax.nn.relu(linear(x, wf_ref, bf_ref))                  # Dropout == identity

        out_ref[...] = linear(x, wo_ref, bo_ref)    # (B, 128) lane-dense; wrapper slices [:, :4]

    return kernel


# ----------------------------------------------------------------------------
# Parameter preparation: PyTorch-layout params -> kernel layout (done once)
# ----------------------------------------------------------------------------
def prepare_params(params):
    f32 = jnp.float32
    prep = {"embed": params["embed"].astype(f32)}

    def build_layer(p_f, p_b, in_dim):
        # Gate columns interleaved: [i_f i_b | f_f f_b | o_f o_b | g_f g_b]
        # PyTorch row order inside W_ih/W_hh is (i, f, g, o).
        gate_src = (0, 1, 3, 2)     # new (i, f, o, g) -> PyTorch index
        W = jnp.zeros((2 * in_dim, 8 * H), f32)   # rows [0:in]=fwd x(t), [in:2in]=bwd x(L-1-t)
        U = jnp.zeros((2 * H, 8 * H), f32)        # block-diagonal per direction
        bias = jnp.zeros((1, 8 * H), f32)         # bih + bhh folded in
        for d, p in enumerate((p_f, p_b)):
            wih_t = p["wih"].T.astype(f32)        # (in_dim, 4H)
            whh_t = p["whh"].T.astype(f32)        # (H, 4H)
            b = (p["bih"] + p["bhh"]).reshape(4 * H).astype(f32)
            for gnew, gsrc in enumerate(gate_src):
                col = gnew * 2 * H + d * H
                W = W.at[d * in_dim:(d + 1) * in_dim, col:col + H].set(
                    wih_t[:, gsrc * H:(gsrc + 1) * H])
                U = U.at[d * H:(d + 1) * H, col:col + H].set(
                    whh_t[:, gsrc * H:(gsrc + 1) * H])
                bias = bias.at[0, col:col + H].set(b[gsrc * H:(gsrc + 1) * H])
        return W, U, bias

    lstm = params["lstm"]
    prep["W0"], prep["U0"], prep["b0"] = build_layer(lstm[(0, 0)], lstm[(0, 1)], E)
    prep["W1"], prep["U1"], prep["b1"] = build_layer(lstm[(1, 0)], lstm[(1, 1)], 2 * H)

    # Head weights: pre-transposed to (in, out); biases (1, out).
    prep["reduce_w"] = params["reduce_w"].T.astype(jnp.float32)     # (512, 1024)
    prep["reduce_b"] = params["reduce_b"].astype(jnp.float32)
    prep["user_w"] = params["user_w"].T.astype(jnp.float32)
    prep["user_b"] = params["user_b"].astype(jnp.float32)
    prep["source_w"] = params["source_w"].T.astype(jnp.float32)
    prep["source_b"] = params["source_b"].astype(jnp.float32)

    # Block 0: pad 1065 -> 1152 (zero gamma/beta tail + zero extra K rows of fc0).
    prep["ln0_g"] = jnp.zeros((1, D_PAD), jnp.float32).at[:, :D_TRUE].set(params["ln0_g"])
    prep["ln0_b"] = jnp.zeros((1, D_PAD), jnp.float32).at[:, :D_TRUE].set(params["ln0_b"])
    prep["fc0_w"] = jnp.zeros((D_PAD, 512), jnp.float32).at[:D_TRUE, :].set(params["fc0_w"].T)
    prep["fc0_b"] = params["fc0_b"].astype(jnp.float32)

    prep["ln1_g"], prep["ln1_b"] = params["ln1_g"], params["ln1_b"]
    prep["fc1_w"], prep["fc1_b"] = params["fc1_w"].T.astype(jnp.float32), params["fc1_b"]
    prep["ln2_g"], prep["ln2_b"] = params["ln2_g"], params["ln2_b"]
    prep["fc2_w"], prep["fc2_b"] = params["fc2_w"].T.astype(jnp.float32), params["fc2_b"]

    # Output layer: pad 4 -> 128 lanes for a dense store.
    prep["out_w"] = jnp.zeros((32, OUT_PAD), jnp.float32).at[:, :OUT_DIM].set(params["out_w"].T)
    prep["out_b"] = jnp.zeros((1, OUT_PAD), jnp.float32).at[:, :OUT_DIM].set(params["out_b"])
    return prep


# ----------------------------------------------------------------------------
# Forward wrapper (single fused pallas_call)
# ----------------------------------------------------------------------------
@jax.jit
def crypto_speculation_forward(prep, x_content, x_user, x_source, x_interaction):
    x_embed = jnp.take(prep["embed"], x_content, axis=0)          # (B, L, E)
    B, L, Edim = x_embed.shape
    # Time-major stacked input [x(t) | x(L-1-t)] for the fused bidirectional projection.
    x_tm = jnp.transpose(x_embed, (1, 0, 2))                       # (L, B, E)
    x_cat0 = jnp.concatenate([x_tm, x_tm[::-1]], axis=-1).reshape(L * B, 2 * Edim)

    args = (x_cat0, x_user, x_source, x_interaction,
            prep["W0"], prep["U0"], prep["b0"],
            prep["W1"], prep["U1"], prep["b1"],
            prep["reduce_w"], prep["reduce_b"],
            prep["user_w"], prep["user_b"],
            prep["source_w"], prep["source_b"],
            prep["ln0_g"], prep["ln0_b"], prep["fc0_w"], prep["fc0_b"],
            prep["ln1_g"], prep["ln1_b"], prep["fc1_w"], prep["fc1_b"],
            prep["ln2_g"], prep["ln2_b"], prep["fc2_w"], prep["fc2_b"],
            prep["out_w"], prep["out_b"])

    out_pad = pl.pallas_call(
        _make_kernel(B, L),
        out_shape=jax.ShapeDtypeStruct((B, OUT_PAD), jnp.float32),
        in_specs=[pl.BlockSpec(memory_space=pltpu.MemorySpace.VMEM) for _ in args],
        out_specs=pl.BlockSpec(memory_space=pltpu.MemorySpace.VMEM),
        scratch_shapes=[
            pltpu.VMEM((L * B, 4 * H), jnp.float32),     # layer-1 stacked input
            pltpu.VMEM((B, L * 2 * H), jnp.float32),     # flattened LSTM output
        ],
        # ~5 MiB resident; 32 MiB leaves headroom and fits v7x's 64 MiB physical VMEM.
        compiler_params=pltpu.CompilerParams(vmem_limit_bytes=32 << 20),
    )(*args)
    # TODO(synk): at B>8 on v7x, add a batch grid axis with dimension_semantics=("parallel",)
    # to engage the second TensorCore; single-core is right at this size.
    # TODO(synk): LSTM carry state (self.lstm_hidden / self.lstm_cell) is not returned
    # (output-equivalent for a single stateless call).
    return out_pad[:, :OUT_DIM]


# ----------------------------------------------------------------------------
# Deterministic synthetic parameters (PyTorch conventions / shapes)
# ----------------------------------------------------------------------------
def init_params(key, vocab, dom_user, dom_source, L):
    fc_dims = [D_TRUE, 512, 128, 32]

    def nrm(k, shape, scale=0.05):
        return (scale * jax.random.normal(k, shape)).astype(jnp.float32)

    keys = iter(jax.random.split(key, 64))
    params = {"embed": nrm(next(keys), (vocab + 1, E))}

    lstm = {}
    for l in range(LAYERS):
        in_dim = E if l == 0 else 2 * H
        for d in range(2):
            lstm[(l, d)] = dict(
                wih=nrm(next(keys), (4 * H, in_dim)),
                whh=nrm(next(keys), (4 * H, H)),
                bih=nrm(next(keys), (1, 4 * H)),
                bhh=nrm(next(keys), (1, 4 * H)),
            )
    params["lstm"] = lstm

    params["reduce_w"] = nrm(next(keys), (LSTM_OUT, 2 * H * L))
    params["reduce_b"] = nrm(next(keys), (1, LSTM_OUT))
    params["user_w"] = nrm(next(keys), (EMBED_DIMS[1], dom_user))
    params["user_b"] = nrm(next(keys), (1, EMBED_DIMS[1]))
    params["source_w"] = nrm(next(keys), (EMBED_DIMS[2], dom_source))
    params["source_b"] = nrm(next(keys), (1, EMBED_DIMS[2]))
    # coin_embed exists in __init__ but is never used in forward(); omitted.

    for i in range(3):
        params[f"ln{i}_g"] = jnp.ones((1, fc_dims[i]), jnp.float32)
        params[f"ln{i}_b"] = jnp.zeros((1, fc_dims[i]), jnp.float32)
        params[f"fc{i}_w"] = nrm(next(keys), (fc_dims[i + 1], fc_dims[i]))
        params[f"fc{i}_b"] = nrm(next(keys), (1, fc_dims[i + 1]))

    params["out_w"] = nrm(next(keys), (OUT_DIM, fc_dims[-1]))
    params["out_b"] = nrm(next(keys), (1, OUT_DIM))
    return params


if __name__ == "__main__":
    key = jax.random.PRNGKey(0)
    B, L = 8, 8                                   # max_sentence_length = 8
    vocab, dom_user, dom_source = 100, 50, 20     # synthetic vectorizer domain sizes

    kp, k1, k2, k3, k4 = jax.random.split(key, 5)
    params = init_params(kp, vocab, dom_user, dom_source, L)
    prep = prepare_params(params)                 # one-time layout / transpose / padding

    x_content = jax.random.randint(k1, (B, L), 0, vocab + 1)
    x_user = jax.random.normal(k2, (B, dom_user), jnp.float32)
    x_source = jax.random.normal(k3, (B, dom_source), jnp.float32)
    x_interaction = jax.random.normal(k4, (B, 1), jnp.float32)

    out = crypto_speculation_forward(prep, x_content, x_user, x_source, x_interaction)
    jax.block_until_ready(out)
    assert out.shape == (B, OUT_DIM) and out.dtype == jnp.float32
    print("KERNEL_OK")
</pallas_src>

<mosaic_0001>
module attributes {stable_mosaic.version = 11 : i64} {
  func.func @kernel(%arg0: memref<64x144xf32, #tpu.memory_space<vmem>>, %arg1: memref<8x50xf32, #tpu.memory_space<vmem>>, %arg2: memref<8x20xf32, #tpu.memory_space<vmem>>, %arg3: memref<8x1xf32, #tpu.memory_space<vmem>>, %arg4: memref<144x256xf32, #tpu.memory_space<vmem>>, %arg5: memref<64x256xf32, #tpu.memory_space<vmem>>, %arg6: memref<1x256xf32, #tpu.memory_space<vmem>>, %arg7: memref<128x256xf32, #tpu.memory_space<vmem>>, %arg8: memref<64x256xf32, #tpu.memory_space<vmem>>, %arg9: memref<1x256xf32, #tpu.memory_space<vmem>>, %arg10: memref<512x1024xf32, #tpu.memory_space<vmem>>, %arg11: memref<1x1024xf32, #tpu.memory_space<vmem>>, %arg12: memref<50x32xf32, #tpu.memory_space<vmem>>, %arg13: memref<1x32xf32, #tpu.memory_space<vmem>>, %arg14: memref<20x8xf32, #tpu.memory_space<vmem>>, %arg15: memref<1x8xf32, #tpu.memory_space<vmem>>, %arg16: memref<1x1152xf32, #tpu.memory_space<vmem>>, %arg17: memref<1x1152xf32, #tpu.memory_space<vmem>>, %arg18: memref<1152x512xf32, #tpu.memory_space<vmem>>, %arg19: memref<1x512xf32, #tpu.memory_space<vmem>>, %arg20: memref<1x512xf32, #tpu.memory_space<vmem>>, %arg21: memref<1x512xf32, #tpu.memory_space<vmem>>, %arg22: memref<512x128xf32, #tpu.memory_space<vmem>>, %arg23: memref<1x128xf32, #tpu.memory_space<vmem>>, %arg24: memref<1x128xf32, #tpu.memory_space<vmem>>, %arg25: memref<1x128xf32, #tpu.memory_space<vmem>>, %arg26: memref<128x32xf32, #tpu.memory_space<vmem>>, %arg27: memref<1x32xf32, #tpu.memory_space<vmem>>, %arg28: memref<32x128xf32, #tpu.memory_space<vmem>>, %arg29: memref<1x128xf32, #tpu.memory_space<vmem>>, %arg30: memref<8x128xf32, #tpu.memory_space<vmem>>, %arg31: memref<64x128xf32, #tpu.memory_space<vmem>>, %arg32: memref<8x512xf32, #tpu.memory_space<vmem>>) attributes {dimension_semantics = [], scalar_prefetch = 0 : i64, scratch_operands = 2 : i64, tpu.core_type = #tpu.core_type<tc>} {
    %c0 = arith.constant 0 : index
    %c0_0 = arith.constant 0 : index
    %0 = vector.load %arg0[%c0, %c0_0] : memref<64x144xf32, #tpu.memory_space<vmem>>, vector<64x144xf32>
    %c0_1 = arith.constant 0 : index
    %c0_2 = arith.constant 0 : index
    %1 = vector.load %arg4[%c0_1, %c0_2] : memref<144x256xf32, #tpu.memory_space<vmem>>, vector<144x256xf32>
    %cst = arith.constant dense<0.000000e+00> : vector<64x256xf32>
    %2 = tpu.matmul %0, %1, %cst {dimension_numbers = #tpu.dot_dimension_numbers<[1], [0], [0], [1], [0, 0, 1, 1], [], []>} : vector<64x144xf32>, vector<144x256xf32>, vector<64x256xf32> -> vector<64x256xf32>
    %c0_3 = arith.constant 0 : index
    %c0_4 = arith.constant 0 : index
    %3 = vector.load %arg6[%c0_3, %c0_4] : memref<1x256xf32, #tpu.memory_space<vmem>>, vector<1x256xf32>
    %4 = vector.broadcast %3 : vector<1x256xf32> to vector<64x256xf32>
    %5 = arith.addf %2, %4 : vector<64x256xf32>
    %c0_5 = arith.constant 0 : index
    %c0_6 = arith.constant 0 : index
    %6 = vector.load %arg5[%c0_5, %c0_6] : memref<64x256xf32, #tpu.memory_space<vmem>>, vector<64x256xf32>
    %cst_7 = arith.constant 0.000000e+00 : f32
    %7 = vector.broadcast %cst_7 : f32 to vector<8x64xf32>
    %cst_8 = arith.constant 0.000000e+00 : f32
    %8 = vector.broadcast %cst_8 : f32 to vector<8x64xf32>
    %9 = vector.extract_strided_slice %5 {offsets = [0, 0], sizes = [8, 256], strides = [1, 1]} : vector<64x256xf32> to vector<8x256xf32>
    %cst_9 = arith.constant dense<0.000000e+00> : vector<8x256xf32>
    %10 = tpu.matmul %7, %6, %cst_9 {dimension_numbers = #tpu.dot_dimension_numbers<[1], [0], [0], [1], [0, 0, 1, 1], [], []>} : vector<8x64xf32>, vector<64x256xf32>, vector<8x256xf32> -> vector<8x256xf32>
    %11 = arith.addf %9, %10 : vector<8x256xf32>
    %12 = vector.extract_strided_slice %11 {offsets = [0, 0], sizes = [8, 192], strides = [1, 1]} : vector<8x256xf32> to vector<8x192xf32>
    %13 = arith.negf %12 : vector<8x192xf32>
    %14 = math.exp %13 : vector<8x192xf32>
    %cst_10 = arith.constant 1.000000e+00 : f32
    %15 = vector.broadcast %cst_10 : f32 to vector<8x192xf32>
    %16 = arith.addf %15, %14 : vector<8x192xf32>
    %17 = arith.divf %15, %16 : vector<8x192xf32>
    %18 = vector.extract_strided_slice %11 {offsets = [0, 192], sizes = [8, 64], strides = [1, 1]} : vector<8x256xf32> to vector<8x64xf32>
    %19 = math.tanh %18 : vector<8x64xf32>
    %20 = vector.extract_strided_slice %17 {offsets = [0, 64], sizes = [8, 64], strides = [1, 1]} : vector<8x192xf32> to vector<8x64xf32>
    %21 = arith.mulf %20, %8 : vector<8x64xf32>
    %22 = vector.extract_strided_slice %17 {offsets = [0, 0], sizes = [8, 64], strides = [1, 1]} : vector<8x192xf32> to vector<8x64xf32>
    %23 = arith.mulf %22, %19 : vector<8x64xf32>
    %24 = arith.addf %21, %23 : vector<8x64xf32>
    %25 = vector.extract_strided_slice %17 {offsets = [0, 128], sizes = [8, 64], strides = [1, 1]} : vector<8x192xf32> to vector<8x64xf32>
    %26 = math.tanh %24 : vector<8x64xf32>
    %27 = arith.mulf %25, %26 : vector<8x64xf32>
    %28 = vector.extract_strided_slice %27 {offsets = [0, 0], sizes = [8, 32], strides = [1, 1]} : vector<8x64xf32> to vector<8x32xf32>
    %29 = vector.extract_strided_slice %27 {offsets = [0, 32], sizes = [8, 32], strides = [1, 1]} : vector<8x64xf32> to vector<8x32xf32>
    %c0_11 = arith.constant 0 : index
    %c0_12 = arith.constant 0 : index
    %30 = vector.load %arg31[%c0_11, %c0_12] : memref<64x128xf32, #tpu.memory_space<vmem>>, vector<8x32xf32>
    tpu.vector_store %arg31[%c0_11, %c0_12], %28 {strides = array<i32>} : memref<64x128xf32, #tpu.memory_space<vmem>>, vector<8x32xf32>,
    %c56 = arith.constant 56 : index
    %c64 = arith.constant 64 : index
    %31 = vector.load %arg31[%c56, %c64] : memref<64x128xf32, #tpu.memory_space<vmem>>, vector<8x32xf32>
    tpu.vector_store %arg31[%c56, %c64], %28 {strides = array<i32>} : memref<64x128xf32, #tpu.memory_space<vmem>>, vector<8x32xf32>,
    %c56_13 = arith.constant 56 : index
    %c32 = arith.constant 32 : index
    %32 = vector.load %arg31[%c56_13, %c32] : memref<64x128xf32, #tpu.memory_space<vmem>>, vector<8x32xf32>
    tpu.vector_store %arg31[%c56_13, %c32], %29 {strides = array<i32>} : memref<64x128xf32, #tpu.memory_space<vmem>>, vector<8x32xf32>,
    %c0_14 = arith.constant 0 : index
    %c96 = arith.constant 96 : index
    %33 = vector.load %arg31[%c0_14, %c96] : memref<64x128xf32, #tpu.memory_space<vmem>>, vector<8x32xf32>
    tpu.vector_store %arg31[%c0_14, %c96], %29 {strides = array<i32>} : memref<64x128xf32, #tpu.memory_space<vmem>>, vector<8x32xf32>,
    %34 = vector.extract_strided_slice %5 {offsets = [8, 0], sizes = [8, 256], strides = [1, 1]} : vector<64x256xf32> to vector<8x256xf32>
    %cst_15 = arith.constant dense<0.000000e+00> : vector<8x256xf32>
    %35 = tpu.matmul %27, %6, %cst_15 {dimension_numbers = #tpu.dot_dimension_numbers<[1], [0], [0], [1], [0, 0, 1, 1], [], []>} : vector<8x64xf32>, vector<64x256xf32>, vector<8x256xf32> -> vector<8x256xf32>
    %36 = arith.addf %34, %35 : vector<8x256xf32>
    %37 = vector.extract_strided_slice %36 {offsets = [0, 0], sizes = [8, 192], strides = [1, 1]} : vector<8x256xf32> to vector<8x192xf32>
    %38 = arith.negf %37 : vector<8x192xf32>
    %39 = math.exp %38 : vector<8x192xf32>
    %cst_16 = arith.constant 1.000000e+00 : f32
    %40 = vector.broadcast %cst_16 : f32 to vector<8x192xf32>
    %41 = arith.addf %40, %39 : vector<8x192xf32>
    %42 = arith.divf %40, %41 : vector<8x192xf32>
    %43 = vector.extract_strided_slice %36 {offsets = [0, 192], sizes = [8, 64], strides = [1, 1]} : vector<8x256xf32> to vector<8x64xf32>
    %44 = math.tanh %43 : vector<8x64xf32>
    %45 = vector.extract_strided_slice %42 {offsets = [0, 64], sizes = [8, 64], strides = [1, 1]} : vector<8x192xf32> to vector<8x64xf32>
    %46 = arith.mulf %45, %24 : vector<8x64xf32>
    %47 = vector.extract_strided_slice %42 {offsets = [0, 0], sizes = [8, 64], strides = [1, 1]} : vector<8x192xf32> to vector<8x64xf32>
    %48 = arith.mulf %47, %44 : vector<8x64xf32>
    %49 = arith.addf %46, %48 : vector<8x64xf32>
    %50 = vector.extract_strided_slice %42 {offsets = [0, 128], sizes = [8, 64], strides = [1, 1]} : vector<8x192xf32> to vector<8x64xf32>
    %51 = math.tanh %49 : vector<8x64xf32>
    %52 = arith.mulf %50, %51 : vector<8x64xf32>
    %53 = vector.extract_strided_slice %52 {offsets = [0, 0], sizes = [8, 32], strides = [1, 1]} : vector<8x64xf32> to vector<8x32xf32>
    %54 = vector.extract_strided_slice %52 {offsets = [0, 32], sizes = [8, 32], strides = [1, 1]} : vector<8x64xf32> to vector<8x32xf32>
    %c8 = arith.constant 8 : index
    %c0_17 = arith.constant 0 : index
    %55 = vector.load %arg31[%c8, %c0_17] : memref<64x128xf32, #tpu.memory_space<vmem>>, vector<8x32xf32>
    tpu.vector_store %arg31[%c8, %c0_17], %53 {strides = array<i32>} : memref<64x128xf32, #tpu.memory_space<vmem>>, vector<8x32xf32>,
    %c48 = arith.constant 48 : index
    %c64_18 = arith.constant 64 : index
    %56 = vector.load %arg31[%c48, %c64_18] : memref<64x128xf32, #tpu.memory_space<vmem>>, vector<8x32xf32>
    tpu.vector_store %arg31[%c48, %c64_18], %53 {strides = array<i32>} : memref<64x128xf32, #tpu.memory_space<vmem>>, vector<8x32xf32>,
    %c48_19 = arith.constant 48 : index
    %c32_20 = arith.constant 32 : index
    %57 = vector.load %arg31[%c48_19, %c32_20] : memref<64x128xf32, #tpu.memory_space<vmem>>, vector<8x32xf32>
    tpu.vector_store %arg31[%c48_19, %c32_20], %54 {strides = array<i32>} : memref<64x128xf32, #tpu.memory_space<vmem>>, vector<8x32xf32>,
    %c8_21 = arith.constant 8 : index
    %c96_22 = arith.constant 96 : index
    %58 = vector.load %arg31[%c8_21, %c96_22] : memref<64x128xf32, #tpu.memory_space<vmem>>, vector<8x32xf32>
    tpu.vector_store %arg31[%c8_21, %c96_22], %54 {strides = array<i32>} : memref<64x128xf32, #tpu.memory_space<vmem>>, vector<8x32xf32>,
    %59 = vector.extract_strided_slice %5 {offsets = [16, 0], sizes = [8, 256], strides = [1, 1]} : vector<64x256xf32> to vector<8x256xf32>
    %cst_23 = arith.constant dense<0.000000e+00> : vector<8x256xf32>
    %60 = tpu.matmul %52, %6, %cst_23 {dimension_numbers = #tpu.dot_dimension_numbers<[1], [0], [0], [1], [0, 0, 1, 1], [], []>} : vector<8x64xf32>, vector<64x256xf32>, vector<8x256xf32> -> vector<8x256xf32>
    %61 = arith.addf %59, %60 : vector<8x256xf32>
    %62 = vector.extract_strided_slice %61 {offsets = [0, 0], sizes = [8, 192], strides = [1, 1]} : vector<8x256xf32> to vector<8x192xf32>
    %63 = arith.negf %62 : vector<8x192xf32>
    %64 = math.exp %63 : vector<8x192xf32>
    %cst_24 = arith.constant 1.000000e+00 : f32
    %65 = vector.broadcast %cst_24 : f32 to vector<8x192xf32>
    %66 = arith.addf %65, %64 : vector<8x192xf32>
    %67 = arith.divf %65, %66 : vector<8x192xf32>
    %68 = vector.extract_strided_slice %61 {offsets = [0, 192], sizes = [8, 64], strides = [1, 1]} : vector<8x256xf32> to vector<8x64xf32>
    %69 = math.tanh %68 : vector<8x64xf32>
    %70 = vector.extract_strided_slice %67 {offsets = [0, 64], sizes = [8, 64], strides = [1, 1]} : vector<8x192xf32> to vector<8x64xf32>
    %71 = arith.mulf %70, %49 : vector<8x64xf32>
    %72 = vector.extract_strided_slice %67 {offsets = [0, 0], sizes = [8, 64], strides = [1, 1]} : vector<8x192xf32> to vector<8x64xf32>
    %73 = arith.mulf %72, %69 : vector<8x64xf32>
    %74 = arith.addf %71, %73 : vector<8x64xf32>
    %75 = vector.extract_strided_slice %67 {offsets = [0, 128], sizes = [8, 64], strides = [1, 1]} : vector<8x192xf32> to vector<8x64xf32>
    %76 = math.tanh %74 : vector<8x64xf32>
    %77 = arith.mulf %75, %76 : vector<8x64xf32>
    %78 = vector.extract_strided_slice %77 {offsets = [0, 0], sizes = [8, 32], strides = [1, 1]} : vector<8x64xf32> to vector<8x32xf32>
    %79 = vector.extract_strided_slice %77 {offsets = [0, 32], sizes = [8, 32], strides = [1, 1]} : vector<8x64xf32> to vector<8x32xf32>
    %c16 = arith.constant 16 : index
    %c0_25 = arith.constant 0 : index
    %80 = vector.load %arg31[%c16, %c0_25] : memref<64x128xf32, #tpu.memory_space<vmem>>, vector<8x32xf32>
    tpu.vector_store %arg31[%c16, %c0_25], %78 {strides = array<i32>} : memref<64x128xf32, #tpu.memory_space<vmem>>, vector<8x32xf32>,
    %c40 = arith.constant 40 : index
    %c64_26 = arith.constant 64 : index
    %81 = vector.load %arg31[%c40, %c64_26] : memref<64x128xf32, #tpu.memory_space<vmem>>, vector<8x32xf32>
    tpu.vector_store %arg31[%c40, %c64_26], %78 {strides = array<i32>} : memref<64x128xf32, #tpu.memory_space<vmem>>, vector<8x32xf32>,
    %c40_27 = arith.constant 40 : index
    %c32_28 = arith.constant 32 : index
    %82 = vector.load %arg31[%c40_27, %c32_28] : memref<64x128xf32, #tpu.memory_space<vmem>>, vector<8x32xf32>
    tpu.vector_store %arg31[%c40_27, %c32_28], %79 {strides = array<i32>} : memref<64x128xf32, #tpu.memory_space<vmem>>, vector<8x32xf32>,
    %c16_29 = arith.constant 16 : index
    %c96_30 = arith.constant 96 : index
    %83 = vector.load %arg31[%c16_29, %c96_30] : memref<64x128xf32, #tpu.memory_space<vmem>>, vector<8x32xf32>
    tpu.vector_store %arg31[%c16_29, %c96_30], %79 {strides = array<i32>} : memref<64x128xf32, #tpu.memory_space<vmem>>, vector<8x32xf32>,
    %84 = vector.extract_strided_slice %5 {offsets = [24, 0], sizes = [8, 256], strides = [1, 1]} : vector<64x256xf32> to vector<8x256xf32>
    %cst_31 = arith.constant dense<0.000000e+00> : vector<8x256xf32>
    %85 = tpu.matmul %77, %6, %cst_31 {dimension_numbers = #tpu.dot_dimension_numbers<[1], [0], [0], [1], [0, 0, 1, 1], [], []>} : vector<8x64xf32>, vector<64x256xf32>, vector<8x256xf32> -> vector<8x256xf32>
    %86 = arith.addf %84, %85 : vector<8x256xf32>
    %87 = vector.extract_strided_slice %86 {offsets = [0, 0], sizes = [8, 192], strides = [1, 1]} : vector<8x256xf32> to vector<8x192xf32>
    %88 = arith.negf %87 : vector<8x192xf32>
    %89 = math.exp %88 : vector<8x192xf32>
    %cst_32 = arith.constant 1.000000e+00 : f32
    %90 = vector.broadcast %cst_32 : f32 to vector<8x192xf32>
    %91 = arith.addf %90, %89 : vector<8x192xf32>
    %92 = arith.divf %90, %91 : vector<8x192xf32>
    %93 = vector.extract_strided_slice %86 {offsets = [0, 192], sizes = [8, 64], strides = [1, 1]} : vector<8x256xf32> to vector<8x64xf32>
    %94 = math.tanh %93 : vector<8x64xf32>
    %95 = vector.extract_strided_slice %92 {offsets = [0, 64], sizes = [8, 64], strides = [1, 1]} : vector<8x192xf32> to vector<8x64xf32>
    %96 = arith.mulf %95, %74 : vector<8x64xf32>
    %97 = vector.extract_strided_slice %92 {offsets = [0, 0], sizes = [8, 64], strides = [1, 1]} : vector<8x192xf32> to vector<8x64xf32>
    %98 = arith.mulf %97, %94 : vector<8x64xf32>
    %99 = arith.addf %96, %98 : vector<8x64xf32>
    %100 = vector.extract_strided_slice %92 {offsets = [0, 128], sizes = [8, 64], strides = [1, 1]} : vector<8x192xf32> to vector<8x64xf32>
    %101 = math.tanh %99 : vector<8x64xf32>
    %102 = arith.mulf %100, %101 : vector<8x64xf32>
    %103 = vector.extract_strided_slice %102 {offsets = [0, 0], sizes = [8, 32], strides = [1, 1]} : vector<8x64xf32> to vector<8x32xf32>
    %104 = vector.extract_strided_slice %102 {offsets = [0, 32], sizes = [8, 32], strides = [1, 1]} : vector<8x64xf32> to vector<8x32xf32>
    %c24 = arith.constant 24 : index
    %c0_33 = arith.constant 0 : index
    %105 = vector.load %arg31[%c24, %c0_33] : memref<64x128xf32, #tpu.memory_space<vmem>>, vector<8x32xf32>
    tpu.vector_store %arg31[%c24, %c0_33], %103 {strides = array<i32>} : memref<64x128xf32, #tpu.memory_space<vmem>>, vector<8x32xf32>,
    %c32_34 = arith.constant 32 : index
    %c64_35 = arith.constant 64 : index
    %106 = vector.load %arg31[%c32_34, %c64_35] : memref<64x128xf32, #tpu.memory_space<vmem>>, vector<8x32xf32>
    tpu.vector_store %arg31[%c32_34, %c64_35], %103 {strides = array<i32>} : memref<64x128xf32, #tpu.memory_space<vmem>>, vector<8x32xf32>,
    %c32_36 = arith.constant 32 : index
    %c32_37 = arith.constant 32 : index
    %107 = vector.load %arg31[%c32_36, %c32_37] : memref<64x128xf32, #tpu.memory_space<vmem>>, vector<8x32xf32>
    tpu.vector_store %arg31[%c32_36, %c32_37], %104 {strides = array<i32>} : memref<64x128xf32, #tpu.memory_space<vmem>>, vector<8x32xf32>,
    %c24_38 = arith.constant 24 : index
    %c96_39 = arith.constant 96 : index
    %108 = vector.load %arg31[%c24_38, %c96_39] : memref<64x128xf32, #tpu.memory_space<vmem>>, vector<8x32xf32>
    tpu.vector_store %arg31[%c24_38, %c96_39], %104 {strides = array<i32>} : memref<64x128xf32, #tpu.memory_space<vmem>>, vector<8x32xf32>,
    %109 = vector.extract_strided_slice %5 {offsets = [32, 0], sizes = [8, 256], strides = [1, 1]} : vector<64x256xf32> to vector<8x256xf32>
    %cst_40 = arith.constant dense<0.000000e+00> : vector<8x256xf32>
    %110 = tpu.matmul %102, %6, %cst_40 {dimension_numbers = #tpu.dot_dimension_numbers<[1], [0], [0], [1], [0, 0, 1, 1], [], []>} : vector<8x64xf32>, vector<64x256xf32>, vector<8x256xf32> -> vector<8x256xf32>
    %111 = arith.addf %109, %110 : vector<8x256xf32>
    %112 = vector.extract_strided_slice %111 {offsets = [0, 0], sizes = [8, 192], strides = [1, 1]} : vector<8x256xf32> to vector<8x192xf32>
    %113 = arith.negf %112 : vector<8x192xf32>
    %114 = math.exp %113 : vector<8x192xf32>
    %cst_41 = arith.constant 1.000000e+00 : f32
    %115 = vector.broadcast %cst_41 : f32 to vector<8x192xf32>
    %116 = arith.addf %115, %114 : vector<8x192xf32>
    %117 = arith.divf %115, %116 : vector<8x192xf32>
    %118 = vector.extract_strided_slice %111 {offsets = [0, 192], sizes = [8, 64], strides = [1, 1]} : vector<8x256xf32> to vector<8x64xf32>
    %119 = math.tanh %118 : vector<8x64xf32>
    %120 = vector.extract_strided_slice %117 {offsets = [0, 64], sizes = [8, 64], strides = [1, 1]} : vector<8x192xf32> to vector<8x64xf32>
    %121 = arith.mulf %120, %99 : vector<8x64xf32>
    %122 = vector.extract_strided_slice %117 {offsets = [0, 0], sizes = [8, 64], strides = [1, 1]} : vector<8x192xf32> to vector<8x64xf32>
    %123 = arith.mulf %122, %119 : vector<8x64xf32>
    %124 = arith.addf %121, %123 : vector<8x64xf32>
    %125 = vector.extract_strided_slice %117 {offsets = [0, 128], sizes = [8, 64], strides = [1, 1]} : vector<8x192xf32> to vector<8x64xf32>
    %126 = math.tanh %124 : vector<8x64xf32>
    %127 = arith.mulf %125, %126 : vector<8x64xf32>
    %128 = vector.extract_strided_slice %127 {offsets = [0, 0], sizes = [8, 32], strides = [1, 1]} : vector<8x64xf32> to vector<8x32xf32>
    %129 = vector.extract_strided_slice %127 {offsets = [0, 32], sizes = [8, 32], strides = [1, 1]} : vector<8x64xf32> to vector<8x32xf32>
    %c32_42 = arith.constant 32 : index
    %c0_43 = arith.constant 0 : index
    %130 = vector.load %arg31[%c32_42, %c0_43] : memref<64x128xf32, #tpu.memory_space<vmem>>, vector<8x32xf32>
    tpu.vector_store %arg31[%c32_42, %c0_43], %128 {strides = array<i32>} : memref<64x128xf32, #tpu.memory_space<vmem>>, vector<8x32xf32>,
    %c24_44 = arith.constant 24 : index
    %c64_45 = arith.constant 64 : index
    %131 = vector.load %arg31[%c24_44, %c64_45] : memref<64x128xf32, #tpu.memory_space<vmem>>, vector<8x32xf32>
    tpu.vector_store %arg31[%c24_44, %c64_45], %128 {strides = array<i32>} : memref<64x128xf32, #tpu.memory_space<vmem>>, vector<8x32xf32>,
    %c24_46 = arith.constant 24 : index
    %c32_47 = arith.constant 32 : index
    %132 = vector.load %arg31[%c24_46, %c32_47] : memref<64x128xf32, #tpu.memory_space<vmem>>, vector<8x32xf32>
    tpu.vector_store %arg31[%c24_46, %c32_47], %129 {strides = array<i32>} : memref<64x128xf32, #tpu.memory_space<vmem>>, vector<8x32xf32>,
    %c32_48 = arith.constant 32 : index
    %c96_49 = arith.constant 96 : index
    %133 = vector.load %arg31[%c32_48, %c96_49] : memref<64x128xf32, #tpu.memory_space<vmem>>, vector<8x32xf32>
    tpu.vector_store %arg31[%c32_48, %c96_49], %129 {strides = array<i32>} : memref<64x128xf32, #tpu.memory_space<vmem>>, vector<8x32xf32>,
    %134 = vector.extract_strided_slice %5 {offsets = [40, 0], sizes = [8, 256], strides = [1, 1]} : vector<64x256xf32> to vector<8x256xf32>
    %cst_50 = arith.constant dense<0.000000e+00> : vector<8x256xf32>
    %135 = tpu.matmul %127, %6, %cst_50 {dimension_numbers = #tpu.dot_dimension_numbers<[1], [0], [0], [1], [0, 0, 1, 1], [], []>} : vector<8x64xf32>, vector<64x256xf32>, vector<8x256xf32> -> vector<8x256xf32>
    %136 = arith.addf %134, %135 : vector<8x256xf32>
    %137 = vector.extract_strided_slice %136 {offsets = [0, 0], sizes = [8, 192], strides = [1, 1]} : vector<8x256xf32> to vector<8x192xf32>
    %138 = arith.negf %137 : vector<8x192xf32>
    %139 = math.exp %138 : vector<8x192xf32>
    %cst_51 = arith.constant 1.000000e+00 : f32
    %140 = vector.broadcast %cst_51 : f32 to vector<8x192xf32>
    %141 = arith.addf %140, %139 : vector<8x192xf32>
    %142 = arith.divf %140, %141 : vector<8x192xf32>
    %143 = vector.extract_strided_slice %136 {offsets = [0, 192], sizes = [8, 64], strides = [1, 1]} : vector<8x256xf32> to vector<8x64xf32>
    %144 = math.tanh %143 : vector<8x64xf32>
    %145 = vector.extract_strided_slice %142 {offsets = [0, 64], sizes = [8, 64], strides = [1, 1]} : vector<8x192xf32> to vector<8x64xf32>
    %146 = arith.mulf %145, %124 : vector<8x64xf32>
    %147 = vector.extract_strided_slice %142 {offsets = [0, 0], sizes = [8, 64], strides = [1, 1]} : vector<8x192xf32> to vector<8x64xf32>
    %148 = arith.mulf %147, %144 : vector<8x64xf32>
    %149 = arith.addf %146, %148 : vector<8x64xf32>
    %150 = vector.extract_strided_slice %142 {offsets = [0, 128], sizes = [8, 64], strides = [1, 1]} : vector<8x192xf32> to vector<8x64xf32>
    %151 = math.tanh %149 : vector<8x64xf32>
    %152 = arith.mulf %150, %151 : vector<8x64xf32>
    %153 = vector.extract_strided_slice %152 {offsets = [0, 0], sizes = [8, 32], strides = [1, 1]} : vector<8x64xf32> to vector<8x32xf32>
    %154 = vector.extract_strided_slice %152 {offsets = [0, 32], sizes = [8, 32], strides = [1, 1]} : vector<8x64xf32> to vector<8x32xf32>
    %c40_52 = arith.constant 40 : index
    %c0_53 = arith.constant 0 : index
    %155 = vector.load %arg31[%c40_52, %c0_53] : memref<64x128xf32, #tpu.memory_space<vmem>>, vector<8x32xf32>
    tpu.vector_store %arg31[%c40_52, %c0_53], %153 {strides = array<i32>} : memref<64x128xf32, #tpu.memory_space<vmem>>, vector<8x32xf32>,
    %c16_54 = arith.constant 16 : index
    %c64_55 = arith.constant 64 : index
    %156 = vector.load %arg31[%c16_54, %c64_55] : memref<64x128xf32, #tpu.memory_space<vmem>>, vector<8x32xf32>
    tpu.vector_store %arg31[%c16_54, %c64_55], %153 {strides = array<i32>} : memref<64x128xf32, #tpu.memory_space<vmem>>, vector<8x32xf32>,
    %c16_56 = arith.constant 16 : index
    %c32_57 = arith.constant 32 : index
    %157 = vector.load %arg31[%c16_56, %c32_57] : memref<64x128xf32, #tpu.memory_space<vmem>>, vector<8x32xf32>
    tpu.vector_store %arg31[%c16_56, %c32_57], %154 {strides = array<i32>} : memref<64x128xf32, #tpu.memory_space<vmem>>, vector<8x32xf32>,
    %c40_58 = arith.constant 40 : index
    %c96_59 = arith.constant 96 : index
    %158 = vector.load %arg31[%c40_58, %c96_59] : memref<64x128xf32, #tpu.memory_space<vmem>>, vector<8x32xf32>
    tpu.vector_store %arg31[%c40_58, %c96_59], %154 {strides = array<i32>} : memref<64x128xf32, #tpu.memory_space<vmem>>, vector<8x32xf32>,
    %159 = vector.extract_strided_slice %5 {offsets = [48, 0], sizes = [8, 256], strides = [1, 1]} : vector<64x256xf32> to vector<8x256xf32>
    %cst_60 = arith.constant dense<0.000000e+00> : vector<8x256xf32>
    %160 = tpu.matmul %152, %6, %cst_60 {dimension_numbers = #tpu.dot_dimension_numbers<[1], [0], [0], [1], [0, 0, 1, 1], [], []>} : vector<8x64xf32>, vector<64x256xf32>, vector<8x256xf32> -> vector<8x256xf32>
    %161 = arith.addf %159, %160 : vector<8x256xf32>
    %162 = vector.extract_strided_slice %161 {offsets = [0, 0], sizes = [8, 192], strides = [1, 1]} : vector<8x256xf32> to vector<8x192xf32>
    %163 = arith.negf %162 : vector<8x192xf32>
    %164 = math.exp %163 : vector<8x192xf32>
    %cst_61 = arith.constant 1.000000e+00 : f32
    %165 = vector.broadcast %cst_61 : f32 to vector<8x192xf32>
    %166 = arith.addf %165, %164 : vector<8x192xf32>
    %167 = arith.divf %165, %166 : vector<8x192xf32>
    %168 = vector.extract_strided_slice %161 {offsets = [0, 192], sizes = [8, 64], strides = [1, 1]} : vector<8x256xf32> to vector<8x64xf32>
    %169 = math.tanh %168 : vector<8x64xf32>
    %170 = vector.extract_strided_slice %167 {offsets = [0, 64], sizes = [8, 64], strides = [1, 1]} : vector<8x192xf32> to vector<8x64xf32>
    %171 = arith.mulf %170, %149 : vector<8x64xf32>
    %172 = vector.extract_strided_slice %167 {offsets = [0, 0], sizes = [8, 64], strides = [1, 1]} : vector<8x192xf32> to vector<8x64xf32>
    %173 = arith.mulf %172, %169 : vector<8x64xf32>
    %174 = arith.addf %171, %173 : vector<8x64xf32>
    %175 = vector.extract_strided_slice %167 {offsets = [0, 128], sizes = [8, 64], strides = [1, 1]} : vector<8x192xf32> to vector<8x64xf32>
    %176 = math.tanh %174 : vector<8x64xf32>
    %177 = arith.mulf %175, %176 : vector<8x64xf32>
    %178 = vector.extract_strided_slice %177 {offsets = [0, 0], sizes = [8, 32], strides = [1, 1]} : vector<8x64xf32> to vector<8x32xf32>
    %179 = vector.extract_strided_slice %177 {offsets = [0, 32], sizes = [8, 32], strides = [1, 1]} : vector<8x64xf32> to vector<8x32xf32>
    %c48_62 = arith.constant 48 : index
    %c0_63 = arith.constant 0 : index
    %180 = vector.load %arg31[%c48_62, %c0_63] : memref<64x128xf32, #tpu.memory_space<vmem>>, vector<8x32xf32>
    tpu.vector_store %arg31[%c48_62, %c0_63], %178 {strides = array<i32>} : memref<64x128xf32, #tpu.memory_space<vmem>>, vector<8x32xf32>,
    %c8_64 = arith.constant 8 : index
    %c64_65 = arith.constant 64 : index
    %181 = vector.load %arg31[%c8_64, %c64_65] : memref<64x128xf32, #tpu.memory_space<vmem>>, vector<8x32xf32>
    tpu.vector_store %arg31[%c8_64, %c64_65], %178 {strides = array<i32>} : memref<64x128xf32, #tpu.memory_space<vmem>>, vector<8x32xf32>,
    %c8_66 = arith.constant 8 : index
    %c32_67 = arith.constant 32 : index
    %182 = vector.load %arg31[%c8_66, %c32_67] : memref<64x128xf32, #tpu.memory_space<vmem>>, vector<8x32xf32>
    tpu.vector_store %arg31[%c8_66, %c32_67], %179 {strides = array<i32>} : memref<64x128xf32, #tpu.memory_space<vmem>>, vector<8x32xf32>,
    %c48_68 = arith.constant 48 : index
    %c96_69 = arith.constant 96 : index
    %183 = vector.load %arg31[%c48_68, %c96_69] : memref<64x128xf32, #tpu.memory_space<vmem>>, vector<8x32xf32>
    tpu.vector_store %arg31[%c48_68, %c96_69], %179 {strides = array<i32>} : memref<64x128xf32, #tpu.memory_space<vmem>>, vector<8x32xf32>,
    %184 = vector.extract_strided_slice %5 {offsets = [56, 0], sizes = [8, 256], strides = [1, 1]} : vector<64x256xf32> to vector<8x256xf32>
    %cst_70 = arith.constant dense<0.000000e+00> : vector<8x256xf32>
    %185 = tpu.matmul %177, %6, %cst_70 {dimension_numbers = #tpu.dot_dimension_numbers<[1], [0], [0], [1], [0, 0, 1, 1], [], []>} : vector<8x64xf32>, vector<64x256xf32>, vector<8x256xf32> -> vector<8x256xf32>
    %186 = arith.addf %184, %185 : vector<8x256xf32>
    %187 = vector.extract_strided_slice %186 {offsets = [0, 0], sizes = [8, 192], strides = [1, 1]} : vector<8x256xf32> to vector<8x192xf32>
    %188 = arith.negf %187 : vector<8x192xf32>
    %189 = math.exp %188 : vector<8x192xf32>
    %cst_71 = arith.constant 1.000000e+00 : f32
    %190 = vector.broadcast %cst_71 : f32 to vector<8x192xf32>
    %191 = arith.addf %190, %189 : vector<8x192xf32>
    %192 = arith.divf %190, %191 : vector<8x192xf32>
    %193 = vector.extract_strided_slice %186 {offsets = [0, 192], sizes = [8, 64], strides = [1, 1]} : vector<8x256xf32> to vector<8x64xf32>
    %194 = math.tanh %193 : vector<8x64xf32>
    %195 = vector.extract_strided_slice %192 {offsets = [0, 64], sizes = [8, 64], strides = [1, 1]} : vector<8x192xf32> to vector<8x64xf32>
    %196 = arith.mulf %195, %174 : vector<8x64xf32>
    %197 = vector.extract_strided_slice %192 {offsets = [0, 0], sizes = [8, 64], strides = [1, 1]} : vector<8x192xf32> to vector<8x64xf32>
    %198 = arith.mulf %197, %194 : vector<8x64xf32>
    %199 = arith.addf %196, %198 : vector<8x64xf32>
    %200 = vector.extract_strided_slice %192 {offsets = [0, 128], sizes = [8, 64], strides = [1, 1]} : vector<8x192xf32> to vector<8x64xf32>
    %201 = math.tanh %199 : vector<8x64xf32>
    %202 = arith.mulf %200, %201 : vector<8x64xf32>
    %203 = vector.extract_strided_slice %202 {offsets = [0, 0], sizes = [8, 32], strides = [1, 1]} : vector<8x64xf32> to vector<8x32xf32>
    %204 = vector.extract_strided_slice %202 {offsets = [0, 32], sizes = [8, 32], strides = [1, 1]} : vector<8x64xf32> to vector<8x32xf32>
    %c56_72 = arith.constant 56 : index
    %c0_73 = arith.constant 0 : index
    %205 = vector.load %arg31[%c56_72, %c0_73] : memref<64x128xf32, #tpu.memory_space<vmem>>, vector<8x32xf32>
    tpu.vector_store %arg31[%c56_72, %c0_73], %203 {strides = array<i32>} : memref<64x128xf32, #tpu.memory_space<vmem>>, vector<8x32xf32>,
    %c0_74 = arith.constant 0 : index
    %c64_75 = arith.constant 64 : index
    %206 = vector.load %arg31[%c0_74, %c64_75] : memref<64x128xf32, #tpu.memory_space<vmem>>, vector<8x32xf32>
    tpu.vector_store %arg31[%c0_74, %c64_75], %203 {strides = array<i32>} : memref<64x128xf32, #tpu.memory_space<vmem>>, vector<8x32xf32>,
    %c0_76 = arith.constant 0 : index
    %c32_77 = arith.constant 32 : index
    %207 = vector.load %arg31[%c0_76, %c32_77] : memref<64x128xf32, #tpu.memory_space<vmem>>, vector<8x32xf32>
    tpu.vector_store %arg31[%c0_76, %c32_77], %204 {strides = array<i32>} : memref<64x128xf32, #tpu.memory_space<vmem>>, vector<8x32xf32>,
    %c56_78 = arith.constant 56 : index
    %c96_79 = arith.constant 96 : index
    %208 = vector.load %arg31[%c56_78, %c96_79] : memref<64x128xf32, #tpu.memory_space<vmem>>, vector<8x32xf32>
    tpu.vector_store %arg31[%c56_78, %c96_79], %204 {strides = array<i32>} : memref<64x128xf32, #tpu.memory_space<vmem>>, vector<8x32xf32>,
    %c0_80 = arith.constant 0 : index
    %c0_81 = arith.constant 0 : index
    %209 = vector.load %arg31[%c0_80, %c0_81] : memref<64x128xf32, #tpu.memory_space<vmem>>, vector<64x128xf32>
    %c0_82 = arith.constant 0 : index
    %c0_83 = arith.constant 0 : index
    %210 = vector.load %arg7[%c0_82, %c0_83] : memref<128x256xf32, #tpu.memory_space<vmem>>, vector<128x256xf32>
    %cst_84 = arith.constant dense<0.000000e+00> : vector<64x256xf32>
    %211 = tpu.matmul %209, %210, %cst_84 {dimension_numbers = #tpu.dot_dimension_numbers<[1], [0], [0], [1], [0, 0, 1, 1], [], []>} : vector<64x128xf32>, vector<128x256xf32>, vector<64x256xf32> -> vector<64x256xf32>
    %c0_85 = arith.constant 0 : index
    %c0_86 = arith.constant 0 : index
    %212 = vector.load %arg9[%c0_85, %c0_86] : memref<1x256xf32, #tpu.memory_space<vmem>>, vector<1x256xf32>
    %213 = vector.broadcast %212 : vector<1x256xf32> to vector<64x256xf32>
    %214 = arith.addf %211, %213 : vector<64x256xf32>
    %c0_87 = arith.constant 0 : index
    %c0_88 = arith.constant 0 : index
    %215 = vector.load %arg8[%c0_87, %c0_88] : memref<64x256xf32, #tpu.memory_space<vmem>>, vector<64x256xf32>
    %cst_89 = arith.constant 0.000000e+00 : f32
    %216 = vector.broadcast %cst_89 : f32 to vector<8x64xf32>
    %cst_90 = arith.constant 0.000000e+00 : f32
    %217 = vector.broadcast %cst_90 : f32 to vector<8x64xf32>
    %218 = vector.extract_strided_slice %214 {offsets = [0, 0], sizes = [8, 256], strides = [1, 1]} : vector<64x256xf32> to vector<8x256xf32>
    %cst_91 = arith.constant dense<0.000000e+00> : vector<8x256xf32>
    %219 = tpu.matmul %216, %215, %cst_91 {dimension_numbers = #tpu.dot_dimension_numbers<[1], [0], [0], [1], [0, 0, 1, 1], [], []>} : vector<8x64xf32>, vector<64x256xf32>, vector<8x256xf32> -> vector<8x256xf32>
    %220 = arith.addf %218, %219 : vector<8x256xf32>
    %221 = vector.extract_strided_slice %220 {offsets = [0, 0], sizes = [8, 192], strides = [1, 1]} : vector<8x256xf32> to vector<8x192xf32>
    %222 = arith.negf %221 : vector<8x192xf32>
    %223 = math.exp %222 : vector<8x192xf32>
    %cst_92 = arith.constant 1.000000e+00 : f32
    %224 = vector.broadcast %cst_92 : f32 to vector<8x192xf32>
    %225 = arith.addf %224, %223 : vector<8x192xf32>
    %226 = arith.divf %224, %225 : vector<8x192xf32>
    %227 = vector.extract_strided_slice %220 {offsets = [0, 192], sizes = [8, 64], strides = [1, 1]} : vector<8x256xf32> to vector<8x64xf32>
    %228 = math.tanh %227 : vector<8x64xf32>
    %229 = vector.extract_strided_slice %226 {offsets = [0, 64], sizes = [8, 64], strides = [1, 1]} : vector<8x192xf32> to vector<8x64xf32>
    %230 = arith.mulf %229, %217 : vector<8x64xf32>
    %231 = vector.extract_strided_slice %226 {offsets = [0, 0], sizes = [8, 64], strides = [1, 1]} : vector<8x192xf32> to vector<8x64xf32>
    %232 = arith.mulf %231, %228 : vector<8x64xf32>
    %233 = arith.addf %230, %232 : vector<8x64xf32>
    %234 = vector.extract_strided_slice %226 {offsets = [0, 128], sizes = [8, 64], strides = [1, 1]} : vector<8x192xf32> to vector<8x64xf32>
    %235 = math.tanh %233 : vector<8x64xf32>
    %236 = arith.mulf %234, %235 : vector<8x64xf32>
    %237 = vector.extract_strided_slice %236 {offsets = [0, 0], sizes = [8, 32], strides = [1, 1]} : vector<8x64xf32> to vector<8x32xf32>
    %c0_93 = arith.constant 0 : index
    %c0_94 = arith.constant 0 : index
    %238 = vector.load %arg32[%c0_93, %c0_94] : memref<8x512xf32, #tpu.memory_space<vmem>>, vector<8x32xf32>
    tpu.vector_store %arg32[%c0_93, %c0_94], %237 {strides = array<i32>} : memref<8x512xf32, #tpu.memory_space<vmem>>, vector<8x32xf32>,
    %239 = vector.extract_strided_slice %236 {offsets = [0, 32], sizes = [8, 32], strides = [1, 1]} : vector<8x64xf32> to vector<8x32xf32>
    %c0_95 = arith.constant 0 : index
    %c480 = arith.constant 480 : index
    %240 = vector.load %arg32[%c0_95, %c480] : memref<8x512xf32, #tpu.memory_space<vmem>>, vector<8x32xf32>
    tpu.vector_store %arg32[%c0_95, %c480], %239 {strides = array<i32>} : memref<8x512xf32, #tpu.memory_space<vmem>>, vector<8x32xf32>,
    %241 = vector.extract_strided_slice %214 {offsets = [8, 0], sizes = [8, 256], strides = [1, 1]} : vector<64x256xf32> to vector<8x256xf32>
    %cst_96 = arith.constant dense<0.000000e+00> : vector<8x256xf32>
    %242 = tpu.matmul %236, %215, %cst_96 {dimension_numbers = #tpu.dot_dimension_numbers<[1], [0], [0], [1], [0, 0, 1, 1], [], []>} : vector<8x64xf32>, vector<64x256xf32>, vector<8x256xf32> -> vector<8x256xf32>
    %243 = arith.addf %241, %242 : vector<8x256xf32>
    %244 = vector.extract_strided_slice %243 {offsets = [0, 0], sizes = [8, 192], strides = [1, 1]} : vector<8x256xf32> to vector<8x192xf32>
    %245 = arith.negf %244 : vector<8x192xf32>
    %246 = math.exp %245 : vector<8x192xf32>
    %cst_97 = arith.constant 1.000000e+00 : f32
    %247 = vector.broadcast %cst_97 : f32 to vector<8x192xf32>
    %248 = arith.addf %247, %246 : vector<8x192xf32>
    %249 = arith.divf %247, %248 : vector<8x192xf32>
    %250 = vector.extract_strided_slice %243 {offsets = [0, 192], sizes = [8, 64], strides = [1, 1]} : vector<8x256xf32> to vector<8x64xf32>
    %251 = math.tanh %250 : vector<8x64xf32>
    %252 = vector.extract_strided_slice %249 {offsets = [0, 64], sizes = [8, 64], strides = [1, 1]} : vector<8x192xf32> to vector<8x64xf32>
    %253 = arith.mulf %252, %233 : vector<8x64xf32>
    %254 = vector.extract_strided_slice %249 {offsets = [0, 0], sizes = [8, 64], strides = [1, 1]} : vector<8x192xf32> to vector<8x64xf32>
    %255 = arith.mulf %254, %251 : vector<8x64xf32>
    %256 = arith.addf %253, %255 : vector<8x64xf32>
    %257 = vector.extract_strided_slice %249 {offsets = [0, 128], sizes = [8, 64], strides = [1, 1]} : vector<8x192xf32> to vector<8x64xf32>
    %258 = math.tanh %256 : vector<8x64xf32>
    %259 = arith.mulf %257, %258 : vector<8x64xf32>
    %260 = vector.extract_strided_slice %259 {offsets = [0, 0], sizes = [8, 32], strides = [1, 1]} : vector<8x64xf32> to vector<8x32xf32>
    %c0_98 = arith.constant 0 : index
    %c64_99 = arith.constant 64 : index
    %261 = vector.load %arg32[%c0_98, %c64_99] : memref<8x512xf32, #tpu.memory_space<vmem>>, vector<8x32xf32>
    tpu.vector_store %arg32[%c0_98, %c64_99], %260 {strides = array<i32>} : memref<8x512xf32, #tpu.memory_space<vmem>>, vector<8x32xf32>,
    %262 = vector.extract_strided_slice %259 {offsets = [0, 32], sizes = [8, 32], strides = [1, 1]} : vector<8x64xf32> to vector<8x32xf32>
    %c0_100 = arith.constant 0 : index
    %c416 = arith.constant 416 : index
    %263 = vector.load %arg32[%c0_100, %c416] : memref<8x512xf32, #tpu.memory_space<vmem>>, vector<8x32xf32>
    tpu.vector_store %arg32[%c0_100, %c416], %262 {strides = array<i32>} : memref<8x512xf32, #tpu.memory_space<vmem>>, vector<8x32xf32>,
    %264 = vector.extract_strided_slice %214 {offsets = [16, 0], sizes = [8, 256], strides = [1, 1]} : vector<64x256xf32> to vector<8x256xf32>
    %cst_101 = arith.constant dense<0.000000e+00> : vector<8x256xf32>
    %265 = tpu.matmul %259, %215, %cst_101 {dimension_numbers = #tpu.dot_dimension_numbers<[1], [0], [0], [1], [0, 0, 1, 1], [], []>} : vector<8x64xf32>, vector<64x256xf32>, vector<8x256xf32> -> vector<8x256xf32>
    %266 = arith.addf %264, %265 : vector<8x256xf32>
    %267 = vector.extract_strided_slice %266 {offsets = [0, 0], sizes = [8, 192], strides = [1, 1]} : vector<8x256xf32> to vector<8x192xf32>
    %268 = arith.negf %267 : vector<8x192xf32>
    %269 = math.exp %268 : vector<8x192xf32>
    %cst_102 = arith.constant 1.000000e+00 : f32
    %270 = vector.broadcast %cst_102 : f32 to vector<8x192xf32>
    %271 = arith.addf %270, %269 : vector<8x192xf32>
    %272 = arith.divf %270, %271 : vector<8x192xf32>
    %273 = vector.extract_strided_slice %266 {offsets = [0, 192], sizes = [8, 64], strides = [1, 1]} : vector<8x256xf32> to vector<8x64xf32>
    %274 = math.tanh %273 : vector<8x64xf32>
    %275 = vector.extract_strided_slice %272 {offsets = [0, 64], sizes = [8, 64], strides = [1, 1]} : vector<8x192xf32> to vector<8x64xf32>
    %276 = arith.mulf %275, %256 : vector<8x64xf32>
    %277 = vector.extract_strided_slice %272 {offsets = [0, 0], sizes = [8, 64], strides = [1, 1]} : vector<8x192xf32> to vector<8x64xf32>
    %278 = arith.mulf %277, %274 : vector<8x64xf32>
    %279 = arith.addf %276, %278 : vector<8x64xf32>
    %280 = vector.extract_strided_slice %272 {offsets = [0, 128], sizes = [8, 64], strides = [1, 1]} : vector<8x192xf32> to vector<8x64xf32>
    %281 = math.tanh %279 : vector<8x64xf32>
    %282 = arith.mulf %280, %281 : vector<8x64xf32>
    %283 = vector.extract_strided_slice %282 {offsets = [0, 0], sizes = [8, 32], strides = [1, 1]} : vector<8x64xf32> to vector<8x32xf32>
    %c0_103 = arith.constant 0 : index
    %c128 = arith.constant 128 : index
    %284 = vector.load %arg32[%c0_103, %c128] : memref<8x512xf32, #tpu.memory_space<vmem>>, vector<8x32xf32>
    tpu.vector_store %arg32[%c0_103, %c128], %283 {strides = array<i32>} : memref<8x512xf32, #tpu.memory_space<vmem>>, vector<8x32xf32>,
    %285 = vector.extract_strided_slice %282 {offsets = [0, 32], sizes = [8, 32], strides = [1, 1]} : vector<8x64xf32> to vector<8x32xf32>
    %c0_104 = arith.constant 0 : index
    %c352 = arith.constant 352 : index
    %286 = vector.load %arg32[%c0_104, %c352] : memref<8x512xf32, #tpu.memory_space<vmem>>, vector<8x32xf32>
    tpu.vector_store %arg32[%c0_104, %c352], %285 {strides = array<i32>} : memref<8x512xf32, #tpu.memory_space<vmem>>, vector<8x32xf32>,
    %287 = vector.extract_strided_slice %214 {offsets = [24, 0], sizes = [8, 256], strides = [1, 1]} : vector<64x256xf32> to vector<8x256xf32>
    %cst_105 = arith.constant dense<0.000000e+00> : vector<8x256xf32>
    %288 = tpu.matmul %282, %215, %cst_105 {dimension_numbers = #tpu.dot_dimension_numbers<[1], [0], [0], [1], [0, 0, 1, 1], [], []>} : vector<8x64xf32>, vector<64x256xf32>, vector<8x256xf32> -> vector<8x256xf32>
    %289 = arith.addf %287, %288 : vector<8x256xf32>
    %290 = vector.extract_strided_slice %289 {offsets = [0, 0], sizes = [8, 192], strides = [1, 1]} : vector<8x256xf32> to vector<8x192xf32>
    %291 = arith.negf %290 : vector<8x192xf32>
    %292 = math.exp %291 : vector<8x192xf32>
    %cst_106 = arith.constant 1.000000e+00 : f32
    %293 = vector.broadcast %cst_106 : f32 to vector<8x192xf32>
    %294 = arith.addf %293, %292 : vector<8x192xf32>
    %295 = arith.divf %293, %294 : vector<8x192xf32>
    %296 = vector.extract_strided_slice %289 {offsets = [0, 192], sizes = [8, 64], strides = [1, 1]} : vector<8x256xf32> to vector<8x64xf32>
    %297 = math.tanh %296 : vector<8x64xf32>
    %298 = vector.extract_strided_slice %295 {offsets = [0, 64], sizes = [8, 64], strides = [1, 1]} : vector<8x192xf32> to vector<8x64xf32>
    %299 = arith.mulf %298, %279 : vector<8x64xf32>
    %300 = vector.extract_strided_slice %295 {offsets = [0, 0], sizes = [8, 64], strides = [1, 1]} : vector<8x192xf32> to vector<8x64xf32>
    %301 = arith.mulf %300, %297 : vector<8x64xf32>
    %302 = arith.addf %299, %301 : vector<8x64xf32>
    %303 = vector.extract_strided_slice %295 {offsets = [0, 128], sizes = [8, 64], strides = [1, 1]} : vector<8x192xf32> to vector<8x64xf32>
    %304 = math.tanh %302 : vector<8x64xf32>
    %305 = arith.mulf %303, %304 : vector<8x64xf32>
    %306 = vector.extract_strided_slice %305 {offsets = [0, 0], sizes = [8, 32], strides = [1, 1]} : vector<8x64xf32> to vector<8x32xf32>
    %c0_107 = arith.constant 0 : index
    %c192 = arith.constant 192 : index
    %307 = vector.load %arg32[%c0_107, %c192] : memref<8x512xf32, #tpu.memory_space<vmem>>, vector<8x32xf32>
    tpu.vector_store %arg32[%c0_107, %c192], %306 {strides = array<i32>} : memref<8x512xf32, #tpu.memory_space<vmem>>, vector<8x32xf32>,
    %308 = vector.extract_strided_slice %305 {offsets = [0, 32], sizes = [8, 32], strides = [1, 1]} : vector<8x64xf32> to vector<8x32xf32>
    %c0_108 = arith.constant 0 : index
    %c288 = arith.constant 288 : index
    %309 = vector.load %arg32[%c0_108, %c288] : memref<8x512xf32, #tpu.memory_space<vmem>>, vector<8x32xf32>
    tpu.vector_store %arg32[%c0_108, %c288], %308 {strides = array<i32>} : memref<8x512xf32, #tpu.memory_space<vmem>>, vector<8x32xf32>,
    %310 = vector.extract_strided_slice %214 {offsets = [32, 0], sizes = [8, 256], strides = [1, 1]} : vector<64x256xf32> to vector<8x256xf32>
    %cst_109 = arith.constant dense<0.000000e+00> : vector<8x256xf32>
    %311 = tpu.matmul %305, %215, %cst_109 {dimension_numbers = #tpu.dot_dimension_numbers<[1], [0], [0], [1], [0, 0, 1, 1], [], []>} : vector<8x64xf32>, vector<64x256xf32>, vector<8x256xf32> -> vector<8x256xf32>
    %312 = arith.addf %310, %311 : vector<8x256xf32>
    %313 = vector.extract_strided_slice %312 {offsets = [0, 0], sizes = [8, 192], strides = [1, 1]} : vector<8x256xf32> to vector<8x192xf32>
    %314 = arith.negf %313 : vector<8x192xf32>
    %315 = math.exp %314 : vector<8x192xf32>
    %cst_110 = arith.constant 1.000000e+00 : f32
    %316 = vector.broadcast %cst_110 : f32 to vector<8x192xf32>
    %317 = arith.addf %316, %315 : vector<8x192xf32>
    %318 = arith.divf %316, %317 : vector<8x192xf32>
    %319 = vector.extract_strided_slice %312 {offsets = [0, 192], sizes = [8, 64], strides = [1, 1]} : vector<8x256xf32> to vector<8x64xf32>
    %320 = math.tanh %319 : vector<8x64xf32>
    %321 = vector.extract_strided_slice %318 {offsets = [0, 64], sizes = [8, 64], strides = [1, 1]} : vector<8x192xf32> to vector<8x64xf32>
    %322 = arith.mulf %321, %302 : vector<8x64xf32>
    %323 = vector.extract_strided_slice %318 {offsets = [0, 0], sizes = [8, 64], strides = [1, 1]} : vector<8x192xf32> to vector<8x64xf32>
    %324 = arith.mulf %323, %320 : vector<8x64xf32>
    %325 = arith.addf %322, %324 : vector<8x64xf32>
    %326 = vector.extract_strided_slice %318 {offsets = [0, 128], sizes = [8, 64], strides = [1, 1]} : vector<8x192xf32> to vector<8x64xf32>
    %327 = math.tanh %325 : vector<8x64xf32>
    %328 = arith.mulf %326, %327 : vector<8x64xf32>
    %329 = vector.extract_strided_slice %328 {offsets = [0, 0], sizes = [8, 32], strides = [1, 1]} : vector<8x64xf32> to vector<8x32xf32>
    %c0_111 = arith.constant 0 : index
    %c256 = arith.constant 256 : index
    %330 = vector.load %arg32[%c0_111, %c256] : memref<8x512xf32, #tpu.memory_space<vmem>>, vector<8x32xf32>
    tpu.vector_store %arg32[%c0_111, %c256], %329 {strides = array<i32>} : memref<8x512xf32, #tpu.memory_space<vmem>>, vector<8x32xf32>,
    %331 = vector.extract_strided_slice %328 {offsets = [0, 32], sizes = [8, 32], strides = [1, 1]} : vector<8x64xf32> to vector<8x32xf32>
    %c0_112 = arith.constant 0 : index
    %c224 = arith.constant 224 : index
    %332 = vector.load %arg32[%c0_112, %c224] : memref<8x512xf32, #tpu.memory_space<vmem>>, vector<8x32xf32>
    tpu.vector_store %arg32[%c0_112, %c224], %331 {strides = array<i32>} : memref<8x512xf32, #tpu.memory_space<vmem>>, vector<8x32xf32>,
    %333 = vector.extract_strided_slice %214 {offsets = [40, 0], sizes = [8, 256], strides = [1, 1]} : vector<64x256xf32> to vector<8x256xf32>
    %cst_113 = arith.constant dense<0.000000e+00> : vector<8x256xf32>
    %334 = tpu.matmul %328, %215, %cst_113 {dimension_numbers = #tpu.dot_dimension_numbers<[1], [0], [0], [1], [0, 0, 1, 1], [], []>} : vector<8x64xf32>, vector<64x256xf32>, vector<8x256xf32> -> vector<8x256xf32>
    %335 = arith.addf %333, %334 : vector<8x256xf32>
    %336 = vector.extract_strided_slice %335 {offsets = [0, 0], sizes = [8, 192], strides = [1, 1]} : vector<8x256xf32> to vector<8x192xf32>
    %337 = arith.negf %336 : vector<8x192xf32>
    %338 = math.exp %337 : vector<8x192xf32>
    %cst_114 = arith.constant 1.000000e+00 : f32
    %339 = vector.broadcast %cst_114 : f32 to vector<8x192xf32>
    %340 = arith.addf %339, %338 : vector<8x192xf32>
    %341 = arith.divf %339, %340 : vector<8x192xf32>
    %342 = vector.extract_strided_slice %335 {offsets = [0, 192], sizes = [8, 64], strides = [1, 1]} : vector<8x256xf32> to vector<8x64xf32>
    %343 = math.tanh %342 : vector<8x64xf32>
    %344 = vector.extract_strided_slice %341 {offsets = [0, 64], sizes = [8, 64], strides = [1, 1]} : vector<8x192xf32> to vector<8x64xf32>
    %345 = arith.mulf %344, %325 : vector<8x64xf32>
    %346 = vector.extract_strided_slice %341 {offsets = [0, 0], sizes = [8, 64], strides = [1, 1]} : vector<8x192xf32> to vector<8x64xf32>
    %347 = arith.mulf %346, %343 : vector<8x64xf32>
    %348 = arith.addf %345, %347 : vector<8x64xf32>
    %349 = vector.extract_strided_slice %341 {offsets = [0, 128], sizes = [8, 64], strides = [1, 1]} : vector<8x192xf32> to vector<8x64xf32>
    %350 = math.tanh %348 : vector<8x64xf32>
    %351 = arith.mulf %349, %350 : vector<8x64xf32>
    %352 = vector.extract_strided_slice %351 {offsets = [0, 0], sizes = [8, 32], strides = [1, 1]} : vector<8x64xf32> to vector<8x32xf32>
    %c0_115 = arith.constant 0 : index
    %c320 = arith.constant 320 : index
    %353 = vector.load %arg32[%c0_115, %c320] : memref<8x512xf32, #tpu.memory_space<vmem>>, vector<8x32xf32>
    tpu.vector_store %arg32[%c0_115, %c320], %352 {strides = array<i32>} : memref<8x512xf32, #tpu.memory_space<vmem>>, vector<8x32xf32>,
    %354 = vector.extract_strided_slice %351 {offsets = [0, 32], sizes = [8, 32], strides = [1, 1]} : vector<8x64xf32> to vector<8x32xf32>
    %c0_116 = arith.constant 0 : index
    %c160 = arith.constant 160 : index
    %355 = vector.load %arg32[%c0_116, %c160] : memref<8x512xf32, #tpu.memory_space<vmem>>, vector<8x32xf32>
    tpu.vector_store %arg32[%c0_116, %c160], %354 {strides = array<i32>} : memref<8x512xf32, #tpu.memory_space<vmem>>, vector<8x32xf32>,
    %356 = vector.extract_strided_slice %214 {offsets = [48, 0], sizes = [8, 256], strides = [1, 1]} : vector<64x256xf32> to vector<8x256xf32>
    %cst_117 = arith.constant dense<0.000000e+00> : vector<8x256xf32>
    %357 = tpu.matmul %351, %215, %cst_117 {dimension_numbers = #tpu.dot_dimension_numbers<[1], [0], [0], [1], [0, 0, 1, 1], [], []>} : vector<8x64xf32>, vector<64x256xf32>, vector<8x256xf32> -> vector<8x256xf32>
    %358 = arith.addf %356, %357 : vector<8x256xf32>
    %359 = vector.extract_strided_slice %358 {offsets = [0, 0], sizes = [8, 192], strides = [1, 1]} : vector<8x256xf32> to vector<8x192xf32>
    %360 = arith.negf %359 : vector<8x192xf32>
    %361 = math.exp %360 : vector<8x192xf32>
    %cst_118 = arith.constant 1.000000e+00 : f32
    %362 = vector.broadcast %cst_118 : f32 to vector<8x192xf32>
    %363 = arith.addf %362, %361 : vector<8x192xf32>
    %364 = arith.divf %362, %363 : vector<8x192xf32>
    %365 = vector.extract_strided_slice %358 {offsets = [0, 192], sizes = [8, 64], strides = [1, 1]} : vector<8x256xf32> to vector<8x64xf32>
    %366 = math.tanh %365 : vector<8x64xf32>
    %367 = vector.extract_strided_slice %364 {offsets = [0, 64], sizes = [8, 64], strides = [1, 1]} : vector<8x192xf32> to vector<8x64xf32>
    %368 = arith.mulf %367, %348 : vector<8x64xf32>
    %369 = vector.extract_strided_slice %364 {offsets = [0, 0], sizes = [8, 64], strides = [1, 1]} : vector<8x192xf32> to vector<8x64xf32>
    %370 = arith.mulf %369, %366 : vector<8x64xf32>
    %371 = arith.addf %368, %370 : vector<8x64xf32>
    %372 = vector.extract_strided_slice %364 {offsets = [0, 128], sizes = [8, 64], strides = [1, 1]} : vector<8x192xf32> to vector<8x64xf32>
    %373 = math.tanh %371 : vector<8x64xf32>
    %374 = arith.mulf %372, %373 : vector<8x64xf32>
    %375 = vector.extract_strided_slice %374 {offsets = [0, 0], sizes = [8, 32], strides = [1, 1]} : vector<8x64xf32> to vector<8x32xf32>
    %c0_119 = arith.constant 0 : index
    %c384 = arith.constant 384 : index
    %376 = vector.load %arg32[%c0_119, %c384] : memref<8x512xf32, #tpu.memory_space<vmem>>, vector<8x32xf32>
    tpu.vector_store %arg32[%c0_119, %c384], %375 {strides = array<i32>} : memref<8x512xf32, #tpu.memory_space<vmem>>, vector<8x32xf32>,
    %377 = vector.extract_strided_slice %374 {offsets = [0, 32], sizes = [8, 32], strides = [1, 1]} : vector<8x64xf32> to vector<8x32xf32>
    %c0_120 = arith.constant 0 : index
    %c96_121 = arith.constant 96 : index
    %378 = vector.load %arg32[%c0_120, %c96_121] : memref<8x512xf32, #tpu.memory_space<vmem>>, vector<8x32xf32>
    tpu.vector_store %arg32[%c0_120, %c96_121], %377 {strides = array<i32>} : memref<8x512xf32, #tpu.memory_space<vmem>>, vector<8x32xf32>,
    %379 = vector.extract_strided_slice %214 {offsets = [56, 0], sizes = [8, 256], strides = [1, 1]} : vector<64x256xf32> to vector<8x256xf32>
    %cst_122 = arith.constant dense<0.000000e+00> : vector<8x256xf32>
    %380 = tpu.matmul %374, %215, %cst_122 {dimension_numbers = #tpu.dot_dimension_numbers<[1], [0], [0], [1], [0, 0, 1, 1], [], []>} : vector<8x64xf32>, vector<64x256xf32>, vector<8x256xf32> -> vector<8x256xf32>
    %381 = arith.addf %379, %380 : vector<8x256xf32>
    %382 = vector.extract_strided_slice %381 {offsets = [0, 0], sizes = [8, 192], strides = [1, 1]} : vector<8x256xf32> to vector<8x192xf32>
    %383 = arith.negf %382 : vector<8x192xf32>
    %384 = math.exp %383 : vector<8x192xf32>
    %cst_123 = arith.constant 1.000000e+00 : f32
    %385 = vector.broadcast %cst_123 : f32 to vector<8x192xf32>
    %386 = arith.addf %385, %384 : vector<8x192xf32>
    %387 = arith.divf %385, %386 : vector<8x192xf32>
    %388 = vector.extract_strided_slice %381 {offsets = [0, 192], sizes = [8, 64], strides = [1, 1]} : vector<8x256xf32> to vector<8x64xf32>
    %389 = math.tanh %388 : vector<8x64xf32>
    %390 = vector.extract_strided_slice %387 {offsets = [0, 64], sizes = [8, 64], strides = [1, 1]} : vector<8x192xf32> to vector<8x64xf32>
    %391 = arith.mulf %390, %371 : vector<8x64xf32>
    %392 = vector.extract_strided_slice %387 {offsets = [0, 0], sizes = [8, 64], strides = [1, 1]} : vector<8x192xf32> to vector<8x64xf32>
    %393 = arith.mulf %392, %389 : vector<8x64xf32>
    %394 = arith.addf %391, %393 : vector<8x64xf32>
    %395 = vector.extract_strided_slice %387 {offsets = [0, 128], sizes = [8, 64], strides = [1, 1]} : vector<8x192xf32> to vector<8x64xf32>
    %396 = math.tanh %394 : vector<8x64xf32>
    %397 = arith.mulf %395, %396 : vector<8x64xf32>
    %398 = vector.extract_strided_slice %397 {offsets = [0, 0], sizes = [8, 32], strides = [1, 1]} : vector<8x64xf32> to vector<8x32xf32>
    %c0_124 = arith.constant 0 : index
    %c448 = arith.constant 448 : index
    %399 = vector.load %arg32[%c0_124, %c448] : memref<8x512xf32, #tpu.memory_space<vmem>>, vector<8x32xf32>
    tpu.vector_store %arg32[%c0_124, %c448], %398 {strides = array<i32>} : memref<8x512xf32, #tpu.memory_space<vmem>>, vector<8x32xf32>,
    %400 = vector.extract_strided_slice %397 {offsets = [0, 32], sizes = [8, 32], strides = [1, 1]} : vector<8x64xf32> to vector<8x32xf32>
    %c0_125 = arith.constant 0 : index
    %c32_126 = arith.constant 32 : index
    %401 = vector.load %arg32[%c0_125, %c32_126] : memref<8x512xf32, #tpu.memory_space<vmem>>, vector<8x32xf32>
    tpu.vector_store %arg32[%c0_125, %c32_126], %400 {strides = array<i32>} : memref<8x512xf32, #tpu.memory_space<vmem>>, vector<8x32xf32>,
    %c0_127 = arith.constant 0 : index
    %c0_128 = arith.constant 0 : index
    %402 = vector.load %arg32[%c0_127, %c0_128] : memref<8x512xf32, #tpu.memory_space<vmem>>, vector<8x512xf32>
    %c0_129 = arith.constant 0 : index
    %c0_130 = arith.constant 0 : index
    %403 = vector.load %arg10[%c0_129, %c0_130] : memref<512x1024xf32, #tpu.memory_space<vmem>>, vector<512x1024xf32>
    %cst_131 = arith.constant dense<0.000000e+00> : vector<8x1024xf32>
    %404 = tpu.matmul %402, %403, %cst_131 {dimension_numbers = #tpu.dot_dimension_numbers<[1], [0], [0], [1], [0, 0, 1, 1], [], []>} : vector<8x512xf32>, vector<512x1024xf32>, vector<8x1024xf32> -> vector<8x1024xf32>
    %c0_132 = arith.constant 0 : index
    %c0_133 = arith.constant 0 : index
    %405 = vector.load %arg11[%c0_132, %c0_133] : memref<1x1024xf32, #tpu.memory_space<vmem>>, vector<1x1024xf32>
    %406 = vector.broadcast %405 : vector<1x1024xf32> to vector<8x1024xf32>
    %407 = arith.addf %404, %406 : vector<8x1024xf32>
    %cst_134 = arith.constant 0.000000e+00 : f32
    %408 = vector.broadcast %cst_134 : f32 to vector<8x1024xf32>
    %409 = arith.maximumf %407, %408 : vector<8x1024xf32>
    %c0_135 = arith.constant 0 : index
    %c0_136 = arith.constant 0 : index
    %410 = vector.load %arg1[%c0_135, %c0_136] : memref<8x50xf32, #tpu.memory_space<vmem>>, vector<8x50xf32>
    %c0_137 = arith.constant 0 : index
    %c0_138 = arith.constant 0 : index
    %411 = vector.load %arg12[%c0_137, %c0_138] : memref<50x32xf32, #tpu.memory_space<vmem>>, vector<50x32xf32>
    %cst_139 = arith.constant dense<0.000000e+00> : vector<8x32xf32>
    %412 = tpu.matmul %410, %411, %cst_139 {dimension_numbers = #tpu.dot_dimension_numbers<[1], [0], [0], [1], [0, 0, 1, 1], [], []>} : vector<8x50xf32>, vector<50x32xf32>, vector<8x32xf32> -> vector<8x32xf32>
    %c0_140 = arith.constant 0 : index
    %c0_141 = arith.constant 0 : index
    %413 = vector.load %arg13[%c0_140, %c0_141] : memref<1x32xf32, #tpu.memory_space<vmem>>, vector<1x32xf32>
    %414 = vector.broadcast %413 : vector<1x32xf32> to vector<8x32xf32>
    %415 = arith.addf %412, %414 : vector<8x32xf32>
    %cst_142 = arith.constant 0.000000e+00 : f32
    %416 = vector.broadcast %cst_142 : f32 to vector<8x32xf32>
    %417 = arith.maximumf %415, %416 : vector<8x32xf32>
    %c0_143 = arith.constant 0 : index
    %c0_144 = arith.constant 0 : index
    %418 = vector.load %arg2[%c0_143, %c0_144] : memref<8x20xf32, #tpu.memory_space<vmem>>, vector<8x20xf32>
    %c0_145 = arith.constant 0 : index
    %c0_146 = arith.constant 0 : index
    %419 = vector.load %arg14[%c0_145, %c0_146] : memref<20x8xf32, #tpu.memory_space<vmem>>, vector<20x8xf32>
    %cst_147 = arith.constant dense<0.000000e+00> : vector<8x8xf32>
    %420 = tpu.matmul %418, %419, %cst_147 {dimension_numbers = #tpu.dot_dimension_numbers<[1], [0], [0], [1], [0, 0, 1, 1], [], []>} : vector<8x20xf32>, vector<20x8xf32>, vector<8x8xf32> -> vector<8x8xf32>
    %c0_148 = arith.constant 0 : index
    %c0_149 = arith.constant 0 : index
    %421 = vector.load %arg15[%c0_148, %c0_149] : memref<1x8xf32, #tpu.memory_space<vmem>>, vector<1x8xf32>
    %422 = vector.broadcast %421 : vector<1x8xf32> to vector<8x8xf32>
    %423 = arith.addf %420, %422 : vector<8x8xf32>
    %cst_150 = arith.constant 0.000000e+00 : f32
    %424 = vector.broadcast %cst_150 : f32 to vector<8x8xf32>
    %425 = arith.maximumf %423, %424 : vector<8x8xf32>
    %cst_151 = arith.constant 0.000000e+00 : f32
    %426 = vector.broadcast %cst_151 : f32 to vector<8x87xf32>
    %c0_152 = arith.constant 0 : index
    %c0_153 = arith.constant 0 : index
    %427 = vector.load %arg3[%c0_152, %c0_153] : memref<8x1xf32, #tpu.memory_space<vmem>>, vector<8x1xf32>
    %428 = tpu.concatenate %409, %417, %425, %427, %426 in 1 : vector<8x1024xf32>, vector<8x32xf32>, vector<8x8xf32>, vector<8x1xf32>, vector<8x87xf32> -> vector<8x1152xf32>
    %cst_154 = arith.constant dense<0.000000e+00> : vector<8xf32>
    %429 = vector.multi_reduction <add>, %428, %cst_154 [1] : vector<8x1152xf32> to vector<8xf32>
    %430 = vector.shape_cast %429 : vector<8xf32> to vector<8x1xf32>
    %cst_155 = arith.constant 9.38967161E-4 : f32
    %431 = vector.broadcast %cst_155 : f32 to vector<8x1xf32>
    %432 = arith.mulf %430, %431 : vector<8x1xf32>
    %433 = arith.mulf %428, %428 : vector<8x1152xf32>
    %cst_156 = arith.constant dense<0.000000e+00> : vector<8xf32>
    %434 = vector.multi_reduction <add>, %433, %cst_156 [1] : vector<8x1152xf32> to vector<8xf32>
    %435 = vector.shape_cast %434 : vector<8xf32> to vector<8x1xf32>
    %cst_157 = arith.constant 9.38967161E-4 : f32
    %436 = vector.broadcast %cst_157 : f32 to vector<8x1xf32>
    %437 = arith.mulf %435, %436 : vector<8x1xf32>
    %438 = arith.mulf %432, %432 : vector<8x1xf32>
    %439 = arith.subf %437, %438 : vector<8x1xf32>
    %440 = vector.broadcast %432 : vector<8x1xf32> to vector<8x1152xf32>
    %441 = arith.subf %428, %440 : vector<8x1152xf32>
    %cst_158 = arith.constant 9.99999974E-6 : f32
    %442 = vector.broadcast %cst_158 : f32 to vector<8x1xf32>
    %443 = arith.addf %439, %442 : vector<8x1xf32>
    %444 = math.rsqrt %443 : vector<8x1xf32>
    %445 = vector.broadcast %444 : vector<8x1xf32> to vector<8x1152xf32>
    %446 = arith.mulf %441, %445 : vector<8x1152xf32>
    %c0_159 = arith.constant 0 : index
    %c0_160 = arith.constant 0 : index
    %447 = vector.load %arg16[%c0_159, %c0_160] : memref<1x1152xf32, #tpu.memory_space<vmem>>, vector<1x1152xf32>
    %448 = vector.broadcast %447 : vector<1x1152xf32> to vector<8x1152xf32>
    %449 = arith.mulf %446, %448 : vector<8x1152xf32>
    %c0_161 = arith.constant 0 : index
    %c0_162 = arith.constant 0 : index
    %450 = vector.load %arg17[%c0_161, %c0_162] : memref<1x1152xf32, #tpu.memory_space<vmem>>, vector<1x1152xf32>
    %451 = vector.broadcast %450 : vector<1x1152xf32> to vector<8x1152xf32>
    %452 = arith.addf %449, %451 : vector<8x1152xf32>
    %c0_163 = arith.constant 0 : index
    %c0_164 = arith.constant 0 : index
    %453 = vector.load %arg18[%c0_163, %c0_164] : memref<1152x512xf32, #tpu.memory_space<vmem>>, vector<1152x512xf32>
    %cst_165 = arith.constant dense<0.000000e+00> : vector<8x512xf32>
    %454 = tpu.matmul %452, %453, %cst_165 {dimension_numbers = #tpu.dot_dimension_numbers<[1], [0], [0], [1], [0, 0, 1, 1], [], []>} : vector<8x1152xf32>, vector<1152x512xf32>, vector<8x512xf32> -> vector<8x512xf32>
    %c0_166 = arith.constant 0 : index
    %c0_167 = arith.constant 0 : index
    %455 = vector.load %arg19[%c0_166, %c0_167] : memref<1x512xf32, #tpu.memory_space<vmem>>, vector<1x512xf32>
    %456 = vector.broadcast %455 : vector<1x512xf32> to vector<8x512xf32>
    %457 = arith.addf %454, %456 : vector<8x512xf32>
    %cst_168 = arith.constant 0.000000e+00 : f32
    %458 = vector.broadcast %cst_168 : f32 to vector<8x512xf32>
    %459 = arith.maximumf %457, %458 : vector<8x512xf32>
    %cst_169 = arith.constant dense<0.000000e+00> : vector<8xf32>
    %460 = vector.multi_reduction <add>, %459, %cst_169 [1] : vector<8x512xf32> to vector<8xf32>
    %461 = vector.shape_cast %460 : vector<8xf32> to vector<8x1xf32>
    %cst_170 = arith.constant 5.120000e+02 : f32
    %462 = vector.broadcast %cst_170 : f32 to vector<8x1xf32>
    %463 = arith.divf %461, %462 : vector<8x1xf32>
    %464 = vector.broadcast %463 : vector<8x1xf32> to vector<8x512xf32>
    %465 = arith.subf %459, %464 : vector<8x512xf32>
    %466 = arith.mulf %465, %465 : vector<8x512xf32>
    %cst_171 = arith.constant dense<0.000000e+00> : vector<8xf32>
    %467 = vector.multi_reduction <add>, %466, %cst_171 [1] : vector<8x512xf32> to vector<8xf32>
    %468 = vector.shape_cast %467 : vector<8xf32> to vector<8x1xf32>
    %cst_172 = arith.constant 5.120000e+02 : f32
    %469 = vector.broadcast %cst_172 : f32 to vector<8x1xf32>
    %470 = arith.divf %468, %469 : vector<8x1xf32>
    %471 = vector.broadcast %463 : vector<8x1xf32> to vector<8x512xf32>
    %472 = arith.subf %459, %471 : vector<8x512xf32>
    %cst_173 = arith.constant 9.99999974E-6 : f32
    %473 = vector.broadcast %cst_173 : f32 to vector<8x1xf32>
    %474 = arith.addf %470, %473 : vector<8x1xf32>
    %475 = math.rsqrt %474 : vector<8x1xf32>
    %476 = vector.broadcast %475 : vector<8x1xf32> to vector<8x512xf32>
    %477 = arith.mulf %472, %476 : vector<8x512xf32>
    %c0_174 = arith.constant 0 : index
    %c0_175 = arith.constant 0 : index
    %478 = vector.load %arg20[%c0_174, %c0_175] : memref<1x512xf32, #tpu.memory_space<vmem>>, vector<1x512xf32>
    %479 = vector.broadcast %478 : vector<1x512xf32> to vector<8x512xf32>
    %480 = arith.mulf %477, %479 : vector<8x512xf32>
    %c0_176 = arith.constant 0 : index
    %c0_177 = arith.constant 0 : index
    %481 = vector.load %arg21[%c0_176, %c0_177] : memref<1x512xf32, #tpu.memory_space<vmem>>, vector<1x512xf32>
    %482 = vector.broadcast %481 : vector<1x512xf32> to vector<8x512xf32>
    %483 = arith.addf %480, %482 : vector<8x512xf32>
    %c0_178 = arith.constant 0 : index
    %c0_179 = arith.constant 0 : index
    %484 = vector.load %arg22[%c0_178, %c0_179] : memref<512x128xf32, #tpu.memory_space<vmem>>, vector<512x128xf32>
    %cst_180 = arith.constant dense<0.000000e+00> : vector<8x128xf32>
    %485 = tpu.matmul %483, %484, %cst_180 {dimension_numbers = #tpu.dot_dimension_numbers<[1], [0], [0], [1], [0, 0, 1, 1], [], []>} : vector<8x512xf32>, vector<512x128xf32>, vector<8x128xf32> -> vector<8x128xf32>
    %c0_181 = arith.constant 0 : index
    %c0_182 = arith.constant 0 : index
    %486 = vector.load %arg23[%c0_181, %c0_182] : memref<1x128xf32, #tpu.memory_space<vmem>>, vector<1x128xf32>
    %487 = vector.broadcast %486 : vector<1x128xf32> to vector<8x128xf32>
    %488 = arith.addf %485, %487 : vector<8x128xf32>
    %cst_183 = arith.constant 0.000000e+00 : f32
    %489 = vector.broadcast %cst_183 : f32 to vector<8x128xf32>
    %490 = arith.maximumf %488, %489 : vector<8x128xf32>
    %cst_184 = arith.constant dense<0.000000e+00> : vector<8xf32>
    %491 = vector.multi_reduction <add>, %490, %cst_184 [1] : vector<8x128xf32> to vector<8xf32>
    %492 = vector.shape_cast %491 : vector<8xf32> to vector<8x1xf32>
    %cst_185 = arith.constant 1.280000e+02 : f32
    %493 = vector.broadcast %cst_185 : f32 to vector<8x1xf32>
    %494 = arith.divf %492, %493 : vector<8x1xf32>
    %495 = vector.broadcast %494 : vector<8x1xf32> to vector<8x128xf32>
    %496 = arith.subf %490, %495 : vector<8x128xf32>
    %497 = arith.mulf %496, %496 : vector<8x128xf32>
    %cst_186 = arith.constant dense<0.000000e+00> : vector<8xf32>
    %498 = vector.multi_reduction <add>, %497, %cst_186 [1] : vector<8x128xf32> to vector<8xf32>
    %499 = vector.shape_cast %498 : vector<8xf32> to vector<8x1xf32>
    %cst_187 = arith.constant 1.280000e+02 : f32
    %500 = vector.broadcast %cst_187 : f32 to vector<8x1xf32>
    %501 = arith.divf %499, %500 : vector<8x1xf32>
    %502 = vector.broadcast %494 : vector<8x1xf32> to vector<8x128xf32>
    %503 = arith.subf %490, %502 : vector<8x128xf32>
    %cst_188 = arith.constant 9.99999974E-6 : f32
    %504 = vector.broadcast %cst_188 : f32 to vector<8x1xf32>
    %505 = arith.addf %501, %504 : vector<8x1xf32>
    %506 = math.rsqrt %505 : vector<8x1xf32>
    %507 = vector.broadcast %506 : vector<8x1xf32> to vector<8x128xf32>
    %508 = arith.mulf %503, %507 : vector<8x128xf32>
    %c0_189 = arith.constant 0 : index
    %c0_190 = arith.constant 0 : index
    %509 = vector.load %arg24[%c0_189, %c0_190] : memref<1x128xf32, #tpu.memory_space<vmem>>, vector<1x128xf32>
    %510 = vector.broadcast %509 : vector<1x128xf32> to vector<8x128xf32>
    %511 = arith.mulf %508, %510 : vector<8x128xf32>
    %c0_191 = arith.constant 0 : index
    %c0_192 = arith.constant 0 : index
    %512 = vector.load %arg25[%c0_191, %c0_192] : memref<1x128xf32, #tpu.memory_space<vmem>>, vector<1x128xf32>
    %513 = vector.broadcast %512 : vector<1x128xf32> to vector<8x128xf32>
    %514 = arith.addf %511, %513 : vector<8x128xf32>
    %c0_193 = arith.constant 0 : index
    %c0_194 = arith.constant 0 : index
    %515 = vector.load %arg26[%c0_193, %c0_194] : memref<128x32xf32, #tpu.memory_space<vmem>>, vector<128x32xf32>
    %cst_195 = arith.constant dense<0.000000e+00> : vector<8x32xf32>
    %516 = tpu.matmul %514, %515, %cst_195 {dimension_numbers = #tpu.dot_dimension_numbers<[1], [0], [0], [1], [0, 0, 1, 1], [], []>} : vector<8x128xf32>, vector<128x32xf32>, vector<8x32xf32> -> vector<8x32xf32>
    %c0_196 = arith.constant 0 : index
    %c0_197 = arith.constant 0 : index
    %517 = vector.load %arg27[%c0_196, %c0_197] : memref<1x32xf32, #tpu.memory_space<vmem>>, vector<1x32xf32>
    %518 = vector.broadcast %517 : vector<1x32xf32> to vector<8x32xf32>
    %519 = arith.addf %516, %518 : vector<8x32xf32>
    %cst_198 = arith.constant 0.000000e+00 : f32
    %520 = vector.broadcast %cst_198 : f32 to vector<8x32xf32>
    %521 = arith.maximumf %519, %520 : vector<8x32xf32>
    %c0_199 = arith.constant 0 : index
    %c0_200 = arith.constant 0 : index
    %522 = vector.load %arg28[%c0_199, %c0_200] : memref<32x128xf32, #tpu.memory_space<vmem>>, vector<32x128xf32>
    %cst_201 = arith.constant dense<0.000000e+00> : vector<8x128xf32>
    %523 = tpu.matmul %521, %522, %cst_201 {dimension_numbers = #tpu.dot_dimension_numbers<[1], [0], [0], [1], [0, 0, 1, 1], [], []>} : vector<8x32xf32>, vector<32x128xf32>, vector<8x128xf32> -> vector<8x128xf32>
    %c0_202 = arith.constant 0 : index
    %c0_203 = arith.constant 0 : index
    %524 = vector.load %arg29[%c0_202, %c0_203] : memref<1x128xf32, #tpu.memory_space<vmem>>, vector<1x128xf32>
    %525 = vector.broadcast %524 : vector<1x128xf32> to vector<8x128xf32>
    %526 = arith.addf %523, %525 : vector<8x128xf32>
    %c0_204 = arith.constant 0 : index
    %c0_205 = arith.constant 0 : index
    %527 = vector.load %arg30[%c0_204, %c0_205] : memref<8x128xf32, #tpu.memory_space<vmem>>, vector<8x128xf32>
    tpu.vector_store %arg30[%c0_204, %c0_205], %526 {strides = array<i32>} : memref<8x128xf32, #tpu.memory_space<vmem>>, vector<8x128xf32>,
    return
  }
}

</mosaic_0001>

<bundles_post_ra>
// kernel: crypto_speculation_forward.1
= control target key start
LH: loop header
LB: loop body
LE: loop exit
PB: predicated region body
PF: predicated region fallthrough
CT: control target
= control target key end

     0   :  { %s8689_s6 = smov 1   ;;  %s8690_s10 = smov 2   ;;  %s9834_s0 = inlined_call_operand.smem [shape: u32[31], index: -1, kind: input, shape index: {}] }
   0x1   :  { %s8764_s5 = sld [smem:[%s9834_s0]]   ;;  %s8691_s14 = smov 3  }
   0x2   :  { %s8769_s9 = sld [smem:[%s9834_s0 + %s8689_s6]]   ;;  %s8692_s18 = smov 4  }
   0x3   :  { %s8774_s13 = sld [smem:[%s9834_s0 + %s8690_s10]]   ;;  %s8693_s22 = smov 5  }
   0x4   :  { %s8779_s17 = sld [smem:[%s9834_s0 + %s8691_s14]]   ;;  %s8694_s26 = smov 6  }
   0x5   :  { %s8784_s21 = sld [smem:[%s9834_s0 + %s8692_s18]]   ;;  %s8695_s30 = smov 7  }
   0x6   :  { %s8789_s25 = sld [smem:[%s9834_s0 + %s8693_s22]]   ;;  %s8696_s4 = smov 8  }
   0x7   :  { %9847 = sst [smem:[#allocation55_spill]] %s8764_s5  ;;  %s8697_s10 = smov 9  }
   0x8   :  { %s8794_s29 = sld [smem:[%s9834_s0 + %s8694_s26]]   ;;  %s8698_s15 = smov 10  }
   0x9   :  { %s8799_s3 = sld [smem:[%s9834_s0 + %s8695_s30]]   ;;  %s8699_s20 = smov 11  }
   0xa   :  { %9848 = sst [smem:[#allocation56_spill]] %s8779_s17  ;;  %s8700_s26 = smov 12  }
   0xb   :  { %s8804_s8 = sld [smem:[%s9834_s0 + %s8696_s4]]   ;;  %s8701_s1 = smov 13  }
   0xc   :  { %s8809_s14 = sld [smem:[%s9834_s0 + %s8697_s10]]   ;;  %s8702_s7 = smov 14  }
   0xd   :  { %s8814_s19 = sld [smem:[%s9834_s0 + %s8698_s15]]   ;;  %s8703_s15 = smov 15  }
   0xe   :  { %s8819_s24 = sld [smem:[%s9834_s0 + %s8699_s20]]   ;;  %s8704_s22 = smov 16  }
   0xf   :  { %s8824_s30 = sld [smem:[%s9834_s0 + %s8700_s26]]   ;;  %s8705_s28 = smov 17  }
  0x10   :  { %s8829_s6 = sld [smem:[%s9834_s0 + %s8701_s1]]  }
  0x11   :  { %9849 = sst [smem:[#allocation57_spill]] %s8804_s8 }
  0x12   :  { %s8834_s12 = sld [smem:[%s9834_s0 + %s8702_s7]]   ;;  %s8706_s7 = smov 18  }
  0x13   :  { %9850 = sst [smem:[#allocation58_spill]] %s8814_s19 }
  0x14   :  { %s8839_s20 = sld [smem:[%s9834_s0 + %s8703_s15]]   ;;  %s8707_s15 = smov 19  }
  0x15   :  { %9851 = sst [smem:[#allocation59_spill]] %s8824_s30 }
  0x16   :  { %9852 = sst [smem:[#allocation60_spill]] %s8829_s6 }
  0x17   :  { %s8844_s27 = sld [smem:[%s9834_s0 + %s8704_s22]]   ;;  %s8708_s22 = smov 20  }
  0x18   :  { %9853 = sst [smem:[#allocation61_spill]] %s8834_s12 }
  0x19   :  { %s8849_s4 = sld [smem:[%s9834_s0 + %s8705_s28]]   ;;  %s8709_s28 = smov 21  }
  0x1a   :  { %s8854_s17 = sld [smem:[%s9834_s0 + %s8706_s7]]   ;;  %s8710_s7 = smov 22  }
  0x1b   :  { %s8859_s12 = sld [smem:[%s9834_s0 + %s8707_s15]]   ;;  %s8711_s15 = smov 23  }
  0x1c   :  { %s8864_s30 = sld [smem:[%s9834_s0 + %s8708_s22]]   ;;  %s8712_s22 = smov 24  }
  0x1d   :  { %9854 = sst [smem:[#allocation62_spill]] %s8844_s27 }
  0x1e   :  { %s8869_s5 = sld [smem:[%s9834_s0 + %s8709_s28]]   ;;  %s8713_s28 = smov 25  }
  0x1f   :  { %s8879_s27 = sld [smem:[%s9834_s0 + %s8711_s15]]   ;;  %s8715_s15 = smov 27  }
  0x20   :  { %9855 = sst [smem:[#allocation63_spill]] %s8854_s17 }
  0x21   :  { %s8874_s17 = sld [smem:[%s9834_s0 + %s8710_s7]]   ;;  %s8714_s7 = smov 26  }
  0x22   :  { %9856 = sst [smem:[#allocation64_spill]] %s8864_s30 }
  0x23   :  { %s8884_s30 = sld [smem:[%s9834_s0 + %s8712_s22]]   ;;  %s8716_s22 = smov 28  }
  0x24   :  { %s8889_s6 = sld [smem:[%s9834_s0 + %s8713_s28]]   ;;  %s8717_s28 = smov 29  }
  0x25   :  { %s8899_s19 = sld [smem:[%s9834_s0 + %s8715_s15]]  }
  0x26   :  { %s8909_s8 = sld [smem:[%s9834_s0 + %s8717_s28]]  }
  0x27   :  { %9857 = sst [smem:[#allocation65_spill]] %s8874_s17 }
  0x28   :  { %s8894_s17 = sld [smem:[%s9834_s0 + %s8714_s7]]   ;;  %s8718_s7 = smov 30  }
  0x29   :  { %9858 = sst [smem:[#allocation66_spill]] %s8884_s30 }
  0x2a   :  { %s8904_s30 = sld [smem:[%s9834_s0 + %s8716_s22]]  }
  0x2e   :  { %9859 = sst [smem:[#allocation67_spill]] %s8894_s17 }
  0x2f   :  { %s8914_s17 = sld [smem:[%s9834_s0 + %s8718_s7]]  }
  0x30   :  { %66 = vsyncpa [#allocation5], 0 }
  0x31   :  { %67 = vsyncpa [#allocation7], 0 }
  0x32   :  { %68 = vsyncpa [#allocation10], 0 }
  0x33   :  { %69 = vsyncpa [#allocation13], 0 }
  0x34   :  { %70 = vsyncpa [#allocation16], 0 }
  0x35   :  { %71 = vsyncpa [#allocation19], 0 }
  0x36   :  { %72 = vsyncpa [#allocation22], 0 }
  0x37   :  { %73 = vsyncpa [#allocation25], 0 }
  0x38   :  { %74 = vsyncpa [#allocation28], 0 }
  0x39   :  { %75 = vsyncpa [#allocation31], 0 }
  0x3a   :  { %76 = vsyncpa [#allocation34], 0 }
  0x3b   :  { %77 = vsyncpa [#allocation37], 0 }
  0x3c   :  { %78 = vsyncpa [#allocation40], 0  ;;  %s8719_s15 = smov [#allocation6]   ;;  %s8113_s0 = scalar_lea.hbm %s8774_s13, 128 }
  0x3d   :  { %s97_s16 = sshll.u32 %s8719_s15, 4  ;;  %p8114_p0 = scmp.ne.s32.totalorder %s8774_s13, %s8113_s0  ;;  %s98_s16 = int_to_ptr.vmem [resolvable:$true] %s97_s16 }
  0x3e   :  { %p8117_p1 = scmp.lt.u32.totalorder %s8113_s0, %s8774_s13 }
  0x40   :  { %p8119_p2 = pnand %p8117_p1, %p8114_p0 }
  0x42   :  { %8122 = shalt.err (!%p8119_p2)
}
  0x43   :  { %s8123_s18 = scalar_lea.vmem %s98_s16, 128  ;;  %p8128_p4 = scmp.lt.s32.totalorder %s98_s16, %s98_s16 }
  0x44   :  { %p8124_p3 = scmp.ne.s32.totalorder %s98_s16, %s8123_s18  ;;  %p8129_p5 = scmp.lt.s32.totalorder %s8123_s18, %s8123_s18 }
  0x46   :  { %p8130_p6 = por %p8129_p5, %p8128_p4 }
  0x48   :  { %p8131_p7 = pnand %p8130_p6, %p8124_p3 }
  0x4a   :  { %8134 = shalt.err (!%p8131_p7)
}
  0x4b   :  { %100 = dma.hbm_to_vmem [thread:$0]  %s8774_s13, 128, %s98_s16, [#allocation7]  }
  0x4c   :  { %s8720_s22 = smov [#allocation9]   ;;  %s8721_s26 = smov [#allocation12]  }
  0x4d   :  { %s120_s23 = sshll.u32 %s8720_s22, 4  ;;  %s142_s28 = sshll.u32 %s8721_s26, 4  ;;  %s121_s23 = int_to_ptr.vmem [resolvable:$true] %s120_s23  ;;  %s143_s28 = int_to_ptr.vmem [resolvable:$true] %s142_s28 }
  0x4e   :  { %s8135_s1 = scalar_lea.hbm %s8789_s25, 2048 }
  0x4f   :  { %p8136_p8 = scmp.ne.s32.totalorder %s8789_s25, %s8135_s1  ;;  %p8139_p9 = scmp.lt.u32.totalorder %s8135_s1, %s8789_s25 }
  0x51   :  { %p8141_p10 = pnand %p8139_p9, %p8136_p8 }
  0x53   :  { %8144 = shalt.err (!%p8141_p10)
}
  0x54   :  { %s8145_s2 = scalar_lea.vmem %s121_s23, 2048  ;;  %p8150_p12 = scmp.lt.s32.totalorder %s121_s23, %s121_s23 }
  0x55   :  { %p8146_p11 = scmp.ne.s32.totalorder %s121_s23, %s8145_s2  ;;  %p8151_p13 = scmp.lt.s32.totalorder %s8145_s2, %s8145_s2 }
  0x57   :  { %p8152_p0 = por %p8151_p13, %p8150_p12 }
  0x59   :  { %p8153_p1 = pnand %p8152_p0, %p8146_p11 }
  0x5b   :  { %8156 = shalt.err (!%p8153_p1)
}
  0x5c   :  { %s8722_s7 = smov 256   ;;  %s8723_s13 = smov 16  }
  0x5d   :  { %126 = dma.hbm_to_vmem [thread:$0]  %s8789_s25, 2048, %s121_s23, [#allocation10], %s8722_s7, %s8722_s7, %s8723_s13  }
  0x5e   :  { %s8157_s10 = scalar_lea.hbm %s8799_s3, 4096 }
  0x5f   :  { %p8158_p2 = scmp.ne.s32.totalorder %s8799_s3, %s8157_s10  ;;  %p8161_p3 = scmp.lt.u32.totalorder %s8157_s10, %s8799_s3 }
  0x61   :  { %p8163_p4 = pnand %p8161_p3, %p8158_p2 }
  0x63   :  { %8166 = shalt.err (!%p8163_p4)
}
  0x64   :  { %s8167_s11 = scalar_lea.vmem %s143_s28, 4096  ;;  %p8172_p6 = scmp.lt.s32.totalorder %s143_s28, %s143_s28 }
  0x65   :  { %p8168_p5 = scmp.ne.s32.totalorder %s143_s28, %s8167_s11  ;;  %p8173_p7 = scmp.lt.s32.totalorder %s8167_s11, %s8167_s11 }
  0x67   :  { %p8174_p8 = por %p8173_p7, %p8172_p6 }
  0x69   :  { %p8175_p9 = pnand %p8174_p8, %p8168_p5 }
  0x6b   :  { %8178 = shalt.err (!%p8175_p9)
}
  0x6c   :  { %148 = dma.hbm_to_vmem [thread:$0]  %s8799_s3, 4096, %s143_s28, [#allocation13], %s8722_s7, %s8722_s7, %s8723_s13  }
  0x6d   :  { %s8724_s25 = smov [#allocation15]   ;;  %s8725_s16 = smov [#allocation18]  }
  0x6e   :  { %s167_s15 = sshll.u32 %s8724_s25, 4  ;;  %s189_s0 = sshll.u32 %s8725_s16, 4  ;;  %s168_s15 = int_to_ptr.vmem [resolvable:$true] %s167_s15  ;;  %s190_s0 = int_to_ptr.vmem [resolvable:$true] %s189_s0 }
  0x6f   :  { %s8179_s18 = scalar_lea.hbm %s8809_s14, 32 }
  0x70   :  { %p8180_p10 = scmp.ne.s32.totalorder %s8809_s14, %s8179_s18  ;;  %p8183_p11 = scmp.lt.u32.totalorder %s8179_s18, %s8809_s14 }
  0x72   :  { %p8185_p12 = pnand %p8183_p11, %p8180_p10 }
  0x74   :  { %8188 = shalt.err (!%p8185_p12)
}
  0x75   :  { %s8189_s22 = scalar_lea.vmem %s168_s15, 32  ;;  %p8194_p0 = scmp.lt.s32.totalorder %s168_s15, %s168_s15 }
  0x76   :  { %p8190_p13 = scmp.ne.s32.totalorder %s168_s15, %s8189_s22  ;;  %p8195_p1 = scmp.lt.s32.totalorder %s8189_s22, %s8189_s22 }
  0x78   :  { %p8196_p2 = por %p8195_p1, %p8194_p0 }
  0x7a   :  { %p8197_p3 = pnand %p8196_p2, %p8190_p13 }
  0x7c   :  { %8200 = shalt.err (!%p8197_p3)
}
  0x7d   :  { %170 = dma.hbm_to_vmem [thread:$0]  %s8809_s14, 32, %s168_s15, [#allocation16]  }
  0x7e   :  { %s8201_s3 = scalar_lea.hbm %s8819_s24, 128 }
  0x7f   :  { %p8202_p4 = scmp.ne.s32.totalorder %s8819_s24, %s8201_s3  ;;  %p8205_p5 = scmp.lt.u32.totalorder %s8201_s3, %s8819_s24 }
  0x81   :  { %p8207_p6 = pnand %p8205_p5, %p8202_p4 }
  0x83   :  { %8210 = shalt.err (!%p8207_p6)
}
  0x84   :  { %s8211_s23 = scalar_lea.vmem %s190_s0, 128  ;;  %p8216_p8 = scmp.lt.s32.totalorder %s190_s0, %s190_s0 }
  0x85   :  { %p8212_p7 = scmp.ne.s32.totalorder %s190_s0, %s8211_s23  ;;  %p8217_p9 = scmp.lt.s32.totalorder %s8211_s23, %s8211_s23 }
  0x87   :  { %p8218_p10 = por %p8217_p9, %p8216_p8 }
  0x89   :  { %p8219_p11 = pnand %p8218_p10, %p8212_p7 }
  0x8b   :  { %8222 = shalt.err (!%p8219_p11)
}
  0x8c   :  { %192 = dma.hbm_to_vmem [thread:$0]  %s8819_s24, 128, %s190_s0, [#allocation19]  }
  0x8d   :  { %s8726_s26 = smov [#allocation21]   ;;  %s8727_s28 = smov [#allocation24]  }
  0x8e   :  { %s213_s14 = sshll.u32 %s8726_s26, 4  ;;  %s233_s1 = sshll.u32 %s8727_s28, 4  ;;  %s214_s14 = int_to_ptr.vmem [resolvable:$true] %s213_s14  ;;  %s234_s1 = int_to_ptr.vmem [resolvable:$true] %s233_s1 }
  0x8f   :  { %s8223_s2 = scalar_lea.hbm %s8839_s20, 16 }
  0x90   :  { %p8224_p12 = scmp.ne.s32.totalorder %s8839_s20, %s8223_s2  ;;  %p8227_p13 = scmp.lt.u32.totalorder %s8223_s2, %s8839_s20 }
  0x92   :  { %p8229_p0 = pnand %p8227_p13, %p8224_p12 }
  0x94   :  { %8232 = shalt.err (!%p8229_p0)
}
  0x95   :  { %s8233_s10 = scalar_lea.vmem %s214_s14, 16  ;;  %s8237_s11 = scalar_lea.vmem %s214_s14, 32 }
  0x96   :  { %p8234_p1 = scmp.ne.s32.totalorder %s214_s14, %s8233_s10  ;;  %p8238_p2 = scmp.lt.s32.totalorder %s214_s14, %s214_s14 }
  0x97   :  { %p8239_p3 = scmp.lt.s32.totalorder %s8237_s11, %s8233_s10 }
  0x99   :  { %p8240_p4 = por %p8239_p3, %p8238_p2 }
  0x9b   :  { %p8241_p5 = pnand %p8240_p4, %p8234_p1 }
  0x9d   :  { %8244 = shalt.err (!%p8241_p5)
}
  0x9e   :  { %216 = dma.hbm_to_vmem [thread:$0]  %s8839_s20, 16, %s214_s14, [#allocation22]  }
  0x9f   :  { %s8245_s24 = scalar_lea.hbm %s8849_s4, 144 }
  0xa0   :  { %p8246_p6 = scmp.ne.s32.totalorder %s8849_s4, %s8245_s24  ;;  %p8249_p7 = scmp.lt.u32.totalorder %s8245_s24, %s8849_s4 }
  0xa2   :  { %p8251_p8 = pnand %p8249_p7, %p8246_p6 }
  0xa4   :  { %8254 = shalt.err (!%p8251_p8)
}
  0xa5   :  { %s8255_s25 = scalar_lea.vmem %s234_s1, 144  ;;  %s8259_s15 = scalar_lea.vmem %s234_s1, 160 }
  0xa6   :  { %p8256_p9 = scmp.ne.s32.totalorder %s234_s1, %s8255_s25  ;;  %p8260_p10 = scmp.lt.s32.totalorder %s234_s1, %s234_s1 }
  0xa7   :  { %p8261_p11 = scmp.lt.s32.totalorder %s8259_s15, %s8255_s25 }
  0xa9   :  { %p8262_p12 = por %p8261_p11, %p8260_p10 }
  0xab   :  { %p8263_p13 = pnand %p8262_p12, %p8256_p9 }
  0xad   :  { %8266 = shalt.err (!%p8263_p13)
}
  0xae   :  { %236 = dma.hbm_to_vmem [thread:$0]  %s8849_s4, 144, %s234_s1, [#allocation25]  }
  0xaf   :  { %s8728_s20 = smov [#allocation27]   ;;  %s8729_s0 = smov [#allocation30]  }
  0xb0   :  { %s255_s16 = sshll.u32 %s8728_s20, 4  ;;  %s275_s18 = sshll.u32 %s8729_s0, 4  ;;  %s256_s16 = int_to_ptr.vmem [resolvable:$true] %s255_s16  ;;  %s276_s18 = int_to_ptr.vmem [resolvable:$true] %s275_s18 }
  0xb1   :  { %s8267_s22 = scalar_lea.hbm %s8859_s12, 64 }
  0xb2   :  { %p8268_p0 = scmp.ne.s32.totalorder %s8859_s12, %s8267_s22  ;;  %p8271_p1 = scmp.lt.u32.totalorder %s8267_s22, %s8859_s12 }
  0xb4   :  { %p8273_p2 = pnand %p8271_p1, %p8268_p0 }
  0xb6   :  { %8276 = shalt.err (!%p8273_p2)
}
  0xb7   :  { %s8277_s3 = scalar_lea.vmem %s256_s16, 64  ;;  %p8282_p4 = scmp.lt.s32.totalorder %s256_s16, %s256_s16 }
  0xb8   :  { %p8278_p3 = scmp.ne.s32.totalorder %s256_s16, %s8277_s3  ;;  %p8283_p5 = scmp.lt.s32.totalorder %s8277_s3, %s8277_s3 }
  0xba   :  { %p8284_p6 = por %p8283_p5, %p8282_p4 }
  0xbc   :  { %p8285_p7 = pnand %p8284_p6, %p8278_p3 }
  0xbe   :  { %8288 = shalt.err (!%p8285_p7)
}
  0xbf   :  { %258 = dma.hbm_to_vmem [thread:$0]  %s8859_s12, 64, %s256_s16, [#allocation28]  }
  0xc0   :  { %s8289_s4 = scalar_lea.hbm %s8869_s5, 64 }
  0xc1   :  { %p8290_p8 = scmp.ne.s32.totalorder %s8869_s5, %s8289_s4  ;;  %p8293_p9 = scmp.lt.u32.totalorder %s8289_s4, %s8869_s5 }
  0xc3   :  { %p8295_p10 = pnand %p8293_p9, %p8290_p8 }
  0xc5   :  { %8298 = shalt.err (!%p8295_p10)
}
  0xc6   :  { %s8299_s23 = scalar_lea.vmem %s276_s18, 64  ;;  %p8304_p12 = scmp.lt.s32.totalorder %s276_s18, %s276_s18 }
  0xc7   :  { %p8300_p11 = scmp.ne.s32.totalorder %s276_s18, %s8299_s23  ;;  %p8305_p13 = scmp.lt.s32.totalorder %s8299_s23, %s8299_s23 }
  0xc9   :  { %p8306_p0 = por %p8305_p13, %p8304_p12 }
  0xcb   :  { %p8307_p1 = pnand %p8306_p0, %p8300_p11 }
  0xcd   :  { %8310 = shalt.err (!%p8307_p1)
}
  0xce   :  { %278 = dma.hbm_to_vmem [thread:$0]  %s8869_s5, 64, %s276_s18, [#allocation31]  }
  0xcf   :  { %s8730_s26 = smov [#allocation33]   ;;  %s8731_s14 = smov [#allocation36]  }
  0xd0   :  { %s297_s12 = sshll.u32 %s8730_s26, 4  ;;  %s317_s28 = sshll.u32 %s8731_s14, 4  ;;  %s298_s12 = int_to_ptr.vmem [resolvable:$true] %s297_s12  ;;  %s318_s28 = int_to_ptr.vmem [resolvable:$true] %s317_s28 }
  0xd1   :  { %s8311_s1 = scalar_lea.hbm %s8879_s27, 16 }
  0xd2   :  { %p8312_p2 = scmp.ne.s32.totalorder %s8879_s27, %s8311_s1  ;;  %p8315_p3 = scmp.lt.u32.totalorder %s8311_s1, %s8879_s27 }
  0xd4   :  { %p8317_p4 = pnand %p8315_p3, %p8312_p2 }
  0xd6   :  { %8320 = shalt.err (!%p8317_p4)
}
  0xd7   :  { %s8321_s2 = scalar_lea.vmem %s298_s12, 16  ;;  %s8325_s10 = scalar_lea.vmem %s298_s12, 32 }
  0xd8   :  { %p8322_p5 = scmp.ne.s32.totalorder %s298_s12, %s8321_s2  ;;  %p8326_p6 = scmp.lt.s32.totalorder %s298_s12, %s298_s12 }
  0xd9   :  { %p8327_p7 = scmp.lt.s32.totalorder %s8325_s10, %s8321_s2 }
  0xdb   :  { %p8328_p8 = por %p8327_p7, %p8326_p6 }
  0xdd   :  { %p8329_p9 = pnand %p8328_p8, %p8322_p5 }
  0xdf   :  { %8332 = shalt.err (!%p8329_p9)
}
  0xe0   :  { %300 = dma.hbm_to_vmem [thread:$0]  %s8879_s27, 16, %s298_s12, [#allocation34]  }
  0xe1   :  { %s8333_s5 = scalar_lea.hbm %s8889_s6, 16 }
  0xe2   :  { %p8334_p10 = scmp.ne.s32.totalorder %s8889_s6, %s8333_s5  ;;  %p8337_p11 = scmp.lt.u32.totalorder %s8333_s5, %s8889_s6 }
  0xe4   :  { %p8339_p12 = pnand %p8337_p11, %p8334_p10 }
  0xe6   :  { %8342 = shalt.err (!%p8339_p12)
}
  0xe7   :  { %s8343_s11 = scalar_lea.vmem %s318_s28, 16  ;;  %s8347_s24 = scalar_lea.vmem %s318_s28, 32 }
  0xe8   :  { %p8344_p13 = scmp.ne.s32.totalorder %s318_s28, %s8343_s11  ;;  %p8348_p0 = scmp.lt.s32.totalorder %s318_s28, %s318_s28 }
  0xe9   :  { %p8349_p1 = scmp.lt.s32.totalorder %s8347_s24, %s8343_s11 }
  0xeb   :  { %p8350_p2 = por %p8349_p1, %p8348_p0 }
  0xed   :  { %p8351_p3 = pnand %p8350_p2, %p8344_p13 }
  0xef   :  { %8354 = shalt.err (!%p8351_p3)
}
  0xf0   :  { %320 = dma.hbm_to_vmem [thread:$0]  %s8889_s6, 16, %s318_s28, [#allocation37]  }
  0xf1   :  { %s8732_s27 = smov [#allocation39]   ;;  %s8733_s15 = smov [#allocation4]  }
  0xf2   :  { %s338_s25 = sshll.u32 %s8732_s27, 4  ;;  %s87_s20 = sshll.u32 %s8733_s15, 4  ;;  %s339_s25 = int_to_ptr.vmem [resolvable:$true] %s338_s25  ;;  %s88_s20 = int_to_ptr.vmem [resolvable:$true] %s87_s20 }
  0xf3   :  { %s8355_s16 = scalar_lea.hbm %s8904_s30, 512 }
  0xf4   :  { %p8356_p4 = scmp.ne.s32.totalorder %s8904_s30, %s8355_s16  ;;  %p8359_p5 = scmp.lt.u32.totalorder %s8355_s16, %s8904_s30 }
  0xf6   :  { %p8361_p6 = pnand %p8359_p5, %p8356_p4 }
  0xf8   :  { %8364 = shalt.err (!%p8361_p6)
}
  0xf9   :  { %s8365_s0 = scalar_lea.vmem %s339_s25, 512  ;;  %p8370_p8 = scmp.lt.s32.totalorder %s339_s25, %s339_s25 }
  0xfa   :  { %p8366_p7 = scmp.ne.s32.totalorder %s339_s25, %s8365_s0  ;;  %p8371_p9 = scmp.lt.s32.totalorder %s8365_s0, %s8365_s0 }
  0xfc   :  { %p8372_p10 = por %p8371_p9, %p8370_p8 }
  0xfe   :  { %p8373_p11 = pnand %p8372_p10, %p8366_p7 }
 0x100   :  { %8376 = shalt.err (!%p8373_p11)
}
 0x101   :  { %s8734_s18 = smov 128   ;;  %s8735_s6 = smov 8  }
 0x102   :  { %344 = dma.hbm_to_vmem [thread:$0]  %s8904_s30, 512, %s339_s25, [#allocation40], %s8734_s18, %s8734_s18, %s8735_s6  }
 0x103   :  { %s8377_s22 = scalar_lea.hbm %s8769_s9, 128 }
 0x104   :  { %p8378_p12 = scmp.ne.s32.totalorder %s8769_s9, %s8377_s22  ;;  %p8381_p13 = scmp.lt.u32.totalorder %s8377_s22, %s8769_s9 }
 0x106   :  { %p8383_p0 = pnand %p8381_p13, %p8378_p12 }
 0x108   :  { %8386 = shalt.err (!%p8383_p0)
}
 0x109   :  { %s8387_s3 = scalar_lea.vmem %s88_s20, 128  ;;  %p8392_p2 = scmp.lt.s32.totalorder %s88_s20, %s88_s20 }
 0x10a   :  { %p8388_p1 = scmp.ne.s32.totalorder %s88_s20, %s8387_s3  ;;  %p8393_p3 = scmp.lt.s32.totalorder %s8387_s3, %s8387_s3 }
 0x10c   :  { %p8394_p4 = por %p8393_p3, %p8392_p2 }
 0x10e   :  { %p8395_p5 = pnand %p8394_p4, %p8388_p1 }
 0x110   :  { %8398 = shalt.err (!%p8395_p5)
}
 0x111   :  { %90 = dma.hbm_to_vmem [thread:$0]  %s8769_s9, 128, %s88_s20, [#allocation5]  }
 0x112   :  { %s8736_s4 = smov [#allocation8]   ;;  %s8737_s23 = smov [#allocation11]  }
 0x113   :  { %s108_s30 = sshll.u32 %s8736_s4, 4  ;;  %s133_s26 = sshll.u32 %s8737_s23, 4  ;;  %s109_s30 = int_to_ptr.vmem [resolvable:$true] %s108_s30  ;;  %s134_s26 = int_to_ptr.vmem [resolvable:$true] %s133_s26 }
 0x114   :  { %s8399_s12 = scalar_lea.hbm %s8784_s21, 4608 }
 0x115   :  { %p8400_p6 = scmp.ne.s32.totalorder %s8784_s21, %s8399_s12  ;;  %p8403_p7 = scmp.lt.u32.totalorder %s8399_s12, %s8784_s21 }
 0x117   :  { %p8405_p8 = pnand %p8403_p7, %p8400_p6 }
 0x119   :  { %8408 = shalt.err (!%p8405_p8)
}
 0x11a   :  { %s8409_s14 = scalar_lea.vmem %s109_s30, 4608  ;;  %p8414_p10 = scmp.lt.s32.totalorder %s109_s30, %s109_s30 }
 0x11b   :  { %p8410_p9 = scmp.ne.s32.totalorder %s109_s30, %s8409_s14  ;;  %p8415_p11 = scmp.lt.s32.totalorder %s8409_s14, %s8409_s14 }
 0x11d   :  { %p8416_p12 = por %p8415_p11, %p8414_p10 }
 0x11f   :  { %p8417_p13 = pnand %p8416_p12, %p8410_p9 }
 0x121   :  { %8420 = shalt.err (!%p8417_p13)
}
 0x122   :  { %114 = dma.hbm_to_vmem [thread:$0]  %s8784_s21, 4608, %s109_s30, [#allocation7], %s8722_s7, %s8722_s7, %s8723_s13  }
 0x123   :  { %s8421_s9 = scalar_lea.hbm %s8794_s29, 32 }
 0x124   :  { %p8422_p0 = scmp.ne.s32.totalorder %s8794_s29, %s8421_s9  ;;  %p8425_p1 = scmp.lt.u32.totalorder %s8421_s9, %s8794_s29 }
 0x126   :  { %p8427_p2 = pnand %p8425_p1, %p8422_p0 }
 0x128   :  { %8430 = shalt.err (!%p8427_p2)
}
 0x129   :  { %s8431_s28 = scalar_lea.vmem %s134_s26, 32  ;;  %p8436_p4 = scmp.lt.s32.totalorder %s134_s26, %s134_s26 }
 0x12a   :  { %p8432_p3 = scmp.ne.s32.totalorder %s134_s26, %s8431_s28  ;;  %p8437_p5 = scmp.lt.s32.totalorder %s8431_s28, %s8431_s28 }
 0x12c   :  { %p8438_p6 = por %p8437_p5, %p8436_p4 }
 0x12e   :  { %p8439_p7 = pnand %p8438_p6, %p8432_p3 }
 0x130   :  { %8442 = shalt.err (!%p8439_p7)
}
 0x131   :  { %s9860_s1 = sld [smem:[#allocation57_spill]]  ;;  %s8738_s2 = smov [#allocation14]  }
 0x132   :  { %136 = dma.hbm_to_vmem [thread:$0]  %s8794_s29, 32, %s134_s26, [#allocation10]  }
 0x133   :  { %s154_s21 = sshll.u32 %s8738_s2, 4  ;;  %s8739_s10 = smov [#allocation17]   ;;  %s155_s21 = int_to_ptr.vmem [resolvable:$true] %s154_s21 }
 0x134   :  { %s176_s5 = sshll.u32 %s8739_s10, 4  ;;  %s177_s5 = int_to_ptr.vmem [resolvable:$true] %s176_s5 }
 0x137   :  { %s8443_s11 = scalar_lea.hbm %s9860_s1, 2048 }
 0x138   :  { %p8444_p8 = scmp.ne.s32.totalorder %s9860_s1, %s8443_s11  ;;  %p8447_p9 = scmp.lt.u32.totalorder %s8443_s11, %s9860_s1 }
 0x13a   :  { %p8449_p10 = pnand %p8447_p9, %p8444_p8 }
 0x13c   :  { %8452 = shalt.err (!%p8449_p10)
}
 0x13d   :  { %s8453_s24 = scalar_lea.vmem %s155_s21, 2048  ;;  %p8458_p12 = scmp.lt.s32.totalorder %s155_s21, %s155_s21 }
 0x13e   :  { %p8454_p11 = scmp.ne.s32.totalorder %s155_s21, %s8453_s24  ;;  %p8459_p13 = scmp.lt.s32.totalorder %s8453_s24, %s8453_s24 }
 0x140   :  { %p8460_p0 = por %p8459_p13, %p8458_p12 }
 0x142   :  { %p8461_p1 = pnand %p8460_p0, %p8454_p11 }
 0x144   :  { %8464 = shalt.err (!%p8461_p1)
}
 0x145   :  { %s9861_s29 = sld [smem:[#allocation58_spill]] }
 0x146   :  { %160 = dma.hbm_to_vmem [thread:$0]  %s9860_s1, 2048, %s155_s21, [#allocation13], %s8722_s7, %s8722_s7, %s8723_s13  }
 0x14b   :  { %s8465_s27 = scalar_lea.hbm %s9861_s29, 65536 }
 0x14c   :  { %p8466_p2 = scmp.ne.s32.totalorder %s9861_s29, %s8465_s27  ;;  %p8469_p3 = scmp.lt.u32.totalorder %s8465_s27, %s9861_s29 }
 0x14e   :  { %p8471_p4 = pnand %p8469_p3, %p8466_p2 }
 0x150   :  { %8474 = shalt.err (!%p8471_p4)
}
 0x151   :  { %s8475_s25 = scalar_lea.vmem %s177_s5, 65536  ;;  %p8480_p6 = scmp.lt.s32.totalorder %s177_s5, %s177_s5 }
 0x152   :  { %p8476_p5 = scmp.ne.s32.totalorder %s177_s5, %s8475_s25  ;;  %p8481_p7 = scmp.lt.s32.totalorder %s8475_s25, %s8475_s25 }
 0x154   :  { %p8482_p8 = por %p8481_p7, %p8480_p6 }
 0x156   :  { %p8483_p9 = pnand %p8482_p8, %p8476_p5 }
 0x158   :  { %8486 = shalt.err (!%p8483_p9)
}
 0x159   :  { %s8740_s15 = smov 1024   ;;  %s9862_s20 = sld [smem:[#allocation60_spill]] }
 0x15a   :  { %s8741_s16 = smov 64   ;;  %s8742_s7 = smov [#allocation20]  }
 0x15b   :  { %182 = dma.hbm_to_vmem [thread:$0]  %s9861_s29, 65536, %s177_s5, [#allocation16], %s8740_s15, %s8740_s15, %s8741_s16  }
 0x15c   :  { %s201_s13 = sshll.u32 %s8742_s7, 4  ;;  %s8743_s0 = smov [#allocation23]   ;;  %s202_s13 = int_to_ptr.vmem [resolvable:$true] %s201_s13 }
 0x15d   :  { %s223_s22 = sshll.u32 %s8743_s0, 4  ;;  %s224_s22 = int_to_ptr.vmem [resolvable:$true] %s223_s22 }
 0x15f   :  { %s8487_s3 = scalar_lea.hbm %s9862_s20, 16 }
 0x160   :  { %p8488_p10 = scmp.ne.s32.totalorder %s9862_s20, %s8487_s3  ;;  %p8491_p11 = scmp.lt.u32.totalorder %s8487_s3, %s9862_s20 }
 0x162   :  { %p8493_p12 = pnand %p8491_p11, %p8488_p10 }
 0x164   :  { %8496 = shalt.err (!%p8493_p12)
}
 0x165   :  { %s8497_s4 = scalar_lea.vmem %s202_s13, 16  ;;  %s8501_s30 = scalar_lea.vmem %s202_s13, 32 }
 0x166   :  { %p8498_p13 = scmp.ne.s32.totalorder %s202_s13, %s8497_s4  ;;  %p8502_p0 = scmp.lt.s32.totalorder %s202_s13, %s202_s13 }
 0x167   :  { %p8503_p1 = scmp.lt.s32.totalorder %s8501_s30, %s8497_s4 }
 0x169   :  { %p8504_p2 = por %p8503_p1, %p8502_p0 }
 0x16b   :  { %p8505_p3 = pnand %p8504_p2, %p8498_p13 }
 0x16d   :  { %8508 = shalt.err (!%p8505_p3)
}
 0x16e   :  { %s9863_s23 = sld [smem:[#allocation62_spill]] }
 0x16f   :  { %204 = dma.hbm_to_vmem [thread:$0]  %s9862_s20, 16, %s202_s13, [#allocation19]  }
 0x174   :  { %s8509_s26 = scalar_lea.hbm %s9863_s23, 144 }
 0x175   :  { %p8510_p4 = scmp.ne.s32.totalorder %s9863_s23, %s8509_s26  ;;  %p8513_p5 = scmp.lt.u32.totalorder %s8509_s26, %s9863_s23 }
 0x177   :  { %p8515_p6 = pnand %p8513_p5, %p8510_p4 }
 0x179   :  { %8518 = shalt.err (!%p8515_p6)
}
 0x17a   :  { %s8519_s12 = scalar_lea.vmem %s224_s22, 144  ;;  %s8523_s14 = scalar_lea.vmem %s224_s22, 160 }
 0x17b   :  { %p8520_p7 = scmp.ne.s32.totalorder %s224_s22, %s8519_s12  ;;  %p8524_p8 = scmp.lt.s32.totalorder %s224_s22, %s224_s22 }
 0x17c   :  { %p8525_p9 = scmp.lt.s32.totalorder %s8523_s14, %s8519_s12 }
 0x17e   :  { %p8526_p10 = por %p8525_p9, %p8524_p8 }
 0x180   :  { %p8527_p11 = pnand %p8526_p10, %p8520_p7 }
 0x182   :  { %8530 = shalt.err (!%p8527_p11)
}
 0x183   :  { %s9864_s9 = sld [smem:[#allocation63_spill]]  ;;  %s8744_s28 = smov [#allocation26]  }
 0x184   :  { %226 = dma.hbm_to_vmem [thread:$0]  %s9863_s23, 144, %s224_s22, [#allocation22]  }
 0x185   :  { %s242_s1 = sshll.u32 %s8744_s28, 4  ;;  %s243_s1 = int_to_ptr.vmem [resolvable:$true] %s242_s1 }
 0x189   :  { %s8531_s2 = scalar_lea.hbm %s9864_s9, 73728 }
 0x18a   :  { %p8532_p12 = scmp.ne.s32.totalorder %s9864_s9, %s8531_s2  ;;  %p8535_p13 = scmp.lt.u32.totalorder %s8531_s2, %s9864_s9 }
 0x18c   :  { %p8537_p0 = pnand %p8535_p13, %p8532_p12 }
 0x18e   :  { %8540 = shalt.err (!%p8537_p0)
}
 0x18f   :  { %s8541_s21 = scalar_lea.vmem %s243_s1, 73728  ;;  %p8546_p2 = scmp.lt.s32.totalorder %s243_s1, %s243_s1 }
 0x190   :  { %p8542_p1 = scmp.ne.s32.totalorder %s243_s1, %s8541_s21  ;;  %p8547_p3 = scmp.lt.s32.totalorder %s8541_s21, %s8541_s21 }
 0x192   :  { %p8548_p4 = por %p8547_p3, %p8546_p2 }
 0x194   :  { %p8549_p5 = pnand %p8548_p4, %p8542_p1 }
 0x196   :  { %8552 = shalt.err (!%p8549_p5)
}
 0x197   :  { %s8745_s10 = smov 512   ;;  %s9865_s5 = sld [smem:[#allocation64_spill]] }
 0x198   :  { %s8746_s11 = smov 32   ;;  %s8747_s24 = smov [#allocation29]  }
 0x199   :  { %248 = dma.hbm_to_vmem [thread:$0]  %s9864_s9, 73728, %s243_s1, [#allocation25], %s8745_s10, %s8745_s10, %s8746_s11  }
 0x19a   :  { %s265_s29 = sshll.u32 %s8747_s24, 4  ;;  %s8748_s27 = smov [#allocation32]   ;;  %s266_s29 = int_to_ptr.vmem [resolvable:$true] %s265_s29 }
 0x19b   :  { %s284_s25 = sshll.u32 %s8748_s27, 4  ;;  %s9013_s25 = int_to_ptr.vmem [resolvable:$true] %s284_s25 }
 0x19d   :  { %s8553_s15 = scalar_lea.hbm %s9865_s5, 64 }
 0x19e   :  { %p8554_p6 = scmp.ne.s32.totalorder %s9865_s5, %s8553_s15  ;;  %p8557_p7 = scmp.lt.u32.totalorder %s8553_s15, %s9865_s5 }
 0x1a0   :  { %p8559_p8 = pnand %p8557_p7, %p8554_p6 }
 0x1a2   :  { %8562 = shalt.err (!%p8559_p8)
}
 0x1a3   :  { %s8563_s20 = scalar_lea.vmem %s266_s29, 64  ;;  %p8568_p10 = scmp.lt.s32.totalorder %s266_s29, %s266_s29 }
 0x1a4   :  { %p8564_p9 = scmp.ne.s32.totalorder %s266_s29, %s8563_s20  ;;  %p8569_p11 = scmp.lt.s32.totalorder %s8563_s20, %s8563_s20 }
 0x1a6   :  { %p8570_p12 = por %p8569_p11, %p8568_p10 }
 0x1a8   :  { %p8571_p13 = pnand %p8570_p12, %p8564_p9 }
 0x1aa   :  { %8574 = shalt.err (!%p8571_p13)
}
 0x1ab   :  { %s9866_s7 = sld [smem:[#allocation65_spill]] }
 0x1ac   :  { %268 = dma.hbm_to_vmem [thread:$0]  %s9865_s5, 64, %s266_s29, [#allocation28]  }
 0x1b1   :  { %s8575_s13 = scalar_lea.hbm %s9866_s7, 8192 }
 0x1b2   :  { %p8576_p0 = scmp.ne.s32.totalorder %s9866_s7, %s8575_s13  ;;  %p8579_p1 = scmp.lt.u32.totalorder %s8575_s13, %s9866_s7 }
 0x1b4   :  { %p8581_p2 = pnand %p8579_p1, %p8576_p0 }
 0x1b6   :  { %8584 = shalt.err (!%p8581_p2)
}
 0x1b7   :  { %s8585_s0 = scalar_lea.vmem %s9013_s25, 8192  ;;  %p8590_p4 = scmp.lt.s32.totalorder %s9013_s25, %s9013_s25 }
 0x1b8   :  { %p8586_p3 = scmp.ne.s32.totalorder %s9013_s25, %s8585_s0  ;;  %p8591_p5 = scmp.lt.s32.totalorder %s8585_s0, %s8585_s0 }
 0x1ba   :  { %p8592_p6 = por %p8591_p5, %p8590_p4 }
 0x1bc   :  { %p8593_p7 = pnand %p8592_p6, %p8586_p3 }
 0x1be   :  { %8596 = shalt.err (!%p8593_p7)
}
 0x1bf   :  { %s9867_s22 = sld [smem:[#allocation66_spill]]  ;;  %s8749_s3 = smov [#allocation35]  }
 0x1c0   :  { %290 = dma.hbm_to_vmem [thread:$0]  %s9866_s7, 8192, %s9013_s25, [#allocation31], %s8734_s18, %s8734_s18, %s8735_s6  }
 0x1c1   :  { %s307_s4 = sshll.u32 %s8749_s3, 4  ;;  %s8750_s30 = smov [#allocation38]   ;;  %s308_s4 = int_to_ptr.vmem [resolvable:$true] %s307_s4 }
 0x1c2   :  { %s329_s23 = sshll.u32 %s8750_s30, 4  ;;  %s330_s23 = int_to_ptr.vmem [resolvable:$true] %s329_s23 }
 0x1c5   :  { %s8597_s26 = scalar_lea.hbm %s9867_s22, 16 }
 0x1c6   :  { %p8598_p8 = scmp.ne.s32.totalorder %s9867_s22, %s8597_s26  ;;  %p8601_p9 = scmp.lt.u32.totalorder %s8597_s26, %s9867_s22 }
 0x1c8   :  { %p8603_p10 = pnand %p8601_p9, %p8598_p8 }
 0x1ca   :  { %8606 = shalt.err (!%p8603_p10)
}
 0x1cb   :  { %s8607_s12 = scalar_lea.vmem %s308_s4, 16  ;;  %s8611_s14 = scalar_lea.vmem %s308_s4, 32 }
 0x1cc   :  { %p8608_p11 = scmp.ne.s32.totalorder %s308_s4, %s8607_s12  ;;  %p8612_p12 = scmp.lt.s32.totalorder %s308_s4, %s308_s4 }
 0x1cd   :  { %p8613_p13 = scmp.lt.s32.totalorder %s8611_s14, %s8607_s12 }
 0x1cf   :  { %p8614_p0 = por %p8613_p13, %p8612_p12 }
 0x1d1   :  { %p8615_p1 = pnand %p8614_p0, %p8608_p11 }
 0x1d3   :  { %8618 = shalt.err (!%p8615_p1)
}
 0x1d4   :  { %310 = dma.hbm_to_vmem [thread:$0]  %s9867_s22, 16, %s308_s4, [#allocation34]  }
 0x1d5   :  { %s8619_s18 = scalar_lea.hbm %s8899_s19, 16 }
 0x1d6   :  { %p8620_p2 = scmp.ne.s32.totalorder %s8899_s19, %s8619_s18  ;;  %p8623_p3 = scmp.lt.u32.totalorder %s8619_s18, %s8899_s19 }
 0x1d8   :  { %p8625_p4 = pnand %p8623_p3, %p8620_p2 }
 0x1da   :  { %8628 = shalt.err (!%p8625_p4)
}
 0x1db   :  { %s8629_s6 = scalar_lea.vmem %s330_s23, 16  ;;  %s8633_s9 = scalar_lea.vmem %s330_s23, 32 }
 0x1dc   :  { %p8630_p5 = scmp.ne.s32.totalorder %s330_s23, %s8629_s6  ;;  %p8634_p6 = scmp.lt.s32.totalorder %s330_s23, %s330_s23 }
 0x1dd   :  { %p8635_p7 = scmp.lt.s32.totalorder %s8633_s9, %s8629_s6 }
 0x1df   :  { %p8636_p8 = por %p8635_p7, %p8634_p6 }
 0x1e1   :  { %p8637_p9 = pnand %p8636_p8, %p8630_p5 }
 0x1e3   :  { %8640 = shalt.err (!%p8637_p9)
}
 0x1e4   :  { %332 = dma.hbm_to_vmem [thread:$0]  %s8899_s19, 16, %s330_s23, [#allocation37]  }
 0x1e5   :  { %s8751_s28 = smov [#allocation41]   ;;  %s8641_s2 = scalar_lea.hbm %s8909_s8, 16 }
 0x1e6   :  { %s351_s1 = sshll.u32 %s8751_s28, 4  ;;  %p8642_p10 = scmp.ne.s32.totalorder %s8909_s8, %s8641_s2  ;;  %s352_s1 = int_to_ptr.vmem [resolvable:$true] %s351_s1 }
 0x1e7   :  { %p8645_p11 = scmp.lt.u32.totalorder %s8641_s2, %s8909_s8 }
 0x1e9   :  { %p8647_p12 = pnand %p8645_p11, %p8642_p10 }
 0x1eb   :  { %8650 = shalt.err (!%p8647_p12)
}
 0x1ec   :  { %s8651_s21 = scalar_lea.vmem %s352_s1, 16  ;;  %s8655_s10 = scalar_lea.vmem %s352_s1, 32 }
 0x1ed   :  { %p8652_p13 = scmp.ne.s32.totalorder %s352_s1, %s8651_s21  ;;  %p8656_p0 = scmp.lt.s32.totalorder %s352_s1, %s352_s1 }
 0x1ee   :  { %p8657_p1 = scmp.lt.s32.totalorder %s8655_s10, %s8651_s21 }
 0x1f0   :  { %p8658_p2 = por %p8657_p1, %p8656_p0 }
 0x1f2   :  { %p8659_p3 = pnand %p8658_p2, %p8652_p13 }
 0x1f4   :  { %8662 = shalt.err (!%p8659_p3)
}
 0x1f5   :  { %354 = dma.hbm_to_vmem [thread:$0]  %s8909_s8, 16, %s352_s1, [#allocation40]  }
 0x1f6   :  { %8663 = dma.done.wait [#allocation5], 128  }
 0x1f7   :  { %8664 = vsyncadd [#allocation5], 4294967168 }
 0x1f8   :  { %8665 = dma.done.wait [#allocation7], 4736  }
 0x1f9   :  { %8666 = vsyncadd [#allocation7], 4294962560 }
 0x1fa   :  { %8667 = dma.done.wait [#allocation10], 2080  }
 0x1fb   :  { %8668 = vsyncadd [#allocation10], 4294965216 }
 0x1fc   :  { %8669 = dma.done.wait [#allocation13], 6144  }
 0x1fd   :  { %8670 = vsyncadd [#allocation13], 4294961152 }
 0x1fe   :  { %8671 = dma.done.wait [#allocation16], 65568  }
 0x1ff   :  { %8672 = vsyncadd [#allocation16], 4294901728 }
 0x200   :  { %8673 = dma.done.wait [#allocation19], 144  }
 0x201   :  { %8674 = vsyncadd [#allocation19], 4294967152 }
 0x202   :  { %8675 = dma.done.wait [#allocation22], 160  }
 0x203   :  { %8676 = vsyncadd [#allocation22], 4294967136 }
 0x204   :  { %8677 = dma.done.wait [#allocation25], 73872  }
 0x205   :  { %8678 = vsyncadd [#allocation25], 4294893424 }
 0x206   :  { %8679 = dma.done.wait [#allocation28], 128  }
 0x207   :  { %8680 = vsyncadd [#allocation28], 4294967168 }
 0x208   :  { %8681 = dma.done.wait [#allocation31], 8256  }
 0x209   :  { %8682 = vsyncadd [#allocation31], 4294959040 }
 0x20a   :  { %8683 = dma.done.wait [#allocation34], 32  }
 0x20b   :  { %8684 = vsyncadd [#allocation34], 4294967264 }
 0x20c   :  { %8685 = dma.done.wait [#allocation37], 32  }
 0x20d   :  { %8686 = vsyncadd [#allocation37], 4294967264 }
 0x20e   :  { %8687 = dma.done.wait [#allocation40], 528  }
 0x20f   :  { %8688 = vsyncadd [#allocation40], 4294966768  ;;  %v8752_v0 = vmov 0.0   ;;  %v447_v1 = vld [vmem:[#allocation8 + $0x8] sm:$0xff]  ;;  %v449_v2 = vld [vmem:[#allocation8 + $0x18] sm:$0xff]  ;;  %s9868_s8 = sld [smem:[#allocation55_spill]] }
 0x210   :  { %1674 = vmatprep.mubr.f32.mxu1 %v8752_v0  ;;  %v446_v3 = vld [vmem:[#allocation8] sm:$0xff]  ;;  %v6227_v4 = vpack.c.bf16 %v449_v2, %v447_v1  ;;  %v448_v5 = vld [vmem:[#allocation8 + $0x10] sm:$0xff]  ;;  %v451_v6 = vld [vmem:[#allocation8 + $0x28] sm:$0xff]  ;;  %vm494_vm0 = vcmask 130048   ;;  %vm648_vm1 = vcmask 523264   ;;  %vm755_vm2 = vcmask 261120  }
 0x211   :  { %v453_v7 = vld [vmem:[#allocation8 + $0x38] sm:$0xff]  ;;  %v6229_v8 = vpack.c.bf16 %v448_v5, %v446_v3  ;;  %v450_v10 = vld [vmem:[#allocation8 + $0x20] sm:$0xff]  ;;  %v452_v11 = vld [vmem:[#allocation8 + $0x30] sm:$0xff]  ;;  %vm761_vm3 = vcmask 785920   ;;  %vm765_vm4 = vcmask 1048320   ;;  %vm763_vm5 = vcmask 523520  }
 0x212   :  { %v6231_v9 = vpack.c.bf16 %v453_v7, %v451_v6  ;;  %v455_v12 = vld [vmem:[#allocation8 + $0x48] sm:$0xff]  ;;  %6228 = vmatprep.subr.bf16.mxu0 %v6227_v4  ;;  %v457_v13 = vld [vmem:[#allocation8 + $0x58] sm:$0xff]  ;;  %v6233_v14 = vpack.c.bf16 %v452_v11, %v450_v10  ;;  %v454_v16 = vld [vmem:[#allocation8 + $0x40] sm:$0xff]  ;;  %s9869_s19 = sld [smem:[#allocation59_spill]]  ;;  %vm8754_vm6 = vmmov 0   ;;  %vm3778_vm7 = vcmask 1041408  }
 0x213   :  { %6230 = vmatpush1.bf16.msra.mxu0 %v6229_v8  ;;  %v6235_v15 = vpack.c.bf16 %v457_v13, %v455_v12  ;;  %v456_v17 = vld [vmem:[#allocation8 + $0x50] sm:$0xff]  ;;  %v459_v18 = vld [vmem:[#allocation8 + $0x68] sm:$0xff]  ;;  %v461_v19 = vld [vmem:[#allocation8 + $0x78] sm:$0xff]  ;;  %vm3774_vm8 = vcmask 408576   ;;  %s9871_s5 = sld [smem:[#allocation56_spill]]  ;;  %vm3868_vm9 = vcmask 1043456  }
 0x214   :  { %6232 = vmatprep.subr.bf16.mxu0 %v6231_v9  ;;  %v6237_v20 = vpack.c.bf16 %v456_v17, %v454_v16  ;;  %v6239_v21 = vpack.c.bf16 %v461_v19, %v459_v18  ;;  %v458_v22 = vld [vmem:[#allocation8 + $0x60] sm:$0xff]  ;;  %v460_v23 = vld [vmem:[#allocation8 + $0x70] sm:$0xff]  ;;  %v463_v24 = vld [vmem:[#allocation8 + $0x88] sm:$0xff]  ;;  %vm3864_vm10 = vcmask 162816   ;;  %s8755_s24 = smov 40   ;;  %vm3953_vm11 = vcmask 326656  }
 0x215   :  { %v465_v25 = vld [vmem:[#allocation8 + $0x98] sm:$0xff]  ;;  %v6241_v26 = vpack.c.bf16 %v460_v23, %v458_v22  ;;  %v462_v29 = vld [vmem:[#allocation8 + $0x80] sm:$0xff]  ;;  %v464_v30 = vld [vmem:[#allocation8 + $0x90] sm:$0xff]  ;;  %vm3955_vm12 = vcmask 334848  }
 0x216   :  { %v431_v27 = vld [vmem:[%s9868_s8 + $0x8] sm:$0xff]  ;;  %v6243_v28 = vpack.c.bf16 %v465_v25, %v463_v24  ;;  %v467_v31 = vld [vmem:[#allocation8 + $0xa8] sm:$0xff]  ;;  %v6245_v33 = vpack.c.bf16 %v464_v30, %v462_v29  ;;  %v466_v35 = vld [vmem:[#allocation8 + $0xa0] sm:$0xff] }
 0x217   :  { %6234 = vmatpush1.bf16.msra.mxu0 %v6233_v14  ;;  %5983 = vmatprep.mubr.msk.f32.mxu0 %vm494_vm0, %v431_v27  ;;  %v469_v32 = vld [vmem:[#allocation8 + $0xb8] sm:$0xff]  ;;  %v468_v36 = vld [vmem:[#allocation8 + $0xb0] sm:$0xff]  ;;  %v471_v37 = vld [vmem:[#allocation8 + $0xc8] sm:$0xff] }
 0x218   :  { %6236 = vmatprep.subr.bf16.mxu0 %v6235_v15  ;;  %v6247_v34 = vpack.c.bf16 %v469_v32, %v467_v31  ;;  %v473_v38 = vld [vmem:[#allocation8 + $0xd8] sm:$0xff]  ;;  %v6249_v39 = vpack.c.bf16 %v468_v36, %v466_v35  ;;  %v470_v41 = vld [vmem:[#allocation8 + $0xc0] sm:$0xff]  ;;  %v472_v42 = vld [vmem:[#allocation8 + $0xd0] sm:$0xff]  ;;  %v484_v32 = vlaneseq }
 0x219   :  { %v6251_v40 = vpack.c.bf16 %v473_v38, %v471_v37  ;;  %v475_v43 = vld [vmem:[#allocation8 + $0xe8] sm:$0xff]  ;;  %v477_v44 = vld [vmem:[#allocation8 + $0xf8] sm:$0xff]  ;;  %v6253_v45 = vpack.c.bf16 %v472_v42, %v470_v41  ;;  %v474_v47 = vld [vmem:[#allocation8 + $0xe0] sm:$0xff] }
 0x21a   :  { %v6255_v46 = vpack.c.bf16 %v477_v44, %v475_v43  ;;  %v476_v48 = vld [vmem:[#allocation8 + $0xf0] sm:$0xff]  ;;  %v479_v49 = vld [vmem:[#allocation8 + $0x108] sm:$0xff]  ;;  %v481_v50 = vld [vmem:[#allocation8 + $0x118] sm:$0xff] }
 0x21b   :  { %6238 = vmatpush1.bf16.msra.mxu0 %v6237_v20  ;;  %v6257_v51 = vpack.c.bf16 %v476_v48, %v474_v47  ;;  %v6259_v52 = vpack.c.bf16 %v481_v50, %v479_v49  ;;  %v478_v53 = vld [vmem:[#allocation8 + $0x100] sm:$0xff]  ;;  %v480_v54 = vld [vmem:[#allocation8 + $0x110] sm:$0xff]  ;;  %v633_v55 = vld [vmem:[#allocation9 + $0x8] sm:$0xff] }
 0x21c   :  { %6240 = vmatprep.subr.bf16.mxu0 %v6239_v21  ;;  %v635_v56 = vld [vmem:[#allocation9 + $0x18] sm:$0xff]  ;;  %v6261_v57 = vpack.c.bf16 %v480_v54, %v478_v53  ;;  %v632_v59 = vld [vmem:[#allocation9] sm:$0xff]  ;;  %v634_v60 = vld [vmem:[#allocation9 + $0x10] sm:$0xff] }
 0x21d   :  { %v9046_v58 = vpack.c.bf16 %v635_v56, %v633_v55  ;;  %v637_v61 = vld [vmem:[#allocation9 + $0x28] sm:$0xff]  ;;  %v639_v62 = vld [vmem:[#allocation9 + $0x38] sm:$0xff]  ;;  %v430_v63 = vld [vmem:[%s9868_s8] sm:$0xff]  ;;  %v9049_v1 = vpack.c.bf16 %v634_v60, %v632_v59 }
 0x21e   :  { %v433_v2 = vld [vmem:[%s9868_s8 + $0x18] sm:$0xff]  ;;  %v9053_v3 = vpack.c.bf16 %v639_v62, %v637_v61  ;;  %v636_v4 = vld [vmem:[#allocation9 + $0x20] sm:$0xff]  ;;  %v638_v5 = vld [vmem:[#allocation9 + $0x30] sm:$0xff] }
 0x21f   :  { %6242 = vmatpush1.bf16.msra.mxu0 %v6241_v26  ;;  %v641_v6 = vld [vmem:[#allocation9 + $0x48] sm:$0xff]  ;;  %v643_v7 = vld [vmem:[#allocation9 + $0x58] sm:$0xff]  ;;  %v432_v8 = vld [vmem:[%s9868_s8 + $0x10] sm:$0xff]  ;;  %v9058_v9 = vpack.c.bf16 %v638_v5, %v636_v4 }
 0x220   :  { %6244 = vmatprep.subr.bf16.mxu0 %v6243_v28  ;;  %v435_v10 = vld [vmem:[%s9868_s8 + $0x28] sm:$0xff]  ;;  %v9062_v11 = vpack.c.bf16 %v643_v7, %v641_v6  ;;  %v640_v12 = vld [vmem:[#allocation9 + $0x40] sm:$0xff]  ;;  %v642_v13 = vld [vmem:[#allocation9 + $0x50] sm:$0xff] }
 0x221   :  { %v645_v14 = vld [vmem:[#allocation9 + $0x68] sm:$0xff]  ;;  %v647_v15 = vld [vmem:[#allocation9 + $0x78] sm:$0xff]  ;;  %v434_v16 = vld [vmem:[%s9868_s8 + $0x20] sm:$0xff]  ;;  %v9067_v17 = vpack.c.bf16 %v642_v13, %v640_v12 }
 0x222   :  { %v437_v18 = vld [vmem:[%s9868_s8 + $0x38] sm:$0xff]  ;;  %v9071_v19 = vpack.c.bf16 %v647_v15, %v645_v14  ;;  %v644_v20 = vld [vmem:[#allocation9 + $0x60] sm:$0xff]  ;;  %v646_v21 = vld [vmem:[#allocation9 + $0x70] sm:$0xff] }
 0x223   :  { %6246 = vmatpush1.bf16.msra.mxu0 %v6245_v33  ;;  %v436_v22 = vld [vmem:[%s9868_s8 + $0x30] sm:$0xff]  ;;  %v9076_v23 = vpack.c.bf16 %v646_v21, %v644_v20  ;;  %v439_v24 = vld [vmem:[%s9868_s8 + $0x48] sm:$0xff]  ;;  %v438_v25 = vld [vmem:[%s9868_s8 + $0x40] sm:$0xff]  ;;  %v9104_v33 = vshrl.u32 %v484_v32, 7 }
 0x224   :  { %6248 = vmatprep.subr.bf16.mxu0 %v6247_v34  ;;  %v441_v26 = vld [vmem:[%s9868_s8 + $0x58] sm:$0xff]  ;;  %v440_v27 = vld [vmem:[%s9868_s8 + $0x50] sm:$0xff]  ;;  %v443_v28 = vld [vmem:[%s9868_s8 + $0x68] sm:$0xff] }
 0x225   :  { %v442_v29 = vld [vmem:[%s9868_s8 + $0x60] sm:$0xff]  ;;  %v445_v30 = vld [vmem:[%s9868_s8 + $0x78] sm:$0xff]  ;;  %v444_v31 = vld [vmem:[%s9868_s8 + $0x70] sm:$0xff]  ;;  %v9107_v34 = vsub.s32 1, %v9104_v33  ;;  %v9115_v41 = vsub.s32 0, %v9104_v33 }
 0x226   :  { %v482_v35 = vld [vmem:[#allocation11] sm:$0x3] }
 0x227   :  { %6250 = vmatpush1.bf16.msra.mxu0 %v6249_v39  ;;  %v9110_v36 = vrot.slane %v482_v35, %v9107_v34  ;;  %v9118_v42 = vrot.slane %v482_v35, %v9115_v41 }
 0x228   :  { %6252 = vmatprep.subr.bf16.mxu0 %v6251_v40 }
 0x22b   :  { %6254 = vmatpush1.bf16.msra.mxu0 %v6253_v45 }
 0x22c   :  { %6256 = vmatprep.subr.bf16.mxu0 %v6255_v46 }
 0x22f   :  { %6258 = vmatpush1.bf16.msra.mxu0 %v6257_v51 }
 0x230   :  { %6260 = vmatprep.subr.bf16.mxu0 %v6259_v52 }
 0x233   :  { %6262 = vmatpush1.bf16.msra.mxu0 %v6261_v57 }
 0x234   :  { %6264 = vmatprep.subr.bf16.mxu0 %v9046_v58 }
 0x236   :  { %584 = vmatmul.mubr.f32.vlgmr.msra.gmra.mrb[0].mxu0 %v430_v63 }
 0x237   :  { %6266 = vmatpush1.bf16.msra.mxu0 %v9049_v1  ;;  %5984 = vmatprep.mubr.msk.f32.mxu0 %vm494_vm0, %v433_v2 }
 0x238   :  { %6268 = vmatprep.subr.bf16.mxu0 %v9053_v3 }
 0x23a   :  { %590 = vmatmul.mubr.f32.gmra.mrb[2].mxu0 %v432_v8 }
 0x23b   :  { %5985 = vmatprep.mubr.msk.f32.mxu0 %vm494_vm0, %v435_v10  ;;  %6270 = vmatpush1.bf16.msra.mxu0 %v9058_v9 }
 0x23c   :  { %6272 = vmatprep.subr.bf16.mxu0 %v9062_v11 }
 0x23e   :  { %596 = vmatmul.mubr.f32.gmra.mrb[4].mxu0 %v434_v16 }
 0x23f   :  { %5986 = vmatprep.mubr.msk.f32.mxu0 %vm494_vm0, %v437_v18  ;;  %6274 = vmatpush1.bf16.msra.mxu0 %v9067_v17 }
 0x240   :  { %6276 = vmatprep.subr.bf16.mxu0 %v9071_v19 }
 0x242   :  { %602 = vmatmul.mubr.f32.gmra.mrb[6].mxu0 %v436_v22 }
 0x243   :  { %5987 = vmatprep.mubr.msk.f32.mxu0 %vm494_vm0, %v439_v24  ;;  %6278 = vmatpush1.bf16.msra.mxu0 %v9076_v23 }
 0x244   :  { %6280 = vmatprep.subr.bf16.mxu0 %v9046_v58 }
 0x246   :  { %608 = vmatmul.mubr.f32.gmra.mrb[8].mxu0 %v438_v25 }
 0x247   :  { %5988 = vmatprep.mubr.msk.f32.mxu0 %vm494_vm0, %v441_v26 }
 0x24a   :  { %614 = vmatmul.mubr.f32.gmra.mrb[10].mxu0 %v440_v27 }
 0x24b   :  { %5989 = vmatprep.mubr.msk.f32.mxu0 %vm494_vm0, %v443_v28 }
 0x24e   :  { %620 = vmatmul.mubr.f32.gmra.mrb[12].mxu0 %v442_v29 }
 0x24f   :  { %5990 = vmatprep.mubr.msk.f32.mxu0 %vm494_vm0, %v445_v30 }
 0x252   :  { %626 = vmatmul.mubr.f32.gmra.mrb[14].mxu0 %v444_v31 }
 0x253   :  { %716 = vmatprep.mubr.f32.mxu0 %v8752_v0 }
 0x256   :  { %717 = vmatmul.mubr.f32.vlgmr.msra.gmra.mrb[0].mxu0 %v8752_v0 }
 0x257   :  { %6282 = vmatpush1.bf16.msra.mxu0 %v9049_v1  ;;  %833 = vmatprep.mubr.f32.mxu0 %v8752_v0 }
 0x258   :  { %6284 = vmatprep.subr.bf16.mxu0 %v9053_v3 }
 0x25b   :  { %6286 = vmatpush1.bf16.msra.mxu0 %v9058_v9 }
 0x25c   :  { %6288 = vmatprep.subr.bf16.mxu0 %v9062_v11 }
 0x25f   :  { %6290 = vmatpush1.bf16.msra.mxu0 %v9067_v17 }
 0x260   :  { %6292 = vmatprep.subr.bf16.mxu0 %v9071_v19 }
 0x263   :  { %6294 = vmatpush1.bf16.msra.mxu0 %v9076_v23 }
 0x264   :  { %6296 = vmatprep.subr.bf16.mxu0 %v9046_v58 }
 0x329   :  { %v718_v37 = vpop.f32.mrb[0].mxu0 }
 0x32a   :  { %v720_v38 = vpop.f32.mrb[1].mxu0  ;;  %v7745_v43 = vadd.f32 %v718_v37, %v9118_v42 }
 0x32b   :  { %v7746_v39 = vadd.f32 %v720_v38, %v9110_v36 }
 0x32c   :  { %v5991_v44 = vmul.f32 -1.442695, %v7745_v43 }
 0x32d   :  { %7912 = vtanh.f32 %v7746_v39  ;;  %v5992_v54 = vmul.f32 -1.442695, %v7746_v39 }
 0x32e   :  { %7914 = vpow2.f32 %v5991_v44 }
 0x337   :  { %v7913_v40 = vpop.eup %7912 }
 0x338   :  { %740 = vrot.lane.b32.xlu0 %v7913_v40, %s8741_s16  ;;  %v7915_v45 = vpop.eup %7914 }
 0x339   :  { %v731_v46 = vadd.f32 1.0, %v7915_v45 }
 0x33b   :  { %7916 = vrcp.f32 %v731_v46 }
 0x345   :  { %v7917_v47 = vpop.eup %7916 }
 0x346   :  { %v738_v50 = vmul.f32 0.0, %v7917_v47 }
 0x3aa   :  { %v741_v48 = vpop.permute.xlu0 %740 }
 0x3ab   :  { %v743_v49 = vmul.f32 %v7917_v47, %v741_v48 }
 0x3ad   :  { %745 = vrot.lane.b32.xlu0 %v743_v49, %s8741_s16 }
 0x41f   :  { %v746_v51 = vpop.permute.xlu0 %745 }
 0x420   :  { %v748_v52 = vadd.f32 %v746_v51, %v738_v50 }
 0x422   :  { %7918 = vtanh.f32 %v748_v52 }
 0x423   :  { %7920 = vpow2.f32 %v5992_v54 }
 0x42c   :  { %v7919_v53 = vpop.eup %7918 }
 0x42d   :  { %751 = vrot.lane.b32.xlu1 %v7919_v53, %s8741_s16  ;;  %v7921_v55 = vpop.eup %7920 }
 0x42e   :  { %v732_v56 = vadd.f32 1.0, %v7921_v55 }
 0x430   :  { %7922 = vrcp.f32 %v732_v56 }
 0x43a   :  { %v7923_v57 = vpop.eup %7922 }
 0x49f   :  { %v752_v59 = vpop.permute.xlu1 %751 }
 0x4a0   :  { %v9123_v60 = vmul.f32 %v7923_v57, %v752_v59 }
 0x4a2   :  { %5993 = vmatmul.mubr.msk.f32.vlgmr.msra.gmra.mrb[2].mxu0 %vm648_vm1, %v9123_v60  ;;  %756 = vst.msk [vmem:[#allocation2] sm:$0xff] %vm755_vm2, %v9123_v60 }
 0x4a3   :  { %6298 = vmatpush1.bf16.msra.mxu0 %v9049_v1  ;;  %946 = vmatprep.mubr.f32.mxu0 %v8752_v0 }
 0x4a4   :  { %6300 = vmatprep.subr.bf16.mxu0 %v9053_v3 }
 0x4a7   :  { %6302 = vmatpush1.bf16.msra.mxu0 %v9058_v9 }
 0x4a8   :  { %6304 = vmatprep.subr.bf16.mxu0 %v9062_v11 }
 0x4ab   :  { %6306 = vmatpush1.bf16.msra.mxu0 %v9067_v17 }
 0x4ac   :  { %6308 = vmatprep.subr.bf16.mxu0 %v9071_v19 }
 0x4af   :  { %6310 = vmatpush1.bf16.msra.mxu0 %v9076_v23 }
 0x4b0   :  { %6312 = vmatprep.subr.bf16.mxu0 %v9046_v58 }
 0x575   :  { %v835_v61 = vpop.f32.mrb[2].mxu0 }
 0x576   :  { %v837_v62 = vpop.f32.mrb[3].mxu0  ;;  %v7747_v4 = vadd.f32 %v835_v61, %v9118_v42 }
 0x577   :  { %v7748_v63 = vadd.f32 %v837_v62, %v9110_v36 }
 0x578   :  { %v5994_v5 = vmul.f32 -1.442695, %v7747_v4 }
 0x579   :  { %7924 = vtanh.f32 %v7748_v63  ;;  %v5995_v18 = vmul.f32 -1.442695, %v7748_v63 }
 0x57a   :  { %7926 = vpow2.f32 %v5994_v5 }
 0x583   :  { %v7925_v2 = vpop.eup %7924 }
 0x584   :  { %857 = vrot.lane.b32.xlu1 %v7925_v2, %s8741_s16  ;;  %v7927_v6 = vpop.eup %7926 }
 0x585   :  { %v848_v7 = vadd.f32 1.0, %v7927_v6 }
 0x587   :  { %7928 = vrcp.f32 %v848_v7 }
 0x591   :  { %v7929_v8 = vpop.eup %7928 }
 0x592   :  { %v855_v13 = vmul.f32 %v7929_v8, %v748_v52 }
 0x5f6   :  { %v858_v10 = vpop.permute.xlu1 %857 }
 0x5f7   :  { %v860_v12 = vmul.f32 %v7929_v8, %v858_v10 }
 0x5f9   :  { %862 = vrot.lane.b32.xlu0 %v860_v12, %s8741_s16 }
 0x66b   :  { %v863_v14 = vpop.permute.xlu0 %862 }
 0x66c   :  { %v865_v15 = vadd.f32 %v863_v14, %v855_v13 }
 0x66e   :  { %7930 = vtanh.f32 %v865_v15 }
 0x66f   :  { %7932 = vpow2.f32 %v5995_v18 }
 0x678   :  { %v7931_v16 = vpop.eup %7930 }
 0x679   :  { %868 = vrot.lane.b32.xlu1 %v7931_v16, %s8741_s16  ;;  %v7933_v20 = vpop.eup %7932 }
 0x67a   :  { %v849_v21 = vadd.f32 1.0, %v7933_v20 }
 0x67c   :  { %7934 = vrcp.f32 %v849_v21 }
 0x686   :  { %v7935_v22 = vpop.eup %7934 }
 0x6eb   :  { %v869_v24 = vpop.permute.xlu1 %868 }
 0x6ec   :  { %v9143_v25 = vmul.f32 %v7935_v22, %v869_v24 }
 0x6ee   :  { %5996 = vmatmul.mubr.msk.f32.vlgmr.msra.gmra.mrb[4].mxu0 %vm648_vm1, %v9143_v25  ;;  %872 = vst.msk [vmem:[#allocation2 + $0x8] sm:$0xff] %vm755_vm2, %v9143_v25 }
 0x6ef   :  { %6314 = vmatpush1.bf16.msra.mxu0 %v9049_v1  ;;  %1059 = vmatprep.mubr.f32.mxu0 %v8752_v0 }
 0x6f0   :  { %6316 = vmatprep.subr.bf16.mxu0 %v9053_v3 }
 0x6f3   :  { %6318 = vmatpush1.bf16.msra.mxu0 %v9058_v9 }
 0x6f4   :  { %6320 = vmatprep.subr.bf16.mxu0 %v9062_v11 }
 0x6f7   :  { %6322 = vmatpush1.bf16.msra.mxu0 %v9067_v17 }
 0x6f8   :  { %6324 = vmatprep.subr.bf16.mxu0 %v9071_v19 }
 0x6fb   :  { %6326 = vmatpush1.bf16.msra.mxu0 %v9076_v23 }
 0x6fc   :  { %6328 = vmatprep.subr.bf16.mxu0 %v9046_v58 }
 0x7c1   :  { %v948_v26 = vpop.f32.mrb[4].mxu0 }
 0x7c2   :  { %v950_v27 = vpop.f32.mrb[5].mxu0  ;;  %v7749_v30 = vadd.f32 %v948_v26, %v9118_v42 }
 0x7c3   :  { %v7750_v28 = vadd.f32 %v950_v27, %v9110_v36 }
 0x7c4   :  { %v5997_v31 = vmul.f32 -1.442695, %v7749_v30 }
 0x7c5   :  { %7936 = vtanh.f32 %v7750_v28  ;;  %v5998_v46 = vmul.f32 -1.442695, %v7750_v28 }
 0x7c6   :  { %7938 = vpow2.f32 %v5997_v31 }
 0x7cf   :  { %v7937_v29 = vpop.eup %7936 }
 0x7d0   :  { %970 = vrot.lane.b32.xlu0 %v7937_v29, %s8741_s16  ;;  %v7939_v32 = vpop.eup %7938 }
 0x7d1   :  { %v961_v35 = vadd.f32 1.0, %v7939_v32 }
 0x7d3   :  { %7940 = vrcp.f32 %v961_v35 }
 0x7dd   :  { %v7941_v37 = vpop.eup %7940 }
 0x7de   :  { %v968_v40 = vmul.f32 %v7941_v37, %v865_v15 }
 0x842   :  { %v971_v38 = vpop.permute.xlu0 %970 }
 0x843   :  { %v973_v39 = vmul.f32 %v7941_v37, %v971_v38 }
 0x845   :  { %975 = vrot.lane.b32.xlu1 %v973_v39, %s8741_s16 }
 0x8b7   :  { %v976_v43 = vpop.permute.xlu1 %975 }
 0x8b8   :  { %v978_v44 = vadd.f32 %v976_v43, %v968_v40 }
 0x8ba   :  { %7942 = vtanh.f32 %v978_v44 }
 0x8bb   :  { %7944 = vpow2.f32 %v5998_v46 }
 0x8c4   :  { %v7943_v45 = vpop.eup %7942 }
 0x8c5   :  { %981 = vrot.lane.b32.xlu0 %v7943_v45, %s8741_s16  ;;  %v7945_v47 = vpop.eup %7944 }
 0x8c6   :  { %v962_v48 = vadd.f32 1.0, %v7945_v47 }
 0x8c8   :  { %7946 = vrcp.f32 %v962_v48 }
 0x8d2   :  { %v7947_v49 = vpop.eup %7946 }
 0x937   :  { %v982_v50 = vpop.permute.xlu0 %981 }
 0x938   :  { %v9163_v51 = vmul.f32 %v7947_v49, %v982_v50 }
 0x93a   :  { %5999 = vmatmul.mubr.msk.f32.vlgmr.msra.gmra.mrb[6].mxu0 %vm648_vm1, %v9163_v51  ;;  %985 = vst.msk [vmem:[#allocation2 + $0x10] sm:$0xff] %vm755_vm2, %v9163_v51 }
 0x93b   :  { %6330 = vmatpush1.bf16.msra.mxu0 %v9049_v1  ;;  %1172 = vmatprep.mubr.f32.mxu0 %v8752_v0 }
 0x93c   :  { %6332 = vmatprep.subr.bf16.mxu0 %v9053_v3 }
 0x93f   :  { %6334 = vmatpush1.bf16.msra.mxu0 %v9058_v9 }
 0x940   :  { %6336 = vmatprep.subr.bf16.mxu0 %v9062_v11 }
 0x943   :  { %6338 = vmatpush1.bf16.msra.mxu0 %v9067_v17 }
 0x944   :  { %6340 = vmatprep.subr.bf16.mxu0 %v9071_v19 }
 0x947   :  { %6342 = vmatpush1.bf16.msra.mxu0 %v9076_v23 }
 0x948   :  { %6344 = vmatprep.subr.bf16.mxu0 %v9046_v58 }
 0xa0d   :  { %v1061_v52 = vpop.f32.mrb[6].mxu0 }
 0xa0e   :  { %v1063_v53 = vpop.f32.mrb[7].mxu0  ;;  %v7751_v56 = vadd.f32 %v1061_v52, %v9118_v42 }
 0xa0f   :  { %v7752_v54 = vadd.f32 %v1063_v53, %v9110_v36 }
 0xa10   :  { %v6000_v57 = vmul.f32 -1.442695, %v7751_v56 }
 0xa11   :  { %7948 = vtanh.f32 %v7752_v54  ;;  %v6001_v8 = vmul.f32 -1.442695, %v7752_v54 }
 0xa12   :  { %7950 = vpow2.f32 %v6000_v57 }
 0xa1b   :  { %v7949_v55 = vpop.eup %7948 }
 0xa1c   :  { %1083 = vrot.lane.b32.xlu1 %v7949_v55, %s8741_s16  ;;  %v7951_v59 = vpop.eup %7950 }
 0xa1d   :  { %v1074_v61 = vadd.f32 1.0, %v7951_v59 }
 0xa1f   :  { %7952 = vrcp.f32 %v1074_v61 }
 0xa29   :  { %v7953_v62 = vpop.eup %7952 }
 0xa2a   :  { %v1081_v4 = vmul.f32 %v7953_v62, %v978_v44 }
 0xa8e   :  { %v1084_v63 = vpop.permute.xlu1 %1083 }
 0xa8f   :  { %v1086_v2 = vmul.f32 %v7953_v62, %v1084_v63 }
 0xa91   :  { %1088 = vrot.lane.b32.xlu0 %v1086_v2, %s8741_s16 }
 0xb03   :  { %v1089_v5 = vpop.permute.xlu0 %1088 }
 0xb04   :  { %v1091_v6 = vadd.f32 %v1089_v5, %v1081_v4 }
 0xb06   :  { %7954 = vtanh.f32 %v1091_v6 }
 0xb07   :  { %7956 = vpow2.f32 %v6001_v8 }
 0xb10   :  { %v7955_v7 = vpop.eup %7954 }
 0xb11   :  { %1094 = vrot.lane.b32.xlu1 %v7955_v7, %s8741_s16  ;;  %v7957_v10 = vpop.eup %7956 }
 0xb12   :  { %v1075_v12 = vadd.f32 1.0, %v7957_v10 }
 0xb14   :  { %7958 = vrcp.f32 %v1075_v12 }
 0xb1e   :  { %v7959_v13 = vpop.eup %7958 }
 0xb83   :  { %v1095_v14 = vpop.permute.xlu1 %1094 }
 0xb84   :  { %v9183_v15 = vmul.f32 %v7959_v13, %v1095_v14 }
 0xb86   :  { %6002 = vmatmul.mubr.msk.f32.vlgmr.msra.gmra.mrb[8].mxu0 %vm648_vm1, %v9183_v15  ;;  %1098 = vst.msk [vmem:[#allocation2 + $0x18] sm:$0xff] %vm755_vm2, %v9183_v15 }
 0xb87   :  { %6346 = vmatpush1.bf16.msra.mxu0 %v9049_v1  ;;  %1285 = vmatprep.mubr.f32.mxu0 %v8752_v0 }
 0xb88   :  { %6348 = vmatprep.subr.bf16.mxu0 %v9053_v3 }
 0xb8b   :  { %6350 = vmatpush1.bf16.msra.mxu0 %v9058_v9 }
 0xb8c   :  { %6352 = vmatprep.subr.bf16.mxu0 %v9062_v11 }
 0xb8f   :  { %6354 = vmatpush1.bf16.msra.mxu0 %v9067_v17 }
 0xb90   :  { %6356 = vmatprep.subr.bf16.mxu0 %v9071_v19 }
 0xb93   :  { %6358 = vmatpush1.bf16.msra.mxu0 %v9076_v23 }
 0xb94   :  { %6360 = vmatprep.subr.bf16.mxu0 %v9046_v58 }
 0xc59   :  { %v1174_v16 = vpop.f32.mrb[8].mxu0 }
 0xc5a   :  { %v1176_v18 = vpop.f32.mrb[9].mxu0  ;;  %v7753_v22 = vadd.f32 %v1174_v16, %v9118_v42 }
 0xc5b   :  { %v7754_v20 = vadd.f32 %v1176_v18, %v9110_v36 }
 0xc5c   :  { %v6003_v24 = vmul.f32 -1.442695, %v7753_v22 }
 0xc5d   :  { %7960 = vtanh.f32 %v7754_v20  ;;  %v6004_v38 = vmul.f32 -1.442695, %v7754_v20 }
 0xc5e   :  { %7962 = vpow2.f32 %v6003_v24 }
 0xc67   :  { %v7961_v21 = vpop.eup %7960 }
 0xc68   :  { %1196 = vrot.lane.b32.xlu0 %v7961_v21, %s8741_s16  ;;  %v7963_v26 = vpop.eup %7962 }
 0xc69   :  { %v1187_v27 = vadd.f32 1.0, %v7963_v26 }
 0xc6b   :  { %7964 = vrcp.f32 %v1187_v27 }
 0xc75   :  { %v7965_v28 = vpop.eup %7964 }
 0xc76   :  { %v1194_v31 = vmul.f32 %v7965_v28, %v1091_v6 }
 0xcda   :  { %v1197_v29 = vpop.permute.xlu0 %1196 }
 0xcdb   :  { %v1199_v30 = vmul.f32 %v7965_v28, %v1197_v29 }
 0xcdd   :  { %1201 = vrot.lane.b32.xlu1 %v1199_v30, %s8741_s16 }
 0xd4f   :  { %v1202_v32 = vpop.permute.xlu1 %1201 }
 0xd50   :  { %v1204_v35 = vadd.f32 %v1202_v32, %v1194_v31 }
 0xd52   :  { %7966 = vtanh.f32 %v1204_v35 }
 0xd53   :  { %7968 = vpow2.f32 %v6004_v38 }
 0xd5c   :  { %v7967_v37 = vpop.eup %7966 }
 0xd5d   :  { %1207 = vrot.lane.b32.xlu0 %v7967_v37, %s8741_s16  ;;  %v7969_v39 = vpop.eup %7968 }
 0xd5e   :  { %v1188_v40 = vadd.f32 1.0, %v7969_v39 }
 0xd60   :  { %7970 = vrcp.f32 %v1188_v40 }
 0xd6a   :  { %v7971_v43 = vpop.eup %7970 }
 0xdcf   :  { %v1208_v44 = vpop.permute.xlu0 %1207 }
 0xdd0   :  { %v9203_v45 = vmul.f32 %v7971_v43, %v1208_v44 }
 0xdd2   :  { %6005 = vmatmul.mubr.msk.f32.vlgmr.msra.gmra.mrb[10].mxu0 %vm648_vm1, %v9203_v45 }
 0xdd3   :  { %6362 = vmatpush1.bf16.msra.mxu0 %v9049_v1  ;;  %1398 = vmatprep.mubr.f32.mxu0 %v8752_v0 }
 0xdd4   :  { %6364 = vmatprep.subr.bf16.mxu0 %v9053_v3 }
 0xdd7   :  { %6366 = vmatpush1.bf16.msra.mxu0 %v9058_v9 }
 0xdd8   :  { %6368 = vmatprep.subr.bf16.mxu0 %v9062_v11 }
 0xddb   :  { %6370 = vmatpush1.bf16.msra.mxu0 %v9067_v17 }
 0xddc   :  { %6372 = vmatprep.subr.bf16.mxu0 %v9071_v19 }
 0xddf   :  { %6374 = vmatpush1.bf16.msra.mxu0 %v9076_v23 }
 0xde0   :  { %6376 = vmatprep.subr.bf16.mxu0 %v9046_v58 }
 0xea5   :  { %v1287_v46 = vpop.f32.mrb[10].mxu0 }
 0xea6   :  { %v1289_v47 = vpop.f32.mrb[11].mxu0  ;;  %v7755_v50 = vadd.f32 %v1287_v46, %v9118_v42 }
 0xea7   :  { %v7756_v48 = vadd.f32 %v1289_v47, %v9110_v36 }
 0xea8   :  { %v6006_v52 = vmul.f32 -1.442695, %v7755_v50 }
 0xea9   :  { %7972 = vtanh.f32 %v7756_v48  ;;  %v6007_v63 = vmul.f32 -1.442695, %v7756_v48 }
 0xeaa   :  { %7974 = vpow2.f32 %v6006_v52  ;;  %v1569_v52 = vld [vmem:[#allocation12 + $0x18] sm:$0xff] }
 0xeb3   :  { %v7973_v49 = vpop.eup %7972 }
 0xeb4   :  { %1309 = vrot.lane.b32.xlu1 %v7973_v49, %s8741_s16  ;;  %v7975_v53 = vpop.eup %7974 }
 0xeb5   :  { %v1300_v54 = vadd.f32 1.0, %v7975_v53 }
 0xeb7   :  { %7976 = vrcp.f32 %v1300_v54 }
 0xec1   :  { %v7977_v55 = vpop.eup %7976 }
 0xec2   :  { %v1307_v58 = vmul.f32 %v7977_v55, %v1204_v35 }
 0xf26   :  { %v1310_v56 = vpop.permute.xlu1 %1309 }
 0xf27   :  { %v1312_v57 = vmul.f32 %v7977_v55, %v1310_v56  ;;  %v1568_v55 = vld [vmem:[#allocation12 + $0x10] sm:$0xff]  ;;  %v1571_v56 = vld [vmem:[#allocation12 + $0x28] sm:$0xff] }
 0xf29   :  { %1314 = vrot.lane.b32.xlu0 %v1312_v57, %s8741_s16  ;;  %v1573_v57 = vld [vmem:[#allocation12 + $0x38] sm:$0xff] }
 0xf9b   :  { %v1315_v59 = vpop.permute.xlu0 %1314 }
 0xf9c   :  { %v1317_v61 = vadd.f32 %v1315_v59, %v1307_v58  ;;  %v6395_v59 = vpack.c.bf16 %v1573_v57, %v1571_v56  ;;  %v1730_v56 = vld [vmem:[#allocation14 + $0x38] sm:$0xff] }
 0xf9e   :  { %7978 = vtanh.f32 %v1317_v61 }
 0xf9f   :  { %7980 = vpow2.f32 %v6007_v63  ;;  %v1577_v63 = vld [vmem:[#allocation12 + $0x58] sm:$0xff] }
 0xfa8   :  { %v7979_v62 = vpop.eup %7978 }
 0xfa9   :  { %1320 = vrot.lane.b32.xlu1 %v7979_v62, %s8741_s16  ;;  %v7981_v2 = vpop.eup %7980  ;;  %v1575_v62 = vld [vmem:[#allocation12 + $0x48] sm:$0xff] }
 0xfaa   :  { %v1301_v4 = vadd.f32 1.0, %v7981_v2 }
 0xfac   :  { %7982 = vrcp.f32 %v1301_v4  ;;  %v6399_v4 = vpack.c.bf16 %v1577_v63, %v1575_v62  ;;  %v1732_v63 = vld [vmem:[#allocation14 + $0x48] sm:$0xff] }
 0xfb6   :  { %v7983_v5 = vpop.eup %7982 }
0x101b   :  { %v1321_v6 = vpop.permute.xlu1 %1320 }
0x101c   :  { %v9221_v7 = vmul.f32 %v7983_v5, %v1321_v6  ;;  %v1574_v5 = vld [vmem:[#allocation12 + $0x40] sm:$0xff]  ;;  %v1576_v6 = vld [vmem:[#allocation12 + $0x50] sm:$0xff] }
0x101e   :  { %6008 = vmatmul.mubr.msk.f32.vlgmr.msra.gmra.mrb[12].mxu0 %vm648_vm1, %v9221_v7 }
0x101f   :  { %6378 = vmatpush1.bf16.msra.mxu0 %v9049_v1  ;;  %1511 = vmatprep.mubr.f32.mxu0 %v8752_v0 }
0x1020   :  { %6380 = vmatprep.subr.bf16.mxu0 %v9053_v3 }
0x1023   :  { %6382 = vmatpush1.bf16.msra.mxu0 %v9058_v9 }
0x1024   :  { %6384 = vmatprep.subr.bf16.mxu0 %v9062_v11 }
0x1027   :  { %6386 = vmatpush1.bf16.msra.mxu0 %v9067_v17 }
0x1028   :  { %6388 = vmatprep.subr.bf16.mxu0 %v9071_v19 }
0x102b   :  { %6390 = vmatpush1.bf16.msra.mxu0 %v9076_v23 }
0x10f1   :  { %v1400_v8 = vpop.f32.mrb[12].mxu0 }
0x10f2   :  { %v1402_v10 = vpop.f32.mrb[13].mxu0  ;;  %v7757_v3 = vadd.f32 %v1400_v8, %v9118_v42  ;;  %v1579_v8 = vld [vmem:[#allocation12 + $0x68] sm:$0xff] }
0x10f3   :  { %v7758_v12 = vadd.f32 %v1402_v10, %v9110_v36  ;;  %v1581_v10 = vld [vmem:[#allocation12 + $0x78] sm:$0xff] }
0x10f4   :  { %v6009_v13 = vmul.f32 -1.442695, %v7757_v3  ;;  %v1578_v3 = vld [vmem:[#allocation12 + $0x60] sm:$0xff] }
0x10f5   :  { %7984 = vtanh.f32 %v7758_v12  ;;  %v6010_v21 = vmul.f32 -1.442695, %v7758_v12  ;;  %v6401_v12 = vpack.c.bf16 %v1576_v6, %v1574_v5  ;;  %v1731_v6 = vld [vmem:[#allocation14 + $0x40] sm:$0xff] }
0x10f6   :  { %7986 = vpow2.f32 %v6009_v13  ;;  %v1580_v13 = vld [vmem:[#allocation12 + $0x70] sm:$0xff] }
0x10ff   :  { %v7985_v1 = vpop.eup %7984 }
0x1100   :  { %1422 = vrot.lane.b32.xlu0 %v7985_v1, %s8741_s16  ;;  %v7987_v9 = vpop.eup %7986  ;;  %v6403_v1 = vpack.c.bf16 %v1581_v10, %v1579_v8  ;;  %v1733_v8 = vld [vmem:[#allocation14 + $0x50] sm:$0xff] }
0x1101   :  { %v1413_v11 = vadd.f32 1.0, %v7987_v9  ;;  %v1585_v9 = vld [vmem:[#allocation12 + $0x98] sm:$0xff] }
0x1103   :  { %7988 = vrcp.f32 %v1413_v11  ;;  %v6405_v11 = vpack.c.bf16 %v1580_v13, %v1578_v3  ;;  %v1735_v13 = vld [vmem:[#allocation14 + $0x60] sm:$0xff] }
0x110d   :  { %v7989_v17 = vpop.eup %7988 }
0x110e   :  { %v1420_v23 = vmul.f32 %v7989_v17, %v1317_v61  ;;  %v1572_v61 = vld [vmem:[#allocation12 + $0x30] sm:$0xff] }
0x1172   :  { %v1423_v14 = vpop.permute.xlu0 %1422 }
0x1173   :  { %v1425_v19 = vmul.f32 %v7989_v17, %v1423_v14  ;;  %v1582_v14 = vld [vmem:[#allocation12 + $0x80] sm:$0xff] }
0x1175   :  { %1427 = vrot.lane.b32.xlu1 %v1425_v19, %s8741_s16  ;;  %v1584_v19 = vld [vmem:[#allocation12 + $0x90] sm:$0xff] }
0x11e7   :  { %v1428_v16 = vpop.permute.xlu1 %1427 }
0x11e8   :  { %v1430_v18 = vadd.f32 %v1428_v16, %v1420_v23  ;;  %v1587_v23 = vld [vmem:[#allocation12 + $0xa8] sm:$0xff]  ;;  %v1589_v16 = vld [vmem:[#allocation12 + $0xb8] sm:$0xff] }
0x11ea   :  { %7990 = vtanh.f32 %v1430_v18 }
0x11eb   :  { %7992 = vpow2.f32 %v6010_v21  ;;  %v1586_v21 = vld [vmem:[#allocation12 + $0xa0] sm:$0xff] }
0x11f4   :  { %v7991_v20 = vpop.eup %7990 }
0x11f5   :  { %1433 = vrot.lane.b32.xlu0 %v7991_v20, %s8741_s16  ;;  %v7993_v22 = vpop.eup %7992  ;;  %v6411_v20 = vpack.c.bf16 %v1589_v16, %v1587_v23  ;;  %v1598_v16 = vld [vmem:[#allocation15] sm:$0x3] }
0x11f6   :  { %v1414_v24 = vadd.f32 1.0, %v7993_v22  ;;  %v1588_v22 = vld [vmem:[#allocation12 + $0xb0] sm:$0xff] }
0x11f8   :  { %7994 = vrcp.f32 %v1414_v24  ;;  %v6413_v24 = vpack.c.bf16 %v1588_v22, %v1586_v21 }
0x1202   :  { %v7995_v26 = vpop.eup %7994 }
0x1267   :  { %v1434_v27 = vpop.permute.xlu0 %1433 }
0x1268   :  { %v9238_v28 = vmul.f32 %v7995_v26, %v1434_v27 }
0x126a   :  { %6011 = vmatmul.mubr.msk.f32.vlgmr.msra.gmra.mrb[14].mxu0 %vm648_vm1, %v9238_v28 }
0x133d   :  { %v1513_v29 = vpop.f32.mrb[14].mxu0 }
0x133e   :  { %v1515_v30 = vpop.f32.mrb[15].mxu0  ;;  %v7759_v35 = vadd.f32 %v1513_v29, %v9118_v42 }
0x133f   :  { %v9243_v31 = vadd.f32 %v1515_v30, %v9110_v36  ;;  %v1591_v30 = vld [vmem:[#allocation12 + $0xc8] sm:$0xff] }
0x1340   :  { %v6012_v37 = vmul.f32 -1.442695, %v7759_v35 }
0x1341   :  { %7996 = vtanh.f32 %v9243_v31  ;;  %v6013_v26 = vmul.f32 -1.442695, %v9243_v31  ;;  %v1724_v31 = vld [vmem:[#allocation14 + $0x8] sm:$0xff] }
0x1342   :  { %7998 = vpow2.f32 %v6012_v37  ;;  %v1590_v37 = vld [vmem:[#allocation12 + $0xc0] sm:$0xff] }
0x134b   :  { %v7997_v32 = vpop.eup %7996 }
0x134c   :  { %1535 = vrot.lane.b32.xlu1 %v7997_v32, %s8741_s16  ;;  %v7999_v38 = vpop.eup %7998  ;;  %v1593_v32 = vld [vmem:[#allocation12 + $0xd8] sm:$0xff] }
0x134d   :  { %v1526_v39 = vadd.f32 1.0, %v7999_v38  ;;  %v6415_v35 = vpack.c.bf16 %v1593_v32, %v1591_v30  ;;  %v1592_v38 = vld [vmem:[#allocation12 + $0xd0] sm:$0xff] }
0x134f   :  { %8000 = vrcp.f32 %v1526_v39  ;;  %v6417_v39 = vpack.c.bf16 %v1592_v38, %v1590_v37 }
0x1359   :  { %v8001_v40 = vpop.eup %8000 }
0x135a   :  { %v1533_v36 = vmul.f32 %v8001_v40, %v1430_v18  ;;  %v6409_v18 = vpack.c.bf16 %v1584_v19, %v1582_v14 }
0x13be   :  { %v1536_v43 = vpop.permute.xlu1 %1535 }
0x13bf   :  { %v1538_v44 = vmul.f32 %v8001_v40, %v1536_v43  ;;  %v1595_v40 = vld [vmem:[#allocation12 + $0xe8] sm:$0xff]  ;;  %v1597_v43 = vld [vmem:[#allocation12 + $0xf8] sm:$0xff] }
0x13c1   :  { %1540 = vrot.lane.b32.xlu0 %v1538_v44, %s8741_s16  ;;  %v6419_v44 = vpack.c.bf16 %v1597_v43, %v1595_v40 }
0x13c5   :  { %758 = vrot.lane.b32.xlu0 %v9123_v60, %s8741_s16 }
0x13c9   :  { %874 = vrot.lane.b32.xlu0 %v9143_v25, %s8741_s16 }
0x13cd   :  { %987 = vrot.lane.b32.xlu0 %v9163_v51, %s8741_s16 }
0x13d1   :  { %1100 = vrot.lane.b32.xlu0 %v9183_v15, %s8741_s16 }
0x1433   :  { %v1541_v42 = vpop.permute.xlu0 %1540 }
0x1434   :  { %v1543_v46 = vadd.f32 %v1541_v42, %v1533_v36  ;;  %v1594_v36 = vld [vmem:[#allocation12 + $0xe0] sm:$0xff]  ;;  %v1596_v42 = vld [vmem:[#allocation12 + $0xf0] sm:$0xff] }
0x1436   :  { %8002 = vtanh.f32 %v1543_v46  ;;  %v6421_v46 = vpack.c.bf16 %v1596_v42, %v1594_v36 }
0x1437   :  { %v759_v47 = vpop.permute.xlu0 %758  ;;  %8004 = vpow2.f32 %v6013_v26  ;;  %v9353_v26 = vrot.slane %v1598_v16, %v9115_v41 }
0x1438   :  { %762 = vst.msk [vmem:[#allocation2 + $0x38] sm:$0xff] %vm761_vm3, %v759_v47 }
0x1439   :  { %766 = vst.msk [vmem:[#allocation2] sm:$0xff] %vm765_vm4, %v759_v47  ;;  %v1726_v47 = vld [vmem:[#allocation14 + $0x18] sm:$0xff] }
0x143a   :  { %764 = vst.msk [vmem:[#allocation2 + $0x38] sm:$0xff] %vm763_vm5, %v9123_v60  ;;  %v1567_v60 = vld [vmem:[#allocation12 + $0x8] sm:$0xff] }
0x143b   :  { %v875_v48 = vpop.permute.xlu0 %874  ;;  %v6391_v54 = vpack.c.bf16 %v1569_v52, %v1567_v60 }
0x143c   :  { %877 = vst.msk [vmem:[#allocation2 + $0x30] sm:$0xff] %vm761_vm3, %v875_v48 }
0x143d   :  { %879 = vst.msk [vmem:[#allocation2 + $0x8] sm:$0xff] %vm765_vm4, %v875_v48  ;;  %6392 = vmatprep.subr.bf16.mxu1 %v6391_v54  ;;  %v1725_v54 = vld [vmem:[#allocation14 + $0x10] sm:$0xff] }
0x143e   :  { %878 = vst.msk [vmem:[#allocation2 + $0x30] sm:$0xff] %vm763_vm5, %v9143_v25  ;;  %v1566_v25 = vld [vmem:[#allocation12] sm:$0xff] }
0x143f   :  { %1437 = vst.msk [vmem:[#allocation2 + $0x30] sm:$0xff] %vm755_vm2, %v9238_v28  ;;  %v988_v49 = vpop.permute.xlu0 %987  ;;  %v6393_v58 = vpack.c.bf16 %v1568_v55, %v1566_v25  ;;  %v1728_v55 = vld [vmem:[#allocation14 + $0x28] sm:$0xff] }
0x1440   :  { %v8003_v50 = vpop.eup %8002  ;;  %990 = vst.msk [vmem:[#allocation2 + $0x28] sm:$0xff] %vm761_vm3, %v988_v49 }
0x1441   :  { %992 = vst.msk [vmem:[#allocation2 + $0x10] sm:$0xff] %vm765_vm4, %v988_v49  ;;  %1546 = vrot.lane.b32.xlu1 %v8003_v50, %s8741_s16  ;;  %6394 = vmatpush1.bf16.msra.mxu1 %v6393_v58  ;;  %v8005_v27 = vpop.eup %8004  ;;  %v9281_v50 = vpack.c.bf16 %v1726_v47, %v1724_v31 }
0x1442   :  { %991 = vst.msk [vmem:[#allocation2 + $0x28] sm:$0xff] %vm763_vm5, %v9163_v51  ;;  %v1570_v51 = vld [vmem:[#allocation12 + $0x20] sm:$0xff]  ;;  %6396 = vmatprep.subr.bf16.mxu1 %v6395_v59  ;;  %v1527_v29 = vadd.f32 1.0, %v8005_v27  ;;  %v9301_v59 = vpack.c.bf16 %v1730_v56, %v1728_v55 }
0x1443   :  { %1324 = vst.msk [vmem:[#allocation2 + $0x28] sm:$0xff] %vm755_vm2, %v9221_v7  ;;  %v1101_v53 = vpop.permute.xlu0 %1100  ;;  %v6397_v2 = vpack.c.bf16 %v1572_v61, %v1570_v51  ;;  %v1727_v51 = vld [vmem:[#allocation14 + $0x20] sm:$0xff]  ;;  %v1729_v61 = vld [vmem:[#allocation14 + $0x30] sm:$0xff] }
0x1444   :  { %1103 = vst.msk [vmem:[#allocation2 + $0x20] sm:$0xff] %vm761_vm3, %v1101_v53  ;;  %8006 = vrcp.f32 %v1527_v29 }
0x1445   :  { %1105 = vst.msk [vmem:[#allocation2 + $0x18] sm:$0xff] %vm765_vm4, %v1101_v53  ;;  %6398 = vmatpush1.bf16.msra.mxu1 %v6397_v2  ;;  %v1723_v53 = vld [vmem:[#allocation14] sm:$0xff]  ;;  %v1734_v2 = vld [vmem:[#allocation14 + $0x58] sm:$0xff] }
0x1446   :  { %1104 = vst.msk [vmem:[#allocation2 + $0x20] sm:$0xff] %vm763_vm5, %v9183_v15  ;;  %6400 = vmatprep.subr.bf16.mxu1 %v6399_v4  ;;  %v1583_v15 = vld [vmem:[#allocation12 + $0x88] sm:$0xff]  ;;  %v9299_v57 = vpack.c.bf16 %v1725_v54, %v1723_v53  ;;  %v9312_v5 = vpack.c.bf16 %v1734_v2, %v1732_v63 }
0x1447   :  { %1211 = vst.msk [vmem:[#allocation2 + $0x20] sm:$0xff] %vm755_vm2, %v9203_v45  ;;  %v6407_v17 = vpack.c.bf16 %v1585_v9, %v1583_v15  ;;  %v1737_v15 = vld [vmem:[#allocation14 + $0x70] sm:$0xff] }
0x1449   :  { %6402 = vmatpush1.bf16.msra.mxu1 %v6401_v12  ;;  %v1738_v12 = vld [vmem:[#allocation14 + $0x78] sm:$0xff] }
0x144a   :  { %6404 = vmatprep.subr.bf16.mxu1 %v6403_v1  ;;  %v9320_v1 = vpack.c.bf16 %v1733_v8, %v1731_v6 }
0x144d   :  { %6406 = vmatpush1.bf16.msra.mxu1 %v6405_v11 }
0x144e   :  { %6408 = vmatprep.subr.bf16.mxu1 %v6407_v17  ;;  %v8007_v48 = vpop.eup %8006 }
0x1451   :  { %6410 = vmatpush1.bf16.msra.mxu1 %v6409_v18  ;;  %v9348_v18 = vrot.slane %v1598_v16, %v9107_v34 }
0x1452   :  { %6412 = vmatprep.subr.bf16.mxu1 %v6411_v20 }
0x1455   :  { %6414 = vmatpush1.bf16.msra.mxu1 %v6413_v24 }
0x1456   :  { %6416 = vmatprep.subr.bf16.mxu1 %v6415_v35 }
0x1459   :  { %6418 = vmatpush1.bf16.msra.mxu1 %v6417_v39 }
0x145a   :  { %6420 = vmatprep.subr.bf16.mxu1 %v6419_v44 }
0x145d   :  { %6422 = vmatpush1.bf16.msra.mxu1 %v6421_v46 }
0x145e   :  { %6424 = vmatprep.subr.bf16.mxu1 %v9281_v50 }
0x14b3   :  { %v1547_v49 = vpop.permute.xlu1 %1546 }
0x14b4   :  { %v1549_v60 = vmul.f32 %v8007_v48, %v1547_v49 }
0x14b6   :  { %1550 = vst.msk [vmem:[#allocation2 + $0x38] sm:$0xff] %vm755_vm2, %v1549_v60  ;;  %1552 = vrot.lane.b32.xlu1 %v1549_v60, %s8741_s16 }
0x14ba   :  { %1439 = vrot.lane.b32.xlu1 %v9238_v28, %s8741_s16 }
0x14be   :  { %1326 = vrot.lane.b32.xlu1 %v9221_v7, %s8741_s16 }
0x14c2   :  { %1213 = vrot.lane.b32.xlu1 %v9203_v45, %s8741_s16 }
0x1528   :  { %v1553_v52 = vpop.permute.xlu1 %1552 }
0x1529   :  { %1555 = vst.msk [vmem:[#allocation2] sm:$0xff] %vm761_vm3, %v1553_v52 }
0x152a   :  { %1557 = vst.msk [vmem:[#allocation2 + $0x38] sm:$0xff] %vm765_vm4, %v1553_v52 }
0x152b   :  { %1556 = vst.msk [vmem:[#allocation2] sm:$0xff] %vm763_vm5, %v1549_v60 }
0x152c   :  { %v1440_v25 = vpop.permute.xlu1 %1439 }
0x152d   :  { %1442 = vst.msk [vmem:[#allocation2 + $0x8] sm:$0xff] %vm761_vm3, %v1440_v25 }
0x152e   :  { %1444 = vst.msk [vmem:[#allocation2 + $0x30] sm:$0xff] %vm765_vm4, %v1440_v25 }
0x152f   :  { %1443 = vst.msk [vmem:[#allocation2 + $0x8] sm:$0xff] %vm763_vm5, %v9238_v28  ;;  %v9309_v28 = vpack.c.bf16 %v1729_v61, %v1727_v51 }
0x1530   :  { %v1327_v58 = vpop.permute.xlu1 %1326 }
0x1531   :  { %1329 = vst.msk [vmem:[#allocation2 + $0x10] sm:$0xff] %vm761_vm3, %v1327_v58  ;;  %v1565_v23 = vld [vmem:[#allocation2 + $0x38] sm:$0xff] }
0x1532   :  { %1331 = vst.msk [vmem:[#allocation2 + $0x28] sm:$0xff] %vm765_vm4, %v1327_v58  ;;  %v1558_v62 = vld [vmem:[#allocation2] sm:$0xff] }
0x1533   :  { %1330 = vst.msk [vmem:[#allocation2 + $0x10] sm:$0xff] %vm763_vm5, %v9221_v7  ;;  %1675 = vmatmul.mubr.f32.vlgmr.msra.gmra.mrb[0].mxu1 %v1558_v62  ;;  %v1736_v7 = vld [vmem:[#allocation14 + $0x68] sm:$0xff] }
0x1534   :  { %6426 = vmatpush1.bf16.msra.mxu1 %v9299_v57  ;;  %1680 = vmatprep.mubr.f32.mxu1 %v8752_v0  ;;  %v1214_v4 = vpop.permute.xlu1 %1213  ;;  %v9323_v3 = vpack.c.bf16 %v1738_v12, %v1736_v7 }
0x1535   :  { %6428 = vmatprep.subr.bf16.mxu1 %v9301_v59  ;;  %1216 = vst.msk [vmem:[#allocation2 + $0x18] sm:$0xff] %vm761_vm3, %v1214_v4  ;;  %v1564_v19 = vld [vmem:[#allocation2 + $0x30] sm:$0xff] }
0x1536   :  { %1218 = vst.msk [vmem:[#allocation2 + $0x20] sm:$0xff] %vm765_vm4, %v1214_v4  ;;  %v1559_v10 = vld [vmem:[#allocation2 + $0x8] sm:$0xff] }
0x1537   :  { %1217 = vst.msk [vmem:[#allocation2 + $0x18] sm:$0xff] %vm763_vm5, %v9203_v45  ;;  %1681 = vmatmul.mubr.f32.gmra.mrb[2].mxu1 %v1559_v10  ;;  %v9327_v45 = vpack.c.bf16 %v1737_v15, %v1735_v13 }
0x1538   :  { %1686 = vmatprep.mubr.f32.mxu1 %v8752_v0  ;;  %6430 = vmatpush1.bf16.msra.mxu1 %v9309_v28 }
0x1539   :  { %6432 = vmatprep.subr.bf16.mxu1 %v9312_v5  ;;  %v1563_v14 = vld [vmem:[#allocation2 + $0x28] sm:$0xff] }
0x153a   :  { %v1560_v9 = vld [vmem:[#allocation2 + $0x10] sm:$0xff] }
0x153b   :  { %1687 = vmatmul.mubr.f32.gmra.mrb[4].mxu1 %v1560_v9 }
0x153c   :  { %1692 = vmatprep.mubr.f32.mxu1 %v8752_v0  ;;  %6434 = vmatpush1.bf16.msra.mxu1 %v9320_v1 }
0x153d   :  { %6436 = vmatprep.subr.bf16.mxu1 %v9323_v3  ;;  %v1562_v17 = vld [vmem:[#allocation2 + $0x20] sm:$0xff] }
0x153e   :  { %v1561_v11 = vld [vmem:[#allocation2 + $0x18] sm:$0xff] }
0x153f   :  { %1693 = vmatmul.mubr.f32.gmra.mrb[6].mxu1 %v1561_v11 }
0x1540   :  { %1698 = vmatprep.mubr.f32.mxu1 %v8752_v0  ;;  %6438 = vmatpush1.bf16.msra.mxu1 %v9327_v45 }
0x1541   :  { %6440 = vmatprep.subr.bf16.mxu1 %v9281_v50 }
0x1543   :  { %1699 = vmatmul.mubr.f32.gmra.mrb[8].mxu1 %v1562_v17 }
0x1544   :  { %1704 = vmatprep.mubr.f32.mxu1 %v8752_v0 }
0x1547   :  { %1705 = vmatmul.mubr.f32.gmra.mrb[10].mxu1 %v1563_v14 }
0x1548   :  { %1710 = vmatprep.mubr.f32.mxu1 %v8752_v0 }
0x154b   :  { %1711 = vmatmul.mubr.f32.gmra.mrb[12].mxu1 %v1564_v19 }
0x154c   :  { %1716 = vmatprep.mubr.f32.mxu1 %v8752_v0 }
0x154f   :  { %1717 = vmatmul.mubr.f32.gmra.mrb[14].mxu1 %v1565_v23 }
0x1550   :  { %1803 = vmatprep.mubr.f32.mxu1 %v8752_v0 }
0x1553   :  { %1804 = vmatmul.mubr.f32.vlgmr.msra.gmra.mrb[0].mxu1 %v8752_v0 }
0x1554   :  { %6442 = vmatpush1.bf16.msra.mxu1 %v9299_v57  ;;  %1914 = vmatprep.mubr.f32.mxu1 %v8752_v0 }
0x1555   :  { %6444 = vmatprep.subr.bf16.mxu1 %v9301_v59 }
0x1558   :  { %6446 = vmatpush1.bf16.msra.mxu1 %v9309_v28 }
0x1559   :  { %6448 = vmatprep.subr.bf16.mxu1 %v9312_v5 }
0x155c   :  { %6450 = vmatpush1.bf16.msra.mxu1 %v9320_v1 }
0x155d   :  { %6452 = vmatprep.subr.bf16.mxu1 %v9323_v3 }
0x1560   :  { %6454 = vmatpush1.bf16.msra.mxu1 %v9327_v45 }
0x1561   :  { %6456 = vmatprep.subr.bf16.mxu1 %v9281_v50 }
0x1626   :  { %v1805_v20 = vpop.f32.mrb[0].mxu1 }
0x1627   :  { %v1807_v21 = vpop.f32.mrb[1].mxu1  ;;  %v7761_v27 = vadd.f32 %v1805_v20, %v9353_v26 }
0x1628   :  { %v7762_v22 = vadd.f32 %v1807_v21, %v9348_v18 }
0x1629   :  { %v6014_v29 = vmul.f32 -1.442695, %v7761_v27 }
0x162a   :  { %8008 = vtanh.f32 %v7762_v22  ;;  %v6015_v36 = vmul.f32 -1.442695, %v7762_v22 }
0x162b   :  { %8010 = vpow2.f32 %v6014_v29 }
0x1634   :  { %v8009_v24 = vpop.eup %8008 }
0x1635   :  { %1827 = vrot.lane.b32.xlu0 %v8009_v24, %s8741_s16  ;;  %v8011_v30 = vpop.eup %8010 }
0x1636   :  { %v1818_v32 = vadd.f32 1.0, %v8011_v30 }
0x1638   :  { %8012 = vrcp.f32 %v1818_v32 }
0x1642   :  { %v8013_v35 = vpop.eup %8012 }
0x1643   :  { %v1825_v39 = vmul.f32 0.0, %v8013_v35 }
0x16a7   :  { %v1828_v37 = vpop.permute.xlu0 %1827 }
0x16a8   :  { %v1830_v38 = vmul.f32 %v8013_v35, %v1828_v37 }
0x16aa   :  { %1832 = vrot.lane.b32.xlu1 %v1830_v38, %s8741_s16 }
0x171c   :  { %v1833_v40 = vpop.permute.xlu1 %1832 }
0x171d   :  { %v1835_v43 = vadd.f32 %v1833_v40, %v1825_v39 }
0x171f   :  { %8014 = vtanh.f32 %v1835_v43 }
0x1720   :  { %8016 = vpow2.f32 %v6015_v36 }
0x1729   :  { %v8015_v44 = vpop.eup %8014 }
0x172a   :  { %1838 = vrot.lane.b32.xlu0 %v8015_v44, %s8741_s16  ;;  %v8017_v42 = vpop.eup %8016 }
0x172b   :  { %v1819_v46 = vadd.f32 1.0, %v8017_v42 }
0x172d   :  { %8018 = vrcp.f32 %v1819_v46 }
0x1737   :  { %v8019_v31 = vpop.eup %8018 }
0x179c   :  { %v1839_v47 = vpop.permute.xlu0 %1838 }
0x179d   :  { %v9358_v48 = vmul.f32 %v8019_v31, %v1839_v47 }
0x179f   :  { %1842 = vst.msk [vmem:[#allocation3] sm:$0xff] %vm755_vm2, %v9358_v48  ;;  %6016 = vmatmul.mubr.msk.f32.vlgmr.msra.gmra.mrb[2].mxu1 %vm648_vm1, %v9358_v48 }
0x17a0   :  { %6458 = vmatpush1.bf16.msra.mxu1 %v9299_v57  ;;  %2025 = vmatprep.mubr.f32.mxu1 %v8752_v0 }
0x17a1   :  { %6460 = vmatprep.subr.bf16.mxu1 %v9301_v59 }
0x17a4   :  { %6462 = vmatpush1.bf16.msra.mxu1 %v9309_v28 }
0x17a5   :  { %6464 = vmatprep.subr.bf16.mxu1 %v9312_v5 }
0x17a8   :  { %6466 = vmatpush1.bf16.msra.mxu1 %v9320_v1 }
0x17a9   :  { %6468 = vmatprep.subr.bf16.mxu1 %v9323_v3 }
0x17ac   :  { %6470 = vmatpush1.bf16.msra.mxu1 %v9327_v45 }
0x17ad   :  { %6472 = vmatprep.subr.bf16.mxu1 %v9281_v50 }
0x1872   :  { %v1916_v49 = vpop.f32.mrb[2].mxu1 }
0x1873   :  { %v1918_v60 = vpop.f32.mrb[3].mxu1  ;;  %v7763_v53 = vadd.f32 %v1916_v49, %v9353_v26 }
0x1874   :  { %v7764_v52 = vadd.f32 %v1918_v60, %v9348_v18 }
0x1875   :  { %v6017_v54 = vmul.f32 -1.442695, %v7763_v53 }
0x1876   :  { %8020 = vtanh.f32 %v7764_v52  ;;  %v6018_v6 = vmul.f32 -1.442695, %v7764_v52 }
0x1877   :  { %8022 = vpow2.f32 %v6017_v54 }
0x1880   :  { %v8021_v25 = vpop.eup %8020 }
0x1881   :  { %1938 = vrot.lane.b32.xlu1 %v8021_v25, %s8741_s16  ;;  %v8023_v55 = vpop.eup %8022 }
0x1882   :  { %v1929_v56 = vadd.f32 1.0, %v8023_v55 }
0x1884   :  { %8024 = vrcp.f32 %v1929_v56 }
0x188e   :  { %v8025_v58 = vpop.eup %8024 }
0x188f   :  { %v1936_v62 = vmul.f32 %v8025_v58, %v1835_v43 }
0x18f3   :  { %v1939_v51 = vpop.permute.xlu1 %1938 }
0x18f4   :  { %v1941_v61 = vmul.f32 %v8025_v58, %v1939_v51 }
0x18f6   :  { %1943 = vrot.lane.b32.xlu0 %v1941_v61, %s8741_s16 }
0x1968   :  { %v1944_v63 = vpop.permute.xlu0 %1943 }
0x1969   :  { %v1946_v2 = vadd.f32 %v1944_v63, %v1936_v62 }
0x196b   :  { %8026 = vtanh.f32 %v1946_v2 }
0x196c   :  { %8028 = vpow2.f32 %v6018_v6 }
0x1975   :  { %v8027_v4 = vpop.eup %8026 }
0x1976   :  { %1949 = vrot.lane.b32.xlu1 %v8027_v4, %s8741_s16  ;;  %v8029_v8 = vpop.eup %8028 }
0x1977   :  { %v1930_v10 = vadd.f32 1.0, %v8029_v8 }
0x1979   :  { %8030 = vrcp.f32 %v1930_v10 }
0x1983   :  { %v8031_v7 = vpop.eup %8030 }
0x19e8   :  { %v1950_v12 = vpop.permute.xlu1 %1949 }
0x19e9   :  { %v9378_v13 = vmul.f32 %v8031_v7, %v1950_v12 }
0x19eb   :  { %6019 = vmatmul.mubr.msk.f32.vlgmr.msra.gmra.mrb[4].mxu1 %vm648_vm1, %v9378_v13 }
0x19ec   :  { %6474 = vmatpush1.bf16.msra.mxu1 %v9299_v57  ;;  %2136 = vmatprep.mubr.f32.mxu1 %v8752_v0 }
0x19ed   :  { %6476 = vmatprep.subr.bf16.mxu1 %v9301_v59 }
0x19f0   :  { %6478 = vmatpush1.bf16.msra.mxu1 %v9309_v28 }
0x19f1   :  { %6480 = vmatprep.subr.bf16.mxu1 %v9312_v5 }
0x19f4   :  { %6482 = vmatpush1.bf16.msra.mxu1 %v9320_v1 }
0x19f5   :  { %6484 = vmatprep.subr.bf16.mxu1 %v9323_v3 }
0x19f8   :  { %6486 = vmatpush1.bf16.msra.mxu1 %v9327_v45 }
0x19f9   :  { %6488 = vmatprep.subr.bf16.mxu1 %v9281_v50 }
0x1abe   :  { %v2027_v15 = vpop.f32.mrb[4].mxu1 }
0x1abf   :  { %v2029_v9 = vpop.f32.mrb[5].mxu1  ;;  %v7765_v14 = vadd.f32 %v2027_v15, %v9353_v26 }
0x1ac0   :  { %v7766_v11 = vadd.f32 %v2029_v9, %v9348_v18 }
0x1ac1   :  { %v6020_v19 = vmul.f32 -1.442695, %v7765_v14 }
0x1ac2   :  { %8032 = vtanh.f32 %v7766_v11  ;;  %v6021_v32 = vmul.f32 -1.442695, %v7766_v11 }
0x1ac3   :  { %8034 = vpow2.f32 %v6020_v19 }
0x1acc   :  { %v8033_v17 = vpop.eup %8032 }
0x1acd   :  { %2049 = vrot.lane.b32.xlu0 %v8033_v17, %s8741_s16  ;;  %v8035_v23 = vpop.eup %8034 }
0x1ace   :  { %v2040_v16 = vadd.f32 1.0, %v8035_v23 }
0x1ad0   :  { %8036 = vrcp.f32 %v2040_v16 }
0x1ada   :  { %v8037_v20 = vpop.eup %8036 }
0x1adb   :  { %v2047_v24 = vmul.f32 %v8037_v20, %v1946_v2 }
0x1b3f   :  { %v2050_v21 = vpop.permute.xlu0 %2049 }
0x1b40   :  { %v2052_v22 = vmul.f32 %v8037_v20, %v2050_v21 }
0x1b42   :  { %2054 = vrot.lane.b32.xlu1 %v2052_v22, %s8741_s16 }
0x1bb4   :  { %v2055_v27 = vpop.permute.xlu1 %2054 }
0x1bb5   :  { %v2057_v29 = vadd.f32 %v2055_v27, %v2047_v24 }
0x1bb7   :  { %8038 = vtanh.f32 %v2057_v29 }
0x1bb8   :  { %8040 = vpow2.f32 %v6021_v32 }
0x1bc1   :  { %v8039_v30 = vpop.eup %8038 }
0x1bc2   :  { %2060 = vrot.lane.b32.xlu0 %v8039_v30, %s8741_s16  ;;  %v8041_v35 = vpop.eup %8040 }
0x1bc3   :  { %v2041_v37 = vadd.f32 1.0, %v8041_v35 }
0x1bc5   :  { %8042 = vrcp.f32 %v2041_v37 }
0x1bcf   :  { %v8043_v38 = vpop.eup %8042 }
0x1c34   :  { %v2061_v39 = vpop.permute.xlu0 %2060 }
0x1c35   :  { %v9396_v40 = vmul.f32 %v8043_v38, %v2061_v39 }
0x1c37   :  { %2064 = vst.msk [vmem:[#allocation3 + $0x8] sm:$0xff] %vm755_vm2, %v9396_v40  ;;  %6022 = vmatmul.mubr.msk.f32.vlgmr.msra.gmra.mrb[6].mxu1 %vm648_vm1, %v9396_v40 }
0x1c38   :  { %6490 = vmatpush1.bf16.msra.mxu1 %v9299_v57  ;;  %2247 = vmatprep.mubr.f32.mxu1 %v8752_v0 }
0x1c39   :  { %6492 = vmatprep.subr.bf16.mxu1 %v9301_v59 }
0x1c3c   :  { %6494 = vmatpush1.bf16.msra.mxu1 %v9309_v28 }
0x1c3d   :  { %6496 = vmatprep.subr.bf16.mxu1 %v9312_v5 }
0x1c40   :  { %6498 = vmatpush1.bf16.msra.mxu1 %v9320_v1 }
0x1c41   :  { %6500 = vmatprep.subr.bf16.mxu1 %v9323_v3 }
0x1c44   :  { %6502 = vmatpush1.bf16.msra.mxu1 %v9327_v45 }
0x1c45   :  { %6504 = vmatprep.subr.bf16.mxu1 %v9281_v50 }
0x1d0a   :  { %v2138_v43 = vpop.f32.mrb[6].mxu1 }
0x1d0b   :  { %v2140_v44 = vpop.f32.mrb[7].mxu1  ;;  %v7767_v46 = vadd.f32 %v2138_v43, %v9353_v26 }
0x1d0c   :  { %v7768_v36 = vadd.f32 %v2140_v44, %v9348_v18 }
0x1d0d   :  { %v6023_v31 = vmul.f32 -1.442695, %v7767_v46 }
0x1d0e   :  { %8044 = vtanh.f32 %v7768_v36  ;;  %v6024_v58 = vmul.f32 -1.442695, %v7768_v36 }
0x1d0f   :  { %8046 = vpow2.f32 %v6023_v31 }
0x1d18   :  { %v8045_v42 = vpop.eup %8044 }
0x1d19   :  { %2160 = vrot.lane.b32.xlu1 %v8045_v42, %s8741_s16  ;;  %v8047_v47 = vpop.eup %8046 }
0x1d1a   :  { %v2151_v49 = vadd.f32 1.0, %v8047_v47 }
0x1d1c   :  { %8048 = vrcp.f32 %v2151_v49 }
0x1d26   :  { %v8049_v60 = vpop.eup %8048 }
0x1d27   :  { %v2158_v53 = vmul.f32 %v8049_v60, %v2057_v29 }
0x1d8b   :  { %v2161_v52 = vpop.permute.xlu1 %2160 }
0x1d8c   :  { %v2163_v25 = vmul.f32 %v8049_v60, %v2161_v52 }
0x1d8e   :  { %2165 = vrot.lane.b32.xlu0 %v2163_v25, %s8741_s16 }
0x1e00   :  { %v2166_v54 = vpop.permute.xlu0 %2165 }
0x1e01   :  { %v2168_v55 = vadd.f32 %v2166_v54, %v2158_v53 }
0x1e03   :  { %8050 = vtanh.f32 %v2168_v55 }
0x1e04   :  { %8052 = vpow2.f32 %v6024_v58 }
0x1e0d   :  { %v8051_v56 = vpop.eup %8050 }
0x1e0e   :  { %2171 = vrot.lane.b32.xlu1 %v8051_v56, %s8741_s16  ;;  %v8053_v51 = vpop.eup %8052 }
0x1e0f   :  { %v2152_v61 = vadd.f32 1.0, %v8053_v51 }
0x1e11   :  { %8054 = vrcp.f32 %v2152_v61 }
0x1e1b   :  { %v8055_v62 = vpop.eup %8054 }
0x1e80   :  { %v2172_v63 = vpop.permute.xlu1 %2171 }
0x1e81   :  { %v9416_v2 = vmul.f32 %v8055_v62, %v2172_v63 }
0x1e83   :  { %6025 = vmatmul.mubr.msk.f32.vlgmr.msra.gmra.mrb[8].mxu1 %vm648_vm1, %v9416_v2 }
0x1e84   :  { %6506 = vmatpush1.bf16.msra.mxu1 %v9299_v57  ;;  %2358 = vmatprep.mubr.f32.mxu1 %v8752_v0 }
0x1e85   :  { %6508 = vmatprep.subr.bf16.mxu1 %v9301_v59 }
0x1e88   :  { %6510 = vmatpush1.bf16.msra.mxu1 %v9309_v28 }
0x1e89   :  { %6512 = vmatprep.subr.bf16.mxu1 %v9312_v5 }
0x1e8c   :  { %6514 = vmatpush1.bf16.msra.mxu1 %v9320_v1 }
0x1e8d   :  { %6516 = vmatprep.subr.bf16.mxu1 %v9323_v3 }
0x1e90   :  { %6518 = vmatpush1.bf16.msra.mxu1 %v9327_v45 }
0x1e91   :  { %6520 = vmatprep.subr.bf16.mxu1 %v9281_v50 }
0x1f56   :  { %v2249_v4 = vpop.f32.mrb[8].mxu1 }
0x1f57   :  { %v2251_v6 = vpop.f32.mrb[9].mxu1  ;;  %v7769_v7 = vadd.f32 %v2249_v4, %v9353_v26 }
0x1f58   :  { %v7770_v8 = vadd.f32 %v2251_v6, %v9348_v18 }
0x1f59   :  { %v6026_v12 = vmul.f32 -1.442695, %v7769_v7 }
0x1f5a   :  { %8056 = vtanh.f32 %v7770_v8  ;;  %v6027_v21 = vmul.f32 -1.442695, %v7770_v8 }
0x1f5b   :  { %8058 = vpow2.f32 %v6026_v12 }
0x1f64   :  { %v8057_v10 = vpop.eup %8056 }
0x1f65   :  { %2271 = vrot.lane.b32.xlu0 %v8057_v10, %s8741_s16  ;;  %v8059_v15 = vpop.eup %8058 }
0x1f66   :  { %v2262_v9 = vadd.f32 1.0, %v8059_v15 }
0x1f68   :  { %8060 = vrcp.f32 %v2262_v9 }
0x1f72   :  { %v8061_v11 = vpop.eup %8060 }
0x1f73   :  { %v2269_v19 = vmul.f32 %v8061_v11, %v2168_v55 }
0x1fd7   :  { %v2272_v17 = vpop.permute.xlu0 %2271 }
0x1fd8   :  { %v2274_v14 = vmul.f32 %v8061_v11, %v2272_v17 }
0x1fda   :  { %2276 = vrot.lane.b32.xlu1 %v2274_v14, %s8741_s16 }
0x204c   :  { %v2277_v23 = vpop.permute.xlu1 %2276 }
0x204d   :  { %v2279_v16 = vadd.f32 %v2277_v23, %v2269_v19 }
0x204f   :  { %8062 = vtanh.f32 %v2279_v16 }
0x2050   :  { %8064 = vpow2.f32 %v6027_v21 }
0x2059   :  { %v8063_v20 = vpop.eup %8062 }
0x205a   :  { %2282 = vrot.lane.b32.xlu0 %v8063_v20, %s8741_s16  ;;  %v8065_v22 = vpop.eup %8064 }
0x205b   :  { %v2263_v24 = vadd.f32 1.0, %v8065_v22 }
0x205d   :  { %8066 = vrcp.f32 %v2263_v24 }
0x2067   :  { %v8067_v27 = vpop.eup %8066 }
0x20cc   :  { %v2283_v29 = vpop.permute.xlu0 %2282 }
0x20cd   :  { %v9434_v30 = vmul.f32 %v8067_v27, %v2283_v29 }
0x20cf   :  { %6028 = vmatmul.mubr.msk.f32.vlgmr.msra.gmra.mrb[10].mxu1 %vm648_vm1, %v9434_v30 }
0x20d0   :  { %6522 = vmatpush1.bf16.msra.mxu1 %v9299_v57  ;;  %2469 = vmatprep.mubr.f32.mxu1 %v8752_v0 }
0x20d1   :  { %6524 = vmatprep.subr.bf16.mxu1 %v9301_v59 }
0x20d4   :  { %6526 = vmatpush1.bf16.msra.mxu1 %v9309_v28 }
0x20d5   :  { %6528 = vmatprep.subr.bf16.mxu1 %v9312_v5 }
0x20d8   :  { %6530 = vmatpush1.bf16.msra.mxu1 %v9320_v1 }
0x20d9   :  { %6532 = vmatprep.subr.bf16.mxu1 %v9323_v3 }
0x20dc   :  { %6534 = vmatpush1.bf16.msra.mxu1 %v9327_v45 }
0x20dd   :  { %6536 = vmatprep.subr.bf16.mxu1 %v9281_v50 }
0x21a2   :  { %v2360_v32 = vpop.f32.mrb[10].mxu1 }
0x21a3   :  { %v2362_v35 = vpop.f32.mrb[11].mxu1  ;;  %v7771_v39 = vadd.f32 %v2360_v32, %v9353_v26  ;;  %v2632_v32 = vld [vmem:[#allocation17 + $0x18] sm:$0xff] }
0x21a4   :  { %v7772_v37 = vadd.f32 %v2362_v35, %v9348_v18 }
0x21a5   :  { %v6029_v43 = vmul.f32 -1.442695, %v7771_v39  ;;  %v2629_v39 = vld [vmem:[#allocation17] sm:$0xff] }
0x21a6   :  { %8068 = vtanh.f32 %v7772_v37  ;;  %v6030_v52 = vmul.f32 -1.442695, %v7772_v37 }
0x21a7   :  { %8070 = vpow2.f32 %v6029_v43  ;;  %v2637_v43 = vld [vmem:[#allocation17 + $0x40] sm:$0xff] }
0x21b0   :  { %v8069_v38 = vpop.eup %8068 }
0x21b1   :  { %2382 = vrot.lane.b32.xlu1 %v8069_v38, %s8741_s16  ;;  %v8071_v44 = vpop.eup %8070  ;;  %v2640_v38 = vld [vmem:[#allocation17 + $0x58] sm:$0xff] }
0x21b2   :  { %v2373_v36 = vadd.f32 1.0, %v8071_v44  ;;  %v6679_v44 = vpack.c.bf16 %v2640_v38, %v2632_v32  ;;  %v2704_v32 = vld [vmem:[#allocation17 + $0x258] sm:$0xff] }
0x21b4   :  { %8072 = vrcp.f32 %v2373_v36  ;;  %v6553_v36 = vpack.c.bf16 %v2637_v43, %v2629_v39  ;;  %6680 = vmatprep.subr.bf16.mxu0 %v6679_v44  ;;  %v2693_v39 = vld [vmem:[#allocation17 + $0x200] sm:$0xff]  ;;  %v2695_v44 = vld [vmem:[#allocation17 + $0x210] sm:$0xff] }
0x21b5   :  { %v2701_v43 = vld [vmem:[#allocation17 + $0x240] sm:$0xff] }
0x21be   :  { %v8073_v42 = vpop.eup %8072 }
0x21bf   :  { %v2380_v50 = vmul.f32 %v8073_v42, %v2279_v16 }
0x2223   :  { %v2383_v46 = vpop.permute.xlu1 %2382 }
0x2224   :  { %v2385_v31 = vmul.f32 %v8073_v42, %v2383_v46  ;;  %v2631_v42 = vld [vmem:[#allocation17 + $0x10] sm:$0xff] }
0x2225   :  { %v2639_v46 = vld [vmem:[#allocation17 + $0x50] sm:$0xff] }
0x2226   :  { %2387 = vrot.lane.b32.xlu0 %v2385_v31, %s8741_s16  ;;  %v2646_v31 = vld [vmem:[#allocation17 + $0x88] sm:$0xff] }
0x2298   :  { %v2388_v47 = vpop.permute.xlu0 %2387 }
0x2299   :  { %v2390_v49 = vadd.f32 %v2388_v47, %v2380_v50  ;;  %v6681_v50 = vpack.c.bf16 %v2639_v46, %v2631_v42  ;;  %v2654_v47 = vld [vmem:[#allocation17 + $0xc8] sm:$0xff] }
0x229a   :  { %v2710_v42 = vld [vmem:[#allocation17 + $0x288] sm:$0xff] }
0x229b   :  { %8074 = vtanh.f32 %v2390_v49  ;;  %6682 = vmatpush1.bf16.msra.mxu0 %v6681_v50  ;;  %v2718_v46 = vld [vmem:[#allocation17 + $0x2c8] sm:$0xff]  ;;  %v6569_v50 = vpack.c.bf16 %v2701_v43, %v2693_v39 }
0x229c   :  { %8076 = vpow2.f32 %v6030_v52  ;;  %v6555_v52 = vpack.c.bf16 %v2654_v47, %v2646_v31  ;;  %v2712_v31 = vld [vmem:[#allocation17 + $0x298] sm:$0xff]  ;;  %v2774_v39 = vld [vmem:[#allocation17 + $0x488] sm:$0xff] }
0x229d   :  { %v2782_v43 = vld [vmem:[#allocation17 + $0x4c8] sm:$0xff] }
0x22a5   :  { %v8075_v60 = vpop.eup %8074 }
0x22a6   :  { %2393 = vrot.lane.b32.xlu1 %v8075_v60, %s8741_s16  ;;  %v8077_v25 = vpop.eup %8076  ;;  %v2656_v60 = vld [vmem:[#allocation17 + $0xd8] sm:$0xff] }
0x22a7   :  { %v2374_v53 = vadd.f32 1.0, %v8077_v25 }
0x22a9   :  { %8078 = vrcp.f32 %v2374_v53  ;;  %v2645_v53 = vld [vmem:[#allocation17 + $0x80] sm:$0xff] }
0x22b3   :  { %v8079_v54 = vpop.eup %8078 }
0x2318   :  { %v2394_v55 = vpop.permute.xlu1 %2393 }
0x2319   :  { %v9452_v56 = vmul.f32 %v8079_v54, %v2394_v55  ;;  %v2653_v54 = vld [vmem:[#allocation17 + $0xc0] sm:$0xff]  ;;  %v2647_v55 = vld [vmem:[#allocation17 + $0x90] sm:$0xff] }
0x231b   :  { %6031 = vmatmul.mubr.msk.f32.vlgmr.msra.gmra.mrb[12].mxu1 %vm648_vm1, %v9452_v56 }
0x231c   :  { %6538 = vmatpush1.bf16.msra.mxu1 %v9299_v57  ;;  %2580 = vmatprep.mubr.f32.mxu1 %v8752_v0 }
0x231d   :  { %6540 = vmatprep.subr.bf16.mxu1 %v9301_v59 }
0x2320   :  { %6542 = vmatpush1.bf16.msra.mxu1 %v9309_v28 }
0x2321   :  { %6544 = vmatprep.subr.bf16.mxu1 %v9312_v5 }
0x2324   :  { %6546 = vmatpush1.bf16.msra.mxu1 %v9320_v1 }
0x2325   :  { %6548 = vmatprep.subr.bf16.mxu1 %v9323_v3 }
0x2328   :  { %6550 = vmatpush1.bf16.msra.mxu1 %v9327_v45 }
0x23ee   :  { %v2471_v58 = vpop.f32.mrb[12].mxu1 }
0x23ef   :  { %v2473_v51 = vpop.f32.mrb[13].mxu1  ;;  %v7773_v59 = vadd.f32 %v2471_v58, %v9353_v26 }
0x23f0   :  { %v7774_v61 = vadd.f32 %v2473_v51, %v9348_v18  ;;  %v6557_v51 = vpack.c.bf16 %v2653_v54, %v2645_v53  ;;  %v2719_v54 = vld [vmem:[#allocation17 + $0x2d0] sm:$0xff] }
0x23f1   :  { %v6032_v62 = vmul.f32 -1.442695, %v7773_v59  ;;  %v2670_v59 = vld [vmem:[#allocation17 + $0x148] sm:$0xff] }
0x23f2   :  { %8080 = vtanh.f32 %v7774_v61  ;;  %v6033_v10 = vmul.f32 -1.442695, %v7774_v61  ;;  %v2655_v61 = vld [vmem:[#allocation17 + $0xd0] sm:$0xff] }
0x23f3   :  { %8082 = vpow2.f32 %v6032_v62 }
0x23fc   :  { %v8081_v57 = vpop.eup %8080 }
0x23fd   :  { %2493 = vrot.lane.b32.xlu0 %v8081_v57, %s8741_s16  ;;  %v8083_v28 = vpop.eup %8082  ;;  %v2662_v57 = vld [vmem:[#allocation17 + $0x108] sm:$0xff] }
0x23fe   :  { %v2484_v5 = vadd.f32 1.0, %v8083_v28  ;;  %v6559_v62 = vpack.c.bf16 %v2670_v59, %v2662_v57  ;;  %v2664_v28 = vld [vmem:[#allocation17 + $0x118] sm:$0xff] }
0x23ff   :  { %v2736_v57 = vld [vmem:[#allocation17 + $0x358] sm:$0xff] }
0x2400   :  { %8084 = vrcp.f32 %v2484_v5  ;;  %v2672_v5 = vld [vmem:[#allocation17 + $0x158] sm:$0xff] }
0x240a   :  { %v8085_v1 = vpop.eup %8084 }
0x240b   :  { %v2491_v45 = vmul.f32 %v8085_v1, %v2390_v49  ;;  %v2648_v49 = vld [vmem:[#allocation17 + $0x98] sm:$0xff] }
0x240c   :  { %v6683_v25 = vpack.c.bf16 %v2656_v60, %v2648_v49  ;;  %v6571_v49 = vpack.c.bf16 %v2718_v46, %v2710_v42  ;;  %v2709_v60 = vld [vmem:[#allocation17 + $0x280] sm:$0xff]  ;;  %v6587_v46 = vpack.c.bf16 %v2782_v43, %v2774_v39 }
0x240e   :  { %6684 = vmatprep.subr.bf16.mxu0 %v6683_v25  ;;  %v2711_v25 = vld [vmem:[#allocation17 + $0x290] sm:$0xff] }
0x246f   :  { %v2494_v63 = vpop.permute.xlu0 %2493 }
0x2470   :  { %v2496_v3 = vmul.f32 %v8085_v1, %v2494_v63  ;;  %v2661_v1 = vld [vmem:[#allocation17 + $0x100] sm:$0xff]  ;;  %v6687_v63 = vpack.c.bf16 %v2672_v5, %v2664_v28 }
0x2471   :  { %v2725_v28 = vld [vmem:[#allocation17 + $0x300] sm:$0xff] }
0x2472   :  { %2498 = vrot.lane.b32.xlu1 %v2496_v3, %s8741_s16  ;;  %v2669_v3 = vld [vmem:[#allocation17 + $0x140] sm:$0xff] }
0x2473   :  { %v2733_v5 = vld [vmem:[#allocation17 + $0x340] sm:$0xff] }
0x24e4   :  { %v2499_v4 = vpop.permute.xlu1 %2498 }
0x24e5   :  { %v9468_v6 = vadd.f32 %v2499_v4, %v2491_v45  ;;  %v2663_v45 = vld [vmem:[#allocation17 + $0x110] sm:$0xff] }
0x24e6   :  { %v2671_v4 = vld [vmem:[#allocation17 + $0x150] sm:$0xff] }
0x24e7   :  { %8086 = vtanh.f32 %v9468_v6 }
0x24e8   :  { %8088 = vpow2.f32 %v6033_v10  ;;  %v2678_v10 = vld [vmem:[#allocation17 + $0x188] sm:$0xff] }
0x24f1   :  { %v8087_v8 = vpop.eup %8086 }
0x24f2   :  { %2504 = vrot.lane.b32.xlu0 %v8087_v8, %s8741_s16  ;;  %v8089_v7 = vpop.eup %8088  ;;  %v6561_v8 = vpack.c.bf16 %v2669_v3, %v2661_v1  ;;  %v2727_v1 = vld [vmem:[#allocation17 + $0x310] sm:$0xff] }
0x24f3   :  { %v2485_v12 = vadd.f32 1.0, %v8089_v7  ;;  %v2686_v7 = vld [vmem:[#allocation17 + $0x1c8] sm:$0xff]  ;;  %v2735_v3 = vld [vmem:[#allocation17 + $0x350] sm:$0xff] }
0x24f5   :  { %8090 = vrcp.f32 %v2485_v12  ;;  %v2680_v12 = vld [vmem:[#allocation17 + $0x198] sm:$0xff] }
0x24ff   :  { %v8091_v15 = vpop.eup %8090 }
0x2564   :  { %v2505_v9 = vpop.permute.xlu0 %2504 }
0x2565   :  { %v9472_v11 = vmul.f32 %v8091_v15, %v2505_v9  ;;  %v6689_v9 = vpack.c.bf16 %v2671_v4, %v2663_v45  ;;  %v2742_v45 = vld [vmem:[#allocation17 + $0x388] sm:$0xff] }
0x2566   :  { %v2750_v4 = vld [vmem:[#allocation17 + $0x3c8] sm:$0xff] }
0x2567   :  { %6034 = vmatmul.mubr.msk.f32.vlgmr.msra.gmra.mrb[14].mxu1 %vm648_vm1, %v9472_v11 }
0x263a   :  { %v2582_v17 = vpop.f32.mrb[14].mxu1 }
0x263b   :  { %v2584_v14 = vpop.f32.mrb[15].mxu1 }
0x263c   :  { %v9477_v19 = vadd.f32 %v2584_v14, %v9348_v18  ;;  %v7775_v18 = vadd.f32 %v2582_v17, %v9353_v26  ;;  %v2638_v26 = vld [vmem:[#allocation17 + $0x48] sm:$0xff]  ;;  %v6563_v17 = vpack.c.bf16 %v2686_v7, %v2678_v10  ;;  %v2688_v14 = vld [vmem:[#allocation17 + $0x1d8] sm:$0xff]  ;;  %v6577_v7 = vpack.c.bf16 %v2733_v5, %v2725_v28 }
0x263d   :  { %v2752_v10 = vld [vmem:[#allocation17 + $0x3d8] sm:$0xff]  ;;  %v2806_v28 = vld [vmem:[#allocation17 + $0x588] sm:$0xff] }
0x263e   :  { %8092 = vtanh.f32 %v9477_v19  ;;  %v6035_v16 = vmul.f32 -1.442695, %v7775_v18  ;;  %v2685_v18 = vld [vmem:[#allocation17 + $0x1c0] sm:$0xff]  ;;  %v2814_v5 = vld [vmem:[#allocation17 + $0x5c8] sm:$0xff] }
0x2640   :  { %8094 = vpow2.f32 %v6035_v16 }
0x2648   :  { %v8093_v23 = vpop.eup %8092 }
0x2649   :  { %2604 = vrot.lane.b32.xlu1 %v8093_v23, %s8741_s16  ;;  %v2677_v23 = vld [vmem:[#allocation17 + $0x180] sm:$0xff] }
0x264a   :  { %v8095_v20 = vpop.eup %8094 }
0x264b   :  { %v2595_v21 = vadd.f32 1.0, %v8095_v20  ;;  %v6691_v20 = vpack.c.bf16 %v2688_v14, %v2680_v12  ;;  %v6705_v12 = vpack.c.bf16 %v2735_v3, %v2727_v1  ;;  %v2743_v14 = vld [vmem:[#allocation17 + $0x390] sm:$0xff]  ;;  %v2808_v1 = vld [vmem:[#allocation17 + $0x598] sm:$0xff] }
0x264d   :  { %2176 = vrot.lane.b32.xlu1 %v9416_v2, %s8741_s16  ;;  %8096 = vrcp.f32 %v2595_v21  ;;  %v2679_v21 = vld [vmem:[#allocation17 + $0x190] sm:$0xff] }
0x2651   :  { %2288 = vrot.lane.b32.xlu1 %v9434_v30, %s8741_s16 }
0x2655   :  { %2510 = vrot.lane.b32.xlu1 %v9472_v11, %s8741_s16 }
0x2657   :  { %v9492_v22 = vpop.eup %8096 }
0x2659   :  { %2066 = vrot.lane.b32.xlu1 %v9396_v40, %s8741_s16  ;;  %v2630_v40 = vld [vmem:[#allocation17 + $0x8] sm:$0xff] }
0x265a   :  { %v6551_v37 = vpack.c.bf16 %v2638_v26, %v2630_v40  ;;  %v2696_v40 = vld [vmem:[#allocation17 + $0x218] sm:$0xff]  ;;  %v6565_v26 = vpack.c.bf16 %v2685_v18, %v2677_v23  ;;  %v2751_v18 = vld [vmem:[#allocation17 + $0x3d0] sm:$0xff] }
0x265c   :  { %6552 = vmatprep.subr.bf16.mxu1 %v6551_v37 }
0x265d   :  { %2398 = vrot.lane.b32.xlu1 %v9452_v56, %s8741_s16  ;;  %6554 = vmatpush1.bf16.msra.mxu1 %v6553_v36  ;;  %v2703_v36 = vld [vmem:[#allocation17 + $0x250] sm:$0xff] }
0x265e   :  { %6556 = vmatprep.subr.bf16.mxu1 %v6555_v52  ;;  %v6697_v47 = vpack.c.bf16 %v2703_v36, %v2695_v44  ;;  %v2717_v52 = vld [vmem:[#allocation17 + $0x2c0] sm:$0xff]  ;;  %v2776_v44 = vld [vmem:[#allocation17 + $0x498] sm:$0xff] }
0x265f   :  { %v6573_v59 = vpack.c.bf16 %v2717_v52, %v2709_v60  ;;  %v2790_v60 = vld [vmem:[#allocation17 + $0x508] sm:$0xff] }
0x2660   :  { %v2798_v52 = vld [vmem:[#allocation17 + $0x548] sm:$0xff] }
0x2661   :  { %6558 = vmatpush1.bf16.msra.mxu1 %v6557_v51  ;;  %v2734_v51 = vld [vmem:[#allocation17 + $0x348] sm:$0xff] }
0x2662   :  { %6560 = vmatprep.subr.bf16.mxu1 %v6559_v62 }
0x2665   :  { %6562 = vmatpush1.bf16.msra.mxu1 %v6561_v8  ;;  %v2744_v8 = vld [vmem:[#allocation17 + $0x398] sm:$0xff] }
0x2666   :  { %6564 = vmatprep.subr.bf16.mxu1 %v6563_v17  ;;  %v2749_v17 = vld [vmem:[#allocation17 + $0x3c0] sm:$0xff]  ;;  %v6707_v23 = vpack.c.bf16 %v2752_v10, %v2744_v8 }
0x2667   :  { %v2805_v8 = vld [vmem:[#allocation17 + $0x580] sm:$0xff] }
0x2668   :  { %v2813_v10 = vld [vmem:[#allocation17 + $0x5c0] sm:$0xff] }
0x2669   :  { %6566 = vmatpush1.bf16.msra.mxu1 %v6565_v26  ;;  %v2757_v26 = vld [vmem:[#allocation17 + $0x400] sm:$0xff] }
0x26bb   :  { %v2605_v24 = vpop.permute.xlu1 %2604 }
0x26bc   :  { %v2607_v27 = vmul.f32 %v9492_v22, %v2605_v24  ;;  %v2687_v24 = vld [vmem:[#allocation17 + $0x1d0] sm:$0xff] }
0x26bd   :  { %v6693_v37 = vpack.c.bf16 %v2687_v24, %v2679_v21  ;;  %v2760_v21 = vld [vmem:[#allocation17 + $0x418] sm:$0xff] }
0x26be   :  { %2609 = vrot.lane.b32.xlu0 %v2607_v27, %s8741_s16  ;;  %v2694_v27 = vld [vmem:[#allocation17 + $0x208] sm:$0xff]  ;;  %v2768_v24 = vld [vmem:[#allocation17 + $0x458] sm:$0xff] }
0x26bf   :  { %v2177_v29 = vpop.permute.xlu1 %2176 }
0x26c0   :  { %2179 = vst.msk [vmem:[#allocation3 + $0x8] sm:$0xff] %vm761_vm3, %v2177_v29  ;;  %v2702_v29 = vld [vmem:[#allocation17 + $0x248] sm:$0xff] }
0x26c1   :  { %v6567_v38 = vpack.c.bf16 %v2702_v29, %v2694_v27  ;;  %v6709_v29 = vpack.c.bf16 %v2751_v18, %v2743_v14  ;;  %v2824_v14 = vld [vmem:[#allocation17 + $0x618] sm:$0xff]  ;;  %v6597_v18 = vpack.c.bf16 %v2813_v10, %v2805_v8  ;;  %v2871_v10 = vld [vmem:[#allocation17 + $0x790] sm:$0xff] }
0x26c2   :  { %1954 = vrot.lane.b32.xlu0 %v9378_v13, %s8741_s16 }
0x26c3   :  { %v2289_v35 = vpop.permute.xlu1 %2288  ;;  %6568 = vmatprep.subr.bf16.mxu1 %v6567_v38  ;;  %v2767_v38 = vld [vmem:[#allocation17 + $0x450] sm:$0xff] }
0x26c4   :  { %2291 = vst.msk [vmem:[#allocation3 + $0x8] sm:$0xff] %vm765_vm4, %v2289_v35  ;;  %6570 = vmatpush1.bf16.msra.mxu1 %v6569_v50  ;;  %v2775_v50 = vld [vmem:[#allocation17 + $0x490] sm:$0xff] }
0x26c5   :  { %2402 = vst.msk [vmem:[#allocation3 + $0x8] sm:$0xff] %vm763_vm5, %v9452_v56  ;;  %v6685_v56 = vpack.c.bf16 %v2655_v61, %v2647_v55  ;;  %v2726_v55 = vld [vmem:[#allocation17 + $0x308] sm:$0xff]  ;;  %v2728_v61 = vld [vmem:[#allocation17 + $0x318] sm:$0xff]  ;;  %6572 = vmatprep.subr.bf16.mxu1 %v6571_v49  ;;  %v2783_v49 = vld [vmem:[#allocation17 + $0x4d0] sm:$0xff] }
0x26c6   :  { %v6575_v62 = vpack.c.bf16 %v2734_v51, %v2726_v55  ;;  %v6717_v55 = vpack.c.bf16 %v2783_v49, %v2775_v50  ;;  %v6591_v51 = vpack.c.bf16 %v2798_v52, %v2790_v60  ;;  %v2602_v50 = vmul.f32 %v9492_v22, %v9468_v6  ;;  %v2854_v49 = vld [vmem:[#allocation17 + $0x708] sm:$0xff]  ;;  %v2856_v52 = vld [vmem:[#allocation17 + $0x718] sm:$0xff] }
0x26c7   :  { %v9502_v58 = vpop.permute.xlu1 %2510  ;;  %6686 = vmatpush1.bf16.msra.mxu0 %v6685_v56  ;;  %v6701_v56 = vpack.c.bf16 %v2719_v54, %v2711_v25  ;;  %v2792_v25 = vld [vmem:[#allocation17 + $0x518] sm:$0xff]  ;;  %v2862_v60 = vld [vmem:[#allocation17 + $0x748] sm:$0xff] }
0x26c8   :  { %6688 = vmatprep.subr.bf16.mxu0 %v6687_v63  ;;  %v6703_v63 = vpack.c.bf16 %v2736_v57, %v2728_v61  ;;  %6574 = vmatpush1.bf16.msra.mxu1 %v6573_v59  ;;  %v2789_v61 = vld [vmem:[#allocation17 + $0x500] sm:$0xff]  ;;  %v2791_v59 = vld [vmem:[#allocation17 + $0x510] sm:$0xff]  ;;  %v2870_v6 = vld [vmem:[#allocation17 + $0x788] sm:$0xff] }
0x26c9   :  { %6576 = vmatprep.subr.bf16.mxu1 %v6575_v62  ;;  %v2797_v57 = vld [vmem:[#allocation17 + $0x540] sm:$0xff]  ;;  %v2799_v62 = vld [vmem:[#allocation17 + $0x550] sm:$0xff]  ;;  %v2878_v22 = vld [vmem:[#allocation17 + $0x7c8] sm:$0xff] }
0x26ca   :  { %v6593_v3 = vpack.c.bf16 %v2797_v57, %v2789_v61 }
0x26cb   :  { %v2067_v15 = vpop.permute.xlu1 %2066  ;;  %6690 = vmatpush1.bf16.msra.mxu0 %v6689_v9  ;;  %v2741_v9 = vld [vmem:[#allocation17 + $0x380] sm:$0xff] }
0x26cc   :  { %2069 = vst.msk [vmem:[#allocation3 + $0x10] sm:$0xff] %vm765_vm4, %v2067_v15  ;;  %v2626_v16 = vld [vmem:[#allocation3 + $0x8] sm:$0xff]  ;;  %6692 = vmatprep.subr.bf16.mxu0 %v6691_v20  ;;  %v6579_v15 = vpack.c.bf16 %v2750_v4, %v2742_v45  ;;  %v2766_v20 = vld [vmem:[#allocation17 + $0x448] sm:$0xff]  ;;  %6578 = vmatpush1.bf16.msra.mxu1 %v6577_v7  ;;  %v6581_v27 = vpack.c.bf16 %v2749_v17, %v2741_v9 }
0x26cd   :  { %2180 = vst.msk [vmem:[#allocation3 + $0x10] sm:$0xff] %vm763_vm5, %v9416_v2  ;;  %3247 = vmatprep.mubr.f32.mxu1 %v2626_v16  ;;  %3389 = vmatprep.mubr.f32.mxu0 %v2626_v16  ;;  %v6695_v2 = vpack.c.bf16 %v2704_v32, %v2696_v40  ;;  %v2758_v16 = vld [vmem:[#allocation17 + $0x408] sm:$0xff]  ;;  %v2765_v32 = vld [vmem:[#allocation17 + $0x440] sm:$0xff]  ;;  %v6721_v45 = vpack.c.bf16 %v2799_v62, %v2791_v59  ;;  %v2807_v7 = vld [vmem:[#allocation17 + $0x590] sm:$0xff] }
0x26ce   :  { %2286 = vst.msk [vmem:[#allocation3 + $0x10] sm:$0xff] %vm755_vm2, %v9434_v30  ;;  %v2720_v30 = vld [vmem:[#allocation17 + $0x2d8] sm:$0xff]  ;;  %6580 = vmatprep.subr.bf16.mxu1 %v6579_v15  ;;  %v6583_v40 = vpack.c.bf16 %v2766_v20, %v2758_v16  ;;  %v6585_v36 = vpack.c.bf16 %v2765_v32, %v2757_v26  ;;  %v6595_v4 = vpack.c.bf16 %v2814_v5, %v2806_v28  ;;  %v2815_v15 = vld [vmem:[#allocation17 + $0x5d0] sm:$0xff]  ;;  %v2822_v9 = vld [vmem:[#allocation17 + $0x608] sm:$0xff] }
0x26cf   :  { %v2399_v35 = vpop.permute.xlu1 %2398  ;;  %6694 = vmatpush1.bf16.msra.mxu0 %v6693_v37  ;;  %v6699_v53 = vpack.c.bf16 %v2720_v30, %v2712_v31  ;;  %v6711_v37 = vpack.c.bf16 %v2768_v24, %v2760_v21  ;;  %v2773_v31 = vld [vmem:[#allocation17 + $0x480] sm:$0xff]  ;;  %v2830_v17 = vld [vmem:[#allocation17 + $0x648] sm:$0xff]  ;;  %v6725_v16 = vpack.c.bf16 %v2815_v15, %v2807_v7  ;;  %v2855_v59 = vld [vmem:[#allocation17 + $0x710] sm:$0xff] }
0x26d0   :  { %2401 = vst.msk [vmem:[#allocation3 + $0x10] sm:$0xff] %vm761_vm3, %v2399_v35  ;;  %6696 = vmatprep.subr.bf16.mxu0 %v6695_v2  ;;  %v2759_v35 = vld [vmem:[#allocation17 + $0x410] sm:$0xff]  ;;  %v2784_v2 = vld [vmem:[#allocation17 + $0x4d8] sm:$0xff]  ;;  %6582 = vmatpush1.bf16.msra.mxu1 %v6581_v27  ;;  %v2781_v30 = vld [vmem:[#allocation17 + $0x4c0] sm:$0xff]  ;;  %v6599_v20 = vpack.c.bf16 %v2830_v17, %v2822_v9 }
0x26d1   :  { %6584 = vmatprep.subr.bf16.mxu1 %v6583_v40  ;;  %v6713_v42 = vpack.c.bf16 %v2767_v38, %v2759_v35  ;;  %v6589_v54 = vpack.c.bf16 %v2781_v30, %v2773_v31  ;;  %v2821_v21 = vld [vmem:[#allocation17 + $0x600] sm:$0xff]  ;;  %v2823_v27 = vld [vmem:[#allocation17 + $0x610] sm:$0xff]  ;;  %v2838_v26 = vld [vmem:[#allocation17 + $0x688] sm:$0xff] }
0x26d2   :  { %v2829_v24 = vld [vmem:[#allocation17 + $0x640] sm:$0xff]  ;;  %v2831_v40 = vld [vmem:[#allocation17 + $0x650] sm:$0xff]  ;;  %v2846_v32 = vld [vmem:[#allocation17 + $0x6c8] sm:$0xff] }
0x26d3   :  { %6698 = vmatpush1.bf16.msra.mxu0 %v6697_v47  ;;  %v6715_v47 = vpack.c.bf16 %v2784_v2, %v2776_v44  ;;  %v2840_v35 = vld [vmem:[#allocation17 + $0x698] sm:$0xff]  ;;  %v6601_v38 = vpack.c.bf16 %v2829_v24, %v2821_v21  ;;  %v6729_v39 = vpack.c.bf16 %v2831_v40, %v2823_v27  ;;  %v6603_v43 = vpack.c.bf16 %v2846_v32, %v2838_v26  ;;  %v2837_v44 = vld [vmem:[#allocation17 + $0x680] sm:$0xff]  ;;  %v2879_v7 = vld [vmem:[#allocation17 + $0x7d0] sm:$0xff] }
0x26d4   :  { %6700 = vmatprep.subr.bf16.mxu0 %v6699_v53  ;;  %v2800_v53 = vld [vmem:[#allocation17 + $0x558] sm:$0xff]  ;;  %6586 = vmatpush1.bf16.msra.mxu1 %v6585_v36  ;;  %v2845_v2 = vld [vmem:[#allocation17 + $0x6c0] sm:$0xff]  ;;  %v2886_v15 = vld [vmem:[#allocation17 + $0x808] sm:$0xff] }
0x26d5   :  { %6588 = vmatprep.subr.bf16.mxu1 %v6587_v46  ;;  %v2847_v46 = vld [vmem:[#allocation17 + $0x6d0] sm:$0xff]  ;;  %v6605_v31 = vpack.c.bf16 %v2845_v2, %v2837_v44  ;;  %v2872_v5 = vld [vmem:[#allocation17 + $0x798] sm:$0xff]  ;;  %v2894_v9 = vld [vmem:[#allocation17 + $0x848] sm:$0xff] }
0x26d6   :  { %v2888_v17 = vld [vmem:[#allocation17 + $0x818] sm:$0xff]  ;;  %v2885_v26 = vld [vmem:[#allocation17 + $0x800] sm:$0xff] }
0x26d7   :  { %6702 = vmatpush1.bf16.msra.mxu0 %v6701_v56  ;;  %v6719_v56 = vpack.c.bf16 %v2800_v53, %v2792_v25  ;;  %v6607_v53 = vpack.c.bf16 %v2862_v60, %v2854_v49  ;;  %v2893_v32 = vld [vmem:[#allocation17 + $0x840] sm:$0xff]  ;;  %v2920_v60 = vld [vmem:[#allocation17 + $0x918] sm:$0xff] }
0x26d8   :  { %6704 = vmatprep.subr.bf16.mxu0 %v6703_v63  ;;  %v2816_v63 = vld [vmem:[#allocation17 + $0x5d8] sm:$0xff]  ;;  %6590 = vmatpush1.bf16.msra.mxu1 %v6589_v54  ;;  %v2901_v2 = vld [vmem:[#allocation17 + $0x880] sm:$0xff] }
0x26d9   :  { %6592 = vmatprep.subr.bf16.mxu1 %v6591_v51  ;;  %v2864_v54 = vld [vmem:[#allocation17 + $0x758] sm:$0xff]  ;;  %v2861_v51 = vld [vmem:[#allocation17 + $0x740] sm:$0xff] }
0x26da   :  { %v6735_v61 = vpack.c.bf16 %v2864_v54, %v2856_v52  ;;  %v2928_v52 = vld [vmem:[#allocation17 + $0x958] sm:$0xff] }
0x26db   :  { %6706 = vmatpush1.bf16.msra.mxu0 %v6705_v12  ;;  %v6723_v12 = vpack.c.bf16 %v2816_v63, %v2808_v1  ;;  %v6611_v1 = vpack.c.bf16 %v2878_v22, %v2870_v6  ;;  %v2880_v63 = vld [vmem:[#allocation17 + $0x7d8] sm:$0xff]  ;;  %v2933_v22 = vld [vmem:[#allocation17 + $0x980] sm:$0xff] }
0x26dc   :  { %6708 = vmatprep.subr.bf16.mxu0 %v6707_v23  ;;  %v2832_v23 = vld [vmem:[#allocation17 + $0x658] sm:$0xff]  ;;  %6594 = vmatpush1.bf16.msra.mxu1 %v6593_v3  ;;  %v2869_v3 = vld [vmem:[#allocation17 + $0x780] sm:$0xff] }
0x26dd   :  { %6596 = vmatprep.subr.bf16.mxu1 %v6595_v4  ;;  %v6739_v4 = vpack.c.bf16 %v2880_v63, %v2872_v5  ;;  %v2941_v5 = vld [vmem:[#allocation17 + $0x9c0] sm:$0xff] }
0x26df   :  { %6710 = vmatpush1.bf16.msra.mxu0 %v6709_v29  ;;  %v6727_v29 = vpack.c.bf16 %v2832_v23, %v2824_v14  ;;  %v6615_v14 = vpack.c.bf16 %v2894_v9, %v2886_v15  ;;  %v2896_v23 = vld [vmem:[#allocation17 + $0x858] sm:$0xff]  ;;  %v2949_v9 = vld [vmem:[#allocation17 + $0xa00] sm:$0xff] }
0x26e0   :  { %6712 = vmatprep.subr.bf16.mxu0 %v6711_v37  ;;  %v2848_v37 = vld [vmem:[#allocation17 + $0x6d8] sm:$0xff]  ;;  %6598 = vmatpush1.bf16.msra.mxu1 %v6597_v18 }
0x26e1   :  { %6600 = vmatprep.subr.bf16.mxu1 %v6599_v20  ;;  %v6731_v36 = vpack.c.bf16 %v2848_v37, %v2840_v35  ;;  %v2887_v35 = vld [vmem:[#allocation17 + $0x810] sm:$0xff]  ;;  %v2902_v37 = vld [vmem:[#allocation17 + $0x888] sm:$0xff] }
0x26e3   :  { %6714 = vmatpush1.bf16.msra.mxu0 %v6713_v42  ;;  %v2839_v42 = vld [vmem:[#allocation17 + $0x690] sm:$0xff] }
0x26e4   :  { %6716 = vmatprep.subr.bf16.mxu0 %v6715_v47  ;;  %6602 = vmatpush1.bf16.msra.mxu1 %v6601_v38  ;;  %v6733_v30 = vpack.c.bf16 %v2847_v46, %v2839_v42  ;;  %v2904_v38 = vld [vmem:[#allocation17 + $0x898] sm:$0xff]  ;;  %v2903_v42 = vld [vmem:[#allocation17 + $0x890] sm:$0xff] }
0x26e5   :  { %6604 = vmatprep.subr.bf16.mxu1 %v6603_v43  ;;  %v6617_v43 = vpack.c.bf16 %v2893_v32, %v2885_v26  ;;  %v2973_v26 = vld [vmem:[#allocation17 + $0xac0] sm:$0xff] }
0x26e7   :  { %6718 = vmatpush1.bf16.msra.mxu0 %v6717_v55  ;;  %v2853_v55 = vld [vmem:[#allocation17 + $0x700] sm:$0xff] }
0x26e8   :  { %6720 = vmatprep.subr.bf16.mxu0 %v6719_v56  ;;  %6606 = vmatpush1.bf16.msra.mxu1 %v6605_v31  ;;  %v6609_v57 = vpack.c.bf16 %v2861_v51, %v2853_v55  ;;  %v2863_v56 = vld [vmem:[#allocation17 + $0x750] sm:$0xff]  ;;  %v6751_v55 = vpack.c.bf16 %v2928_v52, %v2920_v60  ;;  %v3000_v60 = vld [vmem:[#allocation17 + $0xb98] sm:$0xff] }
0x26e9   :  { %6608 = vmatprep.subr.bf16.mxu1 %v6607_v53  ;;  %v6737_v62 = vpack.c.bf16 %v2863_v56, %v2855_v59  ;;  %v2925_v53 = vld [vmem:[#allocation17 + $0x940] sm:$0xff]  ;;  %v2919_v51 = vld [vmem:[#allocation17 + $0x910] sm:$0xff]  ;;  %v2942_v59 = vld [vmem:[#allocation17 + $0x9c8] sm:$0xff] }
0x26ea   :  { %v2936_v56 = vld [vmem:[#allocation17 + $0x998] sm:$0xff] }
0x26eb   :  { %6722 = vmatpush1.bf16.msra.mxu0 %v6721_v45  ;;  %v2877_v45 = vld [vmem:[#allocation17 + $0x7c0] sm:$0xff]  ;;  %v3008_v52 = vld [vmem:[#allocation17 + $0xbd8] sm:$0xff] }
0x26ec   :  { %6724 = vmatprep.subr.bf16.mxu0 %v6723_v12  ;;  %6610 = vmatpush1.bf16.msra.mxu1 %v6609_v57  ;;  %v6613_v8 = vpack.c.bf16 %v2877_v45, %v2869_v3  ;;  %v6741_v12 = vpack.c.bf16 %v2879_v7, %v2871_v10  ;;  %v2934_v57 = vld [vmem:[#allocation17 + $0x988] sm:$0xff]  ;;  %v2935_v3 = vld [vmem:[#allocation17 + $0x990] sm:$0xff]  ;;  %v2952_v10 = vld [vmem:[#allocation17 + $0xa18] sm:$0xff] }
0x26ed   :  { %6612 = vmatprep.subr.bf16.mxu1 %v6611_v1  ;;  %v6627_v1 = vpack.c.bf16 %v2942_v59, %v2934_v57  ;;  %v2943_v45 = vld [vmem:[#allocation17 + $0x9d0] sm:$0xff]  ;;  %v2960_v7 = vld [vmem:[#allocation17 + $0xa58] sm:$0xff]  ;;  %v3014_v57 = vld [vmem:[#allocation17 + $0xc08] sm:$0xff] }
0x26ee   :  { %v6757_v15 = vpack.c.bf16 %v2943_v45, %v2935_v3  ;;  %v3022_v59 = vld [vmem:[#allocation17 + $0xc48] sm:$0xff]  ;;  %v3015_v3 = vld [vmem:[#allocation17 + $0xc10] sm:$0xff] }
0x26ef   :  { %6726 = vmatpush1.bf16.msra.mxu0 %v6725_v16  ;;  %v6743_v16 = vpack.c.bf16 %v2896_v23, %v2888_v17  ;;  %v2957_v17 = vld [vmem:[#allocation17 + $0xa40] sm:$0xff]  ;;  %v6759_v23 = vpack.c.bf16 %v2960_v7, %v2952_v10  ;;  %v3023_v45 = vld [vmem:[#allocation17 + $0xc50] sm:$0xff]  ;;  %v3032_v10 = vld [vmem:[#allocation17 + $0xc98] sm:$0xff] }
0x26f0   :  { %6728 = vmatprep.subr.bf16.mxu0 %v6727_v29  ;;  %6614 = vmatpush1.bf16.msra.mxu1 %v6613_v8  ;;  %v2958_v8 = vld [vmem:[#allocation17 + $0xa48] sm:$0xff]  ;;  %v3040_v7 = vld [vmem:[#allocation17 + $0xcd8] sm:$0xff] }
0x26f1   :  { %6616 = vmatprep.subr.bf16.mxu1 %v6615_v14 }
0x26f3   :  { %6730 = vmatpush1.bf16.msra.mxu0 %v6729_v39  ;;  %v2912_v39 = vld [vmem:[#allocation17 + $0x8d8] sm:$0xff] }
0x26f4   :  { %6732 = vmatprep.subr.bf16.mxu0 %v6731_v36  ;;  %v2909_v36 = vld [vmem:[#allocation17 + $0x8c0] sm:$0xff]  ;;  %v6747_v31 = vpack.c.bf16 %v2912_v39, %v2904_v38  ;;  %v2990_v38 = vld [vmem:[#allocation17 + $0xb48] sm:$0xff]  ;;  %v2984_v39 = vld [vmem:[#allocation17 + $0xb18] sm:$0xff] }
0x26f7   :  { %6734 = vmatpush1.bf16.msra.mxu0 %v6733_v30  ;;  %v2911_v30 = vld [vmem:[#allocation17 + $0x8d0] sm:$0xff] }
0x26f8   :  { %6736 = vmatprep.subr.bf16.mxu0 %v6735_v61  ;;  %v2927_v61 = vld [vmem:[#allocation17 + $0x950] sm:$0xff] }
0x26f9   :  { %v6753_v6 = vpack.c.bf16 %v2927_v61, %v2919_v51  ;;  %v2999_v51 = vld [vmem:[#allocation17 + $0xb90] sm:$0xff] }
0x26fa   :  { %v3007_v61 = vld [vmem:[#allocation17 + $0xbd0] sm:$0xff] }
0x26fb   :  { %6738 = vmatpush1.bf16.msra.mxu0 %v6737_v62  ;;  %v2944_v62 = vld [vmem:[#allocation17 + $0x9d8] sm:$0xff] }
0x26fc   :  { %6740 = vmatprep.subr.bf16.mxu0 %v6739_v4  ;;  %v6755_v63 = vpack.c.bf16 %v2944_v62, %v2936_v56  ;;  %v2950_v4 = vld [vmem:[#allocation17 + $0xa08] sm:$0xff]  ;;  %v3016_v56 = vld [vmem:[#allocation17 + $0xc18] sm:$0xff] }
0x26fd   :  { %v6631_v14 = vpack.c.bf16 %v2958_v8, %v2950_v4  ;;  %v3024_v62 = vld [vmem:[#allocation17 + $0xc58] sm:$0xff]  ;;  %v3030_v4 = vld [vmem:[#allocation17 + $0xc88] sm:$0xff] }
0x26fe   :  { %v3038_v8 = vld [vmem:[#allocation17 + $0xcc8] sm:$0xff] }
0x26ff   :  { %6742 = vmatpush1.bf16.msra.mxu0 %v6741_v12  ;;  %v6629_v12 = vpack.c.bf16 %v2941_v5, %v2933_v22  ;;  %v3013_v22 = vld [vmem:[#allocation17 + $0xc00] sm:$0xff] }
0x2700   :  { %6744 = vmatprep.subr.bf16.mxu0 %v6743_v16  ;;  %v2959_v16 = vld [vmem:[#allocation17 + $0xa50] sm:$0xff]  ;;  %v3021_v5 = vld [vmem:[#allocation17 + $0xc40] sm:$0xff] }
0x2730   :  { %v2610_v47 = vpop.permute.xlu0 %2609 }
0x2731   :  { %v2612_v25 = vadd.f32 %v2610_v47, %v2602_v50  ;;  %v2918_v50 = vld [vmem:[#allocation17 + $0x908] sm:$0xff] }
0x2732   :  { %v2926_v47 = vld [vmem:[#allocation17 + $0x948] sm:$0xff] }
0x2733   :  { %8098 = vtanh.f32 %v2612_v25  ;;  %v6749_v25 = vpack.c.bf16 %v2911_v30, %v2903_v42  ;;  %v6623_v54 = vpack.c.bf16 %v2926_v47, %v2918_v50  ;;  %v2989_v42 = vld [vmem:[#allocation17 + $0xb40] sm:$0xff]  ;;  %v2983_v30 = vld [vmem:[#allocation17 + $0xb10] sm:$0xff]  ;;  %v2998_v47 = vld [vmem:[#allocation17 + $0xb88] sm:$0xff] }
0x2734   :  { %v1955_v28 = vpop.permute.xlu0 %1954  ;;  %v2991_v50 = vld [vmem:[#allocation17 + $0xb50] sm:$0xff] }
0x2735   :  { %1957 = vst.msk [vmem:[#allocation3] sm:$0xff] %vm761_vm3, %v1955_v28 }
0x2736   :  { %2513 = vst.msk [vmem:[#allocation3] sm:$0xff] %vm765_vm4, %v9502_v58  ;;  %v6036_v58 = vmul.f32 -1.442695, %v9477_v19  ;;  %v2910_v19 = vld [vmem:[#allocation17 + $0x8c8] sm:$0xff] }
0x2737   :  { %v6619_v46 = vpack.c.bf16 %v2910_v19, %v2902_v37  ;;  %v2975_v37 = vld [vmem:[#allocation17 + $0xad0] sm:$0xff]  ;;  %v2982_v19 = vld [vmem:[#allocation17 + $0xb08] sm:$0xff] }
0x2738   :  { %8100 = vpow2.f32 %v6036_v58  ;;  %v2966_v58 = vld [vmem:[#allocation17 + $0xa88] sm:$0xff] }
0x273d   :  { %v8099_v18 = vpop.eup %8098 }
0x273e   :  { %2615 = vrot.lane.b32.xlu0 %v8099_v18, %s8741_s16  ;;  %v2951_v18 = vld [vmem:[#allocation17 + $0xa10] sm:$0xff] }
0x2742   :  { %1844 = vrot.lane.b32.xlu0 %v9358_v48, %s8741_s16  ;;  %v8101_v20 = vpop.eup %8100  ;;  %v2895_v48 = vld [vmem:[#allocation17 + $0x850] sm:$0xff] }
0x2743   :  { %v2596_v21 = vadd.f32 1.0, %v8101_v20  ;;  %v6745_v44 = vpack.c.bf16 %v2895_v48, %v2887_v35  ;;  %v2974_v20 = vld [vmem:[#allocation17 + $0xac8] sm:$0xff]  ;;  %v2967_v48 = vld [vmem:[#allocation17 + $0xa90] sm:$0xff] }
0x2744   :  { %v6635_v32 = vpack.c.bf16 %v2974_v20, %v2966_v58  ;;  %v3046_v58 = vld [vmem:[#allocation17 + $0xd08] sm:$0xff] }
0x2745   :  { %8102 = vrcp.f32 %v2596_v21  ;;  %v2968_v21 = vld [vmem:[#allocation17 + $0xa98] sm:$0xff]  ;;  %v3054_v20 = vld [vmem:[#allocation17 + $0xd48] sm:$0xff] }
0x274f   :  { %v8103_v24 = vpop.eup %8102 }
0x27b0   :  { %v2616_v27 = vpop.permute.xlu0 %2615 }
0x27b1   :  { %v2618_v29 = vmul.f32 %v8103_v24, %v2616_v27  ;;  %v2976_v24 = vld [vmem:[#allocation17 + $0xad8] sm:$0xff]  ;;  %v6633_v27 = vpack.c.bf16 %v2957_v17, %v2949_v9  ;;  %v3029_v9 = vld [vmem:[#allocation17 + $0xc80] sm:$0xff] }
0x27b2   :  { %v6763_v35 = vpack.c.bf16 %v2976_v24, %v2968_v21  ;;  %v3037_v17 = vld [vmem:[#allocation17 + $0xcc0] sm:$0xff]  ;;  %v3048_v21 = vld [vmem:[#allocation17 + $0xd18] sm:$0xff] }
0x27b3   :  { %2624 = vst.msk [vmem:[#allocation3] sm:$0xff] %vm763_vm5, %v2618_v29  ;;  %2620 = vrot.lane.b32.xlu0 %v2618_v29, %s8741_s16  ;;  %v6761_v29 = vpack.c.bf16 %v2959_v16, %v2951_v18  ;;  %v3031_v18 = vld [vmem:[#allocation17 + $0xc90] sm:$0xff]  ;;  %v3056_v24 = vld [vmem:[#allocation17 + $0xd58] sm:$0xff]  ;;  %s9870_s16 = sld [smem:[#allocation61_spill]] }
0x27b4   :  { %v1845_v40 = vpop.permute.xlu0 %1844  ;;  %v3039_v16 = vld [vmem:[#allocation17 + $0xcd0] sm:$0xff] }
0x27b5   :  { %1847 = vst.msk [vmem:[#allocation3 + $0x18] sm:$0xff] %vm765_vm4, %v1845_v40  ;;  %v2965_v40 = vld [vmem:[#allocation17 + $0xa80] sm:$0xff] }
0x27b6   :  { %1958 = vst.msk [vmem:[#allocation3 + $0x18] sm:$0xff] %vm763_vm5, %v9378_v13  ;;  %v6621_v13 = vpack.c.bf16 %v2909_v36, %v2901_v2  ;;  %v6765_v2 = vpack.c.bf16 %v2975_v37, %v2967_v48  ;;  %v2981_v36 = vld [vmem:[#allocation17 + $0xb00] sm:$0xff]  ;;  %v3047_v48 = vld [vmem:[#allocation17 + $0xd10] sm:$0xff] }
0x27b7   :  { %2508 = vst.msk [vmem:[#allocation3 + $0x18] sm:$0xff] %vm755_vm2, %v9472_v11  ;;  %v2917_v11 = vld [vmem:[#allocation17 + $0x900] sm:$0xff]  ;;  %v3055_v37 = vld [vmem:[#allocation17 + $0xd50] sm:$0xff] }
0x27b8   :  { %v6625_v28 = vpack.c.bf16 %v2925_v53, %v2917_v11  ;;  %v2997_v11 = vld [vmem:[#allocation17 + $0xb80] sm:$0xff] }
0x27b9   :  { %v3005_v53 = vld [vmem:[#allocation17 + $0xbc0] sm:$0xff] }
0x27ba   :  { %v2625_v49 = vld [vmem:[#allocation3] sm:$0xff] }
0x27bb   :  { %3248 = vmatmul.mubr.f32.vlgmr.msra.gmra.mrb[16].mxu1 %v2625_v49  ;;  %3390 = vmatmul.mubr.f32.vlgmr.msra.gmra.mrb[16].mxu0 %v2625_v49  ;;  %v3006_v49 = vld [vmem:[#allocation17 + $0xbc8] sm:$0xff] }
0x27bc   :  { %6618 = vmatpush1.bf16.msra.mxu1 %v6617_v43  ;;  %6746 = vmatpush1.bf16.msra.mxu0 %v6745_v44  ;;  %v2992_v43 = vld [vmem:[#allocation17 + $0xb58] sm:$0xff]  ;;  %v6637_v44 = vpack.c.bf16 %v2973_v26, %v2965_v40  ;;  %v3045_v40 = vld [vmem:[#allocation17 + $0xd00] sm:$0xff] }
0x27bd   :  { %6620 = vmatprep.subr.bf16.mxu1 %v6619_v46  ;;  %6748 = vmatprep.subr.bf16.mxu0 %v6747_v31  ;;  %v6639_v46 = vpack.c.bf16 %v2990_v38, %v2982_v19  ;;  %v6767_v31 = vpack.c.bf16 %v2992_v43, %v2984_v39  ;;  %v3053_v26 = vld [vmem:[#allocation17 + $0xd40] sm:$0xff]  ;;  %v3062_v19 = vld [vmem:[#allocation17 + $0xd88] sm:$0xff]  ;;  %v3064_v39 = vld [vmem:[#allocation17 + $0xd98] sm:$0xff] }
0x27be   :  { %v3070_v38 = vld [vmem:[#allocation17 + $0xdc8] sm:$0xff]  ;;  %v3072_v43 = vld [vmem:[#allocation17 + $0xdd8] sm:$0xff] }
0x27c0   :  { %6622 = vmatpush1.bf16.msra.mxu1 %v6621_v13  ;;  %6750 = vmatpush1.bf16.msra.mxu0 %v6749_v25  ;;  %v6641_v13 = vpack.c.bf16 %v2989_v42, %v2981_v36  ;;  %v6769_v25 = vpack.c.bf16 %v2991_v50, %v2983_v30  ;;  %v3061_v36 = vld [vmem:[#allocation17 + $0xd80] sm:$0xff]  ;;  %v3063_v30 = vld [vmem:[#allocation17 + $0xd90] sm:$0xff] }
0x27c1   :  { %6624 = vmatprep.subr.bf16.mxu1 %v6623_v54  ;;  %6752 = vmatprep.subr.bf16.mxu0 %v6751_v55  ;;  %v6643_v54 = vpack.c.bf16 %v3006_v49, %v2998_v47  ;;  %v6771_v55 = vpack.c.bf16 %v3008_v52, %v3000_v60  ;;  %v3069_v42 = vld [vmem:[#allocation17 + $0xdc0] sm:$0xff]  ;;  %v3071_v50 = vld [vmem:[#allocation17 + $0xdd0] sm:$0xff]  ;;  %v3078_v47 = vld [vmem:[#allocation17 + $0xe08] sm:$0xff] }
0x27c2   :  { %v3086_v49 = vld [vmem:[#allocation17 + $0xe48] sm:$0xff]  ;;  %v3080_v60 = vld [vmem:[#allocation17 + $0xe18] sm:$0xff] }
0x27c3   :  { %v3088_v52 = vld [vmem:[#allocation17 + $0xe58] sm:$0xff] }
0x27c4   :  { %6626 = vmatpush1.bf16.msra.mxu1 %v6625_v28  ;;  %6754 = vmatpush1.bf16.msra.mxu0 %v6753_v6  ;;  %v6645_v28 = vpack.c.bf16 %v3005_v53, %v2997_v11  ;;  %v6773_v6 = vpack.c.bf16 %v3007_v61, %v2999_v51  ;;  %v3077_v11 = vld [vmem:[#allocation17 + $0xe00] sm:$0xff]  ;;  %v3079_v51 = vld [vmem:[#allocation17 + $0xe10] sm:$0xff] }
0x27c5   :  { %6628 = vmatprep.subr.bf16.mxu1 %v6627_v1  ;;  %6756 = vmatprep.subr.bf16.mxu0 %v6755_v63  ;;  %v6647_v1 = vpack.c.bf16 %v3022_v59, %v3014_v57  ;;  %v6775_v63 = vpack.c.bf16 %v3024_v62, %v3016_v56  ;;  %v3085_v53 = vld [vmem:[#allocation17 + $0xe40] sm:$0xff]  ;;  %v3087_v61 = vld [vmem:[#allocation17 + $0xe50] sm:$0xff]  ;;  %v3094_v57 = vld [vmem:[#allocation17 + $0xe88] sm:$0xff] }
0x27c6   :  { %v3102_v59 = vld [vmem:[#allocation17 + $0xec8] sm:$0xff]  ;;  %v3096_v56 = vld [vmem:[#allocation17 + $0xe98] sm:$0xff] }
0x27c7   :  { %v3104_v62 = vld [vmem:[#allocation17 + $0xed8] sm:$0xff] }
0x27c8   :  { %6630 = vmatpush1.bf16.msra.mxu1 %v6629_v12  ;;  %6758 = vmatpush1.bf16.msra.mxu0 %v6757_v15  ;;  %v6649_v12 = vpack.c.bf16 %v3021_v5, %v3013_v22  ;;  %v6777_v15 = vpack.c.bf16 %v3023_v45, %v3015_v3  ;;  %v3093_v22 = vld [vmem:[#allocation17 + $0xe80] sm:$0xff]  ;;  %v3095_v3 = vld [vmem:[#allocation17 + $0xe90] sm:$0xff] }
0x27c9   :  { %6632 = vmatprep.subr.bf16.mxu1 %v6631_v14  ;;  %6760 = vmatprep.subr.bf16.mxu0 %v6759_v23  ;;  %v6651_v14 = vpack.c.bf16 %v3038_v8, %v3030_v4  ;;  %v6779_v23 = vpack.c.bf16 %v3040_v7, %v3032_v10  ;;  %v3101_v5 = vld [vmem:[#allocation17 + $0xec0] sm:$0xff]  ;;  %v3103_v45 = vld [vmem:[#allocation17 + $0xed0] sm:$0xff]  ;;  %v3110_v4 = vld [vmem:[#allocation17 + $0xf08] sm:$0xff] }
0x27ca   :  { %v3118_v8 = vld [vmem:[#allocation17 + $0xf48] sm:$0xff]  ;;  %v3112_v10 = vld [vmem:[#allocation17 + $0xf18] sm:$0xff] }
0x27cb   :  { %v3120_v7 = vld [vmem:[#allocation17 + $0xf58] sm:$0xff] }
0x27cc   :  { %6634 = vmatpush1.bf16.msra.mxu1 %v6633_v27  ;;  %6762 = vmatpush1.bf16.msra.mxu0 %v6761_v29  ;;  %v6653_v27 = vpack.c.bf16 %v3037_v17, %v3029_v9  ;;  %v6781_v29 = vpack.c.bf16 %v3039_v16, %v3031_v18  ;;  %v3109_v9 = vld [vmem:[#allocation17 + $0xf00] sm:$0xff]  ;;  %v3111_v18 = vld [vmem:[#allocation17 + $0xf10] sm:$0xff] }
0x27cd   :  { %6636 = vmatprep.subr.bf16.mxu1 %v6635_v32  ;;  %6764 = vmatprep.subr.bf16.mxu0 %v6763_v35  ;;  %v6655_v32 = vpack.c.bf16 %v3054_v20, %v3046_v58  ;;  %v6783_v35 = vpack.c.bf16 %v3056_v24, %v3048_v21  ;;  %v3117_v17 = vld [vmem:[#allocation17 + $0xf40] sm:$0xff]  ;;  %v3119_v16 = vld [vmem:[#allocation17 + $0xf50] sm:$0xff]  ;;  %v3126_v58 = vld [vmem:[#allocation17 + $0xf88] sm:$0xff] }
0x27ce   :  { %v3134_v20 = vld [vmem:[#allocation17 + $0xfc8] sm:$0xff]  ;;  %v3128_v21 = vld [vmem:[#allocation17 + $0xf98] sm:$0xff] }
0x27cf   :  { %v3136_v24 = vld [vmem:[#allocation17 + $0xfd8] sm:$0xff] }
0x27d0   :  { %6638 = vmatpush1.bf16.msra.mxu1 %v6637_v44  ;;  %6766 = vmatpush1.bf16.msra.mxu0 %v6765_v2  ;;  %v6657_v44 = vpack.c.bf16 %v3053_v26, %v3045_v40  ;;  %v6785_v2 = vpack.c.bf16 %v3055_v37, %v3047_v48  ;;  %v3125_v40 = vld [vmem:[#allocation17 + $0xf80] sm:$0xff]  ;;  %v3127_v48 = vld [vmem:[#allocation17 + $0xf90] sm:$0xff] }
0x27d1   :  { %6640 = vmatprep.subr.bf16.mxu1 %v6639_v46  ;;  %6768 = vmatprep.subr.bf16.mxu0 %v6767_v31  ;;  %v6659_v46 = vpack.c.bf16 %v3070_v38, %v3062_v19  ;;  %v6787_v31 = vpack.c.bf16 %v3072_v43, %v3064_v39  ;;  %v3133_v26 = vld [vmem:[#allocation17 + $0xfc0] sm:$0xff]  ;;  %v3135_v37 = vld [vmem:[#allocation17 + $0xfd0] sm:$0xff]  ;;  %v2634_v19 = vld [vmem:[#allocation17 + $0x28] sm:$0xff] }
0x27d2   :  { %v2642_v38 = vld [vmem:[#allocation17 + $0x68] sm:$0xff]  ;;  %v2636_v39 = vld [vmem:[#allocation17 + $0x38] sm:$0xff] }
0x27d3   :  { %v2644_v43 = vld [vmem:[#allocation17 + $0x78] sm:$0xff] }
0x27d4   :  { %6642 = vmatpush1.bf16.msra.mxu1 %v6641_v13  ;;  %6770 = vmatpush1.bf16.msra.mxu0 %v6769_v25  ;;  %v6661_v13 = vpack.c.bf16 %v3069_v42, %v3061_v36  ;;  %v6789_v25 = vpack.c.bf16 %v3071_v50, %v3063_v30  ;;  %v6807_v36 = vpack.c.bf16 %v2642_v38, %v2634_v19  ;;  %v2641_v30 = vld [vmem:[#allocation17 + $0x60] sm:$0xff]  ;;  %v2635_v50 = vld [vmem:[#allocation17 + $0x30] sm:$0xff] }
0x27d5   :  { %6644 = vmatprep.subr.bf16.mxu1 %v6643_v54  ;;  %6772 = vmatprep.subr.bf16.mxu0 %v6771_v55  ;;  %v6663_v54 = vpack.c.bf16 %v3086_v49, %v3078_v47  ;;  %v6791_v55 = vpack.c.bf16 %v3088_v52, %v3080_v60  ;;  %v6935_v42 = vpack.c.bf16 %v2644_v43, %v2636_v39  ;;  %v2643_v47 = vld [vmem:[#allocation17 + $0x70] sm:$0xff]  ;;  %v2650_v49 = vld [vmem:[#allocation17 + $0xa8] sm:$0xff]  ;;  %v2652_v52 = vld [vmem:[#allocation17 + $0xb8] sm:$0xff] }
0x27d6   :  { %v2658_v60 = vld [vmem:[#allocation17 + $0xe8] sm:$0xff]  ;;  %v2699_v39 = vld [vmem:[#allocation17 + $0x230] sm:$0xff] }
0x27d7   :  { %v2707_v43 = vld [vmem:[#allocation17 + $0x270] sm:$0xff] }
0x27d8   :  { %6646 = vmatpush1.bf16.msra.mxu1 %v6645_v28  ;;  %6774 = vmatpush1.bf16.msra.mxu0 %v6773_v6  ;;  %v6665_v28 = vpack.c.bf16 %v3085_v53, %v3077_v11  ;;  %v6793_v6 = vpack.c.bf16 %v3087_v61, %v3079_v51  ;;  %v6937_v53 = vpack.c.bf16 %v2643_v47, %v2635_v50  ;;  %v2651_v51 = vld [vmem:[#allocation17 + $0xb0] sm:$0xff]  ;;  %v2721_v50 = vld [vmem:[#allocation17 + $0x2e0] sm:$0xff] }
0x27d9   :  { %6648 = vmatprep.subr.bf16.mxu1 %v6647_v1  ;;  %6776 = vmatprep.subr.bf16.mxu0 %v6775_v63  ;;  %v6667_v1 = vpack.c.bf16 %v3102_v59, %v3094_v57  ;;  %v6795_v63 = vpack.c.bf16 %v3104_v62, %v3096_v56  ;;  %v2659_v57 = vld [vmem:[#allocation17 + $0xf0] sm:$0xff]  ;;  %v2666_v59 = vld [vmem:[#allocation17 + $0x128] sm:$0xff]  ;;  %v6811_v56 = vpack.c.bf16 %v2658_v60, %v2650_v49 }
0x27da   :  { %v2715_v60 = vld [vmem:[#allocation17 + $0x2b0] sm:$0xff] }
0x27dc   :  { %6650 = vmatpush1.bf16.msra.mxu1 %v6649_v12  ;;  %6778 = vmatpush1.bf16.msra.mxu0 %v6777_v15  ;;  %v6669_v12 = vpack.c.bf16 %v3101_v5, %v3093_v22  ;;  %v6797_v15 = vpack.c.bf16 %v3103_v45, %v3095_v3  ;;  %v2676_v22 = vld [vmem:[#allocation17 + $0x178] sm:$0xff]  ;;  %v2673_v3 = vld [vmem:[#allocation17 + $0x160] sm:$0xff] }
0x27dd   :  { %6652 = vmatprep.subr.bf16.mxu1 %v6651_v14  ;;  %6780 = vmatprep.subr.bf16.mxu0 %v6779_v23  ;;  %v6671_v14 = vpack.c.bf16 %v3118_v8, %v3110_v4  ;;  %v6799_v23 = vpack.c.bf16 %v3120_v7, %v3112_v10  ;;  %v8110_v45 = vld [vmem:[#allocation3 + $0x8] sm:$0xff] }
0x27de   :  { %v2667_v10 = vld [vmem:[#allocation17 + $0x130] sm:$0xff] }
0x27df   :  { %v2675_v7 = vld [vmem:[#allocation17 + $0x170] sm:$0xff] }
0x27e0   :  { %6654 = vmatpush1.bf16.msra.mxu1 %v6653_v27  ;;  %6782 = vmatpush1.bf16.msra.mxu0 %v6781_v29  ;;  %v6673_v27 = vpack.c.bf16 %v3117_v17, %v3109_v9  ;;  %v6801_v29 = vpack.c.bf16 %v3119_v16, %v3111_v18  ;;  %v2684_v9 = vld [vmem:[#allocation17 + $0x1b8] sm:$0xff]  ;;  %v2681_v18 = vld [vmem:[#allocation17 + $0x1a0] sm:$0xff] }
0x27e1   :  { %6656 = vmatprep.subr.bf16.mxu1 %v6655_v32  ;;  %6784 = vmatprep.subr.bf16.mxu0 %v6783_v35  ;;  %v6675_v32 = vpack.c.bf16 %v3134_v20, %v3126_v58  ;;  %v6803_v35 = vpack.c.bf16 %v3136_v24, %v3128_v21  ;;  %v2692_v17 = vld [vmem:[#allocation17 + $0x1f8] sm:$0xff]  ;;  %v2689_v16 = vld [vmem:[#allocation17 + $0x1e0] sm:$0xff]  ;;  %v2683_v21 = vld [vmem:[#allocation17 + $0x1b0] sm:$0xff] }
0x27e2   :  { %v6947_v20 = vpack.c.bf16 %v2692_v17, %v2684_v9  ;;  %v2691_v24 = vld [vmem:[#allocation17 + $0x1f0] sm:$0xff]  ;;  %v2770_v9 = vld [vmem:[#allocation17 + $0x468] sm:$0xff]  ;;  %v2764_v17 = vld [vmem:[#allocation17 + $0x438] sm:$0xff] }
0x27e4   :  { %6658 = vmatpush1.bf16.msra.mxu1 %v6657_v44  ;;  %6786 = vmatpush1.bf16.msra.mxu0 %v6785_v2  ;;  %v6677_v44 = vpack.c.bf16 %v3133_v26, %v3125_v40  ;;  %v6805_v2 = vpack.c.bf16 %v3135_v37, %v3127_v48  ;;  %v2700_v40 = vld [vmem:[#allocation17 + $0x238] sm:$0xff]  ;;  %v2697_v48 = vld [vmem:[#allocation17 + $0x220] sm:$0xff] }
0x27e5   :  { %6660 = vmatprep.subr.bf16.mxu1 %v6659_v46  ;;  %6788 = vmatprep.subr.bf16.mxu0 %v6787_v31  ;;  %v2633_v31 = vld [vmem:[#allocation17 + $0x20] sm:$0xff]  ;;  %v2708_v26 = vld [vmem:[#allocation17 + $0x278] sm:$0xff] }
0x27e6   :  { %v6809_v11 = vpack.c.bf16 %v2641_v30, %v2633_v31  ;;  %v2705_v37 = vld [vmem:[#allocation17 + $0x260] sm:$0xff]  ;;  %v6951_v38 = vpack.c.bf16 %v2708_v26, %v2700_v40  ;;  %v6953_v31 = vpack.c.bf16 %v2707_v43, %v2699_v39  ;;  %v2786_v40 = vld [vmem:[#allocation17 + $0x4e8] sm:$0xff]  ;;  %v2780_v26 = vld [vmem:[#allocation17 + $0x4b8] sm:$0xff] }
0x27e7   :  { %v2713_v30 = vld [vmem:[#allocation17 + $0x2a0] sm:$0xff]  ;;  %v2779_v43 = vld [vmem:[#allocation17 + $0x4b0] sm:$0xff] }
0x27e8   :  { %6662 = vmatpush1.bf16.msra.mxu1 %v6661_v13  ;;  %6790 = vmatpush1.bf16.msra.mxu0 %v6789_v25  ;;  %v2660_v13 = vld [vmem:[#allocation17 + $0xf8] sm:$0xff] }
0x27e9   :  { %6664 = vmatprep.subr.bf16.mxu1 %v6663_v54  ;;  %6792 = vmatprep.subr.bf16.mxu0 %v6791_v55  ;;  %v2627_v25 = vld [vmem:[#allocation3 + $0x10] sm:$0xff]  ;;  %v6939_v62 = vpack.c.bf16 %v2660_v13, %v2652_v52  ;;  %v2723_v52 = vld [vmem:[#allocation17 + $0x2f0] sm:$0xff]  ;;  %v2730_v13 = vld [vmem:[#allocation17 + $0x328] sm:$0xff] }
0x27ea   :  { %v2649_v54 = vld [vmem:[#allocation17 + $0xa0] sm:$0xff] }
0x27eb   :  { %v2657_v55 = vld [vmem:[#allocation17 + $0xe0] sm:$0xff] }
0x27ec   :  { %6666 = vmatpush1.bf16.msra.mxu1 %v6665_v28  ;;  %6794 = vmatpush1.bf16.msra.mxu0 %v6793_v6  ;;  %v2674_v28 = vld [vmem:[#allocation17 + $0x168] sm:$0xff]  ;;  %v2668_v6 = vld [vmem:[#allocation17 + $0x138] sm:$0xff]  ;;  %v6813_v5 = vpack.c.bf16 %v2657_v55, %v2649_v54  ;;  %v6829_v54 = vpack.c.bf16 %v2721_v50, %v2713_v30  ;;  %v6957_v55 = vpack.c.bf16 %v2723_v52, %v2715_v60  ;;  %v2793_v50 = vld [vmem:[#allocation17 + $0x520] sm:$0xff] }
0x27ed   :  { %6668 = vmatprep.subr.bf16.mxu1 %v6667_v1  ;;  %6796 = vmatprep.subr.bf16.mxu0 %v6795_v63  ;;  %v6941_v1 = vpack.c.bf16 %v2659_v57, %v2651_v51  ;;  %v2665_v63 = vld [vmem:[#allocation17 + $0x120] sm:$0xff]  ;;  %v6815_v4 = vpack.c.bf16 %v2674_v28, %v2666_v59  ;;  %v6943_v8 = vpack.c.bf16 %v2676_v22, %v2668_v6  ;;  %v2739_v28 = vld [vmem:[#allocation17 + $0x370] sm:$0xff]  ;;  %v2746_v6 = vld [vmem:[#allocation17 + $0x3a8] sm:$0xff] }
0x27ee   :  { %v2729_v51 = vld [vmem:[#allocation17 + $0x320] sm:$0xff]  ;;  %v2754_v22 = vld [vmem:[#allocation17 + $0x3e8] sm:$0xff]  ;;  %v2795_v52 = vld [vmem:[#allocation17 + $0x530] sm:$0xff] }
0x27ef   :  { %v2737_v57 = vld [vmem:[#allocation17 + $0x360] sm:$0xff] }
0x27f0   :  { %6670 = vmatpush1.bf16.msra.mxu1 %v6669_v12  ;;  %6798 = vmatpush1.bf16.msra.mxu0 %v6797_v15  ;;  %v2682_v12 = vld [vmem:[#allocation17 + $0x1a8] sm:$0xff] }
0x27f1   :  { %6672 = vmatprep.subr.bf16.mxu1 %v6671_v14  ;;  %6800 = vmatprep.subr.bf16.mxu0 %v6799_v23  ;;  %v2690_v15 = vld [vmem:[#allocation17 + $0x1e8] sm:$0xff]  ;;  %v6817_v14 = vpack.c.bf16 %v2673_v3, %v2665_v63  ;;  %v6945_v23 = vpack.c.bf16 %v2675_v7, %v2667_v10  ;;  %v6833_v63 = vpack.c.bf16 %v2737_v57, %v2729_v51  ;;  %v2747_v7 = vld [vmem:[#allocation17 + $0x3b0] sm:$0xff]  ;;  %v2809_v57 = vld [vmem:[#allocation17 + $0x5a0] sm:$0xff] }
0x27f2   :  { %v6819_v58 = vpack.c.bf16 %v2690_v15, %v2682_v12  ;;  %v2755_v12 = vld [vmem:[#allocation17 + $0x3f0] sm:$0xff]  ;;  %v2762_v15 = vld [vmem:[#allocation17 + $0x428] sm:$0xff] }
0x27f4   :  { %6674 = vmatpush1.bf16.msra.mxu1 %v6673_v27  ;;  %6802 = vmatpush1.bf16.msra.mxu0 %v6801_v29  ;;  %v2698_v27 = vld [vmem:[#allocation17 + $0x228] sm:$0xff] }
0x27f5   :  { %6676 = vmatprep.subr.bf16.mxu1 %v6675_v32  ;;  %6804 = vmatprep.subr.bf16.mxu0 %v6803_v35  ;;  %v2706_v29 = vld [vmem:[#allocation17 + $0x268] sm:$0xff]  ;;  %v6821_v32 = vpack.c.bf16 %v2689_v16, %v2681_v18  ;;  %v6949_v35 = vpack.c.bf16 %v2691_v24, %v2683_v21  ;;  %v6965_v18 = vpack.c.bf16 %v2755_v12, %v2747_v7  ;;  %v2761_v16 = vld [vmem:[#allocation17 + $0x420] sm:$0xff]  ;;  %v2763_v24 = vld [vmem:[#allocation17 + $0x430] sm:$0xff] }
0x27f6   :  { %v6823_v19 = vpack.c.bf16 %v2706_v29, %v2698_v27  ;;  %v2771_v27 = vld [vmem:[#allocation17 + $0x470] sm:$0xff]  ;;  %v2778_v29 = vld [vmem:[#allocation17 + $0x4a8] sm:$0xff] }
0x27f7   :  { %v2827_v12 = vld [vmem:[#allocation17 + $0x630] sm:$0xff] }
0x27f8   :  { %6678 = vmatpush1.bf16.msra.mxu1 %v6677_v44  ;;  %6806 = vmatpush1.bf16.msra.mxu0 %v6805_v2  ;;  %v2714_v44 = vld [vmem:[#allocation17 + $0x2a8] sm:$0xff] }
0x27f9   :  { %6808 = vmatprep.subr.bf16.mxu1 %v6807_v36  ;;  %6936 = vmatprep.subr.bf16.mxu0 %v6935_v42  ;;  %v2722_v2 = vld [vmem:[#allocation17 + $0x2e8] sm:$0xff]  ;;  %v2716_v36 = vld [vmem:[#allocation17 + $0x2b8] sm:$0xff] }
0x27fa   :  { %v2724_v42 = vld [vmem:[#allocation17 + $0x2f8] sm:$0xff]  ;;  %v6827_v47 = vpack.c.bf16 %v2722_v2, %v2714_v44  ;;  %v2787_v44 = vld [vmem:[#allocation17 + $0x4f0] sm:$0xff]  ;;  %v2794_v2 = vld [vmem:[#allocation17 + $0x528] sm:$0xff] }
0x27fb   :  { %v6955_v49 = vpack.c.bf16 %v2724_v42, %v2716_v36  ;;  %v2802_v36 = vld [vmem:[#allocation17 + $0x568] sm:$0xff]  ;;  %v2796_v42 = vld [vmem:[#allocation17 + $0x538] sm:$0xff]  ;;  %v6973_v30 = vpack.c.bf16 %v2787_v44, %v2779_v43  ;;  %v2859_v44 = vld [vmem:[#allocation17 + $0x730] sm:$0xff] }
0x2825   :  { %v2621_v46 = vpop.permute.xlu0 %2620 }
0x2826   :  { %2623 = vst.msk [vmem:[#allocation3 + $0x18] sm:$0xff] %vm761_vm3, %v2621_v46  ;;  %v6825_v46 = vpack.c.bf16 %v2705_v37, %v2697_v48  ;;  %v6969_v48 = vpack.c.bf16 %v2771_v27, %v2763_v24  ;;  %v2777_v37 = vld [vmem:[#allocation17 + $0x4a0] sm:$0xff]  ;;  %v2843_v27 = vld [vmem:[#allocation17 + $0x6b0] sm:$0xff] }
0x282d   :  { %v9527_v61 = vld [vmem:[#allocation3 + $0x18] sm:$0xff] }
0x282e   :  { %3318 = vmatprep.mubr.f32.mxu1 %v9527_v61  ;;  %3460 = vmatprep.mubr.f32.mxu0 %v9527_v61 }
0x282f   :  { %3319 = vmatmul.mubr.f32.vlgmr.msra.gmra.mrb[16].mxu1 %v2627_v25  ;;  %3461 = vmatmul.mubr.f32.vlgmr.msra.gmra.mrb[16].mxu0 %v2627_v25  ;;  %v2738_v25 = vld [vmem:[#allocation17 + $0x368] sm:$0xff] }
0x2830   :  { %6810 = vmatpush1.bf16.msra.mxu1 %v6809_v11  ;;  %6938 = vmatpush1.bf16.msra.mxu0 %v6937_v53  ;;  %v2732_v11 = vld [vmem:[#allocation17 + $0x338] sm:$0xff]  ;;  %v6831_v59 = vpack.c.bf16 %v2738_v25, %v2730_v13  ;;  %v2803_v13 = vld [vmem:[#allocation17 + $0x570] sm:$0xff]  ;;  %v2810_v25 = vld [vmem:[#allocation17 + $0x5a8] sm:$0xff] }
0x2831   :  { %3531 = vmatprep.mubr.f32.mxu1 %v8110_v45  ;;  %3673 = vmatprep.mubr.f32.mxu0 %v8110_v45  ;;  %v2740_v53 = vld [vmem:[#allocation17 + $0x378] sm:$0xff]  ;;  %v2745_v45 = vld [vmem:[#allocation17 + $0x3a0] sm:$0xff]  ;;  %v6977_v51 = vpack.c.bf16 %v2803_v13, %v2795_v52  ;;  %v2875_v13 = vld [vmem:[#allocation17 + $0x7b0] sm:$0xff] }
0x2832   :  { %6812 = vmatprep.subr.bf16.mxu1 %v6811_v56  ;;  %6940 = vmatprep.subr.bf16.mxu0 %v6939_v62  ;;  %v6959_v56 = vpack.c.bf16 %v2740_v53, %v2732_v11  ;;  %v2731_v62 = vld [vmem:[#allocation17 + $0x330] sm:$0xff]  ;;  %v2818_v11 = vld [vmem:[#allocation17 + $0x5e8] sm:$0xff]  ;;  %v2812_v53 = vld [vmem:[#allocation17 + $0x5b8] sm:$0xff] }
0x2833   :  { %v6961_v3 = vpack.c.bf16 %v2739_v28, %v2731_v62  ;;  %v2811_v28 = vld [vmem:[#allocation17 + $0x5b0] sm:$0xff] }
0x2834   :  { %6814 = vmatpush1.bf16.msra.mxu1 %v6813_v5  ;;  %6942 = vmatpush1.bf16.msra.mxu0 %v6941_v1  ;;  %v2748_v5 = vld [vmem:[#allocation17 + $0x3b8] sm:$0xff] }
0x2835   :  { %6816 = vmatprep.subr.bf16.mxu1 %v6815_v4  ;;  %6944 = vmatprep.subr.bf16.mxu0 %v6943_v8  ;;  %v2756_v1 = vld [vmem:[#allocation17 + $0x3f8] sm:$0xff]  ;;  %v2753_v4 = vld [vmem:[#allocation17 + $0x3e0] sm:$0xff]  ;;  %v6835_v8 = vpack.c.bf16 %v2754_v22, %v2746_v6  ;;  %v2819_v6 = vld [vmem:[#allocation17 + $0x5f0] sm:$0xff] }
0x2836   :  { %v6963_v10 = vpack.c.bf16 %v2756_v1, %v2748_v5  ;;  %v2826_v22 = vld [vmem:[#allocation17 + $0x628] sm:$0xff]  ;;  %v2828_v1 = vld [vmem:[#allocation17 + $0x638] sm:$0xff] }
0x2837   :  { %v2834_v5 = vld [vmem:[#allocation17 + $0x668] sm:$0xff] }
0x2838   :  { %6818 = vmatpush1.bf16.msra.mxu1 %v6817_v14  ;;  %6946 = vmatpush1.bf16.msra.mxu0 %v6945_v23  ;;  %v2772_v14 = vld [vmem:[#allocation17 + $0x478] sm:$0xff]  ;;  %v6837_v23 = vpack.c.bf16 %v2753_v4, %v2745_v45  ;;  %v6981_v45 = vpack.c.bf16 %v2819_v6, %v2811_v28  ;;  %v2825_v4 = vld [vmem:[#allocation17 + $0x620] sm:$0xff]  ;;  %v2891_v6 = vld [vmem:[#allocation17 + $0x830] sm:$0xff] }
0x2839   :  { %6820 = vmatprep.subr.bf16.mxu1 %v6819_v58  ;;  %6948 = vmatprep.subr.bf16.mxu0 %v6947_v20  ;;  %v2769_v58 = vld [vmem:[#allocation17 + $0x460] sm:$0xff]  ;;  %v6839_v20 = vpack.c.bf16 %v2770_v9, %v2762_v15  ;;  %v6967_v21 = vpack.c.bf16 %v2772_v14, %v2764_v17  ;;  %v2835_v15 = vld [vmem:[#allocation17 + $0x670] sm:$0xff]  ;;  %v2842_v9 = vld [vmem:[#allocation17 + $0x6a8] sm:$0xff] }
0x283a   :  { %v2850_v17 = vld [vmem:[#allocation17 + $0x6e8] sm:$0xff]  ;;  %v2844_v14 = vld [vmem:[#allocation17 + $0x6b8] sm:$0xff]  ;;  %v2897_v28 = vld [vmem:[#allocation17 + $0x860] sm:$0xff] }
0x283c   :  { %6822 = vmatpush1.bf16.msra.mxu1 %v6821_v32  ;;  %6950 = vmatpush1.bf16.msra.mxu0 %v6949_v35  ;;  %v2788_v32 = vld [vmem:[#allocation17 + $0x4f8] sm:$0xff]  ;;  %v6841_v35 = vpack.c.bf16 %v2769_v58, %v2761_v16  ;;  %v6985_v16 = vpack.c.bf16 %v2835_v15, %v2827_v12  ;;  %v2841_v58 = vld [vmem:[#allocation17 + $0x6a0] sm:$0xff] }
0x283d   :  { %6824 = vmatprep.subr.bf16.mxu1 %v6823_v19  ;;  %6952 = vmatprep.subr.bf16.mxu0 %v6951_v38  ;;  %v2785_v19 = vld [vmem:[#allocation17 + $0x4e0] sm:$0xff]  ;;  %v6843_v38 = vpack.c.bf16 %v2786_v40, %v2778_v29  ;;  %v6971_v39 = vpack.c.bf16 %v2788_v32, %v2780_v26  ;;  %v2851_v29 = vld [vmem:[#allocation17 + $0x6f0] sm:$0xff]  ;;  %v2858_v40 = vld [vmem:[#allocation17 + $0x728] sm:$0xff] }
0x283e   :  { %v2866_v26 = vld [vmem:[#allocation17 + $0x768] sm:$0xff]  ;;  %v2860_v32 = vld [vmem:[#allocation17 + $0x738] sm:$0xff] }
0x2840   :  { %6826 = vmatpush1.bf16.msra.mxu1 %v6825_v46  ;;  %6954 = vmatpush1.bf16.msra.mxu0 %v6953_v31  ;;  %v2804_v46 = vld [vmem:[#allocation17 + $0x578] sm:$0xff]  ;;  %v6845_v31 = vpack.c.bf16 %v2785_v19, %v2777_v37  ;;  %v6989_v37 = vpack.c.bf16 %v2851_v29, %v2843_v27  ;;  %v2857_v19 = vld [vmem:[#allocation17 + $0x720] sm:$0xff]  ;;  %v2923_v29 = vld [vmem:[#allocation17 + $0x930] sm:$0xff] }
0x2841   :  { %6828 = vmatprep.subr.bf16.mxu1 %v6827_v47  ;;  %6956 = vmatprep.subr.bf16.mxu0 %v6955_v49  ;;  %v2801_v47 = vld [vmem:[#allocation17 + $0x560] sm:$0xff]  ;;  %v6847_v49 = vpack.c.bf16 %v2802_v36, %v2794_v2  ;;  %v6975_v60 = vpack.c.bf16 %v2804_v46, %v2796_v42  ;;  %v2867_v2 = vld [vmem:[#allocation17 + $0x770] sm:$0xff]  ;;  %v2874_v36 = vld [vmem:[#allocation17 + $0x7a8] sm:$0xff] }
0x2842   :  { %v2882_v42 = vld [vmem:[#allocation17 + $0x7e8] sm:$0xff]  ;;  %v2876_v46 = vld [vmem:[#allocation17 + $0x7b8] sm:$0xff]  ;;  %v2929_v27 = vld [vmem:[#allocation17 + $0x960] sm:$0xff] }
0x2844   :  { %6830 = vmatpush1.bf16.msra.mxu1 %v6829_v54  ;;  %6958 = vmatpush1.bf16.msra.mxu0 %v6957_v55  ;;  %v2820_v54 = vld [vmem:[#allocation17 + $0x5f8] sm:$0xff]  ;;  %v6849_v55 = vpack.c.bf16 %v2801_v47, %v2793_v50  ;;  %v6993_v50 = vpack.c.bf16 %v2867_v2, %v2859_v44  ;;  %v2873_v47 = vld [vmem:[#allocation17 + $0x7a0] sm:$0xff]  ;;  %v2939_v44 = vld [vmem:[#allocation17 + $0x9b0] sm:$0xff] }
0x2845   :  { %6832 = vmatprep.subr.bf16.mxu1 %v6831_v59  ;;  %6960 = vmatprep.subr.bf16.mxu0 %v6959_v56  ;;  %v2817_v59 = vld [vmem:[#allocation17 + $0x5e0] sm:$0xff]  ;;  %v6851_v56 = vpack.c.bf16 %v2818_v11, %v2810_v25  ;;  %v6979_v62 = vpack.c.bf16 %v2820_v54, %v2812_v53  ;;  %v2883_v25 = vld [vmem:[#allocation17 + $0x7f0] sm:$0xff]  ;;  %v2890_v11 = vld [vmem:[#allocation17 + $0x828] sm:$0xff] }
0x2846   :  { %v2898_v53 = vld [vmem:[#allocation17 + $0x868] sm:$0xff]  ;;  %v2892_v54 = vld [vmem:[#allocation17 + $0x838] sm:$0xff] }
0x2848   :  { %6834 = vmatpush1.bf16.msra.mxu1 %v6833_v63  ;;  %6962 = vmatpush1.bf16.msra.mxu0 %v6961_v3  ;;  %v2836_v63 = vld [vmem:[#allocation17 + $0x678] sm:$0xff]  ;;  %v6853_v3 = vpack.c.bf16 %v2817_v59, %v2809_v57  ;;  %v6997_v57 = vpack.c.bf16 %v2883_v25, %v2875_v13  ;;  %v6871_v59 = vpack.c.bf16 %v2898_v53, %v2890_v11  ;;  %v2955_v13 = vld [vmem:[#allocation17 + $0xa30] sm:$0xff]  ;;  %v2970_v53 = vld [vmem:[#allocation17 + $0xaa8] sm:$0xff] }
0x2849   :  { %6836 = vmatprep.subr.bf16.mxu1 %v6835_v8  ;;  %6964 = vmatprep.subr.bf16.mxu0 %v6963_v10  ;;  %v2833_v8 = vld [vmem:[#allocation17 + $0x660] sm:$0xff]  ;;  %v6855_v10 = vpack.c.bf16 %v2834_v5, %v2826_v22  ;;  %v6983_v7 = vpack.c.bf16 %v2836_v63, %v2828_v1  ;;  %v2899_v22 = vld [vmem:[#allocation17 + $0x870] sm:$0xff]  ;;  %v2906_v5 = vld [vmem:[#allocation17 + $0x8a8] sm:$0xff] }
0x284a   :  { %v2914_v1 = vld [vmem:[#allocation17 + $0x8e8] sm:$0xff]  ;;  %v2908_v63 = vld [vmem:[#allocation17 + $0x8b8] sm:$0xff]  ;;  %v2963_v11 = vld [vmem:[#allocation17 + $0xa70] sm:$0xff] }
0x284b   :  { %v6875_v12 = vpack.c.bf16 %v2914_v1, %v2906_v5  ;;  %v2979_v5 = vld [vmem:[#allocation17 + $0xaf0] sm:$0xff]  ;;  %v2986_v1 = vld [vmem:[#allocation17 + $0xb28] sm:$0xff] }
0x284c   :  { %6838 = vmatpush1.bf16.msra.mxu1 %v6837_v23  ;;  %6966 = vmatpush1.bf16.msra.mxu0 %v6965_v18  ;;  %v2852_v23 = vld [vmem:[#allocation17 + $0x6f8] sm:$0xff]  ;;  %v6857_v18 = vpack.c.bf16 %v2833_v8, %v2825_v4  ;;  %v7001_v4 = vpack.c.bf16 %v2899_v22, %v2891_v6  ;;  %v2905_v8 = vld [vmem:[#allocation17 + $0x8a0] sm:$0xff]  ;;  %v2971_v6 = vld [vmem:[#allocation17 + $0xab0] sm:$0xff] }
0x284d   :  { %6840 = vmatprep.subr.bf16.mxu1 %v6839_v20  ;;  %6968 = vmatprep.subr.bf16.mxu0 %v6967_v21  ;;  %v2849_v20 = vld [vmem:[#allocation17 + $0x6e0] sm:$0xff]  ;;  %v6859_v21 = vpack.c.bf16 %v2850_v17, %v2842_v9  ;;  %v6987_v24 = vpack.c.bf16 %v2852_v23, %v2844_v14  ;;  %v2915_v9 = vld [vmem:[#allocation17 + $0x8f0] sm:$0xff]  ;;  %v2922_v17 = vld [vmem:[#allocation17 + $0x928] sm:$0xff] }
0x284e   :  { %v2930_v14 = vld [vmem:[#allocation17 + $0x968] sm:$0xff] }
0x284f   :  { %v8111_v23 = vld [vmem:[#allocation3] sm:$0xff] }
0x2850   :  { %6842 = vmatpush1.bf16.msra.mxu1 %v6841_v35  ;;  %6970 = vmatpush1.bf16.msra.mxu0 %v6969_v48  ;;  %v2868_v35 = vld [vmem:[#allocation17 + $0x778] sm:$0xff]  ;;  %v6861_v48 = vpack.c.bf16 %v2849_v20, %v2841_v58 }
0x2851   :  { %6844 = vmatprep.subr.bf16.mxu1 %v6843_v38  ;;  %6972 = vmatprep.subr.bf16.mxu0 %v6971_v39  ;;  %v2865_v38 = vld [vmem:[#allocation17 + $0x760] sm:$0xff]  ;;  %v6863_v39 = vpack.c.bf16 %v2866_v26, %v2858_v40  ;;  %v6991_v43 = vpack.c.bf16 %v2868_v35, %v2860_v32  ;;  %v2931_v26 = vld [vmem:[#allocation17 + $0x970] sm:$0xff]  ;;  %v2938_v32 = vld [vmem:[#allocation17 + $0x9a8] sm:$0xff] }
0x2852   :  { %v2946_v35 = vld [vmem:[#allocation17 + $0x9e8] sm:$0xff] }
0x2854   :  { %6846 = vmatpush1.bf16.msra.mxu1 %v6845_v31  ;;  %6974 = vmatpush1.bf16.msra.mxu0 %v6973_v30  ;;  %v2884_v31 = vld [vmem:[#allocation17 + $0x7f8] sm:$0xff]  ;;  %v6865_v30 = vpack.c.bf16 %v2865_v38, %v2857_v19  ;;  %v7009_v38 = vpack.c.bf16 %v2931_v26, %v2923_v29  ;;  %v3003_v29 = vld [vmem:[#allocation17 + $0xbb0] sm:$0xff] }
0x2855   :  { %6848 = vmatprep.subr.bf16.mxu1 %v6847_v49  ;;  %6976 = vmatprep.subr.bf16.mxu0 %v6975_v60  ;;  %v2881_v49 = vld [vmem:[#allocation17 + $0x7e0] sm:$0xff]  ;;  %v6867_v60 = vpack.c.bf16 %v2882_v42, %v2874_v36  ;;  %v6995_v52 = vpack.c.bf16 %v2884_v31, %v2876_v46  ;;  %v2947_v36 = vld [vmem:[#allocation17 + $0x9f0] sm:$0xff]  ;;  %v2954_v42 = vld [vmem:[#allocation17 + $0xa28] sm:$0xff] }
0x2856   :  { %v2962_v46 = vld [vmem:[#allocation17 + $0xa68] sm:$0xff]  ;;  %v2956_v31 = vld [vmem:[#allocation17 + $0xa38] sm:$0xff]  ;;  %v3011_v26 = vld [vmem:[#allocation17 + $0xbf0] sm:$0xff] }
0x2858   :  { %6850 = vmatpush1.bf16.msra.mxu1 %v6849_v55  ;;  %6978 = vmatpush1.bf16.msra.mxu0 %v6977_v51  ;;  %v2900_v55 = vld [vmem:[#allocation17 + $0x878] sm:$0xff]  ;;  %v6869_v51 = vpack.c.bf16 %v2881_v49, %v2873_v47  ;;  %v7013_v47 = vpack.c.bf16 %v2947_v36, %v2939_v44  ;;  %v6887_v49 = vpack.c.bf16 %v2962_v46, %v2954_v42  ;;  %v3019_v44 = vld [vmem:[#allocation17 + $0xc30] sm:$0xff]  ;;  %v3034_v42 = vld [vmem:[#allocation17 + $0xca8] sm:$0xff] }
0x2859   :  { %6852 = vmatprep.subr.bf16.mxu1 %v6851_v56  ;;  %6980 = vmatprep.subr.bf16.mxu0 %v6979_v62  ;;  %v6999_v56 = vpack.c.bf16 %v2900_v55, %v2892_v54  ;;  %v2889_v62 = vld [vmem:[#allocation17 + $0x820] sm:$0xff]  ;;  %v2978_v54 = vld [vmem:[#allocation17 + $0xae8] sm:$0xff]  ;;  %v2972_v55 = vld [vmem:[#allocation17 + $0xab8] sm:$0xff] }
0x285a   :  { %v3027_v36 = vld [vmem:[#allocation17 + $0xc70] sm:$0xff]  ;;  %v3042_v46 = vld [vmem:[#allocation17 + $0xce8] sm:$0xff] }
0x285c   :  { %6854 = vmatpush1.bf16.msra.mxu1 %v6853_v3  ;;  %6982 = vmatpush1.bf16.msra.mxu0 %v6981_v45  ;;  %v2916_v3 = vld [vmem:[#allocation17 + $0x8f8] sm:$0xff]  ;;  %v6873_v45 = vpack.c.bf16 %v2897_v28, %v2889_v62  ;;  %v2969_v62 = vld [vmem:[#allocation17 + $0xaa0] sm:$0xff] }
0x285d   :  { %6856 = vmatprep.subr.bf16.mxu1 %v6855_v10  ;;  %6984 = vmatprep.subr.bf16.mxu0 %v6983_v7  ;;  %v2913_v10 = vld [vmem:[#allocation17 + $0x8e0] sm:$0xff]  ;;  %v2907_v7 = vld [vmem:[#allocation17 + $0x8b0] sm:$0xff]  ;;  %v7003_v15 = vpack.c.bf16 %v2916_v3, %v2908_v63  ;;  %v2994_v63 = vld [vmem:[#allocation17 + $0xb68] sm:$0xff] }
0x285e   :  { %v6877_v58 = vpack.c.bf16 %v2913_v10, %v2905_v8  ;;  %v7005_v20 = vpack.c.bf16 %v2915_v9, %v2907_v7  ;;  %v2977_v28 = vld [vmem:[#allocation17 + $0xae0] sm:$0xff]  ;;  %v2988_v3 = vld [vmem:[#allocation17 + $0xb38] sm:$0xff]  ;;  %v7021_v8 = vpack.c.bf16 %v2979_v5, %v2971_v6  ;;  %v6895_v10 = vpack.c.bf16 %v2994_v63, %v2986_v1  ;;  %v3051_v6 = vld [vmem:[#allocation17 + $0xd30] sm:$0xff] }
0x285f   :  { %v2985_v7 = vld [vmem:[#allocation17 + $0xb20] sm:$0xff]  ;;  %v3059_v5 = vld [vmem:[#allocation17 + $0xd70] sm:$0xff]  ;;  %v3066_v1 = vld [vmem:[#allocation17 + $0xda8] sm:$0xff] }
0x2860   :  { %6858 = vmatpush1.bf16.msra.mxu1 %v6857_v18  ;;  %6986 = vmatpush1.bf16.msra.mxu0 %v6985_v16  ;;  %v2924_v18 = vld [vmem:[#allocation17 + $0x938] sm:$0xff]  ;;  %v3074_v63 = vld [vmem:[#allocation17 + $0xde8] sm:$0xff] }
0x2861   :  { %6860 = vmatprep.subr.bf16.mxu1 %v6859_v21  ;;  %6988 = vmatprep.subr.bf16.mxu0 %v6987_v24  ;;  %v2932_v16 = vld [vmem:[#allocation17 + $0x978] sm:$0xff]  ;;  %v6879_v21 = vpack.c.bf16 %v2930_v14, %v2922_v17  ;;  %v2921_v24 = vld [vmem:[#allocation17 + $0x920] sm:$0xff]  ;;  %v2995_v17 = vld [vmem:[#allocation17 + $0xb70] sm:$0xff] }
0x2862   :  { %v7007_v40 = vpack.c.bf16 %v2932_v16, %v2924_v18  ;;  %v6881_v19 = vpack.c.bf16 %v2929_v27, %v2921_v24  ;;  %v3002_v14 = vld [vmem:[#allocation17 + $0xba8] sm:$0xff]  ;;  %v3004_v18 = vld [vmem:[#allocation17 + $0xbb8] sm:$0xff]  ;;  %v3001_v24 = vld [vmem:[#allocation17 + $0xba0] sm:$0xff] }
0x2863   :  { %v3012_v16 = vld [vmem:[#allocation17 + $0xbf8] sm:$0xff]  ;;  %v3009_v27 = vld [vmem:[#allocation17 + $0xbe0] sm:$0xff] }
0x2864   :  { %6862 = vmatpush1.bf16.msra.mxu1 %v6861_v48  ;;  %6990 = vmatpush1.bf16.msra.mxu0 %v6989_v37  ;;  %v2940_v48 = vld [vmem:[#allocation17 + $0x9b8] sm:$0xff] }
0x2865   :  { %6864 = vmatprep.subr.bf16.mxu1 %v6863_v39  ;;  %6992 = vmatprep.subr.bf16.mxu0 %v6991_v43  ;;  %v2948_v37 = vld [vmem:[#allocation17 + $0x9f8] sm:$0xff]  ;;  %v6883_v39 = vpack.c.bf16 %v2946_v35, %v2938_v32  ;;  %v2945_v43 = vld [vmem:[#allocation17 + $0x9e0] sm:$0xff]  ;;  %v3018_v32 = vld [vmem:[#allocation17 + $0xc28] sm:$0xff] }
0x2866   :  { %v7011_v2 = vpack.c.bf16 %v2948_v37, %v2940_v48  ;;  %v3026_v35 = vld [vmem:[#allocation17 + $0xc68] sm:$0xff]  ;;  %v3020_v48 = vld [vmem:[#allocation17 + $0xc38] sm:$0xff] }
0x2867   :  { %v3028_v37 = vld [vmem:[#allocation17 + $0xc78] sm:$0xff] }
0x2868   :  { %6866 = vmatpush1.bf16.msra.mxu1 %v6865_v30  ;;  %6994 = vmatpush1.bf16.msra.mxu0 %v6993_v50  ;;  %v2964_v30 = vld [vmem:[#allocation17 + $0xa78] sm:$0xff] }
0x2869   :  { %6868 = vmatprep.subr.bf16.mxu1 %v6867_v60  ;;  %6996 = vmatprep.subr.bf16.mxu0 %v6995_v52  ;;  %v2953_v60 = vld [vmem:[#allocation17 + $0xa20] sm:$0xff]  ;;  %v7015_v25 = vpack.c.bf16 %v2964_v30, %v2956_v31  ;;  %v3036_v31 = vld [vmem:[#allocation17 + $0xcb8] sm:$0xff] }
0x286a   :  { %v2961_v52 = vld [vmem:[#allocation17 + $0xa60] sm:$0xff]  ;;  %v3044_v30 = vld [vmem:[#allocation17 + $0xcf8] sm:$0xff] }
0x286c   :  { %6870 = vmatpush1.bf16.msra.mxu1 %v6869_v51  ;;  %6998 = vmatpush1.bf16.msra.mxu0 %v6997_v57  ;;  %v2980_v51 = vld [vmem:[#allocation17 + $0xaf8] sm:$0xff]  ;;  %v6889_v57 = vpack.c.bf16 %v2961_v52, %v2953_v60  ;;  %v3033_v60 = vld [vmem:[#allocation17 + $0xca0] sm:$0xff] }
0x286d   :  { %6872 = vmatprep.subr.bf16.mxu1 %v6871_v59  ;;  %7000 = vmatprep.subr.bf16.mxu0 %v6999_v56  ;;  %v7017_v59 = vpack.c.bf16 %v2963_v11, %v2955_v13  ;;  %v6891_v56 = vpack.c.bf16 %v2978_v54, %v2970_v53  ;;  %v7019_v22 = vpack.c.bf16 %v2980_v51, %v2972_v55  ;;  %v3041_v52 = vld [vmem:[#allocation17 + $0xce0] sm:$0xff]  ;;  %v3035_v13 = vld [vmem:[#allocation17 + $0xcb0] sm:$0xff]  ;;  %v3050_v53 = vld [vmem:[#allocation17 + $0xd28] sm:$0xff] }
0x286e   :  { %v3043_v11 = vld [vmem:[#allocation17 + $0xcf0] sm:$0xff]  ;;  %v3058_v54 = vld [vmem:[#allocation17 + $0xd68] sm:$0xff]  ;;  %v3052_v55 = vld [vmem:[#allocation17 + $0xd38] sm:$0xff] }
0x286f   :  { %3532 = vmatmul.mubr.f32.vlgmr.msra.gmra.mrb[18].mxu1 %v8111_v23  ;;  %3674 = vmatmul.mubr.f32.vlgmr.msra.gmra.mrb[18].mxu0 %v8111_v23  ;;  %v3010_v23 = vld [vmem:[#allocation17 + $0xbe8] sm:$0xff]  ;;  %v3060_v51 = vld [vmem:[#allocation17 + $0xd78] sm:$0xff] }
0x2870   :  { %6874 = vmatpush1.bf16.msra.mxu1 %v6873_v45  ;;  %3602 = vmatprep.mubr.f32.mxu1 %v9527_v61  ;;  %v2996_v45 = vld [vmem:[#allocation17 + $0xb78] sm:$0xff] }
0x2871   :  { %7002 = vmatpush1.bf16.msra.mxu0 %v7001_v4  ;;  %3744 = vmatprep.mubr.f32.mxu0 %v9527_v61  ;;  %v2937_v61 = vld [vmem:[#allocation17 + $0x9a0] sm:$0xff]  ;;  %v6893_v4 = vpack.c.bf16 %v2977_v28, %v2969_v62  ;;  %v7023_v9 = vpack.c.bf16 %v2996_v45, %v2988_v3  ;;  %v3068_v3 = vld [vmem:[#allocation17 + $0xdb8] sm:$0xff] }
0x2872   :  { %6876 = vmatprep.subr.bf16.mxu1 %v6875_v12  ;;  %7004 = vmatprep.subr.bf16.mxu0 %v7003_v15  ;;  %v6885_v50 = vpack.c.bf16 %v2945_v43, %v2937_v61  ;;  %v2993_v12 = vld [vmem:[#allocation17 + $0xb60] sm:$0xff]  ;;  %v2987_v15 = vld [vmem:[#allocation17 + $0xb30] sm:$0xff]  ;;  %v3076_v45 = vld [vmem:[#allocation17 + $0xdf8] sm:$0xff] }
0x2873   :  { %v3017_v61 = vld [vmem:[#allocation17 + $0xc20] sm:$0xff] }
0x2874   :  { %6878 = vmatpush1.bf16.msra.mxu1 %v6877_v58  ;;  %v6897_v58 = vpack.c.bf16 %v2993_v12, %v2985_v7  ;;  %v3025_v43 = vld [vmem:[#allocation17 + $0xc60] sm:$0xff] }
0x2875   :  { %7006 = vmatpush1.bf16.msra.mxu0 %v7005_v20  ;;  %6880 = vmatprep.subr.bf16.mxu1 %v6879_v21  ;;  %v7025_v20 = vpack.c.bf16 %v2995_v17, %v2987_v15  ;;  %v6899_v21 = vpack.c.bf16 %v3010_v23, %v3002_v14  ;;  %v3049_v62 = vld [vmem:[#allocation17 + $0xd20] sm:$0xff]  ;;  %v3067_v15 = vld [vmem:[#allocation17 + $0xdb0] sm:$0xff]  ;;  %v3082_v14 = vld [vmem:[#allocation17 + $0xe28] sm:$0xff] }
0x2876   :  { %7008 = vmatprep.subr.bf16.mxu0 %v7007_v40  ;;  %v7027_v40 = vpack.c.bf16 %v3012_v16, %v3004_v18  ;;  %v3057_v28 = vld [vmem:[#allocation17 + $0xd60] sm:$0xff]  ;;  %v3075_v17 = vld [vmem:[#allocation17 + $0xdf0] sm:$0xff]  ;;  %v3090_v23 = vld [vmem:[#allocation17 + $0xe68] sm:$0xff] }
0x2877   :  { %v3065_v7 = vld [vmem:[#allocation17 + $0xda0] sm:$0xff]  ;;  %v3084_v18 = vld [vmem:[#allocation17 + $0xe38] sm:$0xff] }
0x2878   :  { %6882 = vmatpush1.bf16.msra.mxu1 %v6881_v19  ;;  %v6901_v19 = vpack.c.bf16 %v3009_v27, %v3001_v24  ;;  %v3073_v12 = vld [vmem:[#allocation17 + $0xde0] sm:$0xff]  ;;  %v3092_v16 = vld [vmem:[#allocation17 + $0xe78] sm:$0xff] }
0x2879   :  { %7010 = vmatpush1.bf16.msra.mxu0 %v7009_v38  ;;  %6884 = vmatprep.subr.bf16.mxu1 %v6883_v39  ;;  %v7029_v38 = vpack.c.bf16 %v3011_v26, %v3003_v29  ;;  %v6903_v39 = vpack.c.bf16 %v3026_v35, %v3018_v32  ;;  %v3081_v24 = vld [vmem:[#allocation17 + $0xe20] sm:$0xff]  ;;  %v3083_v29 = vld [vmem:[#allocation17 + $0xe30] sm:$0xff]  ;;  %v3098_v32 = vld [vmem:[#allocation17 + $0xea8] sm:$0xff] }
0x287a   :  { %7012 = vmatprep.subr.bf16.mxu0 %v7011_v2  ;;  %v7031_v2 = vpack.c.bf16 %v3028_v37, %v3020_v48  ;;  %v3089_v27 = vld [vmem:[#allocation17 + $0xe60] sm:$0xff]  ;;  %v3091_v26 = vld [vmem:[#allocation17 + $0xe70] sm:$0xff]  ;;  %v3106_v35 = vld [vmem:[#allocation17 + $0xee8] sm:$0xff] }
0x287b   :  { %v3100_v48 = vld [vmem:[#allocation17 + $0xeb8] sm:$0xff] }
0x287c   :  { %6886 = vmatpush1.bf16.msra.mxu1 %v6885_v50  ;;  %v6905_v50 = vpack.c.bf16 %v3025_v43, %v3017_v61  ;;  %v3108_v37 = vld [vmem:[#allocation17 + $0xef8] sm:$0xff]  ;;  %v3097_v61 = vld [vmem:[#allocation17 + $0xea0] sm:$0xff] }
0x287d   :  { %7014 = vmatpush1.bf16.msra.mxu0 %v7013_v47  ;;  %6888 = vmatprep.subr.bf16.mxu1 %v6887_v49  ;;  %v7033_v47 = vpack.c.bf16 %v3027_v36, %v3019_v44  ;;  %v6907_v49 = vpack.c.bf16 %v3042_v46, %v3034_v42  ;;  %v3105_v43 = vld [vmem:[#allocation17 + $0xee0] sm:$0xff]  ;;  %v3099_v44 = vld [vmem:[#allocation17 + $0xeb0] sm:$0xff]  ;;  %v3114_v42 = vld [vmem:[#allocation17 + $0xf28] sm:$0xff] }
0x287e   :  { %7016 = vmatprep.subr.bf16.mxu0 %v7015_v25  ;;  %v7035_v25 = vpack.c.bf16 %v3044_v30, %v3036_v31  ;;  %v3107_v36 = vld [vmem:[#allocation17 + $0xef0] sm:$0xff]  ;;  %v3122_v46 = vld [vmem:[#allocation17 + $0xf68] sm:$0xff]  ;;  %v3116_v31 = vld [vmem:[#allocation17 + $0xf38] sm:$0xff] }
0x287f   :  { %v3124_v30 = vld [vmem:[#allocation17 + $0xf78] sm:$0xff] }
0x2880   :  { %6890 = vmatpush1.bf16.msra.mxu1 %v6889_v57  ;;  %v6909_v57 = vpack.c.bf16 %v3041_v52, %v3033_v60  ;;  %v3113_v60 = vld [vmem:[#allocation17 + $0xf20] sm:$0xff] }
0x2881   :  { %7018 = vmatpush1.bf16.msra.mxu0 %v7017_v59  ;;  %6892 = vmatprep.subr.bf16.mxu1 %v6891_v56  ;;  %v7037_v59 = vpack.c.bf16 %v3043_v11, %v3035_v13  ;;  %v6911_v56 = vpack.c.bf16 %v3058_v54, %v3050_v53  ;;  %v3121_v52 = vld [vmem:[#allocation17 + $0xf60] sm:$0xff]  ;;  %v3115_v13 = vld [vmem:[#allocation17 + $0xf30] sm:$0xff]  ;;  %v3130_v53 = vld [vmem:[#allocation17 + $0xfa8] sm:$0xff] }
0x2882   :  { %7020 = vmatprep.subr.bf16.mxu0 %v7019_v22  ;;  %v7039_v22 = vpack.c.bf16 %v3060_v51, %v3052_v55  ;;  %v3123_v11 = vld [vmem:[#allocation17 + $0xf70] sm:$0xff]  ;;  %v3138_v54 = vld [vmem:[#allocation17 + $0xfe8] sm:$0xff]  ;;  %v3132_v55 = vld [vmem:[#allocation17 + $0xfb8] sm:$0xff] }
0x2883   :  { %v3140_v51 = vld [vmem:[#allocation17 + $0xff8] sm:$0xff] }
0x2884   :  { %6894 = vmatpush1.bf16.msra.mxu1 %v6893_v4  ;;  %v6913_v4 = vpack.c.bf16 %v3057_v28, %v3049_v62  ;;  %v3129_v62 = vld [vmem:[#allocation17 + $0xfa0] sm:$0xff] }
0x2885   :  { %7022 = vmatpush1.bf16.msra.mxu0 %v7021_v8  ;;  %6896 = vmatprep.subr.bf16.mxu1 %v6895_v10  ;;  %v7041_v8 = vpack.c.bf16 %v3059_v5, %v3051_v6  ;;  %v6915_v10 = vpack.c.bf16 %v3074_v63, %v3066_v1  ;;  %v3137_v28 = vld [vmem:[#allocation17 + $0xfe0] sm:$0xff]  ;;  %v7059_v6 = vpack.c.bf16 %v3140_v51, %v3132_v55  ;;  %v3139_v5 = vld [vmem:[#allocation17 + $0xff0] sm:$0xff]  ;;  %v4141_v55 = vld [vmem:[#allocation26 + $0x78] sm:$0xff] }
0x2886   :  { %7024 = vmatprep.subr.bf16.mxu0 %v7023_v9  ;;  %v7043_v9 = vpack.c.bf16 %v3076_v45, %v3068_v3  ;;  %v6933_v1 = vpack.c.bf16 %v3137_v28, %v3129_v62  ;;  %v3760_v3 = vld [vmem:[%s9869_s19] sm:$0xff]  ;;  %v3761_v45 = vld [vmem:[%s9869_s19 + $0x8] sm:$0xff]  ;;  %v4138_v62 = vld [vmem:[#allocation26 + $0x60] sm:$0xff] }
0x2887   :  { %v4136_v28 = vld [vmem:[#allocation26 + $0x50] sm:$0xff] }
0x2888   :  { %6898 = vmatpush1.bf16.msra.mxu1 %v6897_v58  ;;  %v6917_v58 = vpack.c.bf16 %v3073_v12, %v3065_v7  ;;  %v3763_v7 = vld [vmem:[%s9869_s19 + $0x18] sm:$0xff]  ;;  %v8112_v12 = vld [vmem:[#allocation3 + $0x10] sm:$0xff] }
0x2889   :  { %7026 = vmatpush1.bf16.msra.mxu0 %v7025_v20  ;;  %6900 = vmatprep.subr.bf16.mxu1 %v6899_v21  ;;  %v7045_v20 = vpack.c.bf16 %v3075_v17, %v3067_v15  ;;  %v6919_v21 = vpack.c.bf16 %v3090_v23, %v3082_v14  ;;  %v3765_v17 = vld [vmem:[%s9869_s19 + $0x28] sm:$0xff]  ;;  %v3854_v23 = vld [vmem:[%s9870_s16] sm:$0xff] }
0x288a   :  { %7028 = vmatprep.subr.bf16.mxu0 %v7027_v40  ;;  %v7047_v40 = vpack.c.bf16 %v3092_v16, %v3084_v18  ;;  %v3855_v18 = vld [vmem:[%s9870_s16 + $0x8] sm:$0xff]  ;;  %v3766_v16 = vld [vmem:[%s9869_s19 + $0x30] sm:$0x3] }
0x288c   :  { %6902 = vmatpush1.bf16.msra.mxu1 %v6901_v19  ;;  %v6921_v19 = vpack.c.bf16 %v3089_v27, %v3081_v24  ;;  %v3853_v24 = vld [vmem:[#allocation6] sm:$0xff] }
0x288d   :  { %7030 = vmatpush1.bf16.msra.mxu0 %v7029_v38  ;;  %6904 = vmatprep.subr.bf16.mxu1 %v6903_v39  ;;  %v7049_v38 = vpack.c.bf16 %v3091_v26, %v3083_v29  ;;  %v6923_v39 = vpack.c.bf16 %v3106_v35, %v3098_v32  ;;  %v3943_v32 = vld [vmem:[%s9871_s5] sm:$0xff] }
0x288e   :  { %7032 = vmatprep.subr.bf16.mxu0 %v7031_v2  ;;  %v7051_v2 = vpack.c.bf16 %v3108_v37, %v3100_v48  ;;  %3949 = vrot.lane.b32.xlu1 %v3943_v32, %s8755_s24 }
0x2890   :  { %6906 = vmatpush1.bf16.msra.mxu1 %v6905_v50  ;;  %v6925_v50 = vpack.c.bf16 %v3105_v43, %v3097_v61  ;;  %v6040_v61 = vld [vmem:[#allocation21] ss:$0 sm:$0xff] }
0x2891   :  { %7034 = vmatpush1.bf16.msra.mxu0 %v7033_v47  ;;  %6908 = vmatprep.subr.bf16.mxu1 %v6907_v49  ;;  %v7053_v47 = vpack.c.bf16 %v3107_v36, %v3099_v44  ;;  %v6927_v49 = vpack.c.bf16 %v3122_v46, %v3114_v42  ;;  %v4127_v43 = vld [vmem:[#allocation26 + $0x8] sm:$0xff]  ;;  %v4133_v46 = vld [vmem:[#allocation26 + $0x38] sm:$0xff] }
0x2892   :  { %7036 = vmatprep.subr.bf16.mxu0 %v7035_v25  ;;  %v7055_v25 = vpack.c.bf16 %v3124_v30, %v3116_v31  ;;  %v4131_v44 = vld [vmem:[#allocation26 + $0x28] sm:$0xff]  ;;  %v4126_v31 = vld [vmem:[#allocation26] sm:$0xff] }
0x2893   :  { %v7075_v42 = vpack.c.bf16 %v4131_v44, %v4127_v43  ;;  %v4130_v30 = vld [vmem:[#allocation26 + $0x20] sm:$0xff]  ;;  %v4159_v43 = vld [vmem:[#allocation26 + $0x108] sm:$0xff] }
0x2894   :  { %6910 = vmatpush1.bf16.msra.mxu1 %v6909_v57  ;;  %v6929_v57 = vpack.c.bf16 %v3121_v52, %v3113_v60  ;;  %v7077_v60 = vpack.c.bf16 %v4130_v30, %v4126_v31  ;;  %v4128_v52 = vld [vmem:[#allocation26 + $0x10] sm:$0xff]  ;;  %v4163_v44 = vld [vmem:[#allocation26 + $0x128] sm:$0xff]  ;;  %v4158_v30 = vld [vmem:[#allocation26 + $0x100] sm:$0xff] }
0x2895   :  { %7038 = vmatpush1.bf16.msra.mxu0 %v7037_v59  ;;  %6912 = vmatprep.subr.bf16.mxu1 %v6911_v56  ;;  %v7057_v59 = vpack.c.bf16 %v3123_v11, %v3115_v13  ;;  %v6931_v56 = vpack.c.bf16 %v3138_v54, %v3130_v53  ;;  %v4132_v13 = vld [vmem:[#allocation26 + $0x30] sm:$0xff]  ;;  %v4139_v53 = vld [vmem:[#allocation26 + $0x68] sm:$0xff]  ;;  %v4137_v54 = vld [vmem:[#allocation26 + $0x58] sm:$0xff]  ;;  %v7091_v31 = vpack.c.bf16 %v4163_v44, %v4159_v43 }
0x2896   :  { %7040 = vmatprep.subr.bf16.mxu0 %v7039_v22  ;;  %v3131_v22 = vld [vmem:[#allocation17 + $0xfb0] sm:$0xff]  ;;  %v7365_v11 = vpack.c.bf16 %v4132_v13, %v4128_v52  ;;  %v4167_v52 = vld [vmem:[#allocation26 + $0x148] sm:$0xff]  ;;  %v4193_v43 = vld [vmem:[#allocation26 + $0x218] sm:$0xff] }
0x2897   :  { %v7061_v63 = vpack.c.bf16 %v3139_v5, %v3131_v22  ;;  %v4140_v22 = vld [vmem:[#allocation26 + $0x70] sm:$0xff]  ;;  %v4143_v5 = vld [vmem:[#allocation26 + $0x88] sm:$0xff]  ;;  %v4197_v44 = vld [vmem:[#allocation26 + $0x238] sm:$0xff] }
0x2898   :  { %6914 = vmatpush1.bf16.msra.mxu1 %v6913_v4  ;;  %v7064_v4 = vpack.c.bf16 %v3761_v45, %v3760_v3  ;;  %v4145_v45 = vld [vmem:[#allocation26 + $0x98] sm:$0xff]  ;;  %v4171_v13 = vld [vmem:[#allocation26 + $0x168] sm:$0xff] }
0x2899   :  { %7042 = vmatpush1.bf16.msra.mxu0 %v7041_v8  ;;  %6916 = vmatprep.subr.bf16.mxu1 %v6915_v10  ;;  %v8753_v8 = vmov 0.0|0.0   ;;  %v3762_v10 = vld [vmem:[%s9869_s19 + $0x10] sm:$0xff] }
0x289a   :  { %7044 = vmatprep.subr.bf16.mxu0 %v7043_v9  ;;  %v7067_v15 = vpack.c.bf16 %v3763_v7, %v3762_v10  ;;  %v3764_v9 = vld [vmem:[%s9869_s19 + $0x20] sm:$0xff]  ;;  %v4142_v10 = vld [vmem:[#allocation26 + $0x80] sm:$0xff] }
0x289b   :  { %v7070_v14 = vpack.c.bf16 %v3765_v17, %v3764_v9  ;;  %v4148_v9 = vld [vmem:[#allocation26 + $0xb0] sm:$0xff] }
0x289c   :  { %6918 = vmatpush1.bf16.msra.mxu1 %v6917_v58  ;;  %v3759_v58 = vld [vmem:[#allocation4] sm:$0xff] }
0x289d   :  { %7046 = vmatpush1.bf16.msra.mxu0 %v7045_v20  ;;  %6920 = vmatprep.subr.bf16.mxu1 %v6919_v21  ;;  %v7073_v20 = vpack.c.bf16 %v3855_v18, %v3854_v23  ;;  %v3856_v21 = vld [vmem:[%s9870_s16 + $0x10] sm:$0xf]  ;;  %v4155_v23 = vld [vmem:[#allocation26 + $0xe8] sm:$0xff] }
0x289e   :  { %7048 = vmatprep.subr.bf16.mxu0 %v7047_v40  ;;  %v4153_v18 = vld [vmem:[#allocation26 + $0xd8] sm:$0xff] }
0x28a0   :  { %6922 = vmatpush1.bf16.msra.mxu1 %v6921_v19 }
0x28a1   :  { %7050 = vmatpush1.bf16.msra.mxu0 %v7049_v38  ;;  %6924 = vmatprep.subr.bf16.mxu1 %v6923_v39 }
0x28a2   :  { %7052 = vmatprep.subr.bf16.mxu0 %v7051_v2  ;;  %v4129_v2 = vld [vmem:[#allocation26 + $0x18] sm:$0xff] }
0x28a4   :  { %6926 = vmatpush1.bf16.msra.mxu1 %v6925_v50 }
0x28a5   :  { %7054 = vmatpush1.bf16.msra.mxu0 %v7053_v47  ;;  %6928 = vmatprep.subr.bf16.mxu1 %v6927_v49  ;;  %v7363_v49 = vpack.c.bf16 %v4133_v46, %v4129_v2  ;;  %v4161_v2 = vld [vmem:[#allocation26 + $0x118] sm:$0xff] }
0x28a6   :  { %7056 = vmatprep.subr.bf16.mxu0 %v7055_v25  ;;  %v4135_v25 = vld [vmem:[#allocation26 + $0x48] sm:$0xff] }
0x28a8   :  { %6930 = vmatpush1.bf16.msra.mxu1 %v6929_v57  ;;  %v7079_v57 = vpack.c.bf16 %v4139_v53, %v4135_v25  ;;  %v4169_v25 = vld [vmem:[#allocation26 + $0x158] sm:$0xff] }
0x28a9   :  { %7058 = vmatpush1.bf16.msra.mxu0 %v7057_v59  ;;  %6932 = vmatprep.subr.bf16.mxu1 %v6931_v56  ;;  %v7367_v59 = vpack.c.bf16 %v4141_v55, %v4137_v54  ;;  %v4134_v56 = vld [vmem:[#allocation26 + $0x40] sm:$0xff]  ;;  %v7095_v55 = vpack.c.bf16 %v4171_v13, %v4167_v52  ;;  %v4201_v52 = vld [vmem:[#allocation26 + $0x258] sm:$0xff] }
0x28aa   :  { %7060 = vmatprep.subr.bf16.mxu0 %v7059_v6  ;;  %v7081_v6 = vpack.c.bf16 %v4138_v62, %v4134_v56  ;;  %v4172_v62 = vld [vmem:[#allocation26 + $0x170] sm:$0xff]  ;;  %v4205_v13 = vld [vmem:[#allocation26 + $0x278] sm:$0xff] }
0x28ac   :  { %6934 = vmatpush1.bf16.msra.mxu1 %v6933_v1  ;;  %v4147_v1 = vld [vmem:[#allocation26 + $0xa8] sm:$0xff] }
0x28ad   :  { %7062 = vmatpush1.bf16.msra.mxu0 %v7061_v63  ;;  %7063 = vmatprep.subr.bf16.mxu1 %v8753_v8  ;;  %v7369_v63 = vpack.c.bf16 %v4140_v22, %v4136_v28  ;;  %v7083_v3 = vpack.c.bf16 %v4147_v1, %v4143_v5  ;;  %v4175_v28 = vld [vmem:[#allocation26 + $0x188] sm:$0xff]  ;;  %v4177_v22 = vld [vmem:[#allocation26 + $0x198] sm:$0xff] }
0x28ae   :  { %7076 = vmatprep.subr.bf16.mxu0 %v7075_v42  ;;  %v4181_v5 = vld [vmem:[#allocation26 + $0x1b8] sm:$0xff] }
0x28af   :  { %3603 = vmatmul.mubr.f32.vlgmr.msra.gmra.mrb[18].mxu1 %v8112_v12 }
0x28b0   :  { %3745 = vmatmul.mubr.f32.vlgmr.msra.gmra.mrb[18].mxu0 %v8112_v12  ;;  %7065 = vmatpush3.bf16.msra.mxu1 %v7064_v4  ;;  %v4149_v4 = vld [vmem:[#allocation26 + $0xb8] sm:$0xff]  ;;  %v4146_v12 = vld [vmem:[#allocation26 + $0xa0] sm:$0xff] }
0x28b1   :  { %7066 = vmatprep.subr.bf16.mxu1 %v8753_v8  ;;  %6169 = vmatprep.mubr.msk.f32.mxu1 %vm8754_vm6, %v8752_v0  ;;  %v7371_v7 = vpack.c.bf16 %v4149_v4, %v4145_v45  ;;  %v7085_v17 = vpack.c.bf16 %v4146_v12, %v4142_v10  ;;  %v4174_v45 = vld [vmem:[#allocation26 + $0x180] sm:$0xff]  ;;  %v4176_v10 = vld [vmem:[#allocation26 + $0x190] sm:$0xff] }
0x28b2   :  { %7078 = vmatpush1.bf16.msra.mxu0 %v7077_v60  ;;  %v4164_v60 = vld [vmem:[#allocation26 + $0x130] sm:$0xff]  ;;  %v4178_v4 = vld [vmem:[#allocation26 + $0x1a0] sm:$0xff] }
0x28b3   :  { %7080 = vmatprep.subr.bf16.mxu0 %v7079_v57  ;;  %v4170_v57 = vld [vmem:[#allocation26 + $0x160] sm:$0xff]  ;;  %v4180_v12 = vld [vmem:[#allocation26 + $0x1b0] sm:$0xff] }
0x28b4   :  { %7068 = vmatpush3.bf16.msra.mxu1 %v7067_v15  ;;  %v4144_v15 = vld [vmem:[#allocation26 + $0x90] sm:$0xff] }
0x28b5   :  { %7069 = vmatprep.subr.bf16.mxu1 %v8753_v8 }
0x28b6   :  { %7082 = vmatpush1.bf16.msra.mxu0 %v7081_v6  ;;  %v4179_v6 = vld [vmem:[#allocation26 + $0x1a8] sm:$0xff] }
0x28b7   :  { %7084 = vmatprep.subr.bf16.mxu0 %v7083_v3  ;;  %v7099_v3 = vpack.c.bf16 %v4179_v6, %v4175_v28  ;;  %v3141_v28 = vld [vmem:[#allocation18] sm:$0xff] }
0x28b8   :  { %7071 = vmatpush3.bf16.msra.mxu1 %v7070_v14  ;;  %v4151_v14 = vld [vmem:[#allocation26 + $0xc8] sm:$0xff]  ;;  %v3146_v6 = vrot.slane %v3141_v28, %v9115_v41 }
0x28b9   :  { %6167 = vmatprep.subr.mxu1 %v8752_v0 }
0x28ba   :  { %7086 = vmatpush1.bf16.msra.mxu0 %v7085_v17  ;;  %v4185_v17 = vld [vmem:[#allocation26 + $0x1d8] sm:$0xff] }
0x28bc   :  { %6168 = vmatpush3.msk.msra.mxu1 %vm3778_vm7, %v3766_v16  ;;  %v7373_v16 = vpack.c.bf16 %v4148_v9, %v4144_v15  ;;  %v4183_v15 = vld [vmem:[#allocation26 + $0x1c8] sm:$0xff] }
0x28bd   :  { %6170 = vmatmul.mubr.msk.f32.vlgmr.msra.gmra.mrb[20].mxu1 %vm3774_vm8, %v3759_v58  ;;  %7072 = vmatprep.subr.bf16.mxu1 %v8753_v8  ;;  %v7087_v58 = vpack.c.bf16 %v4155_v23, %v4151_v14  ;;  %v4187_v9 = vld [vmem:[#allocation26 + $0x1e8] sm:$0xff]  ;;  %v4189_v14 = vld [vmem:[#allocation26 + $0x1f8] sm:$0xff]  ;;  %v7101_v23 = vpack.c.bf16 %v4178_v4, %v4174_v45  ;;  %v9585_v4 = vsub.s32 4, %v9104_v33 }
0x28be   :  { %7074 = vmatpush3.bf16.msra.mxu1 %v7073_v20  ;;  %6178 = vmatprep.mubr.msk.f32.mxu1 %vm8754_vm6, %v8752_v0  ;;  %v4157_v20 = vld [vmem:[#allocation26 + $0xf8] sm:$0xff] }
0x28bf   :  { %6176 = vmatprep.subr.mxu1 %v8752_v0  ;;  %v7375_v32 = vpack.c.bf16 %v4157_v20, %v4153_v18  ;;  %7088 = vmatprep.subr.bf16.mxu0 %v7087_v58  ;;  %v7389_v18 = vpack.c.bf16 %v4180_v12, %v4176_v10  ;;  %v4182_v58 = vld [vmem:[#allocation26 + $0x1c0] sm:$0xff] }
0x28c0   :  { %v4186_v20 = vld [vmem:[#allocation26 + $0x1e0] sm:$0xff] }
0x28c2   :  { %6177 = vmatpush3.msk.msra.mxu1 %vm3868_vm9, %v3856_v21  ;;  %v4150_v21 = vld [vmem:[#allocation26 + $0xc0] sm:$0xff] }
0x28c3   :  { %6179 = vmatmul.mubr.msk.f32.vlgmr.msra.gmra.mrb[22].mxu1 %vm3864_vm10, %v3853_v24  ;;  %7364 = vmatprep.subr.bf16.mxu1 %v7363_v49  ;;  %v4154_v24 = vld [vmem:[#allocation26 + $0xe0] sm:$0xff] }
0x28c4   :  { %7366 = vmatpush1.bf16.msra.mxu1 %v7365_v11  ;;  %v7089_v42 = vpack.c.bf16 %v4154_v24, %v4150_v21  ;;  %v4173_v11 = vld [vmem:[#allocation26 + $0x178] sm:$0xff]  ;;  %v4184_v21 = vld [vmem:[#allocation26 + $0x1d0] sm:$0xff]  ;;  %v7391_v24 = vpack.c.bf16 %v4189_v14, %v4185_v17 }
0x28c5   :  { %7368 = vmatprep.subr.bf16.mxu1 %v7367_v59  ;;  %v4168_v59 = vld [vmem:[#allocation26 + $0x150] sm:$0xff]  ;;  %v7383_v56 = vpack.c.bf16 %v4173_v11, %v4169_v25 }
0x28c6   :  { %7090 = vmatpush1.bf16.msra.mxu0 %v7089_v42 }
0x28c7   :  { %7092 = vmatprep.subr.bf16.mxu0 %v7091_v31  ;;  %v4194_v31 = vld [vmem:[#allocation26 + $0x220] sm:$0xff] }
0x28c8   :  { %7370 = vmatpush1.bf16.msra.mxu1 %v7369_v63  ;;  %v7385_v63 = vpack.c.bf16 %v4172_v62, %v4168_v59  ;;  %v4204_v59 = vld [vmem:[#allocation26 + $0x270] sm:$0xff] }
0x28c9   :  { %7372 = vmatprep.subr.bf16.mxu1 %v7371_v7  ;;  %v7387_v7 = vpack.c.bf16 %v4181_v5, %v4177_v22  ;;  %v3150_v22 = vrot.slane %v3141_v28, %v9107_v34  ;;  %v9576_v5 = vsub.s32 2, %v9104_v33 }
0x28cb   :  { %v3154_v45 = vrot.slane %v3141_v28, %v9576_v5 }
0x28cc   :  { %7374 = vmatpush1.bf16.msra.mxu1 %v7373_v16  ;;  %v7103_v16 = vpack.c.bf16 %v4187_v9, %v4183_v15 }
0x28cd   :  { %7376 = vmatprep.subr.bf16.mxu1 %v7375_v32  ;;  %v4188_v32 = vld [vmem:[#allocation26 + $0x1f0] sm:$0xff] }
0x2902   :  { %v9553_v27 = vpop.f32.mrb[16].mxu1  ;;  %v9555_v29 = vpop.f32.mrb[16].mxu0 }
0x2903   :  { %v9557_v40 = vpop.f32.mrb[17].mxu1  ;;  %v9559_v26 = vpop.f32.mrb[17].mxu0  ;;  %v7779_v15 = vadd.f32 %v9555_v29, %v3154_v45  ;;  %v4211_v45 = vld [vmem:[#allocation26 + $0x2a8] sm:$0xff] }
0x2982   :  { %v9562_v35 = vpop.f32.mrb[18].mxu1 }
0x2983   :  { %v9564_v48 = vpop.f32.mrb[18].mxu0  ;;  %v9566_v37 = vpop.f32.mrb[19].mxu1 }
0x2984   :  { %v9568_v19 = vpop.f32.mrb[19].mxu0 }
0x2990   :  { %v9570_v38 = vpop.f32.mrb[20].mxu1 }
0x2991   :  { %v6171_v39 = vpop.f32.mrb[21].mxu1 }
0x2992   :  { %v4152_v39 = vld [vmem:[#allocation26 + $0xd0] sm:$0xff] }
0x2996   :  { %v3938_v36 = vpop.f32.mrb[22].mxu1 }
0x2997   :  { %v3939_v50 = vadd.f32 %v6040_v61, %v3938_v36  ;;  %v6180_v47 = vpop.f32.mrb[23].mxu1  ;;  %v4156_v61 = vld [vmem:[#allocation26 + $0xf0] sm:$0xff]  ;;  %v4165_v36 = vld [vmem:[#allocation26 + $0x138] sm:$0xff] }
0x2998   :  { %v7377_v46 = vpack.c.bf16 %v4156_v61, %v4152_v39  ;;  %v4160_v47 = vld [vmem:[#allocation26 + $0x110] sm:$0xff]  ;;  %v7379_v49 = vpack.c.bf16 %v4165_v36, %v4161_v2  ;;  %v4191_v39 = vld [vmem:[#allocation26 + $0x208] sm:$0xff]  ;;  %v7105_v2 = vpack.c.bf16 %v4186_v20, %v4182_v58  ;;  %v7393_v36 = vpack.c.bf16 %v4188_v32, %v4184_v21 }
0x2999   :  { %v3942_v51 = vmax.f32 %v3939_v50, 0.0  ;;  %v4162_v50 = vld [vmem:[#allocation26 + $0x120] sm:$0xff]  ;;  %v7381_v54 = vpack.c.bf16 %v4164_v60, %v4160_v47  ;;  %v4195_v61 = vld [vmem:[#allocation26 + $0x228] sm:$0xff]  ;;  %v4196_v47 = vld [vmem:[#allocation26 + $0x230] sm:$0xff]  ;;  %v9609_v20 = vsub.s32 6, %v9104_v33 }
0x299a   :  { %v7093_v53 = vpack.c.bf16 %v4162_v50, %v4158_v30  ;;  %7378 = vmatpush1.bf16.msra.mxu1 %v7377_v46  ;;  %v7107_v42 = vpack.c.bf16 %v4195_v61, %v4191_v39  ;;  %v4190_v46 = vld [vmem:[#allocation26 + $0x200] sm:$0xff]  ;;  %v4192_v30 = vld [vmem:[#allocation26 + $0x210] sm:$0xff]  ;;  %v7395_v50 = vpack.c.bf16 %v4197_v44, %v4193_v43  ;;  %v4203_v60 = vld [vmem:[#allocation26 + $0x268] sm:$0xff]  ;;  %v9621_v43 = vsub.s32 7, %v9104_v33 }
0x299b   :  { %3945 = vrot.lane.b32.xlu0 %v3942_v51, %s8746_s11  ;;  %v4166_v51 = vld [vmem:[#allocation26 + $0x140] sm:$0xff]  ;;  %7380 = vmatprep.subr.bf16.mxu1 %v7379_v49  ;;  %v4199_v49 = vld [vmem:[#allocation26 + $0x248] sm:$0xff]  ;;  %v7109_v25 = vpack.c.bf16 %v4194_v31, %v4190_v46  ;;  %v7397_v11 = vpack.c.bf16 %v4196_v47, %v4192_v30  ;;  %s9872_s11 = sld [smem:[#allocation67_spill]] }
0x299c   :  { %7094 = vmatpush1.bf16.msra.mxu0 %v7093_v53  ;;  %v7097_v1 = vpack.c.bf16 %v4170_v57, %v4166_v51  ;;  %v7111_v53 = vpack.c.bf16 %v4203_v60, %v4199_v49  ;;  %v7399_v51 = vpack.c.bf16 %v4205_v13, %v4201_v52  ;;  %v4200_v57 = vld [vmem:[#allocation26 + $0x250] sm:$0xff]  ;;  %v3174_v30 = vrot.slane %v3141_v28, %v9621_v43  ;;  %v6037_v47 = vld [vmem:[#allocation20] ss:$0 sm:$0xff] }
0x299d   :  { %7096 = vmatprep.subr.bf16.mxu0 %v7095_v55  ;;  %v4202_v55 = vld [vmem:[#allocation26 + $0x260] sm:$0xff]  ;;  %v7401_v62 = vpack.c.bf16 %v4204_v59, %v4200_v57  ;;  %v3849_v13 = vadd.f32 %v6037_v47, %v9570_v38  ;;  %v4225_v47 = vld [vmem:[#allocation26 + $0x318] sm:$0xff] }
0x299e   :  { %7382 = vmatpush1.bf16.msra.mxu1 %v7381_v54  ;;  %v4198_v54 = vld [vmem:[#allocation26 + $0x240] sm:$0xff]  ;;  %v7784_v52 = vadd.f32 %v9568_v19, %v3174_v30 }
0x299f   :  { %7384 = vmatprep.subr.bf16.mxu1 %v7383_v56  ;;  %v7113_v56 = vpack.c.bf16 %v4202_v55, %v4198_v54  ;;  %v3852_v54 = vmax.f32 %v3849_v13, 0.0  ;;  %v3950_v55 = vpop.permute.xlu1 %3949  ;;  %v4222_v13 = vld [vmem:[#allocation26 + $0x300] sm:$0xff] }
0x29a0   :  { %7098 = vmatpush1.bf16.msra.mxu0 %v7097_v1  ;;  %v7777_v1 = vadd.f32 %v9553_v27, %v3146_v6  ;;  %v3162_v27 = vrot.slane %v3141_v28, %v9585_v4 }
0x29a1   :  { %7100 = vmatprep.subr.bf16.mxu0 %v7099_v3  ;;  %v9581_v3 = vsub.s32 3, %v9104_v33 }
0x29a2   :  { %7386 = vmatpush1.bf16.msra.mxu1 %v7385_v63  ;;  %v7778_v63 = vadd.f32 %v9557_v40, %v3150_v22  ;;  %v9587_v10 = vmax.f32 %v7777_v1, 0.0  ;;  %v9595_v40 = vsub.s32 5, %v9104_v33  ;;  %v7781_v29 = vadd.f32 %v9562_v35, %v3162_v27  ;;  %v4213_v27 = vld [vmem:[#allocation26 + $0x2b8] sm:$0xff] }
0x29a3   :  { %7388 = vmatprep.subr.bf16.mxu1 %v7387_v7  ;;  %v3158_v12 = vrot.slane %v3141_v28, %v9581_v3  ;;  %v3170_v35 = vrot.slane %v3141_v28, %v9609_v20 }
0x29a4   :  { %7102 = vmatpush1.bf16.msra.mxu0 %v7101_v23  ;;  %v9589_v7 = vmax.f32 %v7778_v63, 0.0  ;;  %v3968_v9 = vmul.f32 %v9587_v10, %v9587_v10  ;;  %v9602_v23 = vmax.f32 %v7779_v15, 0.0  ;;  %v9616_v32 = vmax.f32 %v7781_v29, 0.0  ;;  %v4207_v63 = vld [vmem:[#allocation26 + $0x288] sm:$0xff] }
0x29a5   :  { %7104 = vmatprep.subr.bf16.mxu0 %v7103_v16  ;;  %v7780_v14 = vadd.f32 %v9559_v26, %v3158_v12  ;;  %v3166_v16 = vrot.slane %v3141_v28, %v9595_v40  ;;  %v4209_v12 = vld [vmem:[#allocation26 + $0x298] sm:$0xff]  ;;  %v7115_v15 = vpack.c.bf16 %v4211_v45, %v4207_v63  ;;  %v4236_v63 = vld [vmem:[#allocation26 + $0x370] sm:$0xff]  ;;  %v4239_v45 = vld [vmem:[#allocation26 + $0x388] sm:$0xff] }
0x29a6   :  { %7390 = vmatpush1.bf16.msra.mxu1 %v7389_v18  ;;  %v3969_v17 = vmul.f32 %v9589_v7, %v9589_v7  ;;  %v3957_v18 = vadd.f32 %v9589_v7, %v9587_v10 }
0x29a7   :  { %7392 = vmatprep.subr.bf16.mxu1 %v7391_v24  ;;  %v9611_v21 = vmax.f32 %v7780_v14, 0.0  ;;  %v3970_v24 = vmul.f32 %v9602_v23, %v9602_v23  ;;  %v7782_v39 = vadd.f32 %v9566_v37, %v3166_v16  ;;  %v7783_v37 = vadd.f32 %v9564_v48, %v3170_v35  ;;  %v4210_v14 = vld [vmem:[#allocation26 + $0x2a0] sm:$0xff]  ;;  %v4212_v16 = vld [vmem:[#allocation26 + $0x2b0] sm:$0xff]  ;;  %v4221_v35 = vld [vmem:[#allocation26 + $0x2f8] sm:$0xff] }
0x29a8   :  { %7106 = vmatpush1.bf16.msra.mxu0 %v7105_v2  ;;  %v3977_v58 = vadd.f32 %v3969_v17, %v3968_v9  ;;  %v3958_v26 = vadd.f32 %v3957_v18, %v9602_v23  ;;  %v9642_v48 = vmax.f32 %v7784_v52, 0.0  ;;  %v7403_v9 = vpack.c.bf16 %v4213_v27, %v4209_v12  ;;  %v4206_v17 = vld [vmem:[#allocation26 + $0x280] sm:$0xff]  ;;  %v4208_v18 = vld [vmem:[#allocation26 + $0x290] sm:$0xff]  ;;  %v4229_v52 = vld [vmem:[#allocation26 + $0x338] sm:$0xff] }
0x29a9   :  { %7108 = vmatprep.subr.bf16.mxu0 %v7107_v42  ;;  %v3971_v2 = vmul.f32 %v9611_v21, %v9611_v21  ;;  %v9628_v42 = vmax.f32 %v7782_v39, 0.0  ;;  %v9635_v49 = vmax.f32 %v7783_v37, 0.0  ;;  %v7117_v29 = vpack.c.bf16 %v4210_v14, %v4206_v17  ;;  %v4243_v12 = vld [vmem:[#allocation26 + $0x3a8] sm:$0xff]  ;;  %v4245_v27 = vld [vmem:[#allocation26 + $0x3b8] sm:$0xff] }
0x29aa   :  { %7394 = vmatpush1.bf16.msra.mxu1 %v7393_v36  ;;  %v3978_v61 = vadd.f32 %v3977_v58, %v3970_v24  ;;  %v3959_v44 = vadd.f32 %v3958_v26, %v9611_v21  ;;  %v3972_v36 = vmul.f32 %v9616_v32, %v9616_v32  ;;  %v3975_v38 = vmul.f32 %v9642_v48, %v9642_v48  ;;  %v4215_v58 = vld [vmem:[#allocation26 + $0x2c8] sm:$0xff] }
0x29ab   :  { %7396 = vmatprep.subr.bf16.mxu1 %v7395_v50  ;;  %v3973_v33 = vmul.f32 %v9628_v42, %v9628_v42  ;;  %v4219_v24 = vld [vmem:[#allocation26 + $0x2e8] sm:$0xff]  ;;  %v7405_v26 = vpack.c.bf16 %v4212_v16, %v4208_v18  ;;  %v7131_v14 = vpack.c.bf16 %v4243_v12, %v4239_v45  ;;  %v4238_v18 = vld [vmem:[#allocation26 + $0x380] sm:$0xff]  ;;  %v4240_v16 = vld [vmem:[#allocation26 + $0x390] sm:$0xff] }
0x29ac   :  { %7110 = vmatpush1.bf16.msra.mxu0 %v7109_v25  ;;  %v3979_v46 = vadd.f32 %v3978_v61, %v3971_v2  ;;  %v3960_v31 = vadd.f32 %v3959_v44, %v9616_v32  ;;  %v7119_v39 = vpack.c.bf16 %v4219_v24, %v4215_v58  ;;  %v4217_v61 = vld [vmem:[#allocation26 + $0x2d8] sm:$0xff]  ;;  %v4214_v44 = vld [vmem:[#allocation26 + $0x2c0] sm:$0xff]  ;;  %v4244_v24 = vld [vmem:[#allocation26 + $0x3b0] sm:$0xff] }
0x29ad   :  { %7112 = vmatprep.subr.bf16.mxu0 %v7111_v53  ;;  %v7407_v2 = vpack.c.bf16 %v4221_v35, %v4217_v61  ;;  %v4249_v61 = vld [vmem:[#allocation26 + $0x3d8] sm:$0xff]  ;;  %v9670_v45 = vld [vmem:[#allocation26 + $0x448] sm:$0xff] }
0x29ae   :  { %7398 = vmatpush1.bf16.msra.mxu1 %v7397_v11  ;;  %v3980_v50 = vadd.f32 %v3979_v46, %v3972_v36  ;;  %v3961_v60 = vadd.f32 %v3960_v31, %v9628_v42  ;;  %v3974_v11 = vmul.f32 %v9635_v49, %v9635_v49  ;;  %v4218_v36 = vld [vmem:[#allocation26 + $0x2e0] sm:$0xff]  ;;  %v4216_v46 = vld [vmem:[#allocation26 + $0x2d0] sm:$0xff]  ;;  %v4253_v35 = vld [vmem:[#allocation26 + $0x3f8] sm:$0xff] }
0x29af   :  { %7400 = vmatprep.subr.bf16.mxu1 %v7399_v51  ;;  %v4220_v31 = vld [vmem:[#allocation26 + $0x2f0] sm:$0xff]  ;;  %v7121_v37 = vpack.c.bf16 %v4218_v36, %v4214_v44  ;;  %v9672_v12 = vld [vmem:[#allocation26 + $0x468] sm:$0xff] }
0x29b0   :  { %7114 = vmatpush1.bf16.msra.mxu0 %v7113_v56  ;;  %v3981_v25 = vadd.f32 %v3980_v50, %v3973_v33  ;;  %v3962_v53 = vadd.f32 %v3961_v60, %v9635_v49  ;;  %v7409_v30 = vpack.c.bf16 %v4220_v31, %v4216_v46  ;;  %v4223_v50 = vld [vmem:[#allocation26 + $0x308] sm:$0xff]  ;;  %v4246_v46 = vld [vmem:[#allocation26 + $0x3c0] sm:$0xff] }
0x29b1   :  { %7116 = vmatprep.subr.bf16.mxu0 %v7115_v15  ;;  %v4227_v33 = vld [vmem:[#allocation26 + $0x328] sm:$0xff]  ;;  %v4241_v15 = vld [vmem:[#allocation26 + $0x398] sm:$0xff]  ;;  %v4250_v31 = vld [vmem:[#allocation26 + $0x3e0] sm:$0xff] }
0x29b2   :  { %7402 = vmatpush1.bf16.msra.mxu1 %v7401_v62  ;;  %v3982_v57 = vadd.f32 %v3981_v25, %v3974_v11  ;;  %v3963_v19 = vadd.f32 %v3962_v53, %v9642_v48  ;;  %v7123_v60 = vpack.c.bf16 %v4227_v33, %v4223_v50  ;;  %v4226_v25 = vld [vmem:[#allocation26 + $0x320] sm:$0xff]  ;;  %v7411_v11 = vpack.c.bf16 %v4229_v52, %v4225_v47  ;;  %v4224_v53 = vld [vmem:[#allocation26 + $0x310] sm:$0xff]  ;;  %v4255_v33 = vld [vmem:[#allocation26 + $0x408] sm:$0xff] }
0x29b3   :  { %7404 = vmatprep.subr.bf16.mxu1 %v7403_v9  ;;  %v7419_v58 = vpack.c.bf16 %v4245_v27, %v4241_v15  ;;  %v4252_v50 = vld [vmem:[#allocation26 + $0x3f0] sm:$0xff]  ;;  %v4259_v47 = vld [vmem:[#allocation26 + $0x428] sm:$0xff]  ;;  %v4261_v52 = vld [vmem:[#allocation26 + $0x438] sm:$0xff] }
0x29b4   :  { %v3983_v22 = vadd.f32 %v3982_v57, %v3975_v38  ;;  %7118 = vmatpush1.bf16.msra.mxu0 %v7117_v29  ;;  %v4235_v57 = vld [vmem:[#allocation26 + $0x368] sm:$0xff]  ;;  %v4242_v29 = vld [vmem:[#allocation26 + $0x3a0] sm:$0xff] }
0x29b5   :  { %7120 = vmatprep.subr.bf16.mxu0 %v7119_v39  ;;  %v4251_v39 = vld [vmem:[#allocation26 + $0x3e8] sm:$0xff]  ;;  %v7133_v44 = vpack.c.bf16 %v4242_v29, %v4238_v18 }
0x29b6   :  { %7406 = vmatpush1.bf16.msra.mxu1 %v7405_v26  ;;  %v4247_v26 = vld [vmem:[#allocation26 + $0x3c8] sm:$0xff] }
0x29b7   :  { %7408 = vmatprep.subr.bf16.mxu1 %v7407_v2  ;;  %v7421_v2 = vpack.c.bf16 %v4244_v24, %v4240_v16  ;;  %v7135_v36 = vpack.c.bf16 %v4251_v39, %v4247_v26 }
0x29b8   :  { %7122 = vmatpush1.bf16.msra.mxu0 %v7121_v37  ;;  %v4248_v37 = vld [vmem:[#allocation26 + $0x3d0] sm:$0xff] }
0x29b9   :  { %7124 = vmatprep.subr.bf16.mxu0 %v7123_v60  ;;  %v4257_v60 = vld [vmem:[#allocation26 + $0x418] sm:$0xff] }
0x29ba   :  { %7410 = vmatpush1.bf16.msra.mxu1 %v7409_v30  ;;  %v7423_v30 = vpack.c.bf16 %v4253_v35, %v4249_v61 }
0x29bb   :  { %7412 = vmatprep.subr.bf16.mxu1 %v7411_v11  ;;  %v7139_v11 = vpack.c.bf16 %v4259_v47, %v4255_v33 }
0x2a0d   :  { %v3946_v51 = vpop.permute.xlu0 %3945 }
0x2a0e   :  { %v3952_v59 = vsel %vm755_vm2, %v3852_v54, %v3946_v51  ;;  %v4228_v54 = vld [vmem:[#allocation26 + $0x330] sm:$0xff]  ;;  %v7125_v51 = vpack.c.bf16 %v4226_v25, %v4222_v13  ;;  %v7137_v13 = vpack.c.bf16 %v4250_v31, %v4246_v46  ;;  %v7425_v25 = vpack.c.bf16 %v4252_v50, %v4248_v37 }
0x2a0f   :  { %v3954_v56 = vsel %vm3953_vm11, %v3952_v59, %v3950_v55  ;;  %v4231_v55 = vld [vmem:[#allocation26 + $0x348] sm:$0xff]  ;;  %v4233_v59 = vld [vmem:[#allocation26 + $0x358] sm:$0xff] }
0x2a10   :  { %v9649_v62 = vsel %vm3955_vm12, %v3954_v56, 0.0  ;;  %v4237_v56 = vld [vmem:[#allocation26 + $0x378] sm:$0xff]  ;;  %v7127_v38 = vpack.c.bf16 %v4235_v57, %v4231_v55  ;;  %7126 = vmatpush1.bf16.msra.mxu0 %v7125_v51 }
0x2a11   :  { %v3964_v28 = vadd.f32 %v3963_v19, %v9649_v62  ;;  %v3976_v6 = vmul.f32 %v9649_v62, %v9649_v62  ;;  %v7413_v19 = vpack.c.bf16 %v4228_v54, %v4224_v53  ;;  %v7427_v53 = vpack.c.bf16 %v4261_v52, %v4257_v60 }
0x2a12   :  { %7128 = vmatprep.subr.bf16.mxu0 %v7127_v38  ;;  %v9658_v38 = vld [vmem:[#allocation23] sm:$0xff] }
0x2a13   :  { %3965 = vadd.xlane.f32.xlu0 %v3964_v28  ;;  %v3984_v1 = vadd.f32 %v3983_v22, %v3976_v6  ;;  %v4230_v28 = vld [vmem:[#allocation26 + $0x340] sm:$0xff]  ;;  %v4232_v22 = vld [vmem:[#allocation26 + $0x350] sm:$0xff]  ;;  %7414 = vmatpush1.bf16.msra.mxu1 %v7413_v19  ;;  %v4021_v15 = vrot.slane %v9658_v38, %v9107_v34  ;;  %v4029_v18 = vrot.slane %v9658_v38, %v9581_v3 }
0x2a14   :  { %v4234_v6 = vld [vmem:[#allocation26 + $0x360] sm:$0xff]  ;;  %v7417_v17 = vpack.c.bf16 %v4236_v63, %v4232_v22  ;;  %v9668_v63 = vld [vmem:[#allocation26 + $0x430] sm:$0xff]  ;;  %v4025_v24 = vrot.slane %v9658_v38, %v9576_v5  ;;  %v4037_v26 = vrot.slane %v9658_v38, %v9595_v40  ;;  %v4033_v39 = vrot.slane %v9658_v38, %v9585_v4 }
0x2a15   :  { %3985 = vadd.xlane.f32.xlu1 %v3984_v1  ;;  %v7415_v1 = vpack.c.bf16 %v4237_v56, %v4233_v59  ;;  %v7129_v9 = vpack.c.bf16 %v4234_v6, %v4230_v28  ;;  %v9660_v28 = vld [vmem:[#allocation24] sm:$0xff]  ;;  %v9662_v6 = vld [vmem:[#allocation26 + $0x400] sm:$0xff]  ;;  %v4045_v61 = vrot.slane %v9658_v38, %v9621_v43  ;;  %v4041_v35 = vrot.slane %v9658_v38, %v9609_v20 }
0x2a16   :  { %v9664_v22 = vld [vmem:[#allocation26 + $0x420] sm:$0xff]  ;;  %v4079_v27 = vrot.slane %v9660_v28, %v9107_v34  ;;  %v4087_v16 = vrot.slane %v9660_v28, %v9581_v3  ;;  %v4083_v37 = vrot.slane %v9660_v28, %v9576_v5 }
0x2a17   :  { %7416 = vmatprep.subr.bf16.mxu1 %v7415_v1  ;;  %7130 = vmatpush1.bf16.msra.mxu0 %v7129_v9  ;;  %v9666_v1 = vld [vmem:[#allocation26 + $0x410] sm:$0xff]  ;;  %v4017_v9 = vrot.slane %v9658_v38, %v9115_v41  ;;  %v4266_v38 = vld [vmem:[#allocation26 + $0x460] sm:$0xff] }
0x2a18   :  { %7418 = vmatpush1.bf16.msra.mxu1 %v7417_v17  ;;  %7132 = vmatprep.subr.bf16.mxu0 %v7131_v14  ;;  %v4075_v17 = vrot.slane %v9660_v28, %v9115_v41  ;;  %v7141_v14 = vpack.c.bf16 %v9664_v22, %v9662_v6  ;;  %v7429_v29 = vpack.c.bf16 %v9668_v63, %v9666_v1  ;;  %v4283_v6 = vld [vmem:[#allocation26 + $0x4e8] sm:$0xff]  ;;  %v4281_v22 = vld [vmem:[#allocation26 + $0x4d8] sm:$0xff] }
0x2a19   :  { %7420 = vmatprep.subr.bf16.mxu1 %v7419_v58  ;;  %v7143_v58 = vpack.c.bf16 %v9672_v12, %v9670_v45  ;;  %v4287_v45 = vld [vmem:[#allocation26 + $0x508] sm:$0xff] }
0x2a1a   :  { %v4291_v12 = vld [vmem:[#allocation26 + $0x528] sm:$0xff] }
0x2a1b   :  { %7134 = vmatpush1.bf16.msra.mxu0 %v7133_v44 }
0x2a1c   :  { %7422 = vmatpush1.bf16.msra.mxu1 %v7421_v2  ;;  %7136 = vmatprep.subr.bf16.mxu0 %v7135_v36 }
0x2a1d   :  { %7424 = vmatprep.subr.bf16.mxu1 %v7423_v30 }
0x2a1f   :  { %7138 = vmatpush1.bf16.msra.mxu0 %v7137_v13 }
0x2a20   :  { %7426 = vmatpush1.bf16.msra.mxu1 %v7425_v25  ;;  %7140 = vmatprep.subr.bf16.mxu0 %v7139_v11 }
0x2a21   :  { %7428 = vmatprep.subr.bf16.mxu1 %v7427_v53  ;;  %v4265_v53 = vld [vmem:[#allocation26 + $0x458] sm:$0xff] }
0x2aa0   :  { %v3966_v54 = vpop.xlane.xlu0 %3965 }
0x2aa1   :  { %v9654_v55 = vmul.f32 0.00093896716, %v3966_v54 }
0x2aa2   :  { %v3986_v51 = vpop.xlane.xlu1 %3985 }
0x2aa3   :  { %v3987_v57 = vmul.f32 0.00093896716, %v3986_v51  ;;  %v3988_v59 = vmul.f32 %v9654_v55, %v9654_v55  ;;  %v3991_v44 = vsub.f32 %v9589_v7, %v9654_v55  ;;  %v3990_v2 = vsub.f32 %v9587_v10, %v9654_v55 }
0x2aa4   :  { %v3993_v36 = vsub.f32 %v9611_v21, %v9654_v55  ;;  %v3992_v46 = vsub.f32 %v9602_v23, %v9654_v55  ;;  %v3995_v30 = vsub.f32 %v9628_v42, %v9654_v55  ;;  %v3994_v50 = vsub.f32 %v9616_v32, %v9654_v55  ;;  %v4269_v42 = vld [vmem:[#allocation26 + $0x478] sm:$0xff] }
0x2aa5   :  { %v3989_v56 = vsub.f32 %v3987_v57, %v3988_v59  ;;  %v3997_v7 = vsub.f32 %v9642_v48, %v9654_v55  ;;  %v4095_v23 = vrot.slane %v9660_v28, %v9595_v40  ;;  %v4091_v32 = vrot.slane %v9660_v28, %v9585_v4  ;;  %v4268_v4 = vld [vmem:[#allocation26 + $0x470] sm:$0xff] }
0x2aa6   :  { %v4103_v57 = vrot.slane %v9660_v28, %v9621_v43  ;;  %v3996_v59 = vsub.f32 %v9635_v49, %v9654_v55  ;;  %v3998_v63 = vsub.f32 %v9649_v62, %v9654_v55  ;;  %v4275_v49 = vld [vmem:[#allocation26 + $0x4a8] sm:$0xff] }
0x2aa7   :  { %v3999_v19 = vadd.f32 1e-05, %v3989_v56 }
0x2aa9   :  { %8104 = vrsqrt.f32 %v3999_v19  ;;  %v4262_v19 = vld [vmem:[#allocation26 + $0x440] sm:$0xff] }
0x2ab3   :  { %v8105_v31 = vpop.eup %8104 }
0x2ab4   :  { %v4002_v10 = vmul.f32 %v8105_v31, %v3991_v44  ;;  %v4001_v33 = vmul.f32 %v8105_v31, %v3990_v2  ;;  %v4004_v47 = vmul.f32 %v8105_v31, %v3993_v36  ;;  %v4003_v21 = vmul.f32 %v8105_v31, %v3992_v46 }
0x2ab5   :  { %v4006_v60 = vmul.f32 %v8105_v31, %v3995_v30  ;;  %v4005_v52 = vmul.f32 %v8105_v31, %v3994_v50  ;;  %v4008_v13 = vmul.f32 %v8105_v31, %v3997_v7  ;;  %v4007_v44 = vmul.f32 %v8105_v31, %v3996_v59  ;;  %v4274_v30 = vld [vmem:[#allocation26 + $0x4a0] sm:$0xff]  ;;  %v4279_v7 = vld [vmem:[#allocation26 + $0x4c8] sm:$0xff] }
0x2ab6   :  { %v4060_v25 = vmul.f32 %v4021_v15, %v4002_v10  ;;  %v4059_v11 = vmul.f32 %v4017_v9, %v4001_v33  ;;  %v4061_v54 = vmul.f32 %v4025_v24, %v4003_v21  ;;  %v4062_v51 = vmul.f32 %v4029_v18, %v4004_v47  ;;  %v4264_v9 = vld [vmem:[#allocation26 + $0x450] sm:$0xff]  ;;  %v4271_v18 = vld [vmem:[#allocation26 + $0x488] sm:$0xff]  ;;  %v4278_v33 = vld [vmem:[#allocation26 + $0x4c0] sm:$0xff] }
0x2ab7   :  { %v4064_v48 = vmul.f32 %v4037_v26, %v4006_v60  ;;  %v7431_v15 = vpack.c.bf16 %v4269_v42, %v4265_v53  ;;  %v4063_v26 = vmul.f32 %v4033_v39, %v4005_v52  ;;  %v4066_v43 = vmul.f32 %v4045_v61, %v4008_v13  ;;  %v4282_v47 = vld [vmem:[#allocation26 + $0x4e0] sm:$0xff]  ;;  %v4284_v52 = vld [vmem:[#allocation26 + $0x4f0] sm:$0xff]  ;;  %v4293_v13 = vld [vmem:[#allocation26 + $0x538] sm:$0xff] }
0x2ab8   :  { %v4118_v56 = vadd.f32 %v4079_v27, %v4060_v25  ;;  %v4117_v40 = vadd.f32 %v4075_v17, %v4059_v11  ;;  %v9726_v1 = vadd.f32 %v4083_v37, %v4061_v54  ;;  %v4273_v27 = vld [vmem:[#allocation26 + $0x498] sm:$0xff]  ;;  %v4099_v2 = vrot.slane %v9660_v28, %v9609_v20  ;;  %v4270_v37 = vld [vmem:[#allocation26 + $0x480] sm:$0xff]  ;;  %v4299_v59 = vld [vmem:[#allocation26 + $0x568] sm:$0xff] }
0x2ab9   :  { %v9730_v24 = vadd.f32 %v4095_v23, %v4064_v48  ;;  %v4277_v17 = vld [vmem:[#allocation26 + $0x4b8] sm:$0xff]  ;;  %v9734_v36 = vmul.f32 %v8105_v31, %v3998_v63  ;;  %v4120_v62 = vadd.f32 %v4087_v16, %v4062_v51  ;;  %v9736_v55 = vadd.f32 %v4091_v32, %v4063_v26  ;;  %v4272_v31 = vld [vmem:[#allocation26 + $0x490] sm:$0xff]  ;;  %v4286_v53 = vld [vmem:[#allocation26 + $0x500] sm:$0xff] }
0x2aba   :  { %4788 = vmatprep.mubr.f32.mxu0 %v4118_v56  ;;  %5143 = vmatprep.mubr.f32.mxu1 %v4118_v56  ;;  %v9738_v46 = vadd.f32 %v4103_v57, %v4066_v43  ;;  %v7145_v39 = vpack.c.bf16 %v4266_v38, %v4262_v19  ;;  %v7433_v61 = vpack.c.bf16 %v4268_v4, %v4264_v9  ;;  %v4276_v16 = vld [vmem:[#allocation26 + $0x4b0] sm:$0xff]  ;;  %v4290_v42 = vld [vmem:[#allocation26 + $0x520] sm:$0xff]  ;;  %v4295_v57 = vld [vmem:[#allocation26 + $0x548] sm:$0xff] }
0x2abb   :  { %4789 = vmatmul.mubr.f32.vlgmr.msra.gmra.mrb[20].mxu0 %v4117_v40  ;;  %5144 = vmatmul.mubr.f32.vlgmr.msra.gmra.mrb[24].mxu1 %v4117_v40  ;;  %v4065_v50 = vmul.f32 %v4041_v35, %v4007_v44  ;;  %v7147_v20 = vpack.c.bf16 %v4275_v49, %v4271_v18  ;;  %v7435_v28 = vpack.c.bf16 %v4277_v17, %v4273_v27  ;;  %v4280_v23 = vld [vmem:[#allocation26 + $0x4d0] sm:$0xff]  ;;  %v4297_v56 = vld [vmem:[#allocation26 + $0x558] sm:$0xff]  ;;  %v4294_v63 = vld [vmem:[#allocation26 + $0x540] sm:$0xff] }
0x2abc   :  { %7142 = vmatpush1.bf16.msra.mxu0 %v7141_v14  ;;  %7430 = vmatpush1.bf16.msra.mxu1 %v7429_v29  ;;  %v4285_v14 = vld [vmem:[#allocation26 + $0x4f8] sm:$0xff]  ;;  %v7149_v35 = vpack.c.bf16 %v4274_v30, %v4270_v37  ;;  %v7437_v10 = vpack.c.bf16 %v4276_v16, %v4272_v31  ;;  %v7151_v21 = vpack.c.bf16 %v4283_v6, %v4279_v7  ;;  %v4288_v51 = vld [vmem:[#allocation26 + $0x510] sm:$0xff]  ;;  %v4303_v43 = vld [vmem:[#allocation26 + $0x588] sm:$0xff] }
0x2abd   :  { %4859 = vmatprep.mubr.f32.mxu0 %v4120_v62  ;;  %5214 = vmatprep.mubr.f32.mxu1 %v4120_v62  ;;  %v9746_v29 = vadd.f32 %v4099_v2, %v4065_v50  ;;  %v7439_v60 = vpack.c.bf16 %v4285_v14, %v4281_v22  ;;  %v7153_v25 = vpack.c.bf16 %v4282_v47, %v4278_v33  ;;  %v4292_v48 = vld [vmem:[#allocation26 + $0x530] sm:$0xff]  ;;  %v4301_v40 = vld [vmem:[#allocation26 + $0x578] sm:$0xff]  ;;  %v4307_v49 = vld [vmem:[#allocation26 + $0x5a8] sm:$0xff] }
0x2abe   :  { %7144 = vmatprep.subr.bf16.mxu0 %v7143_v58  ;;  %7432 = vmatprep.subr.bf16.mxu1 %v7431_v15  ;;  %v4289_v58 = vld [vmem:[#allocation26 + $0x518] sm:$0xff]  ;;  %v7441_v11 = vpack.c.bf16 %v4284_v52, %v4280_v23  ;;  %v7155_v54 = vpack.c.bf16 %v4291_v12, %v4287_v45  ;;  %v7157_v19 = vpack.c.bf16 %v4290_v42, %v4286_v53  ;;  %v4298_v15 = vld [vmem:[#allocation26 + $0x560] sm:$0xff]  ;;  %v4296_v18 = vld [vmem:[#allocation26 + $0x550] sm:$0xff] }
0x2abf   :  { %v7443_v32 = vpack.c.bf16 %v4293_v13, %v4289_v58  ;;  %v7445_v38 = vpack.c.bf16 %v4292_v48, %v4288_v51  ;;  %v7159_v9 = vpack.c.bf16 %v4299_v59, %v4295_v57  ;;  %v7447_v4 = vpack.c.bf16 %v4301_v40, %v4297_v56  ;;  %v4300_v26 = vld [vmem:[#allocation26 + $0x570] sm:$0xff]  ;;  %v4305_v27 = vld [vmem:[#allocation26 + $0x598] sm:$0xff]  ;;  %v4302_v62 = vld [vmem:[#allocation26 + $0x580] sm:$0xff] }
0x2ac0   :  { %7146 = vmatpush1.bf16.msra.mxu0 %v7145_v39  ;;  %7434 = vmatpush1.bf16.msra.mxu1 %v7433_v61  ;;  %v4309_v17 = vld [vmem:[#allocation26 + $0x5b8] sm:$0xff]  ;;  %v7161_v44 = vpack.c.bf16 %v4298_v15, %v4294_v63  ;;  %v7449_v2 = vpack.c.bf16 %v4300_v26, %v4296_v18  ;;  %v4306_v39 = vld [vmem:[#allocation26 + $0x5a0] sm:$0xff]  ;;  %v7163_v61 = vpack.c.bf16 %v4307_v49, %v4303_v43  ;;  %v4304_v30 = vld [vmem:[#allocation26 + $0x590] sm:$0xff] }
0x2ac1   :  { %7148 = vmatprep.subr.bf16.mxu0 %v7147_v20  ;;  %7436 = vmatprep.subr.bf16.mxu1 %v7435_v28  ;;  %v7451_v37 = vpack.c.bf16 %v4309_v17, %v4305_v27  ;;  %v4308_v50 = vld [vmem:[#allocation26 + $0x5b0] sm:$0xff]  ;;  %v4311_v20 = vld [vmem:[#allocation26 + $0x5c8] sm:$0xff]  ;;  %v4313_v31 = vld [vmem:[#allocation26 + $0x5d8] sm:$0xff]  ;;  %v7165_v7 = vpack.c.bf16 %v4306_v39, %v4302_v62 }
0x2ac2   :  { %v4315_v28 = vld [vmem:[#allocation26 + $0x5e8] sm:$0xff]  ;;  %v4317_v16 = vld [vmem:[#allocation26 + $0x5f8] sm:$0xff]  ;;  %v7453_v6 = vpack.c.bf16 %v4308_v50, %v4304_v30  ;;  %v4310_v22 = vld [vmem:[#allocation26 + $0x5c0] sm:$0xff] }
0x2ac3   :  { %v4314_v14 = vld [vmem:[#allocation26 + $0x5e0] sm:$0xff]  ;;  %v4312_v33 = vld [vmem:[#allocation26 + $0x5d0] sm:$0xff]  ;;  %v4321_v23 = vld [vmem:[#allocation26 + $0x618] sm:$0xff] }
0x2ac4   :  { %7150 = vmatpush1.bf16.msra.mxu0 %v7149_v35  ;;  %7438 = vmatpush1.bf16.msra.mxu1 %v7437_v10  ;;  %v7167_v35 = vpack.c.bf16 %v4315_v28, %v4311_v20  ;;  %v7455_v10 = vpack.c.bf16 %v4317_v16, %v4313_v31  ;;  %v4316_v47 = vld [vmem:[#allocation26 + $0x5f0] sm:$0xff]  ;;  %v4325_v52 = vld [vmem:[#allocation26 + $0x638] sm:$0xff]  ;;  %v7169_v45 = vpack.c.bf16 %v4314_v14, %v4310_v22  ;;  %v4318_v58 = vld [vmem:[#allocation26 + $0x600] sm:$0xff] }
0x2ac5   :  { %7152 = vmatprep.subr.bf16.mxu0 %v7151_v21  ;;  %7440 = vmatprep.subr.bf16.mxu1 %v7439_v60  ;;  %v4319_v21 = vld [vmem:[#allocation26 + $0x608] sm:$0xff]  ;;  %v7457_v12 = vpack.c.bf16 %v4316_v47, %v4312_v33  ;;  %v4322_v13 = vld [vmem:[#allocation26 + $0x620] sm:$0xff]  ;;  %v4320_v53 = vld [vmem:[#allocation26 + $0x610] sm:$0xff] }
0x2ac6   :  { %v4323_v60 = vld [vmem:[#allocation26 + $0x628] sm:$0xff]  ;;  %v4324_v42 = vld [vmem:[#allocation26 + $0x630] sm:$0xff]  ;;  %v4329_v51 = vld [vmem:[#allocation26 + $0x658] sm:$0xff]  ;;  %v7173_v57 = vpack.c.bf16 %v4322_v13, %v4318_v58 }
0x2ac7   :  { %v4333_v48 = vld [vmem:[#allocation26 + $0x678] sm:$0xff]  ;;  %v7461_v59 = vpack.c.bf16 %v4324_v42, %v4320_v53  ;;  %v4326_v56 = vld [vmem:[#allocation26 + $0x640] sm:$0xff]  ;;  %v4328_v63 = vld [vmem:[#allocation26 + $0x650] sm:$0xff] }
0x2ac8   :  { %7154 = vmatpush1.bf16.msra.mxu0 %v7153_v25  ;;  %7442 = vmatpush1.bf16.msra.mxu1 %v7441_v11  ;;  %v7171_v25 = vpack.c.bf16 %v4323_v60, %v4319_v21  ;;  %v7459_v11 = vpack.c.bf16 %v4325_v52, %v4321_v23  ;;  %v4330_v40 = vld [vmem:[#allocation26 + $0x660] sm:$0xff]  ;;  %v4332_v15 = vld [vmem:[#allocation26 + $0x670] sm:$0xff]  ;;  %v4337_v18 = vld [vmem:[#allocation26 + $0x698] sm:$0xff] }
0x2ac9   :  { %7156 = vmatprep.subr.bf16.mxu0 %v7155_v54  ;;  %7444 = vmatprep.subr.bf16.mxu1 %v7443_v32  ;;  %v4327_v54 = vld [vmem:[#allocation26 + $0x648] sm:$0xff]  ;;  %v4341_v26 = vld [vmem:[#allocation26 + $0x6b8] sm:$0xff]  ;;  %v7177_v43 = vpack.c.bf16 %v4330_v40, %v4326_v56  ;;  %v7465_v49 = vpack.c.bf16 %v4332_v15, %v4328_v63  ;;  %v4334_v27 = vld [vmem:[#allocation26 + $0x680] sm:$0xff] }
0x2aca   :  { %v4331_v32 = vld [vmem:[#allocation26 + $0x668] sm:$0xff]  ;;  %v4338_v17 = vld [vmem:[#allocation26 + $0x6a0] sm:$0xff]  ;;  %v4336_v62 = vld [vmem:[#allocation26 + $0x690] sm:$0xff] }
0x2acb   :  { %v4340_v39 = vld [vmem:[#allocation26 + $0x6b0] sm:$0xff]  ;;  %v4345_v30 = vld [vmem:[#allocation26 + $0x6d8] sm:$0xff]  ;;  %v7181_v20 = vpack.c.bf16 %v4338_v17, %v4334_v27  ;;  %v4342_v31 = vld [vmem:[#allocation26 + $0x6c0] sm:$0xff] }
0x2acc   :  { %7158 = vmatpush1.bf16.msra.mxu0 %v7157_v19  ;;  %7446 = vmatpush1.bf16.msra.mxu1 %v7445_v38  ;;  %v7175_v19 = vpack.c.bf16 %v4331_v32, %v4327_v54  ;;  %v7463_v38 = vpack.c.bf16 %v4333_v48, %v4329_v51  ;;  %v4349_v50 = vld [vmem:[#allocation26 + $0x6f8] sm:$0xff]  ;;  %v7469_v28 = vpack.c.bf16 %v4340_v39, %v4336_v62  ;;  %v4346_v16 = vld [vmem:[#allocation26 + $0x6e0] sm:$0xff]  ;;  %v4344_v22 = vld [vmem:[#allocation26 + $0x6d0] sm:$0xff] }
0x2acd   :  { %7160 = vmatprep.subr.bf16.mxu0 %v7159_v9  ;;  %7448 = vmatprep.subr.bf16.mxu1 %v7447_v4  ;;  %v4335_v9 = vld [vmem:[#allocation26 + $0x688] sm:$0xff]  ;;  %v4348_v14 = vld [vmem:[#allocation26 + $0x6f0] sm:$0xff]  ;;  %v4353_v33 = vld [vmem:[#allocation26 + $0x718] sm:$0xff]  ;;  %v7185_v21 = vpack.c.bf16 %v4346_v16, %v4342_v31 }
0x2ace   :  { %v4339_v4 = vld [vmem:[#allocation26 + $0x6a8] sm:$0xff]  ;;  %v4357_v47 = vld [vmem:[#allocation26 + $0x738] sm:$0xff]  ;;  %v7473_v60 = vpack.c.bf16 %v4348_v14, %v4344_v22  ;;  %v4350_v23 = vld [vmem:[#allocation26 + $0x700] sm:$0xff] }
0x2acf   :  { %v4354_v52 = vld [vmem:[#allocation26 + $0x720] sm:$0xff]  ;;  %v4352_v58 = vld [vmem:[#allocation26 + $0x710] sm:$0xff]  ;;  %v4361_v53 = vld [vmem:[#allocation26 + $0x758] sm:$0xff] }
0x2ad0   :  { %7162 = vmatpush1.bf16.msra.mxu0 %v7161_v44  ;;  %7450 = vmatpush1.bf16.msra.mxu1 %v7449_v2  ;;  %v7179_v44 = vpack.c.bf16 %v4339_v4, %v4335_v9  ;;  %v7467_v2 = vpack.c.bf16 %v4341_v26, %v4337_v18  ;;  %v4356_v13 = vld [vmem:[#allocation26 + $0x730] sm:$0xff]  ;;  %v4365_v42 = vld [vmem:[#allocation26 + $0x778] sm:$0xff]  ;;  %v7189_v54 = vpack.c.bf16 %v4354_v52, %v4350_v23  ;;  %v4358_v51 = vld [vmem:[#allocation26 + $0x740] sm:$0xff] }
0x2ad1   :  { %7164 = vmatprep.subr.bf16.mxu0 %v7163_v61  ;;  %7452 = vmatprep.subr.bf16.mxu1 %v7451_v37  ;;  %v4343_v61 = vld [vmem:[#allocation26 + $0x6c8] sm:$0xff]  ;;  %v7477_v32 = vpack.c.bf16 %v4356_v13, %v4352_v58  ;;  %v4362_v48 = vld [vmem:[#allocation26 + $0x760] sm:$0xff]  ;;  %v4360_v56 = vld [vmem:[#allocation26 + $0x750] sm:$0xff] }
0x2ad2   :  { %v4347_v37 = vld [vmem:[#allocation26 + $0x6e8] sm:$0xff]  ;;  %v4364_v40 = vld [vmem:[#allocation26 + $0x770] sm:$0xff]  ;;  %v4369_v63 = vld [vmem:[#allocation26 + $0x798] sm:$0xff]  ;;  %v7193_v9 = vpack.c.bf16 %v4362_v48, %v4358_v51 }
0x2ad3   :  { %v4373_v15 = vld [vmem:[#allocation26 + $0x7b8] sm:$0xff]  ;;  %v7481_v4 = vpack.c.bf16 %v4364_v40, %v4360_v56  ;;  %v4366_v18 = vld [vmem:[#allocation26 + $0x780] sm:$0xff]  ;;  %v4368_v27 = vld [vmem:[#allocation26 + $0x790] sm:$0xff] }
0x2ad4   :  { %7166 = vmatpush1.bf16.msra.mxu0 %v7165_v7  ;;  %7454 = vmatpush1.bf16.msra.mxu1 %v7453_v6  ;;  %v7183_v7 = vpack.c.bf16 %v4347_v37, %v4343_v61  ;;  %v7471_v6 = vpack.c.bf16 %v4349_v50, %v4345_v30  ;;  %v4370_v26 = vld [vmem:[#allocation26 + $0x7a0] sm:$0xff]  ;;  %v4372_v17 = vld [vmem:[#allocation26 + $0x7b0] sm:$0xff]  ;;  %v4377_v62 = vld [vmem:[#allocation26 + $0x7d8] sm:$0xff] }
0x2ad5   :  { %7168 = vmatprep.subr.bf16.mxu0 %v7167_v35  ;;  %7456 = vmatprep.subr.bf16.mxu1 %v7455_v10  ;;  %v4351_v35 = vld [vmem:[#allocation26 + $0x708] sm:$0xff]  ;;  %v4381_v39 = vld [vmem:[#allocation26 + $0x7f8] sm:$0xff]  ;;  %v7197_v61 = vpack.c.bf16 %v4370_v26, %v4366_v18  ;;  %v7485_v37 = vpack.c.bf16 %v4372_v17, %v4368_v27  ;;  %v4374_v30 = vld [vmem:[#allocation26 + $0x7c0] sm:$0xff] }
0x2ad6   :  { %v4355_v10 = vld [vmem:[#allocation26 + $0x728] sm:$0xff]  ;;  %v4378_v50 = vld [vmem:[#allocation26 + $0x7e0] sm:$0xff]  ;;  %v4376_v31 = vld [vmem:[#allocation26 + $0x7d0] sm:$0xff] }
0x2ad7   :  { %v4380_v16 = vld [vmem:[#allocation26 + $0x7f0] sm:$0xff]  ;;  %v4385_v22 = vld [vmem:[#allocation26 + $0x818] sm:$0xff] }
0x2ad8   :  { %7170 = vmatpush1.bf16.msra.mxu0 %v7169_v45  ;;  %7458 = vmatpush1.bf16.msra.mxu1 %v7457_v12  ;;  %v7187_v45 = vpack.c.bf16 %v4355_v10, %v4351_v35  ;;  %v7475_v12 = vpack.c.bf16 %v4357_v47, %v4353_v33  ;;  %v4389_v14 = vld [vmem:[#allocation26 + $0x838] sm:$0xff]  ;;  %v7201_v35 = vpack.c.bf16 %v4378_v50, %v4374_v30  ;;  %v4384_v23 = vld [vmem:[#allocation26 + $0x810] sm:$0xff]  ;;  %v4415_v30 = vld [vmem:[#allocation26 + $0x908] sm:$0xff] }
0x2ad9   :  { %7172 = vmatprep.subr.bf16.mxu0 %v7171_v25  ;;  %7460 = vmatprep.subr.bf16.mxu1 %v7459_v11  ;;  %v4359_v25 = vld [vmem:[#allocation26 + $0x748] sm:$0xff]  ;;  %v7489_v10 = vpack.c.bf16 %v4380_v16, %v4376_v31  ;;  %v7491_v47 = vpack.c.bf16 %v4389_v14, %v4385_v22  ;;  %v4388_v52 = vld [vmem:[#allocation26 + $0x830] sm:$0xff]  ;;  %v4393_v58 = vld [vmem:[#allocation26 + $0x858] sm:$0xff] }
0x2ada   :  { %v4363_v11 = vld [vmem:[#allocation26 + $0x768] sm:$0xff]  ;;  %v4397_v13 = vld [vmem:[#allocation26 + $0x878] sm:$0xff]  ;;  %v4396_v48 = vld [vmem:[#allocation26 + $0x870] sm:$0xff] }
0x2adb   :  { %v7495_v51 = vpack.c.bf16 %v4397_v13, %v4393_v58  ;;  %v4401_v56 = vld [vmem:[#allocation26 + $0x898] sm:$0xff]  ;;  %v4404_v26 = vld [vmem:[#allocation26 + $0x8b0] sm:$0xff]  ;;  %v4419_v50 = vld [vmem:[#allocation26 + $0x928] sm:$0xff] }
0x2adc   :  { %7174 = vmatpush1.bf16.msra.mxu0 %v7173_v57  ;;  %7462 = vmatpush1.bf16.msra.mxu1 %v7461_v59  ;;  %v7191_v57 = vpack.c.bf16 %v4363_v11, %v4359_v25  ;;  %v7479_v59 = vpack.c.bf16 %v4365_v42, %v4361_v53  ;;  %v7493_v11 = vpack.c.bf16 %v4388_v52, %v4384_v23  ;;  %v4390_v53 = vld [vmem:[#allocation26 + $0x840] sm:$0xff]  ;;  %v4405_v40 = vld [vmem:[#allocation26 + $0x8b8] sm:$0xff]  ;;  %v4416_v14 = vld [vmem:[#allocation26 + $0x910] sm:$0xff] }
0x2add   :  { %7176 = vmatprep.subr.bf16.mxu0 %v7175_v19  ;;  %7464 = vmatprep.subr.bf16.mxu1 %v7463_v38  ;;  %v4367_v19 = vld [vmem:[#allocation26 + $0x788] sm:$0xff]  ;;  %v4394_v42 = vld [vmem:[#allocation26 + $0x860] sm:$0xff]  ;;  %v7499_v18 = vpack.c.bf16 %v4405_v40, %v4401_v56  ;;  %v4413_v27 = vld [vmem:[#allocation26 + $0x8f8] sm:$0xff] }
0x2ade   :  { %v4371_v38 = vld [vmem:[#allocation26 + $0x7a8] sm:$0xff]  ;;  %v4418_v22 = vld [vmem:[#allocation26 + $0x920] sm:$0xff]  ;;  %v4424_v13 = vld [vmem:[#allocation26 + $0x950] sm:$0xff] }
0x2adf   :  { %v4426_v58 = vld [vmem:[#allocation26 + $0x960] sm:$0xff]  ;;  %v4432_v40 = vld [vmem:[#allocation26 + $0x990] sm:$0xff] }
0x2ae0   :  { %7178 = vmatpush1.bf16.msra.mxu0 %v7177_v43  ;;  %7466 = vmatpush1.bf16.msra.mxu1 %v7465_v49  ;;  %v7195_v43 = vpack.c.bf16 %v4371_v38, %v4367_v19  ;;  %v7483_v49 = vpack.c.bf16 %v4373_v15, %v4369_v63  ;;  %v7209_v19 = vpack.c.bf16 %v4394_v42, %v4390_v53  ;;  %v4398_v15 = vld [vmem:[#allocation26 + $0x880] sm:$0xff]  ;;  %v4431_v53 = vld [vmem:[#allocation26 + $0x988] sm:$0xff] }
0x2ae1   :  { %7180 = vmatprep.subr.bf16.mxu0 %v7179_v44  ;;  %7468 = vmatprep.subr.bf16.mxu1 %v7467_v2  ;;  %v4375_v44 = vld [vmem:[#allocation26 + $0x7c8] sm:$0xff]  ;;  %v4434_v56 = vld [vmem:[#allocation26 + $0x9a0] sm:$0xff] }
0x2ae2   :  { %v4379_v2 = vld [vmem:[#allocation26 + $0x7e8] sm:$0xff] }
0x2ae3   :  { %v4435_v42 = vld [vmem:[#allocation26 + $0x9a8] sm:$0xff] }
0x2ae4   :  { %7182 = vmatpush1.bf16.msra.mxu0 %v7181_v20  ;;  %7470 = vmatpush1.bf16.msra.mxu1 %v7469_v28  ;;  %v7199_v20 = vpack.c.bf16 %v4379_v2, %v4375_v44  ;;  %v7487_v28 = vpack.c.bf16 %v4381_v39, %v4377_v62  ;;  %v4410_v62 = vld [vmem:[#allocation26 + $0x8e0] sm:$0xff]  ;;  %v4408_v39 = vld [vmem:[#allocation26 + $0x8d0] sm:$0xff] }
0x2ae5   :  { %7184 = vmatprep.subr.bf16.mxu0 %v7183_v7  ;;  %7472 = vmatprep.subr.bf16.mxu1 %v7471_v6  ;;  %v4383_v7 = vld [vmem:[#allocation26 + $0x808] sm:$0xff] }
0x2ae6   :  { %v4387_v6 = vld [vmem:[#allocation26 + $0x828] sm:$0xff] }
0x2ae7   :  { %v7203_v33 = vpack.c.bf16 %v4387_v6, %v4383_v7  ;;  %v7219_v7 = vpack.c.bf16 %v4419_v50, %v4415_v30  ;;  %v4414_v6 = vld [vmem:[#allocation26 + $0x900] sm:$0xff] }
0x2ae8   :  { %7186 = vmatpush1.bf16.msra.mxu0 %v7185_v21  ;;  %7474 = vmatpush1.bf16.msra.mxu1 %v7473_v60  ;;  %v4382_v21 = vld [vmem:[#allocation26 + $0x800] sm:$0xff]  ;;  %v7221_v23 = vpack.c.bf16 %v4418_v22, %v4414_v6  ;;  %v4459_v6 = vld [vmem:[#allocation26 + $0xa68] sm:$0xff]  ;;  %v4457_v22 = vld [vmem:[#allocation26 + $0xa58] sm:$0xff] }
0x2ae9   :  { %7188 = vmatprep.subr.bf16.mxu0 %v7187_v45  ;;  %7476 = vmatprep.subr.bf16.mxu1 %v7475_v12  ;;  %v4386_v60 = vld [vmem:[#allocation26 + $0x820] sm:$0xff]  ;;  %v4391_v45 = vld [vmem:[#allocation26 + $0x848] sm:$0xff] }
0x2aea   :  { %v4395_v12 = vld [vmem:[#allocation26 + $0x868] sm:$0xff]  ;;  %v7205_v25 = vpack.c.bf16 %v4386_v60, %v4382_v21  ;;  %v4425_v21 = vld [vmem:[#allocation26 + $0x958] sm:$0xff]  ;;  %v4446_v50 = vld [vmem:[#allocation26 + $0xa00] sm:$0xff] }
0x2aeb   :  { %v4429_v60 = vld [vmem:[#allocation26 + $0x978] sm:$0xff] }
0x2aec   :  { %7190 = vmatpush1.bf16.msra.mxu0 %v7189_v54  ;;  %7478 = vmatpush1.bf16.msra.mxu1 %v7477_v32  ;;  %v4392_v54 = vld [vmem:[#allocation26 + $0x850] sm:$0xff]  ;;  %v7207_v32 = vpack.c.bf16 %v4395_v12, %v4391_v45  ;;  %v4422_v12 = vld [vmem:[#allocation26 + $0x940] sm:$0xff] }
0x2aed   :  { %7192 = vmatprep.subr.bf16.mxu0 %v7191_v57  ;;  %7480 = vmatprep.subr.bf16.mxu1 %v7479_v59  ;;  %v4399_v57 = vld [vmem:[#allocation26 + $0x888] sm:$0xff]  ;;  %v7497_v38 = vpack.c.bf16 %v4396_v48, %v4392_v54  ;;  %v4433_v54 = vld [vmem:[#allocation26 + $0x998] sm:$0xff] }
0x2aee   :  { %v4403_v59 = vld [vmem:[#allocation26 + $0x8a8] sm:$0xff] }
0x2aef   :  { %v7211_v63 = vpack.c.bf16 %v4403_v59, %v4399_v57  ;;  %v7227_v57 = vpack.c.bf16 %v4435_v42, %v4431_v53  ;;  %v4430_v59 = vld [vmem:[#allocation26 + $0x980] sm:$0xff] }
0x2af0   :  { %7194 = vmatpush1.bf16.msra.mxu0 %v7193_v9  ;;  %7482 = vmatpush1.bf16.msra.mxu1 %v7481_v4  ;;  %v4402_v9 = vld [vmem:[#allocation26 + $0x8a0] sm:$0xff]  ;;  %v4400_v4 = vld [vmem:[#allocation26 + $0x890] sm:$0xff] }
0x2af1   :  { %7196 = vmatprep.subr.bf16.mxu0 %v7195_v43  ;;  %7484 = vmatprep.subr.bf16.mxu1 %v7483_v49  ;;  %v4407_v43 = vld [vmem:[#allocation26 + $0x8c8] sm:$0xff]  ;;  %v4409_v49 = vld [vmem:[#allocation26 + $0x8d8] sm:$0xff]  ;;  %v7213_v17 = vpack.c.bf16 %v4402_v9, %v4398_v15  ;;  %v7501_v44 = vpack.c.bf16 %v4404_v26, %v4400_v4  ;;  %v4462_v42 = vld [vmem:[#allocation26 + $0xa80] sm:$0xff] }
0x2af2   :  { %v4443_v15 = vld [vmem:[#allocation26 + $0x9e8] sm:$0xff]  ;;  %v4441_v9 = vld [vmem:[#allocation26 + $0x9d8] sm:$0xff] }
0x2af3   :  { %v4445_v4 = vld [vmem:[#allocation26 + $0x9f8] sm:$0xff] }
0x2af4   :  { %7198 = vmatpush1.bf16.msra.mxu0 %v7197_v61  ;;  %7486 = vmatpush1.bf16.msra.mxu1 %v7485_v37  ;;  %v7503_v61 = vpack.c.bf16 %v4413_v27, %v4409_v49  ;;  %v4412_v37 = vld [vmem:[#allocation26 + $0x8f0] sm:$0xff]  ;;  %v4442_v49 = vld [vmem:[#allocation26 + $0x9e0] sm:$0xff] }
0x2af5   :  { %7200 = vmatprep.subr.bf16.mxu0 %v7199_v20  ;;  %7488 = vmatprep.subr.bf16.mxu1 %v7487_v28  ;;  %v4417_v20 = vld [vmem:[#allocation26 + $0x918] sm:$0xff]  ;;  %v7505_v16 = vpack.c.bf16 %v4412_v37, %v4408_v39  ;;  %v4440_v27 = vld [vmem:[#allocation26 + $0x9d0] sm:$0xff] }
0x2af6   :  { %v4421_v28 = vld [vmem:[#allocation26 + $0x938] sm:$0xff] }
0x2af7   :  { %v4453_v39 = vld [vmem:[#allocation26 + $0xa38] sm:$0xff] }
0x2af8   :  { %7202 = vmatpush1.bf16.msra.mxu0 %v7201_v35  ;;  %7490 = vmatpush1.bf16.msra.mxu1 %v7489_v10  ;;  %v7507_v35 = vpack.c.bf16 %v4421_v28, %v4417_v20  ;;  %v4420_v10 = vld [vmem:[#allocation26 + $0x930] sm:$0xff]  ;;  %v4450_v20 = vld [vmem:[#allocation26 + $0xa20] sm:$0xff] }
0x2af9   :  { %7204 = vmatprep.subr.bf16.mxu0 %v7203_v33  ;;  %7492 = vmatprep.subr.bf16.mxu1 %v7491_v47  ;;  %v4423_v33 = vld [vmem:[#allocation26 + $0x948] sm:$0xff]  ;;  %v7509_v52 = vpack.c.bf16 %v4420_v10, %v4416_v14  ;;  %v4448_v28 = vld [vmem:[#allocation26 + $0xa10] sm:$0xff]  ;;  %v4461_v14 = vld [vmem:[#allocation26 + $0xa78] sm:$0xff] }
0x2afa   :  { %v4427_v47 = vld [vmem:[#allocation26 + $0x968] sm:$0xff] }
0x2afb   :  { %4860 = vmatmul.mubr.f32.vlgmr.msra.gmra.mrb[20].mxu0 %v9726_v1  ;;  %5215 = vmatmul.mubr.f32.vlgmr.msra.gmra.mrb[24].mxu1 %v9726_v1  ;;  %v4411_v1 = vld [vmem:[#allocation26 + $0x8e8] sm:$0xff]  ;;  %v7223_v45 = vpack.c.bf16 %v4427_v47, %v4423_v33  ;;  %v4454_v47 = vld [vmem:[#allocation26 + $0xa40] sm:$0xff] }
0x2afc   :  { %7206 = vmatpush1.bf16.msra.mxu0 %v7205_v25  ;;  %4930 = vmatprep.mubr.f32.mxu0 %v9730_v24  ;;  %v7215_v2 = vpack.c.bf16 %v4411_v1, %v4407_v43  ;;  %v7511_v25 = vpack.c.bf16 %v4429_v60, %v4425_v21  ;;  %v4438_v1 = vld [vmem:[#allocation26 + $0x9c0] sm:$0xff]  ;;  %v4456_v60 = vld [vmem:[#allocation26 + $0xa50] sm:$0xff] }
0x2afd   :  { %7494 = vmatpush1.bf16.msra.mxu1 %v7493_v11  ;;  %5285 = vmatprep.mubr.f32.mxu1 %v9730_v24  ;;  %v4406_v24 = vld [vmem:[#allocation26 + $0x8c0] sm:$0xff]  ;;  %v4428_v11 = vld [vmem:[#allocation26 + $0x970] sm:$0xff] }
0x2afe   :  { %7208 = vmatprep.subr.bf16.mxu0 %v7207_v32  ;;  %7496 = vmatprep.subr.bf16.mxu1 %v7495_v51  ;;  %v7217_v31 = vpack.c.bf16 %v4410_v62, %v4406_v24  ;;  %v4437_v32 = vld [vmem:[#allocation26 + $0x9b8] sm:$0xff]  ;;  %v7225_v51 = vpack.c.bf16 %v4426_v58, %v4422_v12  ;;  %v7513_v48 = vpack.c.bf16 %v4428_v11, %v4424_v13  ;;  %v4451_v24 = vld [vmem:[#allocation26 + $0xa28] sm:$0xff]  ;;  %v4458_v21 = vld [vmem:[#allocation26 + $0xa60] sm:$0xff] }
0x2aff   :  { %v4449_v62 = vld [vmem:[#allocation26 + $0xa18] sm:$0xff]  ;;  %v4467_v12 = vld [vmem:[#allocation26 + $0xaa8] sm:$0xff] }
0x2b00   :  { %7210 = vmatpush1.bf16.msra.mxu0 %v7209_v19  ;;  %v7515_v19 = vpack.c.bf16 %v4437_v32, %v4433_v54  ;;  %v4465_v58 = vld [vmem:[#allocation26 + $0xa98] sm:$0xff]  ;;  %v4466_v54 = vld [vmem:[#allocation26 + $0xaa0] sm:$0xff]  ;;  %v4464_v32 = vld [vmem:[#allocation26 + $0xa90] sm:$0xff] }
0x2b01   :  { %7498 = vmatpush1.bf16.msra.mxu1 %v7497_v38  ;;  %7212 = vmatprep.subr.bf16.mxu0 %v7211_v63  ;;  %v4436_v38 = vld [vmem:[#allocation26 + $0x9b0] sm:$0xff]  ;;  %v4439_v63 = vld [vmem:[#allocation26 + $0x9c8] sm:$0xff]  ;;  %v4469_v13 = vld [vmem:[#allocation26 + $0xab8] sm:$0xff] }
0x2b02   :  { %7500 = vmatprep.subr.bf16.mxu1 %v7499_v18  ;;  %v7229_v18 = vpack.c.bf16 %v4434_v56, %v4430_v59  ;;  %v7517_v26 = vpack.c.bf16 %v4436_v38, %v4432_v40  ;;  %v7231_v43 = vpack.c.bf16 %v4443_v15, %v4439_v63  ;;  %v4475_v59 = vld [vmem:[#allocation26 + $0xae8] sm:$0xff]  ;;  %v4473_v56 = vld [vmem:[#allocation26 + $0xad8] sm:$0xff]  ;;  %v4470_v15 = vld [vmem:[#allocation26 + $0xac0] sm:$0xff] }
0x2b03   :  { %v4477_v40 = vld [vmem:[#allocation26 + $0xaf8] sm:$0xff] }
0x2b04   :  { %7214 = vmatpush1.bf16.msra.mxu0 %v7213_v17  ;;  %v7519_v17 = vpack.c.bf16 %v4445_v4, %v4441_v9  ;;  %v4474_v9 = vld [vmem:[#allocation26 + $0xae0] sm:$0xff]  ;;  %v4472_v4 = vld [vmem:[#allocation26 + $0xad0] sm:$0xff] }
0x2b05   :  { %7502 = vmatpush1.bf16.msra.mxu1 %v7501_v44  ;;  %7216 = vmatprep.subr.bf16.mxu0 %v7215_v2  ;;  %v4444_v44 = vld [vmem:[#allocation26 + $0x9f0] sm:$0xff]  ;;  %v4447_v2 = vld [vmem:[#allocation26 + $0xa08] sm:$0xff] }
0x2b06   :  { %7504 = vmatprep.subr.bf16.mxu1 %v7503_v61  ;;  %v7233_v61 = vpack.c.bf16 %v4442_v49, %v4438_v1  ;;  %v7521_v37 = vpack.c.bf16 %v4444_v44, %v4440_v27  ;;  %v7235_v30 = vpack.c.bf16 %v4451_v24, %v4447_v2  ;;  %v4483_v1 = vld [vmem:[#allocation26 + $0xb28] sm:$0xff]  ;;  %v4481_v49 = vld [vmem:[#allocation26 + $0xb18] sm:$0xff]  ;;  %v4478_v24 = vld [vmem:[#allocation26 + $0xb00] sm:$0xff] }
0x2b07   :  { %v4485_v27 = vld [vmem:[#allocation26 + $0xb38] sm:$0xff] }
0x2b08   :  { %7218 = vmatpush1.bf16.msra.mxu0 %v7217_v31  ;;  %v7523_v31 = vpack.c.bf16 %v4453_v39, %v4449_v62  ;;  %v4482_v62 = vld [vmem:[#allocation26 + $0xb20] sm:$0xff]  ;;  %v4480_v39 = vld [vmem:[#allocation26 + $0xb10] sm:$0xff] }
0x2b09   :  { %7506 = vmatpush1.bf16.msra.mxu1 %v7505_v16  ;;  %7220 = vmatprep.subr.bf16.mxu0 %v7219_v7  ;;  %v4452_v16 = vld [vmem:[#allocation26 + $0xa30] sm:$0xff]  ;;  %v4455_v7 = vld [vmem:[#allocation26 + $0xa48] sm:$0xff] }
0x2b0a   :  { %7508 = vmatprep.subr.bf16.mxu1 %v7507_v35  ;;  %v7237_v35 = vpack.c.bf16 %v4450_v20, %v4446_v50  ;;  %v7525_v10 = vpack.c.bf16 %v4452_v16, %v4448_v28  ;;  %v7239_v33 = vpack.c.bf16 %v4459_v6, %v4455_v7  ;;  %v4491_v50 = vld [vmem:[#allocation26 + $0xb68] sm:$0xff]  ;;  %v4489_v20 = vld [vmem:[#allocation26 + $0xb58] sm:$0xff]  ;;  %v4486_v6 = vld [vmem:[#allocation26 + $0xb40] sm:$0xff] }
0x2b0b   :  { %v4493_v28 = vld [vmem:[#allocation26 + $0xb78] sm:$0xff] }
0x2b0c   :  { %7222 = vmatpush1.bf16.msra.mxu0 %v7221_v23  ;;  %v7527_v23 = vpack.c.bf16 %v4461_v14, %v4457_v22  ;;  %v4490_v22 = vld [vmem:[#allocation26 + $0xb60] sm:$0xff]  ;;  %v4488_v14 = vld [vmem:[#allocation26 + $0xb50] sm:$0xff] }
0x2b0d   :  { %7510 = vmatpush1.bf16.msra.mxu1 %v7509_v52  ;;  %7224 = vmatprep.subr.bf16.mxu0 %v7223_v45  ;;  %v4460_v52 = vld [vmem:[#allocation26 + $0xa70] sm:$0xff]  ;;  %v4463_v45 = vld [vmem:[#allocation26 + $0xa88] sm:$0xff] }
0x2b0e   :  { %7512 = vmatprep.subr.bf16.mxu1 %v7511_v25  ;;  %v7241_v25 = vpack.c.bf16 %v4458_v21, %v4454_v47  ;;  %v7529_v11 = vpack.c.bf16 %v4460_v52, %v4456_v60  ;;  %v7243_v53 = vpack.c.bf16 %v4467_v12, %v4463_v45  ;;  %v4499_v47 = vld [vmem:[#allocation26 + $0xba8] sm:$0xff]  ;;  %v4497_v21 = vld [vmem:[#allocation26 + $0xb98] sm:$0xff]  ;;  %v4494_v12 = vld [vmem:[#allocation26 + $0xb80] sm:$0xff] }
0x2b0f   :  { %v4501_v60 = vld [vmem:[#allocation26 + $0xbb8] sm:$0xff] }
0x2b10   :  { %7226 = vmatpush1.bf16.msra.mxu0 %v7225_v51  ;;  %v7531_v51 = vpack.c.bf16 %v4469_v13, %v4465_v58  ;;  %v4498_v58 = vld [vmem:[#allocation26 + $0xba0] sm:$0xff]  ;;  %v4496_v13 = vld [vmem:[#allocation26 + $0xb90] sm:$0xff] }
0x2b11   :  { %7514 = vmatpush1.bf16.msra.mxu1 %v7513_v48  ;;  %7228 = vmatprep.subr.bf16.mxu0 %v7227_v57  ;;  %v4468_v48 = vld [vmem:[#allocation26 + $0xab0] sm:$0xff]  ;;  %v4471_v57 = vld [vmem:[#allocation26 + $0xac8] sm:$0xff] }
0x2b12   :  { %7516 = vmatprep.subr.bf16.mxu1 %v7515_v19  ;;  %v7245_v19 = vpack.c.bf16 %v4466_v54, %v4462_v42  ;;  %v7533_v38 = vpack.c.bf16 %v4468_v48, %v4464_v32  ;;  %v7247_v63 = vpack.c.bf16 %v4475_v59, %v4471_v57  ;;  %v4507_v42 = vld [vmem:[#allocation26 + $0xbe8] sm:$0xff]  ;;  %v4505_v54 = vld [vmem:[#allocation26 + $0xbd8] sm:$0xff]  ;;  %v4502_v59 = vld [vmem:[#allocation26 + $0xbc0] sm:$0xff] }
0x2b13   :  { %v4509_v32 = vld [vmem:[#allocation26 + $0xbf8] sm:$0xff] }
0x2b14   :  { %7230 = vmatpush1.bf16.msra.mxu0 %v7229_v18  ;;  %v7535_v18 = vpack.c.bf16 %v4477_v40, %v4473_v56  ;;  %v4506_v56 = vld [vmem:[#allocation26 + $0xbe0] sm:$0xff]  ;;  %v4504_v40 = vld [vmem:[#allocation26 + $0xbd0] sm:$0xff] }
0x2b15   :  { %7518 = vmatpush1.bf16.msra.mxu1 %v7517_v26  ;;  %7232 = vmatprep.subr.bf16.mxu0 %v7231_v43  ;;  %v4476_v26 = vld [vmem:[#allocation26 + $0xaf0] sm:$0xff]  ;;  %v4479_v43 = vld [vmem:[#allocation26 + $0xb08] sm:$0xff] }
0x2b16   :  { %7520 = vmatprep.subr.bf16.mxu1 %v7519_v17  ;;  %v7249_v17 = vpack.c.bf16 %v4474_v9, %v4470_v15  ;;  %v7537_v44 = vpack.c.bf16 %v4476_v26, %v4472_v4  ;;  %v7251_v2 = vpack.c.bf16 %v4483_v1, %v4479_v43  ;;  %v4515_v15 = vld [vmem:[#allocation26 + $0xc28] sm:$0xff]  ;;  %v4513_v9 = vld [vmem:[#allocation26 + $0xc18] sm:$0xff]  ;;  %v4510_v1 = vld [vmem:[#allocation26 + $0xc00] sm:$0xff] }
0x2b17   :  { %v4517_v4 = vld [vmem:[#allocation26 + $0xc38] sm:$0xff] }
0x2b18   :  { %7234 = vmatpush1.bf16.msra.mxu0 %v7233_v61  ;;  %v7539_v61 = vpack.c.bf16 %v4485_v27, %v4481_v49  ;;  %v4514_v49 = vld [vmem:[#allocation26 + $0xc20] sm:$0xff]  ;;  %v7555_v27 = vpack.c.bf16 %v4517_v4, %v4513_v9  ;;  %v4548_v4 = vld [vmem:[#allocation26 + $0xd30] sm:$0xff] }
0x2b19   :  { %7522 = vmatpush1.bf16.msra.mxu1 %v7521_v37  ;;  %7236 = vmatprep.subr.bf16.mxu0 %v7235_v30  ;;  %v4484_v37 = vld [vmem:[#allocation26 + $0xb30] sm:$0xff]  ;;  %v4487_v30 = vld [vmem:[#allocation26 + $0xb48] sm:$0xff] }
0x2b1a   :  { %7524 = vmatprep.subr.bf16.mxu1 %v7523_v31  ;;  %v7253_v31 = vpack.c.bf16 %v4482_v62, %v4478_v24  ;;  %v7541_v16 = vpack.c.bf16 %v4484_v37, %v4480_v39  ;;  %v7255_v7 = vpack.c.bf16 %v4491_v50, %v4487_v30  ;;  %v4523_v24 = vld [vmem:[#allocation26 + $0xc68] sm:$0xff]  ;;  %v7269_v62 = vpack.c.bf16 %v4514_v49, %v4510_v1  ;;  %v4521_v39 = vld [vmem:[#allocation26 + $0xc58] sm:$0xff]  ;;  %v4518_v30 = vld [vmem:[#allocation26 + $0xc40] sm:$0xff] }
0x2b1b   :  { %v4522_v50 = vld [vmem:[#allocation26 + $0xc60] sm:$0xff]  ;;  %v4557_v1 = vld [vmem:[#allocation26 + $0xd78] sm:$0xff] }
0x2b1c   :  { %7238 = vmatpush1.bf16.msra.mxu0 %v7237_v35  ;;  %v7543_v35 = vpack.c.bf16 %v4493_v28, %v4489_v20  ;;  %v4520_v20 = vld [vmem:[#allocation26 + $0xc50] sm:$0xff] }
0x2b1d   :  { %7526 = vmatpush1.bf16.msra.mxu1 %v7525_v10  ;;  %7240 = vmatprep.subr.bf16.mxu0 %v7239_v33  ;;  %v4492_v10 = vld [vmem:[#allocation26 + $0xb70] sm:$0xff]  ;;  %v4495_v33 = vld [vmem:[#allocation26 + $0xb88] sm:$0xff] }
0x2b1e   :  { %7528 = vmatprep.subr.bf16.mxu1 %v7527_v23  ;;  %v7257_v23 = vpack.c.bf16 %v4490_v22, %v4486_v6  ;;  %v7545_v52 = vpack.c.bf16 %v4492_v10, %v4488_v14  ;;  %v7259_v45 = vpack.c.bf16 %v4499_v47, %v4495_v33  ;;  %v4529_v22 = vld [vmem:[#allocation26 + $0xc98] sm:$0xff]  ;;  %v4526_v47 = vld [vmem:[#allocation26 + $0xc80] sm:$0xff] }
0x2b1f   :  { %v4533_v14 = vld [vmem:[#allocation26 + $0xcb8] sm:$0xff] }
0x2b20   :  { %7242 = vmatpush1.bf16.msra.mxu0 %v7241_v25  ;;  %v7547_v25 = vpack.c.bf16 %v4501_v60, %v4497_v21  ;;  %v4530_v21 = vld [vmem:[#allocation26 + $0xca0] sm:$0xff]  ;;  %v4528_v60 = vld [vmem:[#allocation26 + $0xc90] sm:$0xff] }
0x2b21   :  { %7530 = vmatpush1.bf16.msra.mxu1 %v7529_v11  ;;  %7244 = vmatprep.subr.bf16.mxu0 %v7243_v53  ;;  %v4500_v11 = vld [vmem:[#allocation26 + $0xbb0] sm:$0xff]  ;;  %v4503_v53 = vld [vmem:[#allocation26 + $0xbc8] sm:$0xff] }
0x2b22   :  { %7532 = vmatprep.subr.bf16.mxu1 %v7531_v51  ;;  %v7261_v51 = vpack.c.bf16 %v4498_v58, %v4494_v12  ;;  %v7549_v48 = vpack.c.bf16 %v4500_v11, %v4496_v13  ;;  %v7263_v57 = vpack.c.bf16 %v4507_v42, %v4503_v53  ;;  %v4539_v12 = vld [vmem:[#allocation26 + $0xce8] sm:$0xff]  ;;  %v4537_v58 = vld [vmem:[#allocation26 + $0xcd8] sm:$0xff]  ;;  %v7277_v13 = vpack.c.bf16 %v4530_v21, %v4526_v47  ;;  %v4534_v53 = vld [vmem:[#allocation26 + $0xcc0] sm:$0xff] }
0x2b23   :  { %v4538_v42 = vld [vmem:[#allocation26 + $0xce0] sm:$0xff]  ;;  %v4573_v47 = vld [vmem:[#allocation26 + $0xdf8] sm:$0xff] }
0x2b24   :  { %7246 = vmatpush1.bf16.msra.mxu0 %v7245_v19  ;;  %v7551_v19 = vpack.c.bf16 %v4509_v32, %v4505_v54  ;;  %v4536_v54 = vld [vmem:[#allocation26 + $0xcd0] sm:$0xff] }
0x2b25   :  { %7534 = vmatpush1.bf16.msra.mxu1 %v7533_v38  ;;  %7248 = vmatprep.subr.bf16.mxu0 %v7247_v63  ;;  %v4508_v38 = vld [vmem:[#allocation26 + $0xbf0] sm:$0xff]  ;;  %v4511_v63 = vld [vmem:[#allocation26 + $0xc08] sm:$0xff] }
0x2b26   :  { %7536 = vmatprep.subr.bf16.mxu1 %v7535_v18  ;;  %v7265_v18 = vpack.c.bf16 %v4506_v56, %v4502_v59  ;;  %v7553_v26 = vpack.c.bf16 %v4508_v38, %v4504_v40  ;;  %v7267_v43 = vpack.c.bf16 %v4515_v15, %v4511_v63  ;;  %v4549_v59 = vld [vmem:[#allocation26 + $0xd38] sm:$0xff]  ;;  %v7281_v56 = vpack.c.bf16 %v4538_v42, %v4534_v53  ;;  %v4542_v38 = vld [vmem:[#allocation26 + $0xd00] sm:$0xff]  ;;  %v4544_v15 = vld [vmem:[#allocation26 + $0xd10] sm:$0xff] }
0x2b27   :  { %v4546_v63 = vld [vmem:[#allocation26 + $0xd20] sm:$0xff]  ;;  %v4581_v53 = vld [vmem:[#allocation26 + $0xe38] sm:$0xff] }
0x2b28   :  { %7250 = vmatpush1.bf16.msra.mxu0 %v7249_v17  ;;  %v4512_v17 = vld [vmem:[#allocation26 + $0xc10] sm:$0xff]  ;;  %v7285_v49 = vpack.c.bf16 %v4546_v63, %v4542_v38  ;;  %v4589_v38 = vld [vmem:[#allocation26 + $0xe78] sm:$0xff] }
0x2b29   :  { %7538 = vmatpush1.bf16.msra.mxu1 %v7537_v44  ;;  %7252 = vmatprep.subr.bf16.mxu0 %v7251_v2  ;;  %v4516_v44 = vld [vmem:[#allocation26 + $0xc30] sm:$0xff]  ;;  %v4519_v2 = vld [vmem:[#allocation26 + $0xc48] sm:$0xff] }
0x2b2a   :  { %7540 = vmatprep.subr.bf16.mxu1 %v7539_v61  ;;  %v4525_v61 = vld [vmem:[#allocation26 + $0xc78] sm:$0xff]  ;;  %v7557_v37 = vpack.c.bf16 %v4516_v44, %v4512_v17  ;;  %v7271_v28 = vpack.c.bf16 %v4523_v24, %v4519_v2  ;;  %v4550_v44 = vld [vmem:[#allocation26 + $0xd40] sm:$0xff]  ;;  %v4552_v24 = vld [vmem:[#allocation26 + $0xd50] sm:$0xff] }
0x2b2b   :  { %v7559_v6 = vpack.c.bf16 %v4525_v61, %v4521_v39  ;;  %v4554_v2 = vld [vmem:[#allocation26 + $0xd60] sm:$0xff]  ;;  %v4556_v39 = vld [vmem:[#allocation26 + $0xd70] sm:$0xff]  ;;  %v4559_v61 = vld [vmem:[#allocation26 + $0xd88] sm:$0xff] }
0x2b2c   :  { %7254 = vmatpush1.bf16.msra.mxu0 %v7253_v31  ;;  %v4524_v31 = vld [vmem:[#allocation26 + $0xc70] sm:$0xff] }
0x2b2d   :  { %7542 = vmatpush1.bf16.msra.mxu1 %v7541_v16  ;;  %7256 = vmatprep.subr.bf16.mxu0 %v7255_v7  ;;  %v4527_v16 = vld [vmem:[#allocation26 + $0xc88] sm:$0xff]  ;;  %v7561_v10 = vpack.c.bf16 %v4524_v31, %v4520_v20  ;;  %v7289_v20 = vpack.c.bf16 %v4554_v2, %v4550_v44  ;;  %v4597_v44 = vld [vmem:[#allocation26 + $0xeb8] sm:$0xff] }
0x2b2e   :  { %7544 = vmatprep.subr.bf16.mxu1 %v7543_v35  ;;  %v4531_v7 = vld [vmem:[#allocation26 + $0xca8] sm:$0xff]  ;;  %v7273_v35 = vpack.c.bf16 %v4522_v50, %v4518_v30  ;;  %v4561_v30 = vld [vmem:[#allocation26 + $0xd98] sm:$0xff] }
0x2b2f   :  { %v7275_v33 = vpack.c.bf16 %v4531_v7, %v4527_v16  ;;  %v4565_v50 = vld [vmem:[#allocation26 + $0xdb8] sm:$0xff]  ;;  %v4558_v16 = vld [vmem:[#allocation26 + $0xd80] sm:$0xff] }
0x2b30   :  { %7258 = vmatpush1.bf16.msra.mxu0 %v7257_v23  ;;  %v7563_v23 = vpack.c.bf16 %v4533_v14, %v4529_v22  ;;  %v4562_v7 = vld [vmem:[#allocation26 + $0xda0] sm:$0xff]  ;;  %v7579_v22 = vpack.c.bf16 %v4565_v50, %v4561_v30  ;;  %v4564_v14 = vld [vmem:[#allocation26 + $0xdb0] sm:$0xff] }
0x2b31   :  { %7546 = vmatpush1.bf16.msra.mxu1 %v7545_v52  ;;  %7260 = vmatprep.subr.bf16.mxu0 %v7259_v45  ;;  %v4532_v52 = vld [vmem:[#allocation26 + $0xcb0] sm:$0xff]  ;;  %v4535_v45 = vld [vmem:[#allocation26 + $0xcc8] sm:$0xff]  ;;  %v7293_v21 = vpack.c.bf16 %v4562_v7, %v4558_v16  ;;  %v4605_v16 = vld [vmem:[#allocation26 + $0xef8] sm:$0xff] }
0x2b32   :  { %7548 = vmatprep.subr.bf16.mxu1 %v7547_v25  ;;  %v7565_v25 = vpack.c.bf16 %v4532_v52, %v4528_v60  ;;  %v7279_v11 = vpack.c.bf16 %v4539_v12, %v4535_v45  ;;  %v4566_v52 = vld [vmem:[#allocation26 + $0xdc0] sm:$0xff]  ;;  %v4568_v12 = vld [vmem:[#allocation26 + $0xdd0] sm:$0xff] }
0x2b33   :  { %v4570_v45 = vld [vmem:[#allocation26 + $0xde0] sm:$0xff]  ;;  %v4596_v50 = vld [vmem:[#allocation26 + $0xeb0] sm:$0xff] }
0x2b34   :  { %7262 = vmatpush1.bf16.msra.mxu0 %v7261_v51  ;;  %v4543_v51 = vld [vmem:[#allocation26 + $0xd08] sm:$0xff]  ;;  %v7297_v42 = vpack.c.bf16 %v4570_v45, %v4566_v52  ;;  %v4613_v52 = vld [vmem:[#allocation26 + $0xf38] sm:$0xff] }
0x2b35   :  { %7550 = vmatpush1.bf16.msra.mxu1 %v7549_v48  ;;  %7264 = vmatprep.subr.bf16.mxu0 %v7263_v57  ;;  %v4547_v48 = vld [vmem:[#allocation26 + $0xd28] sm:$0xff]  ;;  %v4545_v57 = vld [vmem:[#allocation26 + $0xd18] sm:$0xff] }
0x2b36   :  { %7552 = vmatprep.subr.bf16.mxu1 %v7551_v19  ;;  %v7283_v19 = vpack.c.bf16 %v4547_v48, %v4543_v51  ;;  %v7571_v9 = vpack.c.bf16 %v4549_v59, %v4545_v57  ;;  %v4578_v51 = vld [vmem:[#allocation26 + $0xe20] sm:$0xff]  ;;  %v4576_v48 = vld [vmem:[#allocation26 + $0xe10] sm:$0xff] }
0x2b37   :  { %v4580_v59 = vld [vmem:[#allocation26 + $0xe30] sm:$0xff] }
0x2b38   :  { %7266 = vmatpush1.bf16.msra.mxu0 %v7265_v18  ;;  %v4551_v18 = vld [vmem:[#allocation26 + $0xd48] sm:$0xff] }
0x2b39   :  { %7554 = vmatpush1.bf16.msra.mxu1 %v7553_v26  ;;  %7268 = vmatprep.subr.bf16.mxu0 %v7267_v43  ;;  %v4555_v26 = vld [vmem:[#allocation26 + $0xd68] sm:$0xff]  ;;  %v4553_v43 = vld [vmem:[#allocation26 + $0xd58] sm:$0xff] }
0x2b3a   :  { %7556 = vmatprep.subr.bf16.mxu1 %v7555_v27  ;;  %v7573_v27 = vpack.c.bf16 %v4548_v4, %v4544_v15  ;;  %v7287_v17 = vpack.c.bf16 %v4555_v26, %v4551_v18  ;;  %v7589_v15 = vpack.c.bf16 %v4580_v59, %v4576_v48  ;;  %v4582_v4 = vld [vmem:[#allocation26 + $0xe40] sm:$0xff]  ;;  %v4584_v26 = vld [vmem:[#allocation26 + $0xe50] sm:$0xff] }
0x2b3b   :  { %4931 = vmatmul.mubr.f32.vlgmr.msra.gmra.mrb[20].mxu0 %v9736_v55  ;;  %v4586_v18 = vld [vmem:[#allocation26 + $0xe60] sm:$0xff] }
0x2b3c   :  { %5286 = vmatmul.mubr.f32.vlgmr.msra.gmra.mrb[24].mxu1 %v9736_v55  ;;  %7270 = vmatpush1.bf16.msra.mxu0 %v7269_v62  ;;  %v4541_v55 = vld [vmem:[#allocation26 + $0xcf8] sm:$0xff]  ;;  %v7575_v62 = vpack.c.bf16 %v4557_v1, %v4553_v43  ;;  %v4588_v1 = vld [vmem:[#allocation26 + $0xe70] sm:$0xff]  ;;  %v7305_v2 = vpack.c.bf16 %v4586_v18, %v4582_v4  ;;  %v4614_v59 = vld [vmem:[#allocation26 + $0xf40] sm:$0xff] }
0x2b3d   :  { %5001 = vmatprep.mubr.f32.mxu0 %v9738_v46  ;;  %7558 = vmatpush1.bf16.msra.mxu1 %v7557_v37  ;;  %v7567_v32 = vpack.c.bf16 %v4541_v55, %v4537_v58  ;;  %v4563_v37 = vld [vmem:[#allocation26 + $0xda8] sm:$0xff]  ;;  %v4572_v55 = vld [vmem:[#allocation26 + $0xdf0] sm:$0xff]  ;;  %v4629_v4 = vld [vmem:[#allocation26 + $0xfb8] sm:$0xff] }
0x2b3e   :  { %5356 = vmatprep.mubr.f32.mxu1 %v9738_v46  ;;  %7272 = vmatprep.subr.bf16.mxu0 %v7271_v28  ;;  %v4540_v46 = vld [vmem:[#allocation26 + $0xcf0] sm:$0xff]  ;;  %v7577_v28 = vpack.c.bf16 %v4556_v39, %v4552_v24  ;;  %v7291_v31 = vpack.c.bf16 %v4563_v37, %v4559_v61  ;;  %v7593_v24 = vpack.c.bf16 %v4588_v1, %v4584_v26  ;;  %v4590_v39 = vld [vmem:[#allocation26 + $0xe80] sm:$0xff] }
0x2b3f   :  { %7560 = vmatprep.subr.bf16.mxu1 %v7559_v6  ;;  %v7569_v40 = vpack.c.bf16 %v4540_v46, %v4536_v54  ;;  %v4560_v6 = vld [vmem:[#allocation26 + $0xd90] sm:$0xff]  ;;  %v7585_v54 = vpack.c.bf16 %v4572_v55, %v4568_v12  ;;  %v4574_v46 = vld [vmem:[#allocation26 + $0xe00] sm:$0xff] }
0x2b40   :  { %7274 = vmatpush1.bf16.msra.mxu0 %v7273_v35  ;;  %v4567_v35 = vld [vmem:[#allocation26 + $0xdc8] sm:$0xff]  ;;  %v7581_v60 = vpack.c.bf16 %v4564_v14, %v4560_v6  ;;  %v7301_v63 = vpack.c.bf16 %v4578_v51, %v4574_v46  ;;  %v4594_v61 = vld [vmem:[#allocation26 + $0xea0] sm:$0xff]  ;;  %v4592_v37 = vld [vmem:[#allocation26 + $0xe90] sm:$0xff] }
0x2b41   :  { %7562 = vmatpush1.bf16.msra.mxu1 %v7561_v10  ;;  %7276 = vmatprep.subr.bf16.mxu0 %v7275_v33  ;;  %v4571_v10 = vld [vmem:[#allocation26 + $0xde8] sm:$0xff]  ;;  %v4569_v33 = vld [vmem:[#allocation26 + $0xdd8] sm:$0xff]  ;;  %v7309_v7 = vpack.c.bf16 %v4594_v61, %v4590_v39  ;;  %v7597_v6 = vpack.c.bf16 %v4596_v50, %v4592_v37  ;;  %v4598_v14 = vld [vmem:[#allocation26 + $0xec0] sm:$0xff] }
0x2b42   :  { %7564 = vmatprep.subr.bf16.mxu1 %v7563_v23  ;;  %v7295_v23 = vpack.c.bf16 %v4571_v10, %v4567_v35  ;;  %v7583_v58 = vpack.c.bf16 %v4573_v47, %v4569_v33  ;;  %v4602_v35 = vld [vmem:[#allocation26 + $0xee0] sm:$0xff]  ;;  %v4600_v10 = vld [vmem:[#allocation26 + $0xed0] sm:$0xff]  ;;  %v4621_v46 = vld [vmem:[#allocation26 + $0xf78] sm:$0xff] }
0x2b43   :  { %v4604_v47 = vld [vmem:[#allocation26 + $0xef0] sm:$0xff]  ;;  %v7313_v45 = vpack.c.bf16 %v4602_v35, %v4598_v14  ;;  %v4606_v55 = vld [vmem:[#allocation26 + $0xf00] sm:$0xff]  ;;  %v4637_v39 = vld [vmem:[#allocation26 + $0xff8] sm:$0xff] }
0x2b44   :  { %7278 = vmatpush1.bf16.msra.mxu0 %v7277_v13  ;;  %v4575_v13 = vld [vmem:[#allocation26 + $0xe08] sm:$0xff]  ;;  %v7601_v12 = vpack.c.bf16 %v4604_v47, %v4600_v10  ;;  %v4622_v1 = vld [vmem:[#allocation26 + $0xf80] sm:$0xff]  ;;  %v4645_v14 = vld [vmem:[#allocation26 + $0x1038] sm:$0xff] }
0x2b45   :  { %7566 = vmatpush1.bf16.msra.mxu1 %v7565_v25  ;;  %7280 = vmatprep.subr.bf16.mxu0 %v7279_v11  ;;  %v4579_v25 = vld [vmem:[#allocation26 + $0xe28] sm:$0xff]  ;;  %v4577_v11 = vld [vmem:[#allocation26 + $0xe18] sm:$0xff]  ;;  %v4630_v50 = vld [vmem:[#allocation26 + $0xfc0] sm:$0xff] }
0x2b46   :  { %7568 = vmatprep.subr.bf16.mxu1 %v7567_v32  ;;  %v7299_v32 = vpack.c.bf16 %v4579_v25, %v4575_v13  ;;  %v7587_v57 = vpack.c.bf16 %v4581_v53, %v4577_v11  ;;  %v4610_v13 = vld [vmem:[#allocation26 + $0xf20] sm:$0xff]  ;;  %v4608_v25 = vld [vmem:[#allocation26 + $0xf10] sm:$0xff] }
0x2b47   :  { %v4612_v53 = vld [vmem:[#allocation26 + $0xf30] sm:$0xff]  ;;  %v7317_v51 = vpack.c.bf16 %v4610_v13, %v4606_v55  ;;  %v4638_v47 = vld [vmem:[#allocation26 + $0x1000] sm:$0xff]  ;;  %v4653_v55 = vld [vmem:[#allocation26 + $0x1078] sm:$0xff] }
0x2b48   :  { %7282 = vmatpush1.bf16.msra.mxu0 %v7281_v56  ;;  %v4583_v56 = vld [vmem:[#allocation26 + $0xe48] sm:$0xff]  ;;  %v7605_v48 = vpack.c.bf16 %v4612_v53, %v4608_v25  ;;  %v4646_v53 = vld [vmem:[#allocation26 + $0x1040] sm:$0xff] }
0x2b49   :  { %7570 = vmatpush1.bf16.msra.mxu1 %v7569_v40  ;;  %7284 = vmatprep.subr.bf16.mxu0 %v7283_v19  ;;  %v4587_v40 = vld [vmem:[#allocation26 + $0xe68] sm:$0xff]  ;;  %v4585_v19 = vld [vmem:[#allocation26 + $0xe58] sm:$0xff] }
0x2b4a   :  { %7572 = vmatprep.subr.bf16.mxu1 %v7571_v9  ;;  %v7303_v9 = vpack.c.bf16 %v4587_v40, %v4583_v56  ;;  %v7591_v43 = vpack.c.bf16 %v4589_v38, %v4585_v19  ;;  %v4618_v56 = vld [vmem:[#allocation26 + $0xf60] sm:$0xff]  ;;  %v4616_v40 = vld [vmem:[#allocation26 + $0xf50] sm:$0xff] }
0x2b4b   :  { %v4620_v38 = vld [vmem:[#allocation26 + $0xf70] sm:$0xff]  ;;  %v7321_v18 = vpack.c.bf16 %v4618_v56, %v4614_v59  ;;  %v4661_v59 = vld [vmem:[#allocation26 + $0x10b8] sm:$0xff] }
0x2b4c   :  { %7286 = vmatpush1.bf16.msra.mxu0 %v7285_v49  ;;  %v4591_v49 = vld [vmem:[#allocation26 + $0xe88] sm:$0xff]  ;;  %v7609_v26 = vpack.c.bf16 %v4620_v38, %v4616_v40  ;;  %v4654_v38 = vld [vmem:[#allocation26 + $0x1080] sm:$0xff] }
0x2b4d   :  { %7574 = vmatpush1.bf16.msra.mxu1 %v7573_v27  ;;  %7288 = vmatprep.subr.bf16.mxu0 %v7287_v17  ;;  %v4595_v27 = vld [vmem:[#allocation26 + $0xea8] sm:$0xff]  ;;  %v4593_v17 = vld [vmem:[#allocation26 + $0xe98] sm:$0xff] }
0x2b4e   :  { %7576 = vmatprep.subr.bf16.mxu1 %v7575_v62  ;;  %v7307_v62 = vpack.c.bf16 %v4595_v27, %v4591_v49  ;;  %v7595_v30 = vpack.c.bf16 %v4597_v44, %v4593_v17  ;;  %v4626_v49 = vld [vmem:[#allocation26 + $0xfa0] sm:$0xff]  ;;  %v4624_v27 = vld [vmem:[#allocation26 + $0xf90] sm:$0xff] }
0x2b4f   :  { %v4628_v44 = vld [vmem:[#allocation26 + $0xfb0] sm:$0xff]  ;;  %v7325_v61 = vpack.c.bf16 %v4626_v49, %v4622_v1  ;;  %v4669_v1 = vld [vmem:[#allocation26 + $0x10f8] sm:$0xff] }
0x2b50   :  { %7290 = vmatpush1.bf16.msra.mxu0 %v7289_v20  ;;  %v4599_v20 = vld [vmem:[#allocation26 + $0xec8] sm:$0xff]  ;;  %v7613_v37 = vpack.c.bf16 %v4628_v44, %v4624_v27  ;;  %v4666_v44 = vld [vmem:[#allocation26 + $0x10e0] sm:$0xff] }
0x2b51   :  { %7578 = vmatpush1.bf16.msra.mxu1 %v7577_v28  ;;  %7292 = vmatprep.subr.bf16.mxu0 %v7291_v31  ;;  %v4603_v28 = vld [vmem:[#allocation26 + $0xee8] sm:$0xff]  ;;  %v4601_v31 = vld [vmem:[#allocation26 + $0xed8] sm:$0xff] }
0x2b52   :  { %7580 = vmatprep.subr.bf16.mxu1 %v7579_v22  ;;  %v7311_v22 = vpack.c.bf16 %v4603_v28, %v4599_v20  ;;  %v7599_v33 = vpack.c.bf16 %v4605_v16, %v4601_v31  ;;  %v4634_v20 = vld [vmem:[#allocation26 + $0xfe0] sm:$0xff]  ;;  %v4632_v28 = vld [vmem:[#allocation26 + $0xfd0] sm:$0xff] }
0x2b53   :  { %v4636_v16 = vld [vmem:[#allocation26 + $0xff0] sm:$0xff]  ;;  %v7329_v35 = vpack.c.bf16 %v4634_v20, %v4630_v50 }
0x2b54   :  { %7294 = vmatpush1.bf16.msra.mxu0 %v7293_v21  ;;  %v4607_v21 = vld [vmem:[#allocation26 + $0xf08] sm:$0xff]  ;;  %v7617_v10 = vpack.c.bf16 %v4636_v16, %v4632_v28  ;;  %v4674_v16 = vld [vmem:[#allocation26 + $0x1120] sm:$0xff] }
0x2b55   :  { %7582 = vmatpush1.bf16.msra.mxu1 %v7581_v60  ;;  %7296 = vmatprep.subr.bf16.mxu0 %v7295_v23  ;;  %v4611_v60 = vld [vmem:[#allocation26 + $0xf28] sm:$0xff]  ;;  %v4609_v23 = vld [vmem:[#allocation26 + $0xf18] sm:$0xff] }
0x2b56   :  { %7584 = vmatprep.subr.bf16.mxu1 %v7583_v58  ;;  %v7315_v58 = vpack.c.bf16 %v4611_v60, %v4607_v21  ;;  %v7603_v11 = vpack.c.bf16 %v4613_v52, %v4609_v23  ;;  %v4642_v21 = vld [vmem:[#allocation26 + $0x1020] sm:$0xff]  ;;  %v4640_v60 = vld [vmem:[#allocation26 + $0x1010] sm:$0xff] }
0x2b57   :  { %v4644_v52 = vld [vmem:[#allocation26 + $0x1030] sm:$0xff]  ;;  %v7333_v13 = vpack.c.bf16 %v4642_v21, %v4638_v47 }
0x2b58   :  { %7298 = vmatpush1.bf16.msra.mxu0 %v7297_v42  ;;  %v4615_v42 = vld [vmem:[#allocation26 + $0xf48] sm:$0xff]  ;;  %v7621_v25 = vpack.c.bf16 %v4644_v52, %v4640_v60  ;;  %v4682_v52 = vld [vmem:[#allocation26 + $0x1160] sm:$0xff] }
0x2b59   :  { %7586 = vmatpush1.bf16.msra.mxu1 %v7585_v54  ;;  %7300 = vmatprep.subr.bf16.mxu0 %v7299_v32  ;;  %v4619_v54 = vld [vmem:[#allocation26 + $0xf68] sm:$0xff]  ;;  %v4617_v32 = vld [vmem:[#allocation26 + $0xf58] sm:$0xff] }
0x2b5a   :  { %7588 = vmatprep.subr.bf16.mxu1 %v7587_v57  ;;  %v7319_v57 = vpack.c.bf16 %v4619_v54, %v4615_v42  ;;  %v7607_v19 = vpack.c.bf16 %v4621_v46, %v4617_v32  ;;  %v4650_v42 = vld [vmem:[#allocation26 + $0x1060] sm:$0xff]  ;;  %v4648_v54 = vld [vmem:[#allocation26 + $0x1050] sm:$0xff] }
0x2b5b   :  { %v4652_v46 = vld [vmem:[#allocation26 + $0x1070] sm:$0xff]  ;;  %v7337_v56 = vpack.c.bf16 %v4650_v42, %v4646_v53 }
0x2b5c   :  { %7302 = vmatpush1.bf16.msra.mxu0 %v7301_v63  ;;  %v4623_v63 = vld [vmem:[#allocation26 + $0xf88] sm:$0xff]  ;;  %v7625_v40 = vpack.c.bf16 %v4652_v46, %v4648_v54  ;;  %v4690_v46 = vld [vmem:[#allocation26 + $0x11a0] sm:$0xff] }
0x2b5d   :  { %7590 = vmatpush1.bf16.msra.mxu1 %v7589_v15  ;;  %7304 = vmatprep.subr.bf16.mxu0 %v7303_v9  ;;  %v4627_v15 = vld [vmem:[#allocation26 + $0xfa8] sm:$0xff]  ;;  %v4625_v9 = vld [vmem:[#allocation26 + $0xf98] sm:$0xff] }
0x2b5e   :  { %7592 = vmatprep.subr.bf16.mxu1 %v7591_v43  ;;  %v7323_v43 = vpack.c.bf16 %v4627_v15, %v4623_v63  ;;  %v7611_v17 = vpack.c.bf16 %v4629_v4, %v4625_v9  ;;  %v4658_v63 = vld [vmem:[#allocation26 + $0x10a0] sm:$0xff]  ;;  %v4656_v15 = vld [vmem:[#allocation26 + $0x1090] sm:$0xff] }
0x2b5f   :  { %v4660_v4 = vld [vmem:[#allocation26 + $0x10b0] sm:$0xff] }
0x2b60   :  { %7306 = vmatpush1.bf16.msra.mxu0 %v7305_v2  ;;  %v4631_v2 = vld [vmem:[#allocation26 + $0xfc8] sm:$0xff]  ;;  %v7629_v49 = vpack.c.bf16 %v4660_v4, %v4656_v15  ;;  %v4698_v4 = vld [vmem:[#allocation26 + $0x11e0] sm:$0xff] }
0x2b61   :  { %7594 = vmatpush1.bf16.msra.mxu1 %v7593_v24  ;;  %7308 = vmatprep.subr.bf16.mxu0 %v7307_v62  ;;  %v4635_v24 = vld [vmem:[#allocation26 + $0xfe8] sm:$0xff]  ;;  %v4633_v62 = vld [vmem:[#allocation26 + $0xfd8] sm:$0xff] }
0x2b62   :  { %7596 = vmatprep.subr.bf16.mxu1 %v7595_v30  ;;  %v7327_v30 = vpack.c.bf16 %v4635_v24, %v4631_v2  ;;  %v7615_v31 = vpack.c.bf16 %v4637_v39, %v4633_v62  ;;  %v4664_v2 = vld [vmem:[#allocation26 + $0x10d0] sm:$0xff]  ;;  %v4671_v39 = vld [vmem:[#allocation26 + $0x1108] sm:$0xff] }
0x2b63   :  { %v4668_v62 = vld [vmem:[#allocation26 + $0x10f0] sm:$0xff] }
0x2b64   :  { %7310 = vmatpush1.bf16.msra.mxu0 %v7309_v7  ;;  %v4639_v7 = vld [vmem:[#allocation26 + $0x1008] sm:$0xff]  ;;  %v7633_v20 = vpack.c.bf16 %v4668_v62, %v4664_v2  ;;  %v4702_v2 = vld [vmem:[#allocation27] sm:$0xf] }
0x2b65   :  { %7598 = vmatpush1.bf16.msra.mxu1 %v7597_v6  ;;  %7312 = vmatprep.subr.bf16.mxu0 %v7311_v22  ;;  %v4643_v6 = vld [vmem:[#allocation26 + $0x1028] sm:$0xff]  ;;  %v4641_v22 = vld [vmem:[#allocation26 + $0x1018] sm:$0xff]  ;;  %v4715_v62 = vrot.slane %v4702_v2, %v9576_v5 }
0x2b66   :  { %7600 = vmatprep.subr.bf16.mxu1 %v7599_v33  ;;  %v7331_v33 = vpack.c.bf16 %v4643_v6, %v4639_v7  ;;  %v7619_v23 = vpack.c.bf16 %v4645_v14, %v4641_v22  ;;  %v4672_v7 = vld [vmem:[#allocation26 + $0x1110] sm:$0xff]  ;;  %v4679_v14 = vld [vmem:[#allocation26 + $0x1148] sm:$0xff] }
0x2b67   :  { %v4676_v22 = vld [vmem:[#allocation26 + $0x1130] sm:$0xff] }
0x2b68   :  { %7314 = vmatpush1.bf16.msra.mxu0 %v7313_v45  ;;  %v4647_v45 = vld [vmem:[#allocation26 + $0x1048] sm:$0xff]  ;;  %v7637_v21 = vpack.c.bf16 %v4676_v22, %v4672_v7 }
0x2b69   :  { %7602 = vmatpush1.bf16.msra.mxu1 %v7601_v12  ;;  %7316 = vmatprep.subr.bf16.mxu0 %v7315_v58  ;;  %v4651_v12 = vld [vmem:[#allocation26 + $0x1068] sm:$0xff]  ;;  %v4649_v58 = vld [vmem:[#allocation26 + $0x1058] sm:$0xff] }
0x2b6a   :  { %7604 = vmatprep.subr.bf16.mxu1 %v7603_v11  ;;  %v7335_v11 = vpack.c.bf16 %v4651_v12, %v4647_v45  ;;  %v7623_v32 = vpack.c.bf16 %v4653_v55, %v4649_v58  ;;  %v4680_v45 = vld [vmem:[#allocation26 + $0x1150] sm:$0xff]  ;;  %v4687_v55 = vld [vmem:[#allocation26 + $0x1188] sm:$0xff] }
0x2b6b   :  { %v4684_v58 = vld [vmem:[#allocation26 + $0x1170] sm:$0xff] }
0x2b6c   :  { %7318 = vmatpush1.bf16.msra.mxu0 %v7317_v51  ;;  %v4655_v51 = vld [vmem:[#allocation26 + $0x1088] sm:$0xff]  ;;  %v7641_v42 = vpack.c.bf16 %v4684_v58, %v4680_v45 }
0x2b6d   :  { %7606 = vmatpush1.bf16.msra.mxu1 %v7605_v48  ;;  %7320 = vmatprep.subr.bf16.mxu0 %v7319_v57  ;;  %v4659_v48 = vld [vmem:[#allocation26 + $0x10a8] sm:$0xff]  ;;  %v4657_v57 = vld [vmem:[#allocation26 + $0x1098] sm:$0xff] }
0x2b6e   :  { %7608 = vmatprep.subr.bf16.mxu1 %v7607_v19  ;;  %v7339_v19 = vpack.c.bf16 %v4659_v48, %v4655_v51  ;;  %v7627_v9 = vpack.c.bf16 %v4661_v59, %v4657_v57  ;;  %v4688_v51 = vld [vmem:[#allocation26 + $0x1190] sm:$0xff]  ;;  %v4695_v59 = vld [vmem:[#allocation26 + $0x11c8] sm:$0xff] }
0x2b6f   :  { %v4692_v57 = vld [vmem:[#allocation26 + $0x11b0] sm:$0xff] }
0x2b70   :  { %7322 = vmatpush1.bf16.msra.mxu0 %v7321_v18  ;;  %v4663_v18 = vld [vmem:[#allocation26 + $0x10c8] sm:$0xff] }
0x2b71   :  { %7610 = vmatpush1.bf16.msra.mxu1 %v7609_v26  ;;  %7324 = vmatprep.subr.bf16.mxu0 %v7323_v43  ;;  %v4667_v26 = vld [vmem:[#allocation26 + $0x10e8] sm:$0xff]  ;;  %v4665_v43 = vld [vmem:[#allocation26 + $0x10d8] sm:$0xff] }
0x2b72   :  { %7612 = vmatprep.subr.bf16.mxu1 %v7611_v17  ;;  %v7343_v27 = vpack.c.bf16 %v4667_v26, %v4663_v18  ;;  %v4662_v17 = vld [vmem:[#allocation26 + $0x10c0] sm:$0xff]  ;;  %v7631_v24 = vpack.c.bf16 %v4669_v1, %v4665_v43  ;;  %v4696_v26 = vld [vmem:[#allocation26 + $0x11d0] sm:$0xff] }
0x2b73   :  { %v7345_v50 = vpack.c.bf16 %v4666_v44, %v4662_v17  ;;  %v4700_v43 = vld [vmem:[#allocation26 + $0x11f0] sm:$0xff]  ;;  %v6044_v17 = vld [vmem:[#allocation24 + $0x8] ss:$0 sm:$0xff] }
0x2b74   :  { %7326 = vmatpush1.bf16.msra.mxu0 %v7325_v61  ;;  %v4675_v61 = vld [vmem:[#allocation26 + $0x1128] sm:$0xff]  ;;  %v6043_v1 = vld [vmem:[#allocation23 + $0x8] ss:$0 sm:$0xff] }
0x2b75   :  { %7614 = vmatpush1.bf16.msra.mxu1 %v7613_v37  ;;  %7328 = vmatprep.subr.bf16.mxu0 %v7327_v30  ;;  %v4673_v37 = vld [vmem:[#allocation26 + $0x1118] sm:$0xff]  ;;  %v7347_v28 = vpack.c.bf16 %v4675_v61, %v4671_v39  ;;  %v4711_v39 = vrot.slane %v4702_v2, %v9107_v34  ;;  %v5517_v45 = vld [vmem:[#allocation32] sm:$0xff] }
0x2b76   :  { %7616 = vmatprep.subr.bf16.mxu1 %v7615_v31  ;;  %v4677_v30 = vld [vmem:[#allocation26 + $0x1138] sm:$0xff]  ;;  %v4670_v31 = vld [vmem:[#allocation26 + $0x1100] sm:$0xff] }
0x2b77   :  { %v7635_v6 = vpack.c.bf16 %v4677_v30, %v4673_v37  ;;  %v7349_v47 = vpack.c.bf16 %v4674_v16, %v4670_v31  ;;  %v4719_v37 = vrot.slane %v4702_v2, %v9581_v3 }
0x2b78   :  { %7330 = vmatpush1.bf16.msra.mxu0 %v7329_v35  ;;  %v4683_v35 = vld [vmem:[#allocation26 + $0x1168] sm:$0xff] }
0x2b79   :  { %7618 = vmatpush1.bf16.msra.mxu1 %v7617_v10  ;;  %7332 = vmatprep.subr.bf16.mxu0 %v7331_v33  ;;  %v4681_v10 = vld [vmem:[#allocation26 + $0x1158] sm:$0xff]  ;;  %v7351_v60 = vpack.c.bf16 %v4683_v35, %v4679_v14 }
0x2b7a   :  { %7620 = vmatprep.subr.bf16.mxu1 %v7619_v23  ;;  %v4685_v33 = vld [vmem:[#allocation26 + $0x1178] sm:$0xff]  ;;  %v4678_v23 = vld [vmem:[#allocation26 + $0x1140] sm:$0xff] }
0x2b7b   :  { %5002 = vmatmul.mubr.f32.vlgmr.msra.gmra.mrb[20].mxu0 %v9746_v29  ;;  %v7639_v12 = vpack.c.bf16 %v4685_v33, %v4681_v10  ;;  %v7353_v53 = vpack.c.bf16 %v4682_v52, %v4678_v23  ;;  %v5566_v52 = vld [vmem:[#allocation32 + $0x188] sm:$0xff] }
0x2b7c   :  { %5357 = vmatmul.mubr.f32.vlgmr.msra.gmra.mrb[24].mxu1 %v9746_v29  ;;  %7334 = vmatpush1.bf16.msra.mxu0 %v7333_v13  ;;  %v7341_v29 = vpack.c.bf16 %v4658_v63, %v4654_v38  ;;  %v4691_v13 = vld [vmem:[#allocation26 + $0x11a8] sm:$0xff]  ;;  %v7645_v63 = vpack.c.bf16 %v4692_v57, %v4688_v51 }
0x2b7d   :  { %7622 = vmatpush1.bf16.msra.mxu1 %v7621_v25  ;;  %7336 = vmatprep.subr.bf16.mxu0 %v7335_v11  ;;  %v4689_v25 = vld [vmem:[#allocation26 + $0x1198] sm:$0xff]  ;;  %v7355_v54 = vpack.c.bf16 %v4691_v13, %v4687_v55  ;;  %v5549_v13 = vld [vmem:[#allocation32 + $0x100] sm:$0xff]  ;;  %v5520_v57 = vld [vmem:[#allocation32 + $0x18] sm:$0xff] }
0x2b7e   :  { %7624 = vmatprep.subr.bf16.mxu1 %v7623_v32  ;;  %5072 = vmatprep.mubr.f32.mxu0 %v8752_v0  ;;  %v4693_v11 = vld [vmem:[#allocation26 + $0x11b8] sm:$0xff]  ;;  %v4686_v32 = vld [vmem:[#allocation26 + $0x1180] sm:$0xff] }
0x2b7f   :  { %5427 = vmatprep.mubr.f32.mxu1 %v8752_v0  ;;  %v7643_v48 = vpack.c.bf16 %v4693_v11, %v4689_v25  ;;  %v7357_v38 = vpack.c.bf16 %v4690_v46, %v4686_v32  ;;  %v5550_v25 = vld [vmem:[#allocation32 + $0x108] sm:$0xff]  ;;  %v5535_v11 = vld [vmem:[#allocation32 + $0x90] sm:$0xff]  ;;  %v5568_v32 = vld [vmem:[#allocation32 + $0x198] sm:$0xff] }
0x2b80   :  { %7338 = vmatpush1.bf16.msra.mxu0 %v7337_v56  ;;  %v4699_v56 = vld [vmem:[#allocation26 + $0x11e8] sm:$0xff] }
0x2b81   :  { %7626 = vmatpush1.bf16.msra.mxu1 %v7625_v40  ;;  %7340 = vmatprep.subr.bf16.mxu0 %v7339_v19  ;;  %v4697_v40 = vld [vmem:[#allocation26 + $0x11d8] sm:$0xff]  ;;  %v7359_v15 = vpack.c.bf16 %v4699_v56, %v4695_v59 }
0x2b82   :  { %7628 = vmatprep.subr.bf16.mxu1 %v7627_v9  ;;  %v4701_v19 = vld [vmem:[#allocation26 + $0x11f8] sm:$0xff]  ;;  %v4694_v9 = vld [vmem:[#allocation26 + $0x11c0] sm:$0xff] }
0x2b83   :  { %v7647_v18 = vpack.c.bf16 %v4701_v19, %v4697_v40  ;;  %v5551_v59 = vld [vmem:[#allocation32 + $0x110] sm:$0xff]  ;;  %v5552_v40 = vld [vmem:[#allocation32 + $0x118] sm:$0xff]  ;;  %v5537_v19 = vld [vmem:[#allocation32 + $0xa0] sm:$0xff] }
0x2b84   :  { %7342 = vmatpush1.bf16.msra.mxu0 %v7341_v29  ;;  %v7361_v29 = vpack.c.bf16 %v4698_v4, %v4694_v9  ;;  %v5569_v9 = vld [vmem:[#allocation32 + $0x1a0] sm:$0xff]  ;;  %v5570_v4 = vld [vmem:[#allocation32 + $0x1a8] sm:$0xff] }
0x2b85   :  { %7630 = vmatpush1.bf16.msra.mxu1 %v7629_v49  ;;  %7344 = vmatprep.subr.bf16.mxu0 %v7343_v27  ;;  %v7649_v49 = vpack.c.bf16 %v4700_v43, %v4696_v26  ;;  %v4067_v27 = vmul.f32 %v6043_v1, %v9734_v36  ;;  %v7691_v26 = vpack.c.bf16 %v5570_v4, %v5569_v9  ;;  %v5522_v43 = vld [vmem:[#allocation32 + $0x28] sm:$0xff]  ;;  %v5553_v1 = vld [vmem:[#allocation32 + $0x120] sm:$0xff] }
0x2b86   :  { %7632 = vmatprep.subr.bf16.mxu1 %v7631_v24  ;;  %v4707_v24 = vrot.slane %v4702_v2, %v9115_v41  ;;  %v5546_v9 = vld [vmem:[#allocation32 + $0xe8] sm:$0xff]  ;;  %v5577_v4 = vld [vmem:[#allocation32 + $0x1e0] sm:$0xff] }
0x2b87   :  { %v4125_v44 = vadd.f32 %v6044_v17, %v4067_v27 }
0x2b88   :  { %7346 = vmatpush1.bf16.msra.mxu0 %v7345_v50 }
0x2b89   :  { %7634 = vmatpush1.bf16.msra.mxu1 %v7633_v20  ;;  %7348 = vmatprep.subr.bf16.mxu0 %v7347_v28 }
0x2b8a   :  { %7636 = vmatprep.subr.bf16.mxu1 %v7635_v6 }
0x2b8c   :  { %7350 = vmatpush1.bf16.msra.mxu0 %v7349_v47  ;;  %v5533_v47 = vld [vmem:[#allocation32 + $0x80] sm:$0xff] }
0x2b8d   :  { %7638 = vmatpush1.bf16.msra.mxu1 %v7637_v21  ;;  %7352 = vmatprep.subr.bf16.mxu0 %v7351_v60  ;;  %v5534_v21 = vld [vmem:[#allocation32 + $0x88] sm:$0xff]  ;;  %v5565_v60 = vld [vmem:[#allocation32 + $0x180] sm:$0xff] }
0x2b8e   :  { %7640 = vmatprep.subr.bf16.mxu1 %v7639_v12  ;;  %v7651_v23 = vpack.c.bf16 %v5534_v21, %v5533_v47  ;;  %v5518_v12 = vld [vmem:[#allocation32 + $0x8] sm:$0xff]  ;;  %v7683_v58 = vpack.c.bf16 %v5566_v52, %v5565_v60  ;;  %v5555_v47 = vld [vmem:[#allocation32 + $0x130] sm:$0xff]  ;;  %v5556_v21 = vld [vmem:[#allocation32 + $0x138] sm:$0xff] }
0x2b8f   :  { %v7653_v55 = vpack.c.bf16 %v5518_v12, %v5517_v45  ;;  %v5541_v60 = vld [vmem:[#allocation32 + $0xc0] sm:$0xff]  ;;  %v5542_v52 = vld [vmem:[#allocation32 + $0xc8] sm:$0xff] }
0x2b90   :  { %7354 = vmatpush1.bf16.msra.mxu0 %v7353_v53  ;;  %v7685_v53 = vpack.c.bf16 %v5550_v25, %v5549_v13  ;;  %v5573_v45 = vld [vmem:[#allocation32 + $0x1c0] sm:$0xff]  ;;  %v5574_v12 = vld [vmem:[#allocation32 + $0x1c8] sm:$0xff] }
0x2b91   :  { %7642 = vmatpush1.bf16.msra.mxu1 %v7641_v42  ;;  %7356 = vmatprep.subr.bf16.mxu0 %v7355_v54  ;;  %v5536_v42 = vld [vmem:[#allocation32 + $0x98] sm:$0xff]  ;;  %v5567_v54 = vld [vmem:[#allocation32 + $0x190] sm:$0xff]  ;;  %v5525_v13 = vld [vmem:[#allocation32 + $0x40] sm:$0xff] }
0x2b92   :  { %7644 = vmatprep.subr.bf16.mxu1 %v7643_v48  ;;  %v7655_v46 = vpack.c.bf16 %v5536_v42, %v5535_v11  ;;  %v7687_v51 = vpack.c.bf16 %v5568_v32, %v5567_v54  ;;  %v5519_v48 = vld [vmem:[#allocation32 + $0x10] sm:$0xff]  ;;  %v5526_v25 = vld [vmem:[#allocation32 + $0x48] sm:$0xff]  ;;  %v5557_v11 = vld [vmem:[#allocation32 + $0x140] sm:$0xff] }
0x2b93   :  { %v7657_v56 = vpack.c.bf16 %v5520_v57, %v5519_v48  ;;  %v5558_v42 = vld [vmem:[#allocation32 + $0x148] sm:$0xff]  ;;  %v5543_v54 = vld [vmem:[#allocation32 + $0xd0] sm:$0xff]  ;;  %v5544_v32 = vld [vmem:[#allocation32 + $0xd8] sm:$0xff] }
0x2b94   :  { %7358 = vmatpush1.bf16.msra.mxu0 %v7357_v38  ;;  %v5538_v38 = vld [vmem:[#allocation32 + $0xa8] sm:$0xff]  ;;  %v5575_v48 = vld [vmem:[#allocation32 + $0x1d0] sm:$0xff]  ;;  %v5576_v57 = vld [vmem:[#allocation32 + $0x1d8] sm:$0xff] }
0x2b95   :  { %7646 = vmatpush1.bf16.msra.mxu1 %v7645_v63  ;;  %7360 = vmatprep.subr.bf16.mxu0 %v7359_v15  ;;  %v7689_v63 = vpack.c.bf16 %v5552_v40, %v5551_v59  ;;  %v7659_v15 = vpack.c.bf16 %v5538_v38, %v5537_v19  ;;  %v5527_v59 = vld [vmem:[#allocation32 + $0x50] sm:$0xff]  ;;  %v5528_v40 = vld [vmem:[#allocation32 + $0x58] sm:$0xff] }
0x2b96   :  { %7648 = vmatprep.subr.bf16.mxu1 %v7647_v18  ;;  %v5521_v18 = vld [vmem:[#allocation32 + $0x20] sm:$0xff]  ;;  %v5559_v19 = vld [vmem:[#allocation32 + $0x150] sm:$0xff]  ;;  %v5560_v38 = vld [vmem:[#allocation32 + $0x158] sm:$0xff] }
0x2b98   :  { %7362 = vmatpush1.bf16.msra.mxu0 %v7361_v29  ;;  %v5554_v29 = vld [vmem:[#allocation32 + $0x128] sm:$0xff] }
0x2b99   :  { %7650 = vmatpush1.bf16.msra.mxu1 %v7649_v49  ;;  %7652 = vmatprep.subr.bf16.mxu0 %v7651_v23  ;;  %v7661_v49 = vpack.c.bf16 %v5522_v43, %v5521_v18  ;;  %v7693_v27 = vpack.c.bf16 %v5554_v29, %v5553_v1  ;;  %v7697_v23 = vpack.c.bf16 %v5556_v21, %v5555_v47  ;;  %v5578_v43 = vld [vmem:[#allocation32 + $0x1e8] sm:$0xff]  ;;  %v5529_v1 = vld [vmem:[#allocation32 + $0x60] sm:$0xff]  ;;  %v5465_v47 = vld [vmem:[#allocation29] sm:$0xf] }
0x2b9a   :  { %7684 = vmatprep.subr.bf16.mxu1 %v7683_v58  ;;  %v7667_v58 = vpack.c.bf16 %v5542_v52, %v5541_v60  ;;  %v7705_v18 = vpack.c.bf16 %v5560_v38, %v5559_v19  ;;  %v5530_v29 = vld [vmem:[#allocation32 + $0x68] sm:$0xff]  ;;  %v5491_v21 = vld [vmem:[#allocation30] sm:$0xf]  ;;  %v5474_v60 = vrot.slane %v5465_v47, %v9107_v34  ;;  %v5470_v52 = vrot.slane %v5465_v47, %v9115_v41 }
0x2b9b   :  { %5073 = vmatmul.mubr.f32.vlgmr.msra.gmra.mrb[20].mxu0 %v4125_v44 }
0x2b9c   :  { %5428 = vmatmul.mubr.f32.vlgmr.msra.gmra.mrb[24].mxu1 %v4125_v44  ;;  %7654 = vmatpush3.bf16.msra.mxu0 %v7653_v55  ;;  %v7699_v55 = vpack.c.bf16 %v5574_v12, %v5573_v45  ;;  %v5478_v45 = vrot.slane %v5465_v47, %v9576_v5 }
0x2b9d   :  { %7686 = vmatpush3.bf16.msra.mxu1 %v7685_v53  ;;  %7656 = vmatprep.subr.bf16.mxu0 %v7655_v46  ;;  %v7669_v53 = vpack.c.bf16 %v5526_v25, %v5525_v13  ;;  %v7701_v46 = vpack.c.bf16 %v5558_v42, %v5557_v11  ;;  %v5496_v13 = vrot.slane %v5491_v21, %v9115_v41 }
0x2b9e   :  { %7688 = vmatprep.subr.bf16.mxu1 %v7687_v51  ;;  %v7671_v51 = vpack.c.bf16 %v5544_v32, %v5543_v54  ;;  %v5504_v25 = vrot.slane %v5491_v21, %v9576_v5 }
0x2ba0   :  { %7658 = vmatpush3.bf16.msra.mxu0 %v7657_v56  ;;  %v7703_v56 = vpack.c.bf16 %v5576_v57, %v5575_v48 }
0x2ba1   :  { %7690 = vmatpush3.bf16.msra.mxu1 %v7689_v63  ;;  %7660 = vmatprep.subr.bf16.mxu0 %v7659_v15  ;;  %v7673_v63 = vpack.c.bf16 %v5528_v40, %v5527_v59  ;;  %v5545_v15 = vld [vmem:[#allocation32 + $0xe0] sm:$0xff] }
0x2ba2   :  { %7692 = vmatprep.subr.bf16.mxu1 %v7691_v26  ;;  %v7675_v26 = vpack.c.bf16 %v5546_v9, %v5545_v15  ;;  %v5758_v15 = vld [vmem:[%s9872_s11 + $0x8] sm:$0xff]  ;;  %v5759_v9 = vld [vmem:[%s9872_s11 + $0x10] sm:$0xff] }
0x2ba4   :  { %7662 = vmatpush3.bf16.msra.mxu0 %v7661_v49  ;;  %v7707_v49 = vpack.c.bf16 %v5578_v43, %v5577_v4  ;;  %v5762_v43 = vld [vmem:[%s9872_s11 + $0x28] sm:$0xff] }
0x2ba5   :  { %7694 = vmatpush3.bf16.msra.mxu1 %v7693_v27  ;;  %v5561_v27 = vld [vmem:[#allocation32 + $0x160] sm:$0xff] }
0x2c6e   :  { %v5074_v61 = vpop.f32.mrb[20].mxu0 }
0x2c6f   :  { %v9765_v30 = vadd.f32 %v5074_v61, %v4707_v24  ;;  %v5429_v36 = vpop.f32.mrb[24].mxu1  ;;  %v5076_v50 = vpop.f32.mrb[21].mxu0 }
0x2c70   :  { %v9767_v20 = vadd.f32 %v5429_v36, %v4715_v62  ;;  %v9769_v28 = vadd.f32 %v5076_v50, %v4711_v39  ;;  %v5431_v31 = vpop.f32.mrb[25].mxu1 }
0x2c71   :  { %v5434_v16 = vmax.f32 %v9765_v30, 0.0  ;;  %v7788_v6 = vadd.f32 %v5431_v31, %v4719_v37  ;;  %v5539_v31 = vld [vmem:[#allocation32 + $0xb0] sm:$0xff] }
0x2c72   :  { %v5435_v7 = vmax.f32 %v9769_v28, 0.0  ;;  %v5436_v22 = vmax.f32 %v9767_v20, 0.0 }
0x2c73   :  { %v5437_v35 = vmax.f32 %v7788_v6, 0.0 }
0x2c74   :  { %v5438_v14 = vadd.f32 %v5435_v7, %v5434_v16 }
0x2c76   :  { %v5439_v10 = vadd.f32 %v5438_v14, %v5436_v22  ;;  %v5523_v14 = vld [vmem:[#allocation32 + $0x30] sm:$0xff] }
0x2c78   :  { %v5440_v33 = vadd.f32 %v5439_v10, %v5437_v35 }
0x2c7a   :  { %5441 = vadd.xlane.f32.xlu0 %v5440_v33 }
0x2d07   :  { %v5442_v17 = vpop.xlane.xlu0 %5441 }
0x2d08   :  { %v5444_v44 = vmul.f32 0.001953125, %v5442_v17  ;;  %v5562_v17 = vld [vmem:[#allocation32 + $0x168] sm:$0xff] }
0x2d0a   :  { %v9774_v2 = vsub.f32 %v5434_v16, %v5444_v44  ;;  %v9776_v24 = vsub.f32 %v5435_v7, %v5444_v44  ;;  %v9778_v62 = vsub.f32 %v5436_v22, %v5444_v44  ;;  %v9780_v39 = vsub.f32 %v5437_v35, %v5444_v44  ;;  %v5540_v16 = vld [vmem:[#allocation32 + $0xb8] sm:$0xff]  ;;  %v5571_v7 = vld [vmem:[#allocation32 + $0x1b0] sm:$0xff] }
0x2d0b   :  { %v7663_v6 = vpack.c.bf16 %v5540_v16, %v5539_v31  ;;  %v5572_v22 = vld [vmem:[#allocation32 + $0x1b8] sm:$0xff]  ;;  %v5547_v44 = vld [vmem:[#allocation32 + $0xf0] sm:$0xff] }
0x2d0c   :  { %v5449_v61 = vmul.f32 %v9774_v2, %v9774_v2  ;;  %v5450_v37 = vmul.f32 %v9776_v24, %v9776_v24  ;;  %v5451_v30 = vmul.f32 %v9778_v62, %v9778_v62  ;;  %v5452_v50 = vmul.f32 %v9780_v39, %v9780_v39  ;;  %v5524_v35 = vld [vmem:[#allocation32 + $0x38] sm:$0xff] }
0x2d0d   :  { %v7695_v10 = vpack.c.bf16 %v5572_v22, %v5571_v7  ;;  %v7665_v33 = vpack.c.bf16 %v5524_v35, %v5523_v14  ;;  %7664 = vmatprep.subr.bf16.mxu0 %v7663_v6  ;;  %v5532_v31 = vld [vmem:[#allocation32 + $0x78] sm:$0xff]  ;;  %v5563_v7 = vld [vmem:[#allocation32 + $0x170] sm:$0xff] }
0x2d0e   :  { %v5453_v36 = vadd.f32 %v5450_v37, %v5449_v61  ;;  %v5548_v61 = vld [vmem:[#allocation32 + $0xf8] sm:$0xff]  ;;  %v5579_v37 = vld [vmem:[#allocation32 + $0x1f0] sm:$0xff] }
0x2d0f   :  { %7696 = vmatprep.subr.bf16.mxu1 %v7695_v10  ;;  %7666 = vmatpush3.bf16.msra.mxu0 %v7665_v33  ;;  %v5564_v6 = vld [vmem:[#allocation32 + $0x178] sm:$0xff] }
0x2d10   :  { %v5454_v20 = vadd.f32 %v5453_v36, %v5451_v30  ;;  %7698 = vmatpush3.bf16.msra.mxu1 %v7697_v23  ;;  %7668 = vmatprep.subr.bf16.mxu0 %v7667_v58  ;;  %v5580_v30 = vld [vmem:[#allocation32 + $0x1f8] sm:$0xff]  ;;  %v7677_v36 = vpack.c.bf16 %v5530_v29, %v5529_v1  ;;  %v7713_v14 = vpack.c.bf16 %v5564_v6, %v5563_v7  ;;  %v5770_v7 = vld [vmem:[%s9872_s11 + $0x68] sm:$0xff] }
0x2d11   :  { %7700 = vmatprep.subr.bf16.mxu1 %v7699_v55  ;;  %v7711_v16 = vpack.c.bf16 %v5580_v30, %v5579_v37  ;;  %v5482_v23 = vrot.slane %v5465_v47, %v9581_v3  ;;  %v5500_v58 = vrot.slane %v5491_v21, %v9107_v34  ;;  %v5508_v55 = vrot.slane %v5491_v21, %v9581_v3  ;;  %v5765_v37 = vld [vmem:[%s9872_s11 + $0x40] sm:$0xff] }
0x2d12   :  { %v5455_v28 = vadd.f32 %v5454_v20, %v5452_v50  ;;  %v7709_v50 = vpack.c.bf16 %v5562_v17, %v5561_v27  ;;  %v7679_v20 = vpack.c.bf16 %v5548_v61, %v5547_v44  ;;  %v5763_v44 = vld [vmem:[%s9872_s11 + $0x30] sm:$0xff]  ;;  %v5764_v61 = vld [vmem:[%s9872_s11 + $0x38] sm:$0xff] }
0x2d13   :  { %7670 = vmatpush3.bf16.msra.mxu0 %v7669_v53  ;;  %v7725_v30 = vpack.c.bf16 %v5764_v61, %v5763_v44 }
0x2d14   :  { %5456 = vadd.xlane.f32.xlu0 %v5455_v28  ;;  %7702 = vmatpush3.bf16.msra.mxu1 %v7701_v46  ;;  %v5531_v28 = vld [vmem:[#allocation32 + $0x70] sm:$0xff] }
0x2d15   :  { %7672 = vmatprep.subr.bf16.mxu0 %v7671_v51  ;;  %7704 = vmatprep.subr.bf16.mxu1 %v7703_v56  ;;  %v7681_v22 = vpack.c.bf16 %v5532_v31, %v5531_v28  ;;  %v5768_v28 = vld [vmem:[%s9872_s11 + $0x58] sm:$0xff] }
0x2d17   :  { %7674 = vmatpush3.bf16.msra.mxu0 %v7673_v63  ;;  %v5757_v63 = vld [vmem:[%s9872_s11] sm:$0xff] }
0x2d18   :  { %7706 = vmatpush3.bf16.msra.mxu1 %v7705_v18  ;;  %7676 = vmatprep.subr.bf16.mxu0 %v7675_v26  ;;  %v7716_v4 = vpack.c.bf16 %v5758_v15, %v5757_v63  ;;  %v5760_v18 = vld [vmem:[%s9872_s11 + $0x18] sm:$0xff]  ;;  %v5761_v26 = vld [vmem:[%s9872_s11 + $0x20] sm:$0xff] }
0x2d19   :  { %7708 = vmatprep.subr.bf16.mxu1 %v7707_v49  ;;  %v7722_v1 = vpack.c.bf16 %v5762_v43, %v5761_v26 }
0x2d1b   :  { %7678 = vmatpush3.bf16.msra.mxu0 %v7677_v36  ;;  %v5766_v36 = vld [vmem:[%s9872_s11 + $0x48] sm:$0xff] }
0x2d1c   :  { %7710 = vmatpush3.bf16.msra.mxu1 %v7709_v50  ;;  %7680 = vmatprep.subr.bf16.mxu0 %v7679_v20  ;;  %v7728_v50 = vpack.c.bf16 %v5766_v36, %v5765_v37  ;;  %v5767_v20 = vld [vmem:[%s9872_s11 + $0x50] sm:$0xff] }
0x2d1d   :  { %7712 = vmatprep.subr.bf16.mxu1 %v7711_v16  ;;  %v7731_v31 = vpack.c.bf16 %v5768_v28, %v5767_v20  ;;  %v5769_v16 = vld [vmem:[%s9872_s11 + $0x60] sm:$0xff] }
0x2d1e   :  { %v7734_v6 = vpack.c.bf16 %v5770_v7, %v5769_v16 }
0x2d1f   :  { %7682 = vmatpush3.bf16.msra.mxu0 %v7681_v22  ;;  %v5771_v22 = vld [vmem:[%s9872_s11 + $0x70] sm:$0xff] }
0x2d20   :  { %7714 = vmatpush3.bf16.msra.mxu1 %v7713_v14  ;;  %7715 = vmatprep.subr.bf16.mxu0 %v8753_v8  ;;  %v5772_v14 = vld [vmem:[%s9872_s11 + $0x78] sm:$0xff] }
0x2d21   :  { %7739 = vmatprep.subr.bf16.mxu1 %v8753_v8 }
0x2da1   :  { %v5457_v35 = vpop.xlane.xlu0 %5456 }
0x2da2   :  { %v5458_v10 = vmul.f32 0.001953125, %v5457_v35  ;;  %v7737_v35 = vpack.c.bf16 %v5772_v14, %v5771_v22 }
0x2da4   :  { %v5459_v33 = vadd.f32 1e-05, %v5458_v10  ;;  %v5851_v10 = vld [vmem:[#allocation39] sm:$0xff] }
0x2da6   :  { %8106 = vrsqrt.f32 %v5459_v33  ;;  %v5852_v33 = vld [vmem:[#allocation39 + $0x8] sm:$0xff] }
0x2da7   :  { %v7740_v47 = vpack.c.bf16 %v5852_v33, %v5851_v10 }
0x2db0   :  { %v8107_v12 = vpop.eup %8106 }
0x2db1   :  { %v5462_v11 = vmul.f32 %v8107_v12, %v9776_v24  ;;  %v5464_v53 = vmul.f32 %v8107_v12, %v9780_v39  ;;  %v5461_v42 = vmul.f32 %v8107_v12, %v9774_v2  ;;  %v5463_v54 = vmul.f32 %v8107_v12, %v9778_v62  ;;  %v6045_v2 = vld [vmem:[#allocation33] ss:$0 sm:$0xff] }
0x2db3   :  { %v5488_v32 = vmul.f32 %v5474_v60, %v5462_v11  ;;  %v5490_v46 = vmul.f32 %v5482_v23, %v5464_v53  ;;  %v5487_v51 = vmul.f32 %v5470_v52, %v5461_v42  ;;  %v5489_v48 = vmul.f32 %v5478_v45, %v5463_v54  ;;  %v6046_v45 = vld [vmem:[#allocation35] ss:$0 sm:$0xff]  ;;  %v6048_v42 = vld [vmem:[#allocation38] ss:$0 sm:$0xff] }
0x2db4   :  { %v5854_v11 = vld [vmem:[#allocation39 + $0x18] sm:$0xff] }
0x2db5   :  { %v5514_v57 = vadd.f32 %v5500_v58, %v5488_v32  ;;  %v5516_v34 = vadd.f32 %v5508_v55, %v5490_v46  ;;  %v5513_v59 = vadd.f32 %v5496_v13, %v5487_v51  ;;  %v5515_v3 = vadd.f32 %v5504_v25, %v5489_v48  ;;  %v6047_v58 = vld [vmem:[#allocation36] ss:$0 sm:$0xff]  ;;  %v5853_v25 = vld [vmem:[#allocation39 + $0x10] sm:$0xff]  ;;  %v6049_v51 = vld [vmem:[#allocation41] ss:$0 sm:$0xff] }
0x2db6   :  { %v7743_v53 = vpack.c.bf16 %v5854_v11, %v5853_v25 }
0x2db7   :  { %5652 = vmatprep.mubr.f32.mxu0 %v5514_v57  ;;  %5722 = vmatprep.mubr.f32.mxu1 %v5516_v34 }
0x2db8   :  { %5653 = vmatmul.mubr.f32.vlgmr.msra.gmra.mrb[22].mxu0 %v5513_v59  ;;  %5723 = vmatmul.mubr.f32.vlgmr.msra.gmra.mrb[26].mxu1 %v5515_v3 }
0x2db9   :  { %6213 = vmatprep.mubr.msk.f32.mxu0 %vm8754_vm6, %v8752_v0  ;;  %6224 = vmatprep.mubr.msk.f32.mxu1 %vm8754_vm6, %v8752_v0  ;;  %v7719_v0 = vpack.c.bf16 %v5760_v18, %v5759_v9 }
0x2dba   :  { %7717 = vmatpush3.bf16.msra.mxu0 %v7716_v4  ;;  %7741 = vmatpush3.bf16.msra.mxu1 %v7740_v47 }
0x2dbb   :  { %7718 = vmatprep.subr.bf16.mxu0 %v8753_v8  ;;  %7742 = vmatprep.subr.bf16.mxu1 %v8753_v8 }
0x2dbe   :  { %7720 = vmatpush3.bf16.msra.mxu0 %v7719_v0  ;;  %7744 = vmatpush3.bf16.msra.mxu1 %v7743_v53 }
0x2dbf   :  { %7721 = vmatprep.subr.bf16.mxu0 %v8753_v8 }
0x2dc2   :  { %7723 = vmatpush3.bf16.msra.mxu0 %v7722_v1 }
0x2dc3   :  { %7724 = vmatprep.subr.bf16.mxu0 %v8753_v8 }
0x2dc6   :  { %7726 = vmatpush3.bf16.msra.mxu0 %v7725_v30 }
0x2dc7   :  { %7727 = vmatprep.subr.bf16.mxu0 %v8753_v8 }
0x2dca   :  { %7729 = vmatpush3.bf16.msra.mxu0 %v7728_v50 }
0x2dcb   :  { %7730 = vmatprep.subr.bf16.mxu0 %v8753_v8 }
0x2dce   :  { %7732 = vmatpush3.bf16.msra.mxu0 %v7731_v31 }
0x2dcf   :  { %7733 = vmatprep.subr.bf16.mxu0 %v8753_v8 }
0x2dd2   :  { %7735 = vmatpush3.bf16.msra.mxu0 %v7734_v6 }
0x2dd3   :  { %7736 = vmatprep.subr.bf16.mxu0 %v8753_v8 }
0x2dd6   :  { %7738 = vmatpush3.bf16.msra.mxu0 %v7737_v35 }
0x2e8b   :  { %v6095_v41 = vpop.f32.mrb[22].mxu0  ;;  %v6130_v5 = vpop.f32.mrb[26].mxu1 }
0x2e8c   :  { %v6096_v24 = vpop.f32.mrb[23].mxu0  ;;  %v6131_v62 = vpop.f32.mrb[27].mxu1 }
0x2e8d   :  { %v6097_v39 = vadd.f32 %v6096_v24, %v6095_v41  ;;  %v6132_v56 = vadd.f32 %v6131_v62, %v6130_v5 }
0x2e8f   :  { %v5655_v40 = vadd.f32 %v6097_v39, %v6045_v2 }
0x2e91   :  { %v5725_v19 = vadd.f32 %v6132_v56, %v5655_v40 }
0x2e93   :  { %v5728_v38 = vmax.f32 %v5725_v19, 0.0 }
0x2e95   :  { %5729 = vadd.xlane.f32.xlu1 %v5728_v38 }
0x2f22   :  { %v5730_v29 = vpop.xlane.xlu1 %5729 }
0x2f23   :  { %v5732_v49 = vmul.f32 0.0078125, %v5730_v29 }
0x2f25   :  { %v5733_v27 = vsub.f32 %v5728_v38, %v5732_v49 }
0x2f27   :  { %v5734_v17 = vmul.f32 %v5733_v27, %v5733_v27 }
0x2f29   :  { %5735 = vadd.xlane.f32.xlu0 %v5734_v17 }
0x2fb6   :  { %v5736_v21 = vpop.xlane.xlu0 %5735 }
0x2fb7   :  { %v5737_v60 = vmul.f32 0.0078125, %v5736_v21 }
0x2fb9   :  { %v5738_v23 = vadd.f32 1e-05, %v5737_v60 }
0x2fbb   :  { %8108 = vrsqrt.f32 %v5738_v23 }
0x2fc5   :  { %v8109_v52 = vpop.eup %8108 }
0x2fc6   :  { %v5740_v12 = vmul.f32 %v8109_v52, %v5733_v27 }
0x2fc8   :  { %v5748_v55 = vmul.f32 %v6046_v45, %v5740_v12 }
0x2fca   :  { %v5756_v13 = vadd.f32 %v6047_v58, %v5748_v55 }
0x2fcc   :  { %6214 = vmatmul.mubr.f32.vlgmr.msra.gmra.mrb[24].mxu0 %v5756_v13 }
0x309f   :  { %v5846_v54 = vpop.f32.mrb[24].mxu0 }
0x30a0   :  { %v5847_v32 = vadd.f32 %v6048_v42, %v5846_v54  ;;  %v6215_v8 = vpop.f32.mrb[25].mxu0 }
0x30a2   :  { %v5850_v46 = vmax.f32 %v5847_v32, 0.0 }
0x30a4   :  { %6225 = vmatmul.mubr.msk.f32.vlgmr.msra.gmra.mrb[28].mxu1 %vm755_vm2, %v5850_v46 }
0x3177   :  { %v5931_v48 = vpop.f32.mrb[28].mxu1 }
0x3178   :  { %v5932_v57 = vadd.f32 %v6049_v51, %v5931_v48  ;;  %v6226_v34 = vpop.f32.mrb[29].mxu1 }
0x317a   :  { %5935 = vst [vmem:[%s8914_s17] sm:$0xff] %v5932_v57 }
0x317b   :  { %5940 = vsyncpa [#allocation5], 1 }
0x317c   :  { %5941 = vsyncpa [#allocation7], 1 }
0x317d   :  { %5942 = vsyncpa [#allocation10], 1 }
0x317e   :  { %5943 = vsyncpa [#allocation13], 1 }
0x317f   :  { %5944 = vsyncpa [#allocation16], 1 }
0x3180   :  { %5945 = vsyncpa [#allocation19], 1 }
0x3181   :  { %5946 = vsyncpa [#allocation22], 1 }
0x3182   :  { %5947 = vsyncpa [#allocation25], 1 }
0x3183   :  { %5948 = vsyncpa [#allocation28], 1 }
0x3184   :  { %5949 = vsyncpa [#allocation31], 1 }
0x3185   :  { %5950 = vsyncpa [#allocation34], 1 }
0x3186   :  { %5951 = vsyncpa [#allocation37], 1 }
0x3187   :  { %5952 = vsyncpa [#allocation40], 1 }

</bundles_post_ra>
